<compile_context>
chip_gen: v7x
topology: tpu7x:2x2x1
jax: 0.10.0
libtpu: 0.0.40
codegen_flags: <defaults>
</compile_context>

<pallas_src>
import jax
import jax.numpy as jnp
from jax.experimental import pallas as pl
from jax.experimental.pallas import tpu as pltpu

PAD = 4                       # shared zero-pad in H = max dilation
LPAD = 8                      # left zero-pad in W (sublane-aligned interior)
DILATIONS = (1, 2, 3, 4)      # d1..d4 of the ASPP module
BN_EPS = 1e-5


def scene_head_kernel(x_ref, wband_ref, bias_ref, wht_ref, bh_ref, out_ref,
                      xpad_ref):
    """One batch element per grid step.

    x_ref     : (1, H, W, Cin)   bf16  unpadded NHWC input block
    wband_ref : (4, 3, Cin, 3*Cr) bf16 per-(branch, ky) tap weights, BN scale folded,
                                       the 3 kx taps packed along the last axis
    bias_ref  : (4, 1, Cr)       f32   folded conv-bias + BN bias
    wht_ref   : (L, 4*Cr)        f32   1x1 head weights, output-major
    bh_ref    : (L, 1)           f32   head bias
    out_ref   : (1, L, H*W)      f32   lane-dense, channel-major output
    xpad_ref  : (Hp, Wp2, Cin)   bf16  VMEM scratch, zero-padded input
    """
    _, H, W, Cin = x_ref.shape
    Hp, Wp2, _ = xpad_ref.shape
    Cr = bias_ref.shape[-1]
    HW = H * W
    zdt = xpad_ref.dtype

    # ---- zero ONLY the pad border strips; interior is fully overwritten below.
    # (re-done every step: scratch is per-core under the "parallel" batch axis)
    xpad_ref[0:PAD, :, :] = jnp.zeros((PAD, Wp2, Cin), zdt)
    xpad_ref[PAD + H:, :, :] = jnp.zeros((Hp - PAD - H, Wp2, Cin), zdt)
    xpad_ref[PAD:PAD + H, 0:LPAD, :] = jnp.zeros((H, LPAD, Cin), zdt)
    xpad_ref[PAD:PAD + H, LPAD + W:, :] = jnp.zeros((H, Wp2 - LPAD - W, Cin), zdt)
    # interior store (W starts at sublane offset LPAD=8)
    xpad_ref[PAD:PAD + H, LPAD:LPAD + W, :] = x_ref[0]

    wht_all = wht_ref[...]                                            # (L, 4*Cr) f32

    z = None
    for bi, d in enumerate(DILATIONS):
        # --- per-ky row-band matmuls, accumulated in the padded/column-packed
        # --- domain: acc[p, kx*Cr + o] with p = y*Wp2 + wcol.
        acc = None
        for ky in range(3):
            oy = PAD - d + d * ky
            # contiguous row band; merging (H, Wp2) leading dims is relayout-free
            lhs = xpad_ref[oy:oy + H].reshape(H * Wp2, Cin)           # bf16
            part = jax.lax.dot_general(
                lhs, wband_ref[bi, ky],
                dimension_numbers=(((1,), (0,)), ((), ())),
                preferred_element_type=jnp.float32)                   # (H*Wp2, 3*Cr) f32
            acc = part if acc is None else acc + part

        # --- kx shifts applied in the OUTPUT domain (Cr-wide slices) ---
        acc3 = acc.reshape(H, Wp2, 3 * Cr)                            # free split
        fsum = None
        for kx in range(3):
            ox = LPAD - d + d * kx
            piece = acc3[:, ox:ox + W, kx * Cr:(kx + 1) * Cr]         # (H, W, Cr)
            fsum = piece if fsum is None else fsum + piece

        # BN scale pre-folded into the taps; only bias + ReLU remain (f32).
        feat = jnp.maximum(fsum + bias_ref[bi], 0.0).reshape(HW, Cr)  # (HW, Cr) f32

        # --- head: accumulate this branch's contribution; no feats concat,
        # --- only a small (HW, Cr) operand feeds the MXU. Result stays (L, HW)
        # --- lane-dense and channel-major.
        zp = jax.lax.dot_general(
            wht_all[:, bi * Cr:(bi + 1) * Cr], feat,
            dimension_numbers=(((1,), (1,)), ((), ())),
            preferred_element_type=jnp.float32)                       # (L, HW) f32
        z = zp if z is None else z + zp

    out_ref[0] = (z + bh_ref[...]).astype(out_ref.dtype)


def scene_head_forward(x_nchw, wband, bias, wht, bh):
    """Pallas-backed forward pass. Input/output in PyTorch NCHW layout."""
    N, C, H, W = x_nchw.shape
    L = wht.shape[0]
    Hp = H + 2 * PAD
    # padded width: >= LPAD + W + PAD, rounded up to a multiple of 16 (bf16 sublane tile)
    Wp2 = ((LPAD + W + PAD + 15) // 16) * 16

    # TODO(synk): fold this relayout + bf16 cast into the upstream producer.
    x_nhwc = jnp.transpose(x_nchw.astype(jnp.bfloat16), (0, 2, 3, 1))  # NCHW -> NHWC

    out_flat = pl.pallas_call(
        scene_head_kernel,
        out_shape=jax.ShapeDtypeStruct((N, L, H * W), jnp.float32),
        grid_spec=pltpu.PrefetchScalarGridSpec(
            num_scalar_prefetch=0,
            grid=(N,),
            in_specs=[
                pl.BlockSpec((1, H, W, C), lambda n: (n, 0, 0, 0)),
                pl.BlockSpec(wband.shape, lambda n: (0, 0, 0, 0)),
                pl.BlockSpec(bias.shape, lambda n: (0, 0, 0)),
                pl.BlockSpec(wht.shape, lambda n: (0, 0)),
                pl.BlockSpec(bh.shape, lambda n: (0, 0)),
            ],
            out_specs=pl.BlockSpec((1, L, H * W), lambda n: (n, 0, 0)),
            scratch_shapes=[pltpu.VMEM((Hp, Wp2, C), jnp.bfloat16)],
        ),
        compiler_params=pltpu.CompilerParams(
            dimension_semantics=("parallel",),
            vmem_limit_bytes=32 * 1024 * 1024),
    )(x_nhwc, wband, bias, wht, bh)

    # (N, L, H*W) is already channel-major; reshape is metadata-only.
    return out_flat.reshape(N, L, H, W)                               # NCHW


def init_params(key, features, num_landmarks, reduction=4):
    """Deterministic synthetic parameters matching the PyTorch module's shapes."""
    C = features
    Cr = features // reduction
    L = num_landmarks
    keys = jax.random.split(key, 32)
    ki = iter(range(32))

    branches_raw = []
    for _ in DILATIONS:
        w = jax.random.normal(keys[next(ki)], (Cr, C, 3, 3), jnp.float32) * 0.05
        cb = jax.random.normal(keys[next(ki)], (Cr,), jnp.float32) * 0.05
        gamma = 1.0 + 0.1 * jax.random.normal(keys[next(ki)], (Cr,), jnp.float32)
        beta = 0.1 * jax.random.normal(keys[next(ki)], (Cr,), jnp.float32)
        rmean = 0.1 * jax.random.normal(keys[next(ki)], (Cr,), jnp.float32)
        rvar = 0.5 + jax.random.uniform(keys[next(ki)], (Cr,), jnp.float32)
        branches_raw.append((w, cb, gamma, beta, rmean, rvar))

    wh_raw = jax.random.normal(keys[next(ki)], (L, 4 * Cr, 1, 1), jnp.float32) * 0.05
    bh_raw = jax.random.normal(keys[next(ki)], (L,), jnp.float32) * 0.05

    # --- convert to kernel-friendly tensors (BN scale folded into weights) ---
    wband_list, bias_list = [], []
    for (w, cb, g, be, rm, rv) in branches_raw:
        s = g / jnp.sqrt(rv + BN_EPS)                                 # (Cr,)
        ky_blocks = []
        for ky in range(3):
            taps = [w[:, :, ky, kx].T * s[None, :] for kx in range(3)]  # (C, Cr) each
            ky_blocks.append(jnp.concatenate(taps, axis=1))           # (C, 3*Cr)
        wband_list.append(jnp.stack(ky_blocks, axis=0))               # (3, C, 3*Cr)
        bias_list.append(((cb - rm) * s + be)[None, :])               # (1, Cr)
    wband = jnp.stack(wband_list, axis=0).astype(jnp.bfloat16)        # (4, 3, C, 3*Cr)
    bias = jnp.stack(bias_list, axis=0)                               # (4, 1, Cr) f32
    wht = wh_raw.reshape(L, 4 * Cr)                                   # (L, 4*Cr) f32
    bh = bh_raw.reshape(L, 1)                                         # (L, 1)   f32

    return (wband, bias, wht, bh), (branches_raw, wh_raw, bh_raw)


def reference_forward(x_nchw, branches_raw, wh_raw, bh_raw):
    """Pure-JAX f32 reference mirroring the PyTorch forward (eval-mode BN)."""
    feats = []
    for d, (w, cb, g, be, rm, rv) in zip(DILATIONS, branches_raw):
        y = jax.lax.conv_general_dilated(
            x_nchw, w, window_strides=(1, 1), padding=((d, d), (d, d)),
            rhs_dilation=(d, d),
            dimension_numbers=('NCHW', 'OIHW', 'NCHW'))
        y = y + cb[None, :, None, None]
        y = (y - rm[None, :, None, None]) / jnp.sqrt(rv + BN_EPS)[None, :, None, None]
        y = y * g[None, :, None, None] + be[None, :, None, None]
        feats.append(jnp.maximum(y, 0.0))
    ycat = jnp.concatenate(feats, axis=1)
    z = jax.lax.conv_general_dilated(
        ycat, wh_raw, window_strides=(1, 1), padding='VALID',
        dimension_numbers=('NCHW', 'OIHW', 'NCHW'))
    return z + bh_raw[None, :, None, None]


if __name__ == "__main__":
    # small shapes consistent with the module: features divisible by reduction=4
    N, FEATURES, H, W = 2, 32, 16, 16
    NUM_LANDMARKS = 16

    key = jax.random.PRNGKey(0)
    kx, kp = jax.random.split(key)
    x = jax.random.normal(kx, (N, FEATURES, H, W), jnp.float32)

    (wband, bias, wht, bh), (branches_raw, wh_raw, bh_raw) = init_params(
        kp, FEATURES, NUM_LANDMARKS, reduction=4)

    out = scene_head_forward(x, wband, bias, wht, bh)
    out = jax.block_until_ready(out)

    ref = reference_forward(x, branches_raw, wh_raw, bh_raw)
    ref = jax.block_until_ready(ref)

    assert out.shape == (N, NUM_LANDMARKS, H, W), out.shape
    # bf16 branch-conv operands (f32 accumulation, f32 head) -> slightly looser tol
    assert jnp.allclose(out, ref, rtol=1e-2, atol=1e-2), (
        float(jnp.max(jnp.abs(out - ref))))

    print("KERNEL_OK")
</pallas_src>

<mosaic_0001>
module attributes {stable_mosaic.version = 11 : i64} {
  func.func @scene_head_kernel(%arg0: i32, %arg1: memref<1x16x16x32xbf16, #tpu.memory_space<vmem>>, %arg2: memref<4x3x32x24xbf16, #tpu.memory_space<vmem>>, %arg3: memref<4x1x8xf32, #tpu.memory_space<vmem>>, %arg4: memref<16x32xf32, #tpu.memory_space<vmem>>, %arg5: memref<16x1xf32, #tpu.memory_space<vmem>>, %arg6: memref<1x16x256xf32, #tpu.memory_space<vmem>>, %arg7: memref<24x32x32xbf16, #tpu.memory_space<vmem>>) attributes {dimension_semantics = [#tpu.dimension_semantics<parallel>], iteration_bounds = array<i64: 2>, scalar_prefetch = 0 : i64, scratch_operands = 1 : i64, tpu.core_type = #tpu.core_type<tc>, window_params = [{transform_indices = @transform_0, window_bounds = array<i64: 1, 16, 16, 32>}, {pipeline_mode = #tpu.pipeline_mode<synchronous>, transform_indices = @transform_1, window_bounds = array<i64: 4, 3, 32, 24>}, {pipeline_mode = #tpu.pipeline_mode<synchronous>, transform_indices = @transform_2, window_bounds = array<i64: 4, 1, 8>}, {pipeline_mode = #tpu.pipeline_mode<synchronous>, transform_indices = @transform_3, window_bounds = array<i64: 16, 32>}, {pipeline_mode = #tpu.pipeline_mode<synchronous>, transform_indices = @transform_4, window_bounds = array<i64: 16, 1>}, {transform_indices = @transform_5, window_bounds = array<i64: 1, 16, 256>}]} {
    %cst = arith.constant 0.000000e+00 : bf16
    %0 = vector.broadcast %cst : bf16 to vector<4x32x32xbf16>
    %c0 = arith.constant 0 : index
    %c0_0 = arith.constant 0 : index
    %c0_1 = arith.constant 0 : index
    %1 = vector.load %arg7[%c0, %c0_0, %c0_1] : memref<24x32x32xbf16, #tpu.memory_space<vmem>>, vector<4x32x32xbf16>
    tpu.vector_store %arg7[%c0, %c0_0, %c0_1], %0 {strides = array<i32>} : memref<24x32x32xbf16, #tpu.memory_space<vmem>>, vector<4x32x32xbf16>,
    %cst_2 = arith.constant 0.000000e+00 : bf16
    %2 = vector.broadcast %cst_2 : bf16 to vector<4x32x32xbf16>
    %c20 = arith.constant 20 : index
    %c0_3 = arith.constant 0 : index
    %c0_4 = arith.constant 0 : index
    %3 = vector.load %arg7[%c20, %c0_3, %c0_4] : memref<24x32x32xbf16, #tpu.memory_space<vmem>>, vector<4x32x32xbf16>
    tpu.vector_store %arg7[%c20, %c0_3, %c0_4], %2 {strides = array<i32>} : memref<24x32x32xbf16, #tpu.memory_space<vmem>>, vector<4x32x32xbf16>,
    %cst_5 = arith.constant 0.000000e+00 : bf16
    %4 = vector.broadcast %cst_5 : bf16 to vector<16x8x32xbf16>
    %c4 = arith.constant 4 : index
    %c0_6 = arith.constant 0 : index
    %c0_7 = arith.constant 0 : index
    %5 = vector.load %arg7[%c4, %c0_6, %c0_7] : memref<24x32x32xbf16, #tpu.memory_space<vmem>>, vector<16x8x32xbf16>
    tpu.vector_store %arg7[%c4, %c0_6, %c0_7], %4 {strides = array<i32>} : memref<24x32x32xbf16, #tpu.memory_space<vmem>>, vector<16x8x32xbf16>,
    %cst_8 = arith.constant 0.000000e+00 : bf16
    %6 = vector.broadcast %cst_8 : bf16 to vector<16x8x32xbf16>
    %c4_9 = arith.constant 4 : index
    %c24 = arith.constant 24 : index
    %c0_10 = arith.constant 0 : index
    %7 = vector.load %arg7[%c4_9, %c24, %c0_10] : memref<24x32x32xbf16, #tpu.memory_space<vmem>>, vector<16x8x32xbf16>
    tpu.vector_store %arg7[%c4_9, %c24, %c0_10], %6 {strides = array<i32>} : memref<24x32x32xbf16, #tpu.memory_space<vmem>>, vector<16x8x32xbf16>,
    %c0_11 = arith.constant 0 : index
    %c0_12 = arith.constant 0 : index
    %c0_13 = arith.constant 0 : index
    %c0_14 = arith.constant 0 : index
    %8 = vector.load %arg1[%c0_11, %c0_12, %c0_13, %c0_14] : memref<1x16x16x32xbf16, #tpu.memory_space<vmem>>, vector<1x16x16x32xbf16>
    %9 = vector.shape_cast %8 : vector<1x16x16x32xbf16> to vector<16x16x32xbf16>
    %c4_15 = arith.constant 4 : index
    %c8 = arith.constant 8 : index
    %c0_16 = arith.constant 0 : index
    %10 = vector.load %arg7[%c4_15, %c8, %c0_16] : memref<24x32x32xbf16, #tpu.memory_space<vmem>>, vector<16x16x32xbf16>
    tpu.vector_store %arg7[%c4_15, %c8, %c0_16], %9 {strides = array<i32>} : memref<24x32x32xbf16, #tpu.memory_space<vmem>>, vector<16x16x32xbf16>,
    %c0_17 = arith.constant 0 : index
    %c0_18 = arith.constant 0 : index
    %11 = vector.load %arg4[%c0_17, %c0_18] : memref<16x32xf32, #tpu.memory_space<vmem>>, vector<16x32xf32>
    %c3 = arith.constant 3 : index
    %c0_19 = arith.constant 0 : index
    %c0_20 = arith.constant 0 : index
    %12 = vector.load %arg7[%c3, %c0_19, %c0_20] : memref<24x32x32xbf16, #tpu.memory_space<vmem>>, vector<16x32x32xbf16>
    %13 = vector.shape_cast %12 : vector<16x32x32xbf16> to vector<512x32xbf16>
    %c0_21 = arith.constant 0 : index
    %c0_22 = arith.constant 0 : index
    %c0_23 = arith.constant 0 : index
    %c0_24 = arith.constant 0 : index
    %14 = vector.load %arg2[%c0_21, %c0_22, %c0_23, %c0_24] : memref<4x3x32x24xbf16, #tpu.memory_space<vmem>>, vector<1x1x32x24xbf16>
    %15 = vector.shape_cast %14 : vector<1x1x32x24xbf16> to vector<32x24xbf16>
    %cst_25 = arith.constant dense<0.000000e+00> : vector<512x24xf32>
    %16 = tpu.matmul %13, %15, %cst_25 {dimension_numbers = #tpu.dot_dimension_numbers<[1], [0], [0], [1], [0, 0, 1, 1], [], []>} : vector<512x32xbf16>, vector<32x24xbf16>, vector<512x24xf32> -> vector<512x24xf32>
    %c4_26 = arith.constant 4 : index
    %c0_27 = arith.constant 0 : index
    %c0_28 = arith.constant 0 : index
    %17 = vector.load %arg7[%c4_26, %c0_27, %c0_28] : memref<24x32x32xbf16, #tpu.memory_space<vmem>>, vector<16x32x32xbf16>
    %18 = vector.shape_cast %17 : vector<16x32x32xbf16> to vector<512x32xbf16>
    %c0_29 = arith.constant 0 : index
    %c1 = arith.constant 1 : index
    %c0_30 = arith.constant 0 : index
    %c0_31 = arith.constant 0 : index
    %19 = vector.load %arg2[%c0_29, %c1, %c0_30, %c0_31] : memref<4x3x32x24xbf16, #tpu.memory_space<vmem>>, vector<1x1x32x24xbf16>
    %20 = vector.shape_cast %19 : vector<1x1x32x24xbf16> to vector<32x24xbf16>
    %cst_32 = arith.constant dense<0.000000e+00> : vector<512x24xf32>
    %21 = tpu.matmul %18, %20, %cst_32 {dimension_numbers = #tpu.dot_dimension_numbers<[1], [0], [0], [1], [0, 0, 1, 1], [], []>} : vector<512x32xbf16>, vector<32x24xbf16>, vector<512x24xf32> -> vector<512x24xf32>
    %22 = arith.addf %16, %21 : vector<512x24xf32>
    %c5 = arith.constant 5 : index
    %c0_33 = arith.constant 0 : index
    %c0_34 = arith.constant 0 : index
    %23 = vector.load %arg7[%c5, %c0_33, %c0_34] : memref<24x32x32xbf16, #tpu.memory_space<vmem>>, vector<16x32x32xbf16>
    %24 = vector.shape_cast %23 : vector<16x32x32xbf16> to vector<512x32xbf16>
    %c0_35 = arith.constant 0 : index
    %c2 = arith.constant 2 : index
    %c0_36 = arith.constant 0 : index
    %c0_37 = arith.constant 0 : index
    %25 = vector.load %arg2[%c0_35, %c2, %c0_36, %c0_37] : memref<4x3x32x24xbf16, #tpu.memory_space<vmem>>, vector<1x1x32x24xbf16>
    %26 = vector.shape_cast %25 : vector<1x1x32x24xbf16> to vector<32x24xbf16>
    %cst_38 = arith.constant dense<0.000000e+00> : vector<512x24xf32>
    %27 = tpu.matmul %24, %26, %cst_38 {dimension_numbers = #tpu.dot_dimension_numbers<[1], [0], [0], [1], [0, 0, 1, 1], [], []>} : vector<512x32xbf16>, vector<32x24xbf16>, vector<512x24xf32> -> vector<512x24xf32>
    %28 = arith.addf %22, %27 : vector<512x24xf32>
    %29 = vector.shape_cast %28 : vector<512x24xf32> to vector<16x32x24xf32>
    %30 = vector.extract_strided_slice %29 {offsets = [0, 7, 0], sizes = [16, 16, 8], strides = [1, 1, 1]} : vector<16x32x24xf32> to vector<16x16x8xf32>
    %31 = vector.extract_strided_slice %29 {offsets = [0, 8, 8], sizes = [16, 16, 8], strides = [1, 1, 1]} : vector<16x32x24xf32> to vector<16x16x8xf32>
    %32 = arith.addf %30, %31 : vector<16x16x8xf32>
    %33 = vector.extract_strided_slice %29 {offsets = [0, 9, 16], sizes = [16, 16, 8], strides = [1, 1, 1]} : vector<16x32x24xf32> to vector<16x16x8xf32>
    %34 = arith.addf %32, %33 : vector<16x16x8xf32>
    %c0_39 = arith.constant 0 : index
    %c0_40 = arith.constant 0 : index
    %c0_41 = arith.constant 0 : index
    %35 = vector.load %arg3[%c0_39, %c0_40, %c0_41] : memref<4x1x8xf32, #tpu.memory_space<vmem>>, vector<1x1x8xf32>
    %36 = vector.shape_cast %35 : vector<1x1x8xf32> to vector<1x8xf32>
    %37 = vector.shape_cast %36 : vector<1x8xf32> to vector<1x1x8xf32>
    %38 = vector.broadcast %37 : vector<1x1x8xf32> to vector<16x16x8xf32>
    %39 = arith.addf %34, %38 : vector<16x16x8xf32>
    %cst_42 = arith.constant 0.000000e+00 : f32
    %40 = vector.broadcast %cst_42 : f32 to vector<16x16x8xf32>
    %41 = arith.maximumf %39, %40 : vector<16x16x8xf32>
    %42 = vector.shape_cast %41 : vector<16x16x8xf32> to vector<256x8xf32>
    %43 = vector.extract_strided_slice %11 {offsets = [0, 0], sizes = [16, 8], strides = [1, 1]} : vector<16x32xf32> to vector<16x8xf32>
    %cst_43 = arith.constant dense<0.000000e+00> : vector<16x256xf32>
    %44 = tpu.matmul %43, %42, %cst_43 {dimension_numbers = #tpu.dot_dimension_numbers<[1], [1], [0], [0], [0, 0, 1, 0], [], []>} : vector<16x8xf32>, vector<256x8xf32>, vector<16x256xf32> -> vector<16x256xf32>
    %c2_44 = arith.constant 2 : index
    %c0_45 = arith.constant 0 : index
    %c0_46 = arith.constant 0 : index
    %45 = vector.load %arg7[%c2_44, %c0_45, %c0_46] : memref<24x32x32xbf16, #tpu.memory_space<vmem>>, vector<16x32x32xbf16>
    %46 = vector.shape_cast %45 : vector<16x32x32xbf16> to vector<512x32xbf16>
    %c1_47 = arith.constant 1 : index
    %c0_48 = arith.constant 0 : index
    %c0_49 = arith.constant 0 : index
    %c0_50 = arith.constant 0 : index
    %47 = vector.load %arg2[%c1_47, %c0_48, %c0_49, %c0_50] : memref<4x3x32x24xbf16, #tpu.memory_space<vmem>>, vector<1x1x32x24xbf16>
    %48 = vector.shape_cast %47 : vector<1x1x32x24xbf16> to vector<32x24xbf16>
    %cst_51 = arith.constant dense<0.000000e+00> : vector<512x24xf32>
    %49 = tpu.matmul %46, %48, %cst_51 {dimension_numbers = #tpu.dot_dimension_numbers<[1], [0], [0], [1], [0, 0, 1, 1], [], []>} : vector<512x32xbf16>, vector<32x24xbf16>, vector<512x24xf32> -> vector<512x24xf32>
    %c4_52 = arith.constant 4 : index
    %c0_53 = arith.constant 0 : index
    %c0_54 = arith.constant 0 : index
    %50 = vector.load %arg7[%c4_52, %c0_53, %c0_54] : memref<24x32x32xbf16, #tpu.memory_space<vmem>>, vector<16x32x32xbf16>
    %51 = vector.shape_cast %50 : vector<16x32x32xbf16> to vector<512x32xbf16>
    %c1_55 = arith.constant 1 : index
    %c1_56 = arith.constant 1 : index
    %c0_57 = arith.constant 0 : index
    %c0_58 = arith.constant 0 : index
    %52 = vector.load %arg2[%c1_55, %c1_56, %c0_57, %c0_58] : memref<4x3x32x24xbf16, #tpu.memory_space<vmem>>, vector<1x1x32x24xbf16>
    %53 = vector.shape_cast %52 : vector<1x1x32x24xbf16> to vector<32x24xbf16>
    %cst_59 = arith.constant dense<0.000000e+00> : vector<512x24xf32>
    %54 = tpu.matmul %51, %53, %cst_59 {dimension_numbers = #tpu.dot_dimension_numbers<[1], [0], [0], [1], [0, 0, 1, 1], [], []>} : vector<512x32xbf16>, vector<32x24xbf16>, vector<512x24xf32> -> vector<512x24xf32>
    %55 = arith.addf %49, %54 : vector<512x24xf32>
    %c6 = arith.constant 6 : index
    %c0_60 = arith.constant 0 : index
    %c0_61 = arith.constant 0 : index
    %56 = vector.load %arg7[%c6, %c0_60, %c0_61] : memref<24x32x32xbf16, #tpu.memory_space<vmem>>, vector<16x32x32xbf16>
    %57 = vector.shape_cast %56 : vector<16x32x32xbf16> to vector<512x32xbf16>
    %c1_62 = arith.constant 1 : index
    %c2_63 = arith.constant 2 : index
    %c0_64 = arith.constant 0 : index
    %c0_65 = arith.constant 0 : index
    %58 = vector.load %arg2[%c1_62, %c2_63, %c0_64, %c0_65] : memref<4x3x32x24xbf16, #tpu.memory_space<vmem>>, vector<1x1x32x24xbf16>
    %59 = vector.shape_cast %58 : vector<1x1x32x24xbf16> to vector<32x24xbf16>
    %cst_66 = arith.constant dense<0.000000e+00> : vector<512x24xf32>
    %60 = tpu.matmul %57, %59, %cst_66 {dimension_numbers = #tpu.dot_dimension_numbers<[1], [0], [0], [1], [0, 0, 1, 1], [], []>} : vector<512x32xbf16>, vector<32x24xbf16>, vector<512x24xf32> -> vector<512x24xf32>
    %61 = arith.addf %55, %60 : vector<512x24xf32>
    %62 = vector.shape_cast %61 : vector<512x24xf32> to vector<16x32x24xf32>
    %63 = vector.extract_strided_slice %62 {offsets = [0, 6, 0], sizes = [16, 16, 8], strides = [1, 1, 1]} : vector<16x32x24xf32> to vector<16x16x8xf32>
    %64 = vector.extract_strided_slice %62 {offsets = [0, 8, 8], sizes = [16, 16, 8], strides = [1, 1, 1]} : vector<16x32x24xf32> to vector<16x16x8xf32>
    %65 = arith.addf %63, %64 : vector<16x16x8xf32>
    %66 = vector.extract_strided_slice %62 {offsets = [0, 10, 16], sizes = [16, 16, 8], strides = [1, 1, 1]} : vector<16x32x24xf32> to vector<16x16x8xf32>
    %67 = arith.addf %65, %66 : vector<16x16x8xf32>
    %c1_67 = arith.constant 1 : index
    %c0_68 = arith.constant 0 : index
    %c0_69 = arith.constant 0 : index
    %68 = vector.load %arg3[%c1_67, %c0_68, %c0_69] : memref<4x1x8xf32, #tpu.memory_space<vmem>>, vector<1x1x8xf32>
    %69 = vector.shape_cast %68 : vector<1x1x8xf32> to vector<1x8xf32>
    %70 = vector.shape_cast %69 : vector<1x8xf32> to vector<1x1x8xf32>
    %71 = vector.broadcast %70 : vector<1x1x8xf32> to vector<16x16x8xf32>
    %72 = arith.addf %67, %71 : vector<16x16x8xf32>
    %cst_70 = arith.constant 0.000000e+00 : f32
    %73 = vector.broadcast %cst_70 : f32 to vector<16x16x8xf32>
    %74 = arith.maximumf %72, %73 : vector<16x16x8xf32>
    %75 = vector.shape_cast %74 : vector<16x16x8xf32> to vector<256x8xf32>
    %76 = vector.extract_strided_slice %11 {offsets = [0, 8], sizes = [16, 8], strides = [1, 1]} : vector<16x32xf32> to vector<16x8xf32>
    %cst_71 = arith.constant dense<0.000000e+00> : vector<16x256xf32>
    %77 = tpu.matmul %76, %75, %cst_71 {dimension_numbers = #tpu.dot_dimension_numbers<[1], [1], [0], [0], [0, 0, 1, 0], [], []>} : vector<16x8xf32>, vector<256x8xf32>, vector<16x256xf32> -> vector<16x256xf32>
    %78 = arith.addf %44, %77 : vector<16x256xf32>
    %c1_72 = arith.constant 1 : index
    %c0_73 = arith.constant 0 : index
    %c0_74 = arith.constant 0 : index
    %79 = vector.load %arg7[%c1_72, %c0_73, %c0_74] : memref<24x32x32xbf16, #tpu.memory_space<vmem>>, vector<16x32x32xbf16>
    %80 = vector.shape_cast %79 : vector<16x32x32xbf16> to vector<512x32xbf16>
    %c2_75 = arith.constant 2 : index
    %c0_76 = arith.constant 0 : index
    %c0_77 = arith.constant 0 : index
    %c0_78 = arith.constant 0 : index
    %81 = vector.load %arg2[%c2_75, %c0_76, %c0_77, %c0_78] : memref<4x3x32x24xbf16, #tpu.memory_space<vmem>>, vector<1x1x32x24xbf16>
    %82 = vector.shape_cast %81 : vector<1x1x32x24xbf16> to vector<32x24xbf16>
    %cst_79 = arith.constant dense<0.000000e+00> : vector<512x24xf32>
    %83 = tpu.matmul %80, %82, %cst_79 {dimension_numbers = #tpu.dot_dimension_numbers<[1], [0], [0], [1], [0, 0, 1, 1], [], []>} : vector<512x32xbf16>, vector<32x24xbf16>, vector<512x24xf32> -> vector<512x24xf32>
    %c4_80 = arith.constant 4 : index
    %c0_81 = arith.constant 0 : index
    %c0_82 = arith.constant 0 : index
    %84 = vector.load %arg7[%c4_80, %c0_81, %c0_82] : memref<24x32x32xbf16, #tpu.memory_space<vmem>>, vector<16x32x32xbf16>
    %85 = vector.shape_cast %84 : vector<16x32x32xbf16> to vector<512x32xbf16>
    %c2_83 = arith.constant 2 : index
    %c1_84 = arith.constant 1 : index
    %c0_85 = arith.constant 0 : index
    %c0_86 = arith.constant 0 : index
    %86 = vector.load %arg2[%c2_83, %c1_84, %c0_85, %c0_86] : memref<4x3x32x24xbf16, #tpu.memory_space<vmem>>, vector<1x1x32x24xbf16>
    %87 = vector.shape_cast %86 : vector<1x1x32x24xbf16> to vector<32x24xbf16>
    %cst_87 = arith.constant dense<0.000000e+00> : vector<512x24xf32>
    %88 = tpu.matmul %85, %87, %cst_87 {dimension_numbers = #tpu.dot_dimension_numbers<[1], [0], [0], [1], [0, 0, 1, 1], [], []>} : vector<512x32xbf16>, vector<32x24xbf16>, vector<512x24xf32> -> vector<512x24xf32>
    %89 = arith.addf %83, %88 : vector<512x24xf32>
    %c7 = arith.constant 7 : index
    %c0_88 = arith.constant 0 : index
    %c0_89 = arith.constant 0 : index
    %90 = vector.load %arg7[%c7, %c0_88, %c0_89] : memref<24x32x32xbf16, #tpu.memory_space<vmem>>, vector<16x32x32xbf16>
    %91 = vector.shape_cast %90 : vector<16x32x32xbf16> to vector<512x32xbf16>
    %c2_90 = arith.constant 2 : index
    %c2_91 = arith.constant 2 : index
    %c0_92 = arith.constant 0 : index
    %c0_93 = arith.constant 0 : index
    %92 = vector.load %arg2[%c2_90, %c2_91, %c0_92, %c0_93] : memref<4x3x32x24xbf16, #tpu.memory_space<vmem>>, vector<1x1x32x24xbf16>
    %93 = vector.shape_cast %92 : vector<1x1x32x24xbf16> to vector<32x24xbf16>
    %cst_94 = arith.constant dense<0.000000e+00> : vector<512x24xf32>
    %94 = tpu.matmul %91, %93, %cst_94 {dimension_numbers = #tpu.dot_dimension_numbers<[1], [0], [0], [1], [0, 0, 1, 1], [], []>} : vector<512x32xbf16>, vector<32x24xbf16>, vector<512x24xf32> -> vector<512x24xf32>
    %95 = arith.addf %89, %94 : vector<512x24xf32>
    %96 = vector.shape_cast %95 : vector<512x24xf32> to vector<16x32x24xf32>
    %97 = vector.extract_strided_slice %96 {offsets = [0, 5, 0], sizes = [16, 16, 8], strides = [1, 1, 1]} : vector<16x32x24xf32> to vector<16x16x8xf32>
    %98 = vector.extract_strided_slice %96 {offsets = [0, 8, 8], sizes = [16, 16, 8], strides = [1, 1, 1]} : vector<16x32x24xf32> to vector<16x16x8xf32>
    %99 = arith.addf %97, %98 : vector<16x16x8xf32>
    %100 = vector.extract_strided_slice %96 {offsets = [0, 11, 16], sizes = [16, 16, 8], strides = [1, 1, 1]} : vector<16x32x24xf32> to vector<16x16x8xf32>
    %101 = arith.addf %99, %100 : vector<16x16x8xf32>
    %c2_95 = arith.constant 2 : index
    %c0_96 = arith.constant 0 : index
    %c0_97 = arith.constant 0 : index
    %102 = vector.load %arg3[%c2_95, %c0_96, %c0_97] : memref<4x1x8xf32, #tpu.memory_space<vmem>>, vector<1x1x8xf32>
    %103 = vector.shape_cast %102 : vector<1x1x8xf32> to vector<1x8xf32>
    %104 = vector.shape_cast %103 : vector<1x8xf32> to vector<1x1x8xf32>
    %105 = vector.broadcast %104 : vector<1x1x8xf32> to vector<16x16x8xf32>
    %106 = arith.addf %101, %105 : vector<16x16x8xf32>
    %cst_98 = arith.constant 0.000000e+00 : f32
    %107 = vector.broadcast %cst_98 : f32 to vector<16x16x8xf32>
    %108 = arith.maximumf %106, %107 : vector<16x16x8xf32>
    %109 = vector.shape_cast %108 : vector<16x16x8xf32> to vector<256x8xf32>
    %110 = vector.extract_strided_slice %11 {offsets = [0, 16], sizes = [16, 8], strides = [1, 1]} : vector<16x32xf32> to vector<16x8xf32>
    %cst_99 = arith.constant dense<0.000000e+00> : vector<16x256xf32>
    %111 = tpu.matmul %110, %109, %cst_99 {dimension_numbers = #tpu.dot_dimension_numbers<[1], [1], [0], [0], [0, 0, 1, 0], [], []>} : vector<16x8xf32>, vector<256x8xf32>, vector<16x256xf32> -> vector<16x256xf32>
    %112 = arith.addf %78, %111 : vector<16x256xf32>
    %c0_100 = arith.constant 0 : index
    %c0_101 = arith.constant 0 : index
    %c0_102 = arith.constant 0 : index
    %113 = vector.load %arg7[%c0_100, %c0_101, %c0_102] : memref<24x32x32xbf16, #tpu.memory_space<vmem>>, vector<16x32x32xbf16>
    %114 = vector.shape_cast %113 : vector<16x32x32xbf16> to vector<512x32xbf16>
    %c3_103 = arith.constant 3 : index
    %c0_104 = arith.constant 0 : index
    %c0_105 = arith.constant 0 : index
    %c0_106 = arith.constant 0 : index
    %115 = vector.load %arg2[%c3_103, %c0_104, %c0_105, %c0_106] : memref<4x3x32x24xbf16, #tpu.memory_space<vmem>>, vector<1x1x32x24xbf16>
    %116 = vector.shape_cast %115 : vector<1x1x32x24xbf16> to vector<32x24xbf16>
    %cst_107 = arith.constant dense<0.000000e+00> : vector<512x24xf32>
    %117 = tpu.matmul %114, %116, %cst_107 {dimension_numbers = #tpu.dot_dimension_numbers<[1], [0], [0], [1], [0, 0, 1, 1], [], []>} : vector<512x32xbf16>, vector<32x24xbf16>, vector<512x24xf32> -> vector<512x24xf32>
    %c4_108 = arith.constant 4 : index
    %c0_109 = arith.constant 0 : index
    %c0_110 = arith.constant 0 : index
    %118 = vector.load %arg7[%c4_108, %c0_109, %c0_110] : memref<24x32x32xbf16, #tpu.memory_space<vmem>>, vector<16x32x32xbf16>
    %119 = vector.shape_cast %118 : vector<16x32x32xbf16> to vector<512x32xbf16>
    %c3_111 = arith.constant 3 : index
    %c1_112 = arith.constant 1 : index
    %c0_113 = arith.constant 0 : index
    %c0_114 = arith.constant 0 : index
    %120 = vector.load %arg2[%c3_111, %c1_112, %c0_113, %c0_114] : memref<4x3x32x24xbf16, #tpu.memory_space<vmem>>, vector<1x1x32x24xbf16>
    %121 = vector.shape_cast %120 : vector<1x1x32x24xbf16> to vector<32x24xbf16>
    %cst_115 = arith.constant dense<0.000000e+00> : vector<512x24xf32>
    %122 = tpu.matmul %119, %121, %cst_115 {dimension_numbers = #tpu.dot_dimension_numbers<[1], [0], [0], [1], [0, 0, 1, 1], [], []>} : vector<512x32xbf16>, vector<32x24xbf16>, vector<512x24xf32> -> vector<512x24xf32>
    %123 = arith.addf %117, %122 : vector<512x24xf32>
    %c8_116 = arith.constant 8 : index
    %c0_117 = arith.constant 0 : index
    %c0_118 = arith.constant 0 : index
    %124 = vector.load %arg7[%c8_116, %c0_117, %c0_118] : memref<24x32x32xbf16, #tpu.memory_space<vmem>>, vector<16x32x32xbf16>
    %125 = vector.shape_cast %124 : vector<16x32x32xbf16> to vector<512x32xbf16>
    %c3_119 = arith.constant 3 : index
    %c2_120 = arith.constant 2 : index
    %c0_121 = arith.constant 0 : index
    %c0_122 = arith.constant 0 : index
    %126 = vector.load %arg2[%c3_119, %c2_120, %c0_121, %c0_122] : memref<4x3x32x24xbf16, #tpu.memory_space<vmem>>, vector<1x1x32x24xbf16>
    %127 = vector.shape_cast %126 : vector<1x1x32x24xbf16> to vector<32x24xbf16>
    %cst_123 = arith.constant dense<0.000000e+00> : vector<512x24xf32>
    %128 = tpu.matmul %125, %127, %cst_123 {dimension_numbers = #tpu.dot_dimension_numbers<[1], [0], [0], [1], [0, 0, 1, 1], [], []>} : vector<512x32xbf16>, vector<32x24xbf16>, vector<512x24xf32> -> vector<512x24xf32>
    %129 = arith.addf %123, %128 : vector<512x24xf32>
    %130 = vector.shape_cast %129 : vector<512x24xf32> to vector<16x32x24xf32>
    %131 = vector.extract_strided_slice %130 {offsets = [0, 4, 0], sizes = [16, 16, 8], strides = [1, 1, 1]} : vector<16x32x24xf32> to vector<16x16x8xf32>
    %132 = vector.extract_strided_slice %130 {offsets = [0, 8, 8], sizes = [16, 16, 8], strides = [1, 1, 1]} : vector<16x32x24xf32> to vector<16x16x8xf32>
    %133 = arith.addf %131, %132 : vector<16x16x8xf32>
    %134 = vector.extract_strided_slice %130 {offsets = [0, 12, 16], sizes = [16, 16, 8], strides = [1, 1, 1]} : vector<16x32x24xf32> to vector<16x16x8xf32>
    %135 = arith.addf %133, %134 : vector<16x16x8xf32>
    %c3_124 = arith.constant 3 : index
    %c0_125 = arith.constant 0 : index
    %c0_126 = arith.constant 0 : index
    %136 = vector.load %arg3[%c3_124, %c0_125, %c0_126] : memref<4x1x8xf32, #tpu.memory_space<vmem>>, vector<1x1x8xf32>
    %137 = vector.shape_cast %136 : vector<1x1x8xf32> to vector<1x8xf32>
    %138 = vector.shape_cast %137 : vector<1x8xf32> to vector<1x1x8xf32>
    %139 = vector.broadcast %138 : vector<1x1x8xf32> to vector<16x16x8xf32>
    %140 = arith.addf %135, %139 : vector<16x16x8xf32>
    %cst_127 = arith.constant 0.000000e+00 : f32
    %141 = vector.broadcast %cst_127 : f32 to vector<16x16x8xf32>
    %142 = arith.maximumf %140, %141 : vector<16x16x8xf32>
    %143 = vector.shape_cast %142 : vector<16x16x8xf32> to vector<256x8xf32>
    %144 = vector.extract_strided_slice %11 {offsets = [0, 24], sizes = [16, 8], strides = [1, 1]} : vector<16x32xf32> to vector<16x8xf32>
    %cst_128 = arith.constant dense<0.000000e+00> : vector<16x256xf32>
    %145 = tpu.matmul %144, %143, %cst_128 {dimension_numbers = #tpu.dot_dimension_numbers<[1], [1], [0], [0], [0, 0, 1, 0], [], []>} : vector<16x8xf32>, vector<256x8xf32>, vector<16x256xf32> -> vector<16x256xf32>
    %146 = arith.addf %112, %145 : vector<16x256xf32>
    %c0_129 = arith.constant 0 : index
    %c0_130 = arith.constant 0 : index
    %147 = vector.load %arg5[%c0_129, %c0_130] : memref<16x1xf32, #tpu.memory_space<vmem>>, vector<16x1xf32>
    %148 = vector.broadcast %147 : vector<16x1xf32> to vector<16x256xf32>
    %149 = arith.addf %146, %148 : vector<16x256xf32>
    %c0_131 = arith.constant 0 : index
    %c0_132 = arith.constant 0 : index
    %c0_133 = arith.constant 0 : index
    %150 = vector.load %arg6[%c0_131, %c0_132, %c0_133] : memref<1x16x256xf32, #tpu.memory_space<vmem>>, vector<1x16x256xf32>
    %151 = vector.shape_cast %150 : vector<1x16x256xf32> to vector<16x256xf32>
    %152 = vector.shape_cast %149 : vector<16x256xf32> to vector<1x16x256xf32>
    tpu.vector_store %arg6[%c0_131, %c0_132, %c0_133], %152 {strides = array<i32>} : memref<1x16x256xf32, #tpu.memory_space<vmem>>, vector<1x16x256xf32>,
    return
  }
  func.func @transform_0(%arg0: i32) -> (i32, i32, i32, i32) {
    %c0_i32 = arith.constant 0 : i32
    %c0_i32_0 = arith.constant 0 : i32
    %c0_i32_1 = arith.constant 0 : i32
    %c0_i32_2 = arith.constant 0 : i32
    return %arg0, %c0_i32, %c0_i32_0, %c0_i32_1 : i32, i32, i32, i32
  }
  func.func @transform_1(%arg0: i32) -> (i32, i32, i32, i32) {
    %c0_i32 = arith.constant 0 : i32
    %c0_i32_0 = arith.constant 0 : i32
    %c0_i32_1 = arith.constant 0 : i32
    %c0_i32_2 = arith.constant 0 : i32
    %c0_i32_3 = arith.constant 0 : i32
    return %c0_i32, %c0_i32_0, %c0_i32_1, %c0_i32_2 : i32, i32, i32, i32
  }
  func.func @transform_2(%arg0: i32) -> (i32, i32, i32) {
    %c0_i32 = arith.constant 0 : i32
    %c0_i32_0 = arith.constant 0 : i32
    %c0_i32_1 = arith.constant 0 : i32
    %c0_i32_2 = arith.constant 0 : i32
    return %c0_i32, %c0_i32_0, %c0_i32_1 : i32, i32, i32
  }
  func.func @transform_3(%arg0: i32) -> (i32, i32) {
    %c0_i32 = arith.constant 0 : i32
    %c0_i32_0 = arith.constant 0 : i32
    %c0_i32_1 = arith.constant 0 : i32
    return %c0_i32, %c0_i32_0 : i32, i32
  }
  func.func @transform_4(%arg0: i32) -> (i32, i32) {
    %c0_i32 = arith.constant 0 : i32
    %c0_i32_0 = arith.constant 0 : i32
    %c0_i32_1 = arith.constant 0 : i32
    return %c0_i32, %c0_i32_0 : i32, i32
  }
  func.func @transform_5(%arg0: i32) -> (i32, i32, i32) {
    %c0_i32 = arith.constant 0 : i32
    %c0_i32_0 = arith.constant 0 : i32
    %c0_i32_1 = arith.constant 0 : i32
    return %arg0, %c0_i32, %c0_i32_0 : i32, i32, i32
  }
}

</mosaic_0001>

<bundles_post_ra>
// kernel: tpu_custom_call.1
= control target key start
LH: loop header
LB: loop body
LE: loop exit
PB: predicated region body
PF: predicated region fallthrough
CT: control target
= control target key end

     0   :  { %10 = vsyncpa [#allocation4], 0  ;;  %s16876_s0 = inlined_call_operand.vmem [shape: bf16[2,16,16,32], index: 0, kind: input, shape index: {}]   ;;  %s16877_s1 = inlined_call_operand.vmem [shape: bf16[4,3,32,24], index: 1, kind: input, shape index: {}]   ;;  %s16878_s2 = inlined_call_operand.vmem [shape: f32[4,1,8], index: 2, kind: input, shape index: {}]   ;;  %s16879_s3 = inlined_call_operand.vmem [shape: f32[16,32], index: 3, kind: input, shape index: {}]   ;;  %s16880_s4 = inlined_call_operand.vmem [shape: f32[16,1], index: 4, kind: input, shape index: {}]   ;;  %s16881_s5 = inlined_call_operand.hbm [shape: f32[2,16,256], index: 5, kind: output, shape index: {}]  }
   0x1   :  { %12 = vsyncpa [#allocation4 + $0x1], 0  ;;  %s12344_s18 = smov 0   ;;  %s12346_s19 = smov 0  }
   0x2   :  { %s12348_s20 = smov 0   ;;  %s12350_s21 = smov 0  }
   0x3 LB: > { %s12365_s22 = sadd.s32 4294967295, %s12305_s21   ;;  %s9350_s23 = sadd.s32 4294967294, %s12305_s21   ;;  %s12305_s21 = sphi %s12350_s21, %s17558_s21   ;;  %s12301_s20 = sphi %s12348_s20, %s17557_s20   ;;  %s12297_s19 = sphi %s12346_s19, %s17556_s19   ;;  %s12293_s18 = sphi %s12344_s18, %s17555_s18  }
   0x4   : > { %s12369_s24 = sadd.s32 1, %s12305_s21   ;;  %s135_s25 = sadd.s32 1, %s12301_s20 }
   0x5   : > { %s132_s26 = ssub.s32 %s12305_s21, %s12369_s24  ;;  %p145_p0 = scmp.ne.s32.totalorder %s12301_s20, %s12297_s19 }
   0x6   : > { %p133_p1 = scmp.eq.s32.totalorder %s132_s26, 0  ;;  %p146_p2 = scmp.eq.s32.totalorder %s12365_s22, 1 }
   0x7   : > { %p151_p3 = scmp.ne.s32.totalorder %s12297_s19, %s12293_s18  ;;  %p152_p4 = scmp.eq.s32.totalorder %s9350_s23, 1 }
   0x8   : > { %s12380_s27 = scalar_select %p133_p1, %s12301_s20, %s135_s25  }
   0x9   : > { %p12382_p5 = por %p146_p2, %p145_p0  ;;  %p12386_p6 = por %p152_p4, %p151_p3 }
   0xa   : > { %p9353_p7 = scmp.ge.s32.totalorder %s12305_s21, 1  ;;  %p190_p8 = scmp.lt.s32.totalorder %s12305_s21, 3 }
   0xc   : > { %p191_p9 = pnand %p9353_p7, %p190_p8 }
   0xe   : > { %194 = sbr.rel (%p191_p9) target bundleno = 2348 (0x92c), region = 40 }
  0x15   : > { %v12126_v0 = vld [vmem:[%s16877_s1 + $0x10] sm:$0xff]   ;;  %p218_p10 = scmp.lt.s32.totalorder %s12365_s22, 1  ;;  %v12399_v1 = vld [vmem:[%s16877_s1 + $0x18] sm:$0xff]   ;;  %vm224_vm0 = vcmask 261120   ;;  %vm243_vm1 = vcmask 257024   ;;  %vm260_vm2 = vcmask 261124  }
  0x16   : > { %10543 = vmatprep.subr.bf16.mxu0 %v12126_v0  ;;  %11551 = vmatprep.subr.bf16.mxu1 %v12126_v0  ;;  %v12307_v2 = vmov 0   ;;  %v12156_v3 = vld [vmem:[%s16877_s1] sm:$0xff]   ;;  %v12157_v18 = vld [vmem:[%s16877_s1 + $0x8] sm:$0xff]   ;;  %v12164_v55 = vld [vmem:[%s16877_s1 + $0x30] sm:$0xff]   ;;  %s12308_s6 = smov 120   ;;  %vm2127_vm3 = vcmask 1045504  }
  0x17   : > { %s12402_s9 = scalar_select %p218_p10, %s12365_s22, 1  ;;  %10544 = vmatpush3.bf16.msra.mxu0 %v12126_v0  ;;  %11553 = vmatpush3.bf16.msra.mxu1 %v12126_v0  ;;  %244 = vst.msk [vmem:[#allocation2 + $0x40] sm:$0xf] %vm243_vm1, %v12307_v2  ;;  %245 = vst.msk [vmem:[#allocation2 + $0x50] sm:$0xf] %vm243_vm1, %v12307_v2  ;;  %v12160_v4 = vld [vmem:[%s16877_s1 + $0x40] sm:$0xff]  }
  0x18   : > { %225 = vst.msk [vmem:[#allocation2] sm:$0xff] %vm224_vm0, %v12307_v2  ;;  %226 = vst.msk [vmem:[#allocation2 + $0x8] sm:$0xff] %vm224_vm0, %v12307_v2  ;;  %10545 = vmatprep.subr.bf16.mxu0 %v12399_v1  ;;  %11552 = vmatprep.subr.bf16.mxu1 %v12399_v1  ;;  %v12163_v52 = vld [vmem:[%s16877_s1 + $0x48] sm:$0xff]   ;;  %vm1870_vm4 = vcmask 1046528   ;;  %s12309_s13 = smov 112   ;;  %vm2551_vm5 = vcmask 1040384  }
  0x19   : > { %227 = vst.msk [vmem:[#allocation2 + $0x10] sm:$0xff] %vm224_vm0, %v12307_v2  ;;  %228 = vst.msk [vmem:[#allocation2 + $0x18] sm:$0xff] %vm224_vm0, %v12307_v2  ;;  %s9989_s10 = sshll.u32 %s12402_s9, 7  ;;  %12124 = vset.pattern.permute.xlu0 %v12307_v2  ;;  %12125 = vset.pattern.permute.xlu1 %v12307_v2  ;;  %vm4672_vm6 = vcmask 64512   ;;  %vm4160_vm7 = vcmask 1043456   ;;  %vm4585_vm8 = vcmask 1041408  }
  0x1a   : > { %229 = vst.msk [vmem:[#allocation2 + $0x20] sm:$0xff] %vm224_vm0, %v12307_v2  ;;  %230 = vst.msk [vmem:[#allocation2 + $0x28] sm:$0xff] %vm224_vm0, %v12307_v2  ;;  %s12461_s15 = scalar_lea.vmem %s16876_s0, %s9989_s10  ;;  %vm6235_vm10 = vcmask 1044480   ;;  %vm6916_vm11 = vcmask 1042432   ;;  %s215_s12 = sand.u32 1, %s12297_s19  }
  0x1b   : > { %231 = vst.msk [vmem:[#allocation2 + $0x30] sm:$0xff] %vm224_vm0, %v12307_v2  ;;  %232 = vst.msk [vmem:[#allocation2 + $0x38] sm:$0xff] %vm224_vm0, %v12307_v2  ;;  %v12128_v5 = vld [vmem:[%s12461_s15] ss:$0 sps:$4 sm:$0xff]   ;;  %10546 = vmatpush3.bf16.msra.mxu0 %v12399_v1  ;;  %11554 = vmatpush3.bf16.msra.mxu1 %v12399_v1  ;;  %v12129_v6 = vld [vmem:[%s12461_s15 + $0x38] ss:$0 sps:$4 sm:$0xff]  }
  0x1c   : > { %234 = vst.msk [vmem:[#allocation2 + $0x140] sm:$0xff] %vm224_vm0, %v12307_v2  ;;  %235 = vst.msk [vmem:[#allocation2 + $0x148] sm:$0xff] %vm224_vm0, %v12307_v2  ;;  %v12130_v7 = vld [vmem:[%s12461_s15 + $0x4] ss:$0 sps:$4 sm:$0xff]   ;;  %v12131_v8 = vld [vmem:[%s12461_s15 + $0x3c] ss:$0 sps:$4 sm:$0xff]   ;;  %10611 = vmatprep.subr.bf16.mxu0 %v12156_v3  ;;  %10747 = vmatprep.subr.bf16.mxu1 %v12160_v4 }
  0x1d   : > { %236 = vst.msk [vmem:[#allocation2 + $0x150] sm:$0xff] %vm224_vm0, %v12307_v2  ;;  %237 = vst.msk [vmem:[#allocation2 + $0x158] sm:$0xff] %vm224_vm0, %v12307_v2  ;;  %v12132_v9 = vld [vmem:[%s12461_s15 + $0x8] ss:$0 sps:$4 sm:$0xff]   ;;  %v12133_v10 = vld [vmem:[%s12461_s15 + $0x40] ss:$0 sps:$4 sm:$0xff]  }
  0x1e   : > { %238 = vst.msk [vmem:[#allocation2 + $0x160] sm:$0xff] %vm224_vm0, %v12307_v2  ;;  %239 = vst.msk [vmem:[#allocation2 + $0x168] sm:$0xff] %vm224_vm0, %v12307_v2  ;;  %v12134_v11 = vld [vmem:[%s12461_s15 + $0xc] ss:$0 sps:$4 sm:$0xff]   ;;  %v12135_v12 = vld [vmem:[%s12461_s15 + $0x44] ss:$0 sps:$4 sm:$0xff]  }
  0x1f   : > { %240 = vst.msk [vmem:[#allocation2 + $0x170] sm:$0xff] %vm224_vm0, %v12307_v2  ;;  %241 = vst.msk [vmem:[#allocation2 + $0x178] sm:$0xff] %vm224_vm0, %v12307_v2  ;;  %v12136_v13 = vld [vmem:[%s12461_s15 + $0x10] ss:$0 sps:$4 sm:$0xff]   ;;  %v12137_v14 = vld [vmem:[%s12461_s15 + $0x48] ss:$0 sps:$4 sm:$0xff]  }
  0x20   : > { %246 = vst.msk [vmem:[#allocation2 + $0x60] sm:$0xf] %vm243_vm1, %v12307_v2  ;;  %247 = vst.msk [vmem:[#allocation2 + $0x70] sm:$0xf] %vm243_vm1, %v12307_v2  ;;  %v12138_v15 = vld [vmem:[%s12461_s15 + $0x14] ss:$0 sps:$4 sm:$0xff]  }
  0x21   : > { %248 = vst.msk [vmem:[#allocation2 + $0x80] sm:$0xf] %vm243_vm1, %v12307_v2  ;;  %249 = vst.msk [vmem:[#allocation2 + $0x90] sm:$0xf] %vm243_vm1, %v12307_v2  ;;  %v12139_v16 = vld [vmem:[%s12461_s15 + $0x4c] ss:$0 sps:$4 sm:$0xff]  }
  0x22   : > { %250 = vst.msk [vmem:[#allocation2 + $0xa0] sm:$0xf] %vm243_vm1, %v12307_v2  ;;  %251 = vst.msk [vmem:[#allocation2 + $0xb0] sm:$0xf] %vm243_vm1, %v12307_v2  ;;  %v12140_v17 = vld [vmem:[%s12461_s15 + $0x18] ss:$0 sps:$4 sm:$0xff]  }
  0x23   : > { %252 = vst.msk [vmem:[#allocation2 + $0xc0] sm:$0xf] %vm243_vm1, %v12307_v2  ;;  %253 = vst.msk [vmem:[#allocation2 + $0xd0] sm:$0xf] %vm243_vm1, %v12307_v2  ;;  %v12141_v20 = vld [vmem:[%s12461_s15 + $0x50] ss:$0 sps:$4 sm:$0xff]  }
  0x24   : > { %254 = vst.msk [vmem:[#allocation2 + $0xe0] sm:$0xf] %vm243_vm1, %v12307_v2  ;;  %255 = vst.msk [vmem:[#allocation2 + $0xf0] sm:$0xf] %vm243_vm1, %v12307_v2  ;;  %v12142_v23 = vld [vmem:[%s12461_s15 + $0x1c] ss:$0 sps:$4 sm:$0xff]  }
  0x25   : > { %256 = vst.msk [vmem:[#allocation2 + $0x100] sm:$0xf] %vm243_vm1, %v12307_v2  ;;  %257 = vst.msk [vmem:[#allocation2 + $0x110] sm:$0xf] %vm243_vm1, %v12307_v2  ;;  %v12143_v25 = vld [vmem:[%s12461_s15 + $0x54] ss:$0 sps:$4 sm:$0xff]  }
  0x26   : > { %258 = vst.msk [vmem:[#allocation2 + $0x120] sm:$0xf] %vm243_vm1, %v12307_v2  ;;  %259 = vst.msk [vmem:[#allocation2 + $0x130] sm:$0xf] %vm243_vm1, %v12307_v2  ;;  %v12144_v28 = vld [vmem:[%s12461_s15 + $0x20] ss:$0 sps:$4 sm:$0xff]  }
  0x27   : > { %261 = vst.msk [vmem:[#allocation2 + $0x48] sm:$0xf0] %vm260_vm2, %v12307_v2  ;;  %262 = vst.msk [vmem:[#allocation2 + $0x58] sm:$0xf0] %vm260_vm2, %v12307_v2  ;;  %v12145_v29 = vld [vmem:[%s12461_s15 + $0x58] ss:$0 sps:$4 sm:$0xff]  }
  0x28   : > { %263 = vst.msk [vmem:[#allocation2 + $0x68] sm:$0xf0] %vm260_vm2, %v12307_v2  ;;  %264 = vst.msk [vmem:[#allocation2 + $0x78] sm:$0xf0] %vm260_vm2, %v12307_v2  ;;  %v12146_v30 = vld [vmem:[%s12461_s15 + $0x24] ss:$0 sps:$4 sm:$0xff]  }
  0x29   : > { %265 = vst.msk [vmem:[#allocation2 + $0x88] sm:$0xf0] %vm260_vm2, %v12307_v2  ;;  %266 = vst.msk [vmem:[#allocation2 + $0x98] sm:$0xf0] %vm260_vm2, %v12307_v2  ;;  %v12147_v34 = vld [vmem:[%s12461_s15 + $0x5c] ss:$0 sps:$4 sm:$0xff]  }
  0x2a   : > { %267 = vst.msk [vmem:[#allocation2 + $0xa8] sm:$0xf0] %vm260_vm2, %v12307_v2  ;;  %268 = vst.msk [vmem:[#allocation2 + $0xb8] sm:$0xf0] %vm260_vm2, %v12307_v2  ;;  %v12148_v36 = vld [vmem:[%s12461_s15 + $0x28] ss:$0 sps:$4 sm:$0xff]  }
  0x2b   : > { %269 = vst.msk [vmem:[#allocation2 + $0xc8] sm:$0xf0] %vm260_vm2, %v12307_v2  ;;  %270 = vst.msk [vmem:[#allocation2 + $0xd8] sm:$0xf0] %vm260_vm2, %v12307_v2  ;;  %v12149_v37 = vld [vmem:[%s12461_s15 + $0x60] ss:$0 sps:$4 sm:$0xff]  }
  0x2c   : > { %271 = vst.msk [vmem:[#allocation2 + $0xe8] sm:$0xf0] %vm260_vm2, %v12307_v2  ;;  %272 = vst.msk [vmem:[#allocation2 + $0xf8] sm:$0xf0] %vm260_vm2, %v12307_v2  ;;  %v12150_v38 = vld [vmem:[%s12461_s15 + $0x2c] ss:$0 sps:$4 sm:$0xff]  }
  0x2d   : > { %273 = vst.msk [vmem:[#allocation2 + $0x108] sm:$0xf0] %vm260_vm2, %v12307_v2  ;;  %274 = vst.msk [vmem:[#allocation2 + $0x118] sm:$0xf0] %vm260_vm2, %v12307_v2  ;;  %v12151_v39 = vld [vmem:[%s12461_s15 + $0x64] ss:$0 sps:$4 sm:$0xff]  }
  0x2e   : > { %275 = vst.msk [vmem:[#allocation2 + $0x128] sm:$0xf0] %vm260_vm2, %v12307_v2  ;;  %276 = vst.msk [vmem:[#allocation2 + $0x138] sm:$0xf0] %vm260_vm2, %v12307_v2  ;;  %v12152_v40 = vld [vmem:[%s12461_s15 + $0x30] ss:$0 sps:$4 sm:$0xff]  }
  0x2f   : > { %437 = vst.msk [vmem:[#allocation2 + $0x40] sm:$0xf0] %vm260_vm2, %v12128_v5  ;;  %451 = vst.msk [vmem:[#allocation2 + $0xb0] sm:$0xf0] %vm260_vm2, %v12129_v6  ;;  %v12153_v41 = vld [vmem:[%s12461_s15 + $0x68] ss:$0 sps:$4 sm:$0xff]  }
  0x30   : > { %438 = vst.msk [vmem:[#allocation2 + $0x48] sm:$0xf] %vm243_vm1, %v12130_v7  ;;  %452 = vst.msk [vmem:[#allocation2 + $0xb8] sm:$0xf] %vm243_vm1, %v12131_v8  ;;  %v12154_v43 = vld [vmem:[%s12461_s15 + $0x34] ss:$0 sps:$4 sm:$0xff]  }
  0x31   : > { %439 = vst.msk [vmem:[#allocation2 + $0x50] sm:$0xf0] %vm260_vm2, %v12132_v9  ;;  %453 = vst.msk [vmem:[#allocation2 + $0xc0] sm:$0xf0] %vm260_vm2, %v12133_v10  ;;  %v12155_v45 = vld [vmem:[%s12461_s15 + $0x6c] ss:$0 sps:$4 sm:$0xff]  }
  0x32   : > { %440 = vst.msk [vmem:[#allocation2 + $0x58] sm:$0xf] %vm243_vm1, %v12134_v11  ;;  %454 = vst.msk [vmem:[#allocation2 + $0xc8] sm:$0xf] %vm243_vm1, %v12135_v12  ;;  %v12158_v47 = vld [vmem:[%s12461_s15 + $0x70] ss:$0 sps:$4 sm:$0xff]  }
  0x33   : > { %441 = vst.msk [vmem:[#allocation2 + $0x60] sm:$0xf0] %vm260_vm2, %v12136_v13  ;;  %455 = vst.msk [vmem:[#allocation2 + $0xd0] sm:$0xf0] %vm260_vm2, %v12137_v14  ;;  %v12159_v49 = vld [vmem:[%s12461_s15 + $0x74] ss:$0 sps:$4 sm:$0xff]  }
  0x34   : > { %442 = vst.msk [vmem:[#allocation2 + $0x68] sm:$0xf] %vm243_vm1, %v12138_v15  ;;  %456 = vst.msk [vmem:[#allocation2 + $0xd8] sm:$0xf] %vm243_vm1, %v12139_v16  ;;  %v12161_v50 = vld [vmem:[%s12461_s15 + $0x78] ss:$0 sps:$4 sm:$0xff]  }
  0x35   : > { %443 = vst.msk [vmem:[#allocation2 + $0x70] sm:$0xf0] %vm260_vm2, %v12140_v17  ;;  %457 = vst.msk [vmem:[#allocation2 + $0xe0] sm:$0xf0] %vm260_vm2, %v12141_v20  ;;  %v12162_v51 = vld [vmem:[%s12461_s15 + $0x7c] ss:$0 sps:$4 sm:$0xff]  }
  0x36   : > { %v12494_v19 = vld [vmem:[#allocation2 + $0x40] sm:$0xff]  ;;  %v12501_v21 = vld [vmem:[#allocation2 + $0xb0] sm:$0xff]  ;;  %444 = vst.msk [vmem:[#allocation2 + $0x78] sm:$0xf] %vm243_vm1, %v12142_v23  ;;  %458 = vst.msk [vmem:[#allocation2 + $0xe8] sm:$0xf] %vm243_vm1, %v12143_v25 }
  0x37   : > { %10547 = vmatprep.mubr.msk.bf16.mxu0 %vm224_vm0, %v12494_v19  ;;  %v12503_v22 = vld [vmem:[#allocation2 + $0x48] sm:$0xff]  ;;  %10575 = vmatprep.mubr.msk.bf16.mxu1 %vm224_vm0, %v12501_v21  ;;  %v12511_v24 = vld [vmem:[#allocation2 + $0xb8] sm:$0xff]  ;;  %445 = vst.msk [vmem:[#allocation2 + $0x80] sm:$0xf0] %vm260_vm2, %v12144_v28  ;;  %459 = vst.msk [vmem:[#allocation2 + $0xf0] sm:$0xf0] %vm260_vm2, %v12145_v29 }
  0x38   : > { %10548 = vmatmul.mubr.msk.bf16.vlgmr.msra.gmra.mrb[0].mxu0 %vm224_vm0, %v12503_v22  ;;  %10576 = vmatmul.mubr.msk.bf16.vlgmr.msra.gmra.mrb[0].mxu1 %vm224_vm0, %v12511_v24  ;;  %v12517_v26 = vld [vmem:[#allocation2 + $0x50] sm:$0xff]  ;;  %v12519_v27 = vld [vmem:[#allocation2 + $0xc0] sm:$0xff]  ;;  %446 = vst.msk [vmem:[#allocation2 + $0x88] sm:$0xf] %vm243_vm1, %v12146_v30  ;;  %460 = vst.msk [vmem:[#allocation2 + $0xf8] sm:$0xf] %vm243_vm1, %v12147_v34 }
  0x39   : > { %10612 = vmatpush3.bf16.msra.mxu0 %v12156_v3  ;;  %10551 = vmatprep.mubr.msk.bf16.mxu0 %vm224_vm0, %v12517_v26  ;;  %v12531_v31 = vld [vmem:[#allocation2 + $0x58] sm:$0xff]  ;;  %v12533_v32 = vld [vmem:[#allocation2 + $0xc8] sm:$0xff]  ;;  %447 = vst.msk [vmem:[#allocation2 + $0x90] sm:$0xf0] %vm260_vm2, %v12148_v36  ;;  %461 = vst.msk [vmem:[#allocation2 + $0x100] sm:$0xf0] %vm260_vm2, %v12149_v37 }
  0x3a   : > { %10579 = vmatprep.mubr.msk.bf16.mxu1 %vm224_vm0, %v12519_v27  ;;  %10613 = vmatprep.subr.bf16.mxu0 %v12157_v18  ;;  %v12536_v33 = vld [vmem:[#allocation2 + $0x60] sm:$0xff]  ;;  %v12540_v35 = vld [vmem:[#allocation2 + $0xd0] sm:$0xff]  ;;  %448 = vst.msk [vmem:[#allocation2 + $0x98] sm:$0xf] %vm243_vm1, %v12150_v38  ;;  %462 = vst.msk [vmem:[#allocation2 + $0x108] sm:$0xf] %vm243_vm1, %v12151_v39 }
  0x3b   : > { %10748 = vmatpush3.bf16.msra.mxu1 %v12160_v4  ;;  %v12560_v42 = vld [vmem:[#allocation2 + $0x68] sm:$0xff]  ;;  %449 = vst.msk [vmem:[#allocation2 + $0xa0] sm:$0xf0] %vm260_vm2, %v12152_v40  ;;  %v12565_v44 = vld [vmem:[#allocation2 + $0xd8] sm:$0xff]  ;;  %463 = vst.msk [vmem:[#allocation2 + $0x110] sm:$0xf0] %vm260_vm2, %v12153_v41 }
  0x3c   : > { %v12569_v46 = vld [vmem:[#allocation2 + $0x70] sm:$0xff]  ;;  %450 = vst.msk [vmem:[#allocation2 + $0xa8] sm:$0xf] %vm243_vm1, %v12154_v43  ;;  %v12573_v48 = vld [vmem:[#allocation2 + $0xe0] sm:$0xff]  ;;  %464 = vst.msk [vmem:[#allocation2 + $0x118] sm:$0xf] %vm243_vm1, %v12155_v45  ;;  %10749 = vmatprep.subr.bf16.mxu1 %v12163_v52 }
  0x3d   : > { %10614 = vmatpush3.bf16.msra.mxu0 %v12157_v18  ;;  %465 = vst.msk [vmem:[#allocation2 + $0x120] sm:$0xf0] %vm260_vm2, %v12158_v47  ;;  %467 = vst.msk [vmem:[#allocation2 + $0x130] sm:$0xf0] %vm260_vm2, %v12161_v50  ;;  %v12593_v53 = vld [vmem:[#allocation2 + $0x78] sm:$0xff]  ;;  %v12596_v54 = vld [vmem:[#allocation2 + $0xe8] sm:$0xff] }
  0x3e   : > { %466 = vst.msk [vmem:[#allocation2 + $0x128] sm:$0xf] %vm243_vm1, %v12159_v49  ;;  %468 = vst.msk [vmem:[#allocation2 + $0x138] sm:$0xf] %vm243_vm1, %v12162_v51  ;;  %v12601_v56 = vld [vmem:[#allocation2 + $0x80] sm:$0xff]  ;;  %v12603_v57 = vld [vmem:[#allocation2 + $0xf0] sm:$0xff] }
  0x3f   : > { %10750 = vmatpush3.bf16.msra.mxu1 %v12163_v52  ;;  %v12613_v58 = vld [vmem:[#allocation2 + $0x88] sm:$0xff]  ;;  %v12615_v59 = vld [vmem:[#allocation2 + $0xf8] sm:$0xff]  ;;  %v12649_v4 = vld [vmem:[#allocation2 + $0x30] sm:$0xff]  ;;  %s9354_s14 = sshll.u32 %s215_s12, 5  ;;  %s9990_s17 = sshll.u32 %s12365_s22, 9 }
  0x40   : > { %10552 = vmatmul.mubr.msk.bf16.gmra.mrb[4].mxu0 %vm224_vm0, %v12531_v31  ;;  %10580 = vmatmul.mubr.msk.bf16.gmra.mrb[4].mxu1 %vm224_vm0, %v12533_v32  ;;  %v12617_v60 = vld [vmem:[#allocation2 + $0x90] sm:$0xff]  ;;  %v12619_v61 = vld [vmem:[#allocation2 + $0x100] sm:$0xff]  ;;  %v12664_v7 = vld [vmem:[#allocation2 + $0x38] sm:$0xff]  ;;  %s217_s15 = scalar_lea.vmem [#allocation3], %s9354_s14  ;;  %s16833_s26 = scalar_lea.hbm %s16881_s5, %s9990_s17 }
  0x41   : > { %10555 = vmatprep.mubr.msk.bf16.mxu0 %vm224_vm0, %v12536_v33  ;;  %10583 = vmatprep.mubr.msk.bf16.mxu1 %vm224_vm0, %v12540_v35  ;;  %v12629_v62 = vld [vmem:[#allocation2 + $0x98] sm:$0xff]  ;;  %v12631_v63 = vld [vmem:[#allocation2 + $0x108] sm:$0xff]  ;;  %v12165_v6 = vld [vmem:[%s16877_s1 + $0x20] sm:$0xff]   ;;  %s9288_s16 = sshll.u32 %s217_s15, 4  ;;  %s16835_s30 = scalar_lea.sflag [#allocation4], %s215_s12  ;;  %s16828_s16 = int_to_ptr.vmem [resolvable:$true] %s9288_s16 }
  0x42   : > { %10815 = vmatprep.subr.bf16.mxu1 %v12164_v55  ;;  %v12633_v0 = vld [vmem:[#allocation2 + $0xa0] sm:$0xff]  ;;  %v12635_v1 = vld [vmem:[#allocation2 + $0x110] sm:$0xff]  ;;  %10679 = vmatprep.subr.bf16.mxu0 %v12165_v6  ;;  %v12166_v10 = vld [vmem:[%s16877_s1 + $0x28] sm:$0xff]   ;;  %s12243_s22 = scalar_lea.vmem %s16828_s16, 512 }
  0x43   : > { %v12645_v2 = vld [vmem:[#allocation2 + $0xa8] sm:$0xff]  ;;  %v12647_v3 = vld [vmem:[#allocation2 + $0x118] sm:$0xff]  ;;  %v12168_v13 = vld [vmem:[%s16877_s1 + $0x50] sm:$0xff]   ;;  %p12244_p11 = scmp.ne.s32.totalorder %s16828_s16, %s12243_s22 }
  0x44   : > { %v12651_v5 = vld [vmem:[#allocation2 + $0x120] sm:$0xff]  ;;  %v12668_v9 = vld [vmem:[#allocation2 + $0x130] sm:$0xff]  ;;  %v12167_v12 = vld [vmem:[%s16877_s1 + $0x38] sm:$0xff]  }
  0x45   : > { %v12666_v8 = vld [vmem:[#allocation2 + $0x128] sm:$0xff]  ;;  %v12681_v11 = vld [vmem:[#allocation2 + $0x138] sm:$0xff]  ;;  %v2633_v14 = vld [vmem:[#allocation2 + $0x20] sm:$0xff]  ;;  %p12245_p12 = pnand %p12244_p11, %p12382_p5 }
  0x46   : > { %v2634_v15 = vld [vmem:[#allocation2 + $0x28] sm:$0xff]  ;;  %v12169_v16 = vld [vmem:[%s16877_s1 + $0x58] sm:$0xff]   ;;  %v12170_v51 = vld [vmem:[%s16877_s1 + $0x70] sm:$0xff]  }
  0x47   : > { %vm14889_vm9 = vmpackc.low %vm4672_vm6, %vm4672_vm6  ;;  %p12246_p13 = pneg %p12245_p12 }
  0x48   : > { %10556 = vmatmul.mubr.msk.bf16.gmra.mrb[8].mxu0 %vm224_vm0, %v12560_v42  ;;  %10584 = vmatmul.mubr.msk.bf16.gmra.mrb[8].mxu1 %vm224_vm0, %v12565_v44 }
  0x49   : > { %10559 = vmatprep.mubr.msk.bf16.mxu0 %vm224_vm0, %v12569_v46  ;;  %10587 = vmatprep.mubr.msk.bf16.mxu1 %vm224_vm0, %v12573_v48 }
  0x50   : > { %10560 = vmatmul.mubr.msk.bf16.gmra.mrb[12].mxu0 %vm224_vm0, %v12593_v53  ;;  %10588 = vmatmul.mubr.msk.bf16.gmra.mrb[12].mxu1 %vm224_vm0, %v12596_v54 }
  0x51   : > { %10563 = vmatprep.mubr.msk.bf16.mxu0 %vm224_vm0, %v12601_v56  ;;  %10591 = vmatprep.mubr.msk.bf16.mxu1 %vm224_vm0, %v12603_v57 }
  0x58   : > { %10564 = vmatmul.mubr.msk.bf16.gmra.mrb[16].mxu0 %vm224_vm0, %v12613_v58  ;;  %10592 = vmatmul.mubr.msk.bf16.gmra.mrb[16].mxu1 %vm224_vm0, %v12615_v59 }
  0x59   : > { %10567 = vmatprep.mubr.msk.bf16.mxu0 %vm224_vm0, %v12617_v60  ;;  %10595 = vmatprep.mubr.msk.bf16.mxu1 %vm224_vm0, %v12619_v61 }
  0x60   : > { %10568 = vmatmul.mubr.msk.bf16.gmra.mrb[20].mxu0 %vm224_vm0, %v12629_v62  ;;  %10596 = vmatmul.mubr.msk.bf16.gmra.mrb[20].mxu1 %vm224_vm0, %v12631_v63 }
  0x61   : > { %10571 = vmatprep.mubr.msk.bf16.mxu0 %vm224_vm0, %v12633_v0  ;;  %10599 = vmatprep.mubr.msk.bf16.mxu1 %vm224_vm0, %v12635_v1 }
  0x68   : > { %10572 = vmatmul.mubr.msk.bf16.gmra.mrb[24].mxu0 %vm224_vm0, %v12645_v2  ;;  %10600 = vmatmul.mubr.msk.bf16.gmra.mrb[24].mxu1 %vm224_vm0, %v12647_v3 }
  0x69   : > { %10615 = vmatprep.mubr.msk.bf16.mxu0 %vm224_vm0, %v12649_v4  ;;  %10603 = vmatprep.mubr.msk.bf16.mxu1 %vm224_vm0, %v12651_v5 }
  0x70   : > { %10616 = vmatmul.mubr.msk.bf16.vlgmr.msra.gmra.mrb[0].mxu0 %vm224_vm0, %v12664_v7  ;;  %10604 = vmatmul.mubr.msk.bf16.gmra.mrb[28].mxu1 %vm224_vm0, %v12666_v8 }
  0x71   : > { %10619 = vmatprep.mubr.msk.bf16.mxu0 %vm224_vm0, %v12494_v19  ;;  %10607 = vmatprep.mubr.msk.bf16.mxu1 %vm224_vm0, %v12668_v9 }
  0x72   : > { %10680 = vmatpush3.bf16.msra.mxu0 %v12165_v6 }
  0x73   : > { %10681 = vmatprep.subr.bf16.mxu0 %v12166_v10 }
  0x76   : > { %10682 = vmatpush3.bf16.msra.mxu0 %v12166_v10 }
  0x78   : > { %10620 = vmatmul.mubr.msk.bf16.gmra.mrb[4].mxu0 %vm224_vm0, %v12503_v22  ;;  %10608 = vmatmul.mubr.msk.bf16.gmra.mrb[32].mxu1 %vm224_vm0, %v12681_v11 }
  0x79   : > { %10623 = vmatprep.mubr.msk.bf16.mxu0 %vm224_vm0, %v12517_v26  ;;  %10751 = vmatprep.mubr.msk.bf16.mxu1 %vm224_vm0, %v12494_v19 }
  0x80   : > { %10624 = vmatmul.mubr.msk.bf16.gmra.mrb[8].mxu0 %vm224_vm0, %v12531_v31  ;;  %10752 = vmatmul.mubr.msk.bf16.vlgmr.msra.gmra.mrb[36].mxu1 %vm224_vm0, %v12503_v22 }
  0x81   : > { %10627 = vmatprep.mubr.msk.bf16.mxu0 %vm224_vm0, %v12536_v33  ;;  %10755 = vmatprep.mubr.msk.bf16.mxu1 %vm224_vm0, %v12517_v26 }
  0x82   : > { %10816 = vmatpush3.bf16.msra.mxu1 %v12164_v55 }
  0x83   : > { %10817 = vmatprep.subr.bf16.mxu1 %v12167_v12 }
  0x86   : > { %10818 = vmatpush3.bf16.msra.mxu1 %v12167_v12 }
  0x87   : > { %10883 = vmatprep.subr.bf16.mxu1 %v12168_v13 }
  0x88   : > { %10628 = vmatmul.mubr.msk.bf16.gmra.mrb[12].mxu0 %vm224_vm0, %v12560_v42  ;;  %10756 = vmatmul.mubr.msk.bf16.gmra.mrb[40].mxu1 %vm224_vm0, %v12531_v31 }
  0x89   : > { %10631 = vmatprep.mubr.msk.bf16.mxu0 %vm224_vm0, %v12569_v46  ;;  %10759 = vmatprep.mubr.msk.bf16.mxu1 %vm224_vm0, %v12536_v33 }
  0x90   : > { %10632 = vmatmul.mubr.msk.bf16.gmra.mrb[16].mxu0 %vm224_vm0, %v12593_v53  ;;  %10760 = vmatmul.mubr.msk.bf16.gmra.mrb[44].mxu1 %vm224_vm0, %v12560_v42 }
  0x91   : > { %10635 = vmatprep.mubr.msk.bf16.mxu0 %vm224_vm0, %v12601_v56  ;;  %10763 = vmatprep.mubr.msk.bf16.mxu1 %vm224_vm0, %v12569_v46 }
  0x98   : > { %10636 = vmatmul.mubr.msk.bf16.gmra.mrb[20].mxu0 %vm224_vm0, %v12613_v58  ;;  %10764 = vmatmul.mubr.msk.bf16.gmra.mrb[48].mxu1 %vm224_vm0, %v12593_v53 }
  0x99   : > { %10639 = vmatprep.mubr.msk.bf16.mxu0 %vm224_vm0, %v12617_v60  ;;  %10767 = vmatprep.mubr.msk.bf16.mxu1 %vm224_vm0, %v12601_v56 }
  0xa0   : > { %10640 = vmatmul.mubr.msk.bf16.gmra.mrb[24].mxu0 %vm224_vm0, %v12629_v62  ;;  %10768 = vmatmul.mubr.msk.bf16.gmra.mrb[52].mxu1 %vm224_vm0, %v12613_v58 }
  0xa1   : > { %10643 = vmatprep.mubr.msk.bf16.mxu0 %vm224_vm0, %v12633_v0  ;;  %10771 = vmatprep.mubr.msk.bf16.mxu1 %vm224_vm0, %v12617_v60 }
  0xa8   : > { %10644 = vmatmul.mubr.msk.bf16.gmra.mrb[28].mxu0 %vm224_vm0, %v12645_v2  ;;  %10772 = vmatmul.mubr.msk.bf16.gmra.mrb[56].mxu1 %vm224_vm0, %v12629_v62 }
  0xa9   : > { %10647 = vmatprep.mubr.msk.bf16.mxu0 %vm224_vm0, %v12501_v21  ;;  %10775 = vmatprep.mubr.msk.bf16.mxu1 %vm224_vm0, %v12633_v0 }
  0xb0   : > { %10648 = vmatmul.mubr.msk.bf16.gmra.mrb[32].mxu0 %vm224_vm0, %v12511_v24  ;;  %10776 = vmatmul.mubr.msk.bf16.gmra.mrb[60].mxu1 %vm224_vm0, %v12645_v2 }
  0xb1   : > { %10651 = vmatprep.mubr.msk.bf16.mxu0 %vm224_vm0, %v12519_v27  ;;  %10779 = vmatprep.mubr.msk.bf16.mxu1 %vm224_vm0, %v12501_v21 }
  0xb8   : > { %10652 = vmatmul.mubr.msk.bf16.gmra.mrb[36].mxu0 %vm224_vm0, %v12533_v32  ;;  %10780 = vmatmul.mubr.msk.bf16.gmra.mrb[64].mxu1 %vm224_vm0, %v12511_v24 }
  0xb9   : > { %10655 = vmatprep.mubr.msk.bf16.mxu0 %vm224_vm0, %v12540_v35  ;;  %10783 = vmatprep.mubr.msk.bf16.mxu1 %vm224_vm0, %v12519_v27 }
  0xc0   : > { %10656 = vmatmul.mubr.msk.bf16.gmra.mrb[40].mxu0 %vm224_vm0, %v12565_v44  ;;  %10784 = vmatmul.mubr.msk.bf16.gmra.mrb[68].mxu1 %vm224_vm0, %v12533_v32 }
  0xc1   : > { %10659 = vmatprep.mubr.msk.bf16.mxu0 %vm224_vm0, %v12573_v48  ;;  %10787 = vmatprep.mubr.msk.bf16.mxu1 %vm224_vm0, %v12540_v35 }
  0xc8   : > { %10660 = vmatmul.mubr.msk.bf16.gmra.mrb[44].mxu0 %vm224_vm0, %v12596_v54  ;;  %10788 = vmatmul.mubr.msk.bf16.gmra.mrb[72].mxu1 %vm224_vm0, %v12565_v44 }
  0xc9   : > { %10663 = vmatprep.mubr.msk.bf16.mxu0 %vm224_vm0, %v12603_v57  ;;  %10791 = vmatprep.mubr.msk.bf16.mxu1 %vm224_vm0, %v12573_v48 }
  0xd0   : > { %10664 = vmatmul.mubr.msk.bf16.gmra.mrb[48].mxu0 %vm224_vm0, %v12615_v59  ;;  %10792 = vmatmul.mubr.msk.bf16.gmra.mrb[76].mxu1 %vm224_vm0, %v12596_v54 }
  0xd1   : > { %10667 = vmatprep.mubr.msk.bf16.mxu0 %vm224_vm0, %v12619_v61  ;;  %10795 = vmatprep.mubr.msk.bf16.mxu1 %vm224_vm0, %v12603_v57 }
  0xd8   : > { %10668 = vmatmul.mubr.msk.bf16.gmra.mrb[52].mxu0 %vm224_vm0, %v12631_v63  ;;  %10796 = vmatmul.mubr.msk.bf16.gmra.mrb[80].mxu1 %vm224_vm0, %v12615_v59 }
  0xd9   : > { %10671 = vmatprep.mubr.msk.bf16.mxu0 %vm224_vm0, %v12635_v1  ;;  %10799 = vmatprep.mubr.msk.bf16.mxu1 %vm224_vm0, %v12619_v61 }
  0xe0   : > { %10672 = vmatmul.mubr.msk.bf16.gmra.mrb[56].mxu0 %vm224_vm0, %v12647_v3  ;;  %10800 = vmatmul.mubr.msk.bf16.gmra.mrb[84].mxu1 %vm224_vm0, %v12631_v63 }
  0xe1   : > { %10675 = vmatprep.mubr.msk.bf16.mxu0 %vm224_vm0, %v12651_v5  ;;  %10803 = vmatprep.mubr.msk.bf16.mxu1 %vm224_vm0, %v12635_v1 }
  0xe8   : > { %10676 = vmatmul.mubr.msk.bf16.gmra.mrb[60].mxu0 %vm224_vm0, %v12666_v8  ;;  %10804 = vmatmul.mubr.msk.bf16.gmra.mrb[88].mxu1 %vm224_vm0, %v12647_v3 }
  0xe9   : > { %10683 = vmatprep.mubr.msk.bf16.mxu0 %vm224_vm0, %v12517_v26  ;;  %10807 = vmatprep.mubr.msk.bf16.mxu1 %vm224_vm0, %v12651_v5 }
  0xf0   : > { %10684 = vmatmul.mubr.msk.bf16.vlgmr.msra.gmra.mrb[0].mxu0 %vm224_vm0, %v12531_v31  ;;  %10808 = vmatmul.mubr.msk.bf16.gmra.mrb[92].mxu1 %vm224_vm0, %v12666_v8 }
  0xf1   : > { %10687 = vmatprep.mubr.msk.bf16.mxu0 %vm224_vm0, %v12536_v33  ;;  %10811 = vmatprep.mubr.msk.bf16.mxu1 %vm224_vm0, %v12668_v9 }
  0xf8   : > { %10688 = vmatmul.mubr.msk.bf16.gmra.mrb[4].mxu0 %vm224_vm0, %v12560_v42  ;;  %10812 = vmatmul.mubr.msk.bf16.gmra.mrb[96].mxu1 %vm224_vm0, %v12681_v11 }
  0xf9   : > { %10691 = vmatprep.mubr.msk.bf16.mxu0 %vm224_vm0, %v12569_v46  ;;  %10819 = vmatprep.mubr.msk.bf16.mxu1 %vm224_vm0, %v2633_v14  ;;  %v470_v14 = vld [vmem:[%s16879_s3 + $0x8] sm:$0xff] }
 0x100   : > { %10692 = vmatmul.mubr.msk.bf16.gmra.mrb[8].mxu0 %vm224_vm0, %v12593_v53  ;;  %10820 = vmatmul.mubr.msk.bf16.vlgmr.msra.gmra.mrb[36].mxu1 %vm224_vm0, %v2634_v15 }
 0x101   : > { %10695 = vmatprep.mubr.msk.bf16.mxu0 %vm224_vm0, %v12601_v56  ;;  %10823 = vmatprep.mubr.msk.bf16.mxu1 %vm224_vm0, %v12649_v4 }
 0x102   : > { %10884 = vmatpush3.bf16.msra.mxu1 %v12168_v13 }
 0x103   : > { %10885 = vmatprep.subr.bf16.mxu1 %v12169_v16 }
 0x106   : > { %10886 = vmatpush3.bf16.msra.mxu1 %v12169_v16 }
 0x107   : > { %10951 = vmatprep.subr.bf16.mxu1 %v12170_v51 }
 0x108   : > { %10696 = vmatmul.mubr.msk.bf16.gmra.mrb[12].mxu0 %vm224_vm0, %v12613_v58  ;;  %10824 = vmatmul.mubr.msk.bf16.gmra.mrb[40].mxu1 %vm224_vm0, %v12664_v7  ;;  %v469_v7 = vld [vmem:[%s16879_s3] sm:$0xff] }
 0x109   : > { %10699 = vmatprep.mubr.msk.bf16.mxu0 %vm224_vm0, %v12617_v60  ;;  %10827 = vmatprep.mubr.msk.bf16.mxu1 %vm224_vm0, %v12494_v19 }
 0x10a   : > { %4668 = vrot.lane.b32.xlu0 %v469_v7, %s12308_s6 }
 0x10b   : > { %v12842_v17 = vpop.f32.mrb[0].mxu1 }
 0x10c   : > { %v12844_v18 = vpop.f32.mrb[1].mxu1 }
 0x10d   : > { %v12846_v20 = vpop.f32.mrb[2].mxu1 }
 0x10e   : > { %v12848_v23 = vpop.f32.mrb[3].mxu1  ;;  %4670 = vrot.lane.b32.xlu0 %v470_v14, %s12308_s6  ;;  %v13005_v14 = vld [vmem:[#allocation2 + $0x140] sm:$0xff] }
 0x110   : > { %10700 = vmatmul.mubr.msk.bf16.gmra.mrb[16].mxu0 %vm224_vm0, %v12629_v62  ;;  %10828 = vmatmul.mubr.msk.bf16.gmra.mrb[44].mxu1 %vm224_vm0, %v12503_v22 }
 0x111   : > { %10703 = vmatprep.mubr.msk.bf16.mxu0 %vm224_vm0, %v12633_v0  ;;  %10831 = vmatprep.mubr.msk.bf16.mxu1 %vm224_vm0, %v12517_v26 }
 0x113   : > { %v12858_v19 = vpop.f32.mrb[4].mxu1 }
 0x114   : > { %v12860_v25 = vpop.f32.mrb[5].mxu1 }
 0x115   : > { %v12862_v28 = vpop.f32.mrb[6].mxu1 }
 0x116   : > { %v12864_v29 = vpop.f32.mrb[7].mxu1 }
 0x118   : > { %10704 = vmatmul.mubr.msk.bf16.gmra.mrb[20].mxu0 %vm224_vm0, %v12645_v2  ;;  %10832 = vmatmul.mubr.msk.bf16.gmra.mrb[48].mxu1 %vm224_vm0, %v12531_v31 }
 0x119   : > { %10707 = vmatprep.mubr.msk.bf16.mxu0 %vm224_vm0, %v12501_v21  ;;  %10835 = vmatprep.mubr.msk.bf16.mxu1 %vm224_vm0, %v12536_v33 }
 0x11b   : > { %v12874_v22 = vpop.f32.mrb[8].mxu1 }
 0x11c   : > { %v12876_v26 = vpop.f32.mrb[9].mxu1 }
 0x11d   : > { %v12878_v30 = vpop.f32.mrb[10].mxu1 }
 0x11e   : > { %v12880_v34 = vpop.f32.mrb[11].mxu1 }
 0x120   : > { %10708 = vmatmul.mubr.msk.bf16.gmra.mrb[24].mxu0 %vm224_vm0, %v12511_v24  ;;  %10836 = vmatmul.mubr.msk.bf16.gmra.mrb[52].mxu1 %vm224_vm0, %v12560_v42 }
 0x121   : > { %10711 = vmatprep.mubr.msk.bf16.mxu0 %vm224_vm0, %v12519_v27  ;;  %10839 = vmatprep.mubr.msk.bf16.mxu1 %vm224_vm0, %v12569_v46 }
 0x123   : > { %v12890_v31 = vpop.f32.mrb[12].mxu1 }
 0x124   : > { %v12892_v36 = vpop.f32.mrb[13].mxu1 }
 0x125   : > { %v12894_v37 = vpop.f32.mrb[14].mxu1 }
 0x126   : > { %v12896_v38 = vpop.f32.mrb[15].mxu1 }
 0x128   : > { %10712 = vmatmul.mubr.msk.bf16.gmra.mrb[28].mxu0 %vm224_vm0, %v12533_v32  ;;  %10840 = vmatmul.mubr.msk.bf16.gmra.mrb[56].mxu1 %vm224_vm0, %v12593_v53 }
 0x129   : > { %10715 = vmatprep.mubr.msk.bf16.mxu0 %vm224_vm0, %v12540_v35  ;;  %10843 = vmatprep.mubr.msk.bf16.mxu1 %vm224_vm0, %v12601_v56 }
 0x12b   : > { %v12906_v39 = vpop.f32.mrb[16].mxu1 }
 0x12c   : > { %v12908_v40 = vpop.f32.mrb[17].mxu1 }
 0x12d   : > { %v12910_v41 = vpop.f32.mrb[18].mxu1 }
 0x12e   : > { %v12912_v43 = vpop.f32.mrb[19].mxu1 }
 0x130   : > { %10716 = vmatmul.mubr.msk.bf16.gmra.mrb[32].mxu0 %vm224_vm0, %v12565_v44  ;;  %10844 = vmatmul.mubr.msk.bf16.gmra.mrb[60].mxu1 %vm224_vm0, %v12613_v58 }
 0x131   : > { %10719 = vmatprep.mubr.msk.bf16.mxu0 %vm224_vm0, %v12573_v48  ;;  %10847 = vmatprep.mubr.msk.bf16.mxu1 %vm224_vm0, %v12617_v60 }
 0x133   : > { %v12922_v45 = vpop.f32.mrb[20].mxu1 }
 0x134   : > { %v12924_v47 = vpop.f32.mrb[21].mxu1 }
 0x135   : > { %v12926_v49 = vpop.f32.mrb[22].mxu1 }
 0x136   : > { %v12928_v50 = vpop.f32.mrb[23].mxu1 }
 0x138   : > { %10720 = vmatmul.mubr.msk.bf16.gmra.mrb[36].mxu0 %vm224_vm0, %v12596_v54  ;;  %10848 = vmatmul.mubr.msk.bf16.gmra.mrb[64].mxu1 %vm224_vm0, %v12629_v62 }
 0x139   : > { %10723 = vmatprep.mubr.msk.bf16.mxu0 %vm224_vm0, %v12603_v57  ;;  %10851 = vmatprep.mubr.msk.bf16.mxu1 %vm224_vm0, %v12633_v0 }
 0x13b   : > { %v12941_v52 = vpop.f32.mrb[24].mxu1 }
 0x13c   : > { %v12943_v55 = vpop.f32.mrb[25].mxu1 }
 0x13d   : > { %v12945_v4 = vpop.f32.mrb[26].mxu1 }
 0x13e   : > { %v12947_v6 = vpop.f32.mrb[27].mxu1 }
 0x140   : > { %10724 = vmatmul.mubr.msk.bf16.gmra.mrb[40].mxu0 %vm224_vm0, %v12615_v59  ;;  %10852 = vmatmul.mubr.msk.bf16.gmra.mrb[68].mxu1 %vm224_vm0, %v12645_v2 }
 0x141   : > { %10727 = vmatprep.mubr.msk.bf16.mxu0 %vm224_vm0, %v12619_v61  ;;  %10855 = vmatprep.mubr.msk.bf16.mxu1 %vm224_vm0, %v12501_v21 }
 0x143   : > { %v12961_v10 = vpop.f32.mrb[28].mxu1 }
 0x144   : > { %v12963_v12 = vpop.f32.mrb[29].mxu1 }
 0x145   : > { %v12965_v13 = vpop.f32.mrb[30].mxu1 }
 0x146   : > { %17039 = vst [vmem:[#allocation6_spill] sm:$0xff] %v12965_v13  ;;  %v12970_v15 = vpop.f32.mrb[31].mxu1 }
 0x147   : > { %17040 = vst [vmem:[#allocation7_spill] sm:$0xff] %v12970_v15 }
 0x148   : > { %10728 = vmatmul.mubr.msk.bf16.gmra.mrb[44].mxu0 %vm224_vm0, %v12631_v63  ;;  %10856 = vmatmul.mubr.msk.bf16.gmra.mrb[72].mxu1 %vm224_vm0, %v12511_v24 }
 0x149   : > { %10731 = vmatprep.mubr.msk.bf16.mxu0 %vm224_vm0, %v12635_v1  ;;  %10859 = vmatprep.mubr.msk.bf16.mxu1 %vm224_vm0, %v12519_v27 }
 0x14b   : > { %v12981_v16 = vpop.f32.mrb[32].mxu1 }
 0x14c   : > { %17041 = vst [vmem:[#allocation8_spill] sm:$0xff] %v12981_v16  ;;  %v12983_v7 = vpop.f32.mrb[33].mxu1 }
 0x14d   : > { %17042 = vst [vmem:[#allocation9_spill] sm:$0xff] %v12983_v7  ;;  %v12985_v13 = vpop.f32.mrb[34].mxu1 }
 0x14e   : > { %17043 = vst [vmem:[#allocation10_spill] sm:$0xff] %v12985_v13  ;;  %v12987_v15 = vpop.f32.mrb[35].mxu1  ;;  %v12171_v13 = vld [vmem:[%s16877_s1 + $0x78] sm:$0xff]  }
 0x14f   : > { %17044 = vst [vmem:[#allocation11_spill] sm:$0xff] %v12987_v15  ;;  %v13015_v15 = vld [vmem:[#allocation2 + $0x148] sm:$0xff] }
 0x150   : > { %10732 = vmatmul.mubr.msk.bf16.gmra.mrb[48].mxu0 %vm224_vm0, %v12647_v3  ;;  %10860 = vmatmul.mubr.msk.bf16.gmra.mrb[76].mxu1 %vm224_vm0, %v12533_v32 }
 0x151   : > { %10735 = vmatprep.mubr.msk.bf16.mxu0 %vm224_vm0, %v12651_v5  ;;  %10863 = vmatprep.mubr.msk.bf16.mxu1 %vm224_vm0, %v12540_v35 }
 0x158   : > { %10736 = vmatmul.mubr.msk.bf16.gmra.mrb[52].mxu0 %vm224_vm0, %v12666_v8  ;;  %10864 = vmatmul.mubr.msk.bf16.gmra.mrb[80].mxu1 %vm224_vm0, %v12565_v44 }
 0x159   : > { %10739 = vmatprep.mubr.msk.bf16.mxu0 %vm224_vm0, %v12668_v9  ;;  %10867 = vmatprep.mubr.msk.bf16.mxu1 %vm224_vm0, %v12573_v48 }
 0x160   : > { %10740 = vmatmul.mubr.msk.bf16.gmra.mrb[56].mxu0 %vm224_vm0, %v12681_v11  ;;  %10868 = vmatmul.mubr.msk.bf16.gmra.mrb[84].mxu1 %vm224_vm0, %v12596_v54 }
 0x161   : > { %10743 = vmatprep.mubr.msk.bf16.mxu0 %vm224_vm0, %v13005_v14  ;;  %10871 = vmatprep.mubr.msk.bf16.mxu1 %vm224_vm0, %v12603_v57 }
 0x168   : > { %10744 = vmatmul.mubr.msk.bf16.gmra.mrb[60].mxu0 %vm224_vm0, %v13015_v15  ;;  %10872 = vmatmul.mubr.msk.bf16.gmra.mrb[88].mxu1 %vm224_vm0, %v12615_v59 }
 0x169   : > { %10875 = vmatprep.mubr.msk.bf16.mxu1 %vm224_vm0, %v12619_v61 }
 0x170   : > { %10876 = vmatmul.mubr.msk.bf16.gmra.mrb[92].mxu1 %vm224_vm0, %v12631_v63 }
 0x171   : > { %10879 = vmatprep.mubr.msk.bf16.mxu1 %vm224_vm0, %v12635_v1 }
 0x178   : > { %10880 = vmatmul.mubr.msk.bf16.gmra.mrb[96].mxu1 %vm224_vm0, %v12647_v3 }
 0x179   : > { %10887 = vmatprep.mubr.msk.bf16.mxu1 %vm224_vm0, %v12536_v33 }
 0x180   : > { %10888 = vmatmul.mubr.msk.bf16.vlgmr.msra.gmra.mrb[36].mxu1 %vm224_vm0, %v12560_v42 }
 0x181   : > { %10891 = vmatprep.mubr.msk.bf16.mxu1 %vm224_vm0, %v12569_v46  ;;  %10952 = vmatpush3.bf16.msra.mxu1 %v12170_v51 }
 0x182   : > { %10953 = vmatprep.subr.bf16.mxu1 %v12171_v13 }
 0x185   : > { %10954 = vmatpush3.bf16.msra.mxu1 %v12171_v13 }
 0x188   : > { %10892 = vmatmul.mubr.msk.bf16.gmra.mrb[40].mxu1 %vm224_vm0, %v12593_v53 }
 0x189   : > { %10895 = vmatprep.mubr.msk.bf16.mxu1 %vm224_vm0, %v12601_v56 }
 0x190   : > { %10896 = vmatmul.mubr.msk.bf16.gmra.mrb[44].mxu1 %vm224_vm0, %v12613_v58 }
 0x191   : > { %10899 = vmatprep.mubr.msk.bf16.mxu1 %vm224_vm0, %v12617_v60 }
 0x198   : > { %10900 = vmatmul.mubr.msk.bf16.gmra.mrb[48].mxu1 %vm224_vm0, %v12629_v62 }
 0x199   : > { %10903 = vmatprep.mubr.msk.bf16.mxu1 %vm224_vm0, %v12633_v0 }
 0x1a0   : > { %10904 = vmatmul.mubr.msk.bf16.gmra.mrb[52].mxu1 %vm224_vm0, %v12645_v2 }
 0x1a1   : > { %10907 = vmatprep.mubr.msk.bf16.mxu1 %vm224_vm0, %v12501_v21  ;;  %v13069_v21 = vld [vmem:[%s16877_s1 + $0x60] sm:$0xff]  }
 0x1a2   : > { %11019 = vmatprep.subr.bf16.mxu1 %v13069_v21 }
 0x1a8   : > { %10908 = vmatmul.mubr.msk.bf16.gmra.mrb[56].mxu1 %vm224_vm0, %v12511_v24 }
 0x1a9   : > { %10911 = vmatprep.mubr.msk.bf16.mxu1 %vm224_vm0, %v12519_v27 }
 0x1b0   : > { %10912 = vmatmul.mubr.msk.bf16.gmra.mrb[60].mxu1 %vm224_vm0, %v12533_v32 }
 0x1b1   : > { %10915 = vmatprep.mubr.msk.bf16.mxu1 %vm224_vm0, %v12540_v35 }
 0x1b8   : > { %10916 = vmatmul.mubr.msk.bf16.gmra.mrb[64].mxu1 %vm224_vm0, %v12565_v44 }
 0x1b9   : > { %10919 = vmatprep.mubr.msk.bf16.mxu1 %vm224_vm0, %v12573_v48 }
 0x1c0   : > { %10920 = vmatmul.mubr.msk.bf16.gmra.mrb[68].mxu1 %vm224_vm0, %v12596_v54 }
 0x1c1   : > { %10923 = vmatprep.mubr.msk.bf16.mxu1 %vm224_vm0, %v12603_v57 }
 0x1c3   : > { %v13076_v24 = vpop.f32.mrb[0].mxu0 }
 0x1c4   : > { %17045 = vst [vmem:[#allocation12_spill] sm:$0xff] %v13076_v24  ;;  %v13078_v27 = vpop.f32.mrb[1].mxu0  ;;  %v1872_v32 = vrot.slane %v13076_v24, 1  ;;  %v2129_v35 = vrot.slane %v13076_v24, 2 }
 0x1c5   : > { %17046 = vst [vmem:[#allocation13_spill] sm:$0xff] %v13078_v27  ;;  %v10686_v33 = vpop.f32.mrb[2].mxu0 }
 0x1c6   : > { %v2131_v44 = vrot.slane %v10686_v33, 2  ;;  %1923 = vrot.lane.b32.xlu1 %v1872_v32, %s12308_s6  ;;  %v13083_v48 = vpop.f32.mrb[3].mxu0 }
 0x1c7   : > { %17047 = vst [vmem:[#allocation14_spill] sm:$0xff] %v13083_v48  ;;  %v1871_v54 = vrot.slane %v13083_v48, 1  ;;  %v2128_v57 = vrot.slane %v13083_v48, 2 }
 0x1c8   : > { %v2132_v51 = vsel %vm2127_vm3, %v2129_v35, %v2131_v44  ;;  %10924 = vmatmul.mubr.msk.bf16.gmra.mrb[72].mxu1 %vm224_vm0, %v12615_v59 }
 0x1c9   : > { %v1873_v13 = vsel %vm1870_vm4, %v1871_v54, %v1872_v32  ;;  %v2130_v27 = vsel %vm2127_vm3, %v2128_v57, %v2129_v35  ;;  %10927 = vmatprep.mubr.msk.bf16.mxu1 %vm224_vm0, %v12619_v61 }
 0x1ca   : > { %1919 = vrot.lane.b32.xlu1 %v1871_v54, %s12308_s6  ;;  %1921 = vrot.lane.b32.xlu0 %v1873_v13, %s12308_s6 }
 0x1cb   : > { %v13094_v33 = vpop.f32.mrb[4].mxu0 }
 0x1cc   : > { %17048 = vst [vmem:[#allocation15_spill] sm:$0xff] %v13094_v33  ;;  %v13098_v24 = vpop.f32.mrb[5].mxu0  ;;  %v2134_v44 = vrot.slane %v13094_v33, 2  ;;  %v1875_v32 = vrot.slane %v13094_v33, 1 }
 0x1cd   : > { %17049 = vst [vmem:[#allocation16_spill] sm:$0xff] %v13098_v24  ;;  %v10690_v48 = vpop.f32.mrb[6].mxu0 }
 0x1ce   : > { %v2136_v7 = vrot.slane %v10690_v48, 2  ;;  %2208 = vrot.lane.b32.xlu1 %v2128_v57, %s12309_s13  ;;  %2210 = vrot.lane.b32.xlu0 %v2130_v27, %s12309_s13  ;;  %v13103_v59 = vpop.f32.mrb[7].mxu0 }
 0x1cf   : > { %17050 = vst [vmem:[#allocation17_spill] sm:$0xff] %v13103_v59  ;;  %v1874_v35 = vrot.slane %v13103_v59, 1  ;;  %v2133_v54 = vrot.slane %v13103_v59, 2  ;;  %v3404_v59 = vld [vmem:[#allocation2 + $0x150] sm:$0xff] }
 0x1d0   : > { %v2137_v61 = vsel %vm2127_vm3, %v2134_v44, %v2136_v7  ;;  %10928 = vmatmul.mubr.msk.bf16.gmra.mrb[76].mxu1 %vm224_vm0, %v12631_v63 }
 0x1d1   : > { %v1876_v48 = vsel %vm1870_vm4, %v1874_v35, %v1875_v32  ;;  %v2135_v13 = vsel %vm2127_vm3, %v2133_v54, %v2134_v44  ;;  %10931 = vmatprep.mubr.msk.bf16.mxu1 %vm224_vm0, %v12635_v1 }
 0x1d2   : > { %2212 = vrot.lane.b32.xlu1 %v2132_v51, %s12309_s13  ;;  %1927 = vrot.lane.b32.xlu0 %v1876_v48, %s12308_s6 }
 0x1d3   : > { %v13115_v27 = vpop.f32.mrb[8].mxu0 }
 0x1d4   : > { %17051 = vst [vmem:[#allocation18_spill] sm:$0xff] %v13115_v27  ;;  %v13119_v57 = vpop.f32.mrb[9].mxu0  ;;  %v2139_v7 = vrot.slane %v13115_v27, 2  ;;  %v1878_v51 = vrot.slane %v13115_v27, 1 }
 0x1d5   : > { %17052 = vst [vmem:[#allocation19_spill] sm:$0xff] %v13119_v57  ;;  %v10694_v33 = vpop.f32.mrb[10].mxu0 }
 0x1d6   : > { %v2141_v24 = vrot.slane %v10694_v33, 2  ;;  %1929 = vrot.lane.b32.xlu1 %v1875_v32, %s12308_s6  ;;  %2216 = vrot.lane.b32.xlu0 %v2135_v13, %s12309_s13  ;;  %v13124_v63 = vpop.f32.mrb[11].mxu0 }
 0x1d7   : > { %17053 = vst [vmem:[#allocation20_spill] sm:$0xff] %v13124_v63  ;;  %v1877_v44 = vrot.slane %v13124_v63, 1  ;;  %v2138_v48 = vrot.slane %v13124_v63, 2 }
 0x1d8   : > { %v2142_v1 = vsel %vm2127_vm3, %v2139_v7, %v2141_v24  ;;  %10932 = vmatmul.mubr.msk.bf16.gmra.mrb[80].mxu1 %vm224_vm0, %v12647_v3 }
 0x1d9   : > { %v1879_v57 = vsel %vm1870_vm4, %v1877_v44, %v1878_v51  ;;  %v2140_v33 = vsel %vm2127_vm3, %v2138_v48, %v2139_v7  ;;  %10935 = vmatprep.mubr.msk.bf16.mxu1 %vm224_vm0, %v12651_v5 }
 0x1da   : > { %1925 = vrot.lane.b32.xlu1 %v1874_v35, %s12308_s6  ;;  %1935 = vrot.lane.b32.xlu0 %v1878_v51, %s12308_s6 }
 0x1db   : > { %v13136_v32 = vpop.f32.mrb[12].mxu0 }
 0x1dc   : > { %17054 = vst [vmem:[#allocation21_spill] sm:$0xff] %v13136_v32  ;;  %v13140_v13 = vpop.f32.mrb[13].mxu0  ;;  %v2144_v24 = vrot.slane %v13136_v32, 2  ;;  %v1881_v35 = vrot.slane %v13136_v32, 1 }
 0x1dd   : > { %17055 = vst [vmem:[#allocation22_spill] sm:$0xff] %v13140_v13  ;;  %v10698_v63 = vpop.f32.mrb[14].mxu0 }
 0x1de   : > { %v2146_v27 = vrot.slane %v10698_v63, 2  ;;  %2214 = vrot.lane.b32.xlu1 %v2133_v54, %s12309_s13  ;;  %1931 = vrot.lane.b32.xlu0 %v1877_v44, %s12308_s6  ;;  %v13145_v3 = vpop.f32.mrb[15].mxu0 }
 0x1df   : > { %17056 = vst [vmem:[#allocation23_spill] sm:$0xff] %v13145_v3  ;;  %v1880_v7 = vrot.slane %v13145_v3, 1  ;;  %v2143_v51 = vrot.slane %v13145_v3, 2 }
 0x1e0   : > { %v2147_v5 = vsel %vm2127_vm3, %v2144_v24, %v2146_v27  ;;  %10936 = vmatmul.mubr.msk.bf16.gmra.mrb[84].mxu1 %vm224_vm0, %v12666_v8 }
 0x1e1   : > { %v1882_v13 = vsel %vm1870_vm4, %v1880_v7, %v1881_v35  ;;  %v2145_v63 = vsel %vm2127_vm3, %v2143_v51, %v2144_v24  ;;  %10939 = vmatprep.mubr.msk.bf16.mxu1 %vm224_vm0, %v12668_v9 }
 0x1e2   : > { %2218 = vrot.lane.b32.xlu1 %v2137_v61, %s12309_s13  ;;  %2220 = vrot.lane.b32.xlu0 %v2138_v48, %s12309_s13 }
 0x1e3   : > { %v13157_v54 = vpop.f32.mrb[16].mxu0 }
 0x1e4   : > { %17057 = vst [vmem:[#allocation24_spill] sm:$0xff] %v13157_v54  ;;  %v13161_v44 = vpop.f32.mrb[17].mxu0  ;;  %v2149_v27 = vrot.slane %v13157_v54, 2  ;;  %v1884_v61 = vrot.slane %v13157_v54, 1 }
 0x1e5   : > { %17058 = vst [vmem:[#allocation25_spill] sm:$0xff] %v13161_v44  ;;  %v10702_v32 = vpop.f32.mrb[18].mxu0 }
 0x1e6   : > { %v2151_v3 = vrot.slane %v10702_v32, 2  ;;  %2224 = vrot.lane.b32.xlu0 %v2142_v1, %s12309_s13  ;;  %1933 = vrot.lane.b32.xlu1 %v1879_v57, %s12308_s6  ;;  %v13166_v8 = vpop.f32.mrb[19].mxu0 }
 0x1e7   : > { %17059 = vst [vmem:[#allocation26_spill] sm:$0xff] %v13166_v8  ;;  %v1883_v48 = vrot.slane %v13166_v8, 1  ;;  %v2148_v24 = vrot.slane %v13166_v8, 2 }
 0x1e8   : > { %v13172_v9 = vsel %vm2127_vm3, %v2149_v27, %v2151_v3  ;;  %10940 = vmatmul.mubr.msk.bf16.gmra.mrb[88].mxu1 %vm224_vm0, %v12681_v11 }
 0x1e9   : > { %v1885_v32 = vsel %vm1870_vm4, %v1883_v48, %v1884_v61  ;;  %v2150_v1 = vsel %vm2127_vm3, %v2148_v24, %v2149_v27  ;;  %10943 = vmatprep.mubr.msk.bf16.mxu1 %vm224_vm0, %v13005_v14 }
 0x1ea   : > { %2222 = vrot.lane.b32.xlu1 %v2140_v33, %s12309_s13  ;;  %1941 = vrot.lane.b32.xlu0 %v1881_v35, %s12308_s6 }
 0x1eb   : > { %v13180_v57 = vpop.f32.mrb[20].mxu0 }
 0x1ec   : > { %v13184_v54 = vpop.f32.mrb[21].mxu0  ;;  %v2154_v44 = vrot.slane %v13180_v57, 2  ;;  %v16894_v33 = vrot.slane %v13180_v57, 1 }
 0x1ed   : > { %17060 = vst [vmem:[#allocation27_spill] sm:$0xff] %v13184_v54  ;;  %v10706_v3 = vpop.f32.mrb[22].mxu0 }
 0x1ee   : > { %v2156_v8 = vrot.slane %v10706_v3, 2  ;;  %1937 = vrot.lane.b32.xlu0 %v1880_v7, %s12308_s6  ;;  %1939 = vrot.lane.b32.xlu1 %v1882_v13, %s12308_s6  ;;  %v13189_v11 = vpop.f32.mrb[23].mxu0 }
 0x1ef   : > { %v16892_v35 = vrot.slane %v13189_v11, 1  ;;  %v16893_v27 = vrot.slane %v13189_v11, 2 }
 0x1f0   : > { %v13195_v14 = vsel %vm2127_vm3, %v2154_v44, %v2156_v8  ;;  %10944 = vmatmul.mubr.msk.bf16.gmra.mrb[92].mxu1 %vm224_vm0, %v13015_v15 }
 0x1f1   : > { %v1888_v13 = vsel %vm1870_vm4, %v16892_v35, %v16894_v33  ;;  %v2155_v7 = vsel %vm2127_vm3, %v16893_v27, %v2154_v44  ;;  %10947 = vmatprep.mubr.msk.bf16.mxu1 %vm224_vm0, %v3404_v59  ;;  %v3405_v44 = vld [vmem:[#allocation2 + $0x158] sm:$0xff]  ;;  %v12182_v33 = vld [vmem:[#allocation2 + $0x40] sm:$0xff] }
 0x1f2   : > { %2226 = vrot.lane.b32.xlu0 %v2143_v51, %s12309_s13  ;;  %2228 = vrot.lane.b32.xlu1 %v2145_v63, %s12309_s13 }
 0x1f3   : > { %v13209_v3 = vpop.f32.mrb[24].mxu0 }
 0x1f4   : > { %v13212_v8 = vpop.f32.mrb[25].mxu0  ;;  %v2159_v54 = vrot.slane %v13209_v3, 2  ;;  %v16896_v51 = vrot.slane %v13209_v3, 1 }
 0x1f5   : > { %17061 = vst [vmem:[#allocation28_spill] sm:$0xff] %v13212_v8  ;;  %v10710_v15 = vpop.f32.mrb[26].mxu0 }
 0x1f6   : > { %v2161_v16 = vrot.slane %v10710_v15, 2  ;;  %2230 = vrot.lane.b32.xlu0 %v2147_v5, %s12309_s13  ;;  %1945 = vrot.lane.b32.xlu1 %v1885_v32, %s12308_s6  ;;  %v13217_v35 = vpop.f32.mrb[27].mxu0 }
 0x1f7   : > { %v16895_v63 = vrot.slane %v13217_v35, 1  ;;  %v2158_v27 = vrot.slane %v13217_v35, 2 }
 0x1f8   : > { %v13223_v59 = vsel %vm2127_vm3, %v2159_v54, %v2161_v16  ;;  %10948 = vmatmul.mubr.msk.bf16.gmra.mrb[96].mxu1 %vm224_vm0, %v3405_v44 }
 0x1f9   : > { %v1891_v5 = vsel %vm1870_vm4, %v16895_v63, %v16896_v51  ;;  %v2160_v32 = vsel %vm2127_vm3, %v2158_v27, %v2159_v54  ;;  %10955 = vmatprep.mubr.msk.bf16.mxu1 %vm224_vm0, %v12182_v33 }
 0x1fa   : > { %1947 = vrot.lane.b32.xlu0 %v1884_v61, %s12308_s6  ;;  %2234 = vrot.lane.b32.xlu1 %v2150_v1, %s12309_s13  ;;  %v12183_v1 = vld [vmem:[#allocation2 + $0x48] sm:$0xff] }
 0x1fb   : > { %v10713_v15 = vpop.f32.mrb[28].mxu0 }
 0x1fc   : > { %v13238_v16 = vadd.f32 %v10713_v15, %v12842_v17  ;;  %v1631_v44 = vpop.f32.mrb[29].mxu0  ;;  %v12173_v17 = vld [vmem:[%s16877_s1 + $0x68] sm:$0xff]  }
 0x1fd   : > { %v13241_v8 = vadd.f32 %v1631_v44, %v12844_v18  ;;  %v10714_v63 = vpop.f32.mrb[30].mxu0 }
 0x1fe   : > { %17062 = vst [vmem:[#allocation29_spill] sm:$0xff] %v13238_v16  ;;  %v13244_v51 = vadd.f32 %v10714_v63, %v12846_v20  ;;  %1943 = vrot.lane.b32.xlu0 %v1883_v48, %s12308_s6  ;;  %1951 = vrot.lane.b32.xlu1 %v1888_v13, %s12308_s6  ;;  %v1634_v54 = vpop.f32.mrb[31].mxu0  ;;  %v12184_v20 = vld [vmem:[#allocation2 + $0x50] sm:$0xff] }
 0x1ff   : > { %17063 = vst [vmem:[#allocation30_spill] sm:$0xff] %v13241_v8  ;;  %v13249_v61 = vadd.f32 %v1634_v54, %v12848_v23 }
 0x200   : > { %10956 = vmatmul.mubr.msk.bf16.vlgmr.msra.gmra.mrb[100].mxu1 %vm224_vm0, %v12183_v1 }
 0x201   : > { %17064 = vst [vmem:[#allocation31_spill] sm:$0xff] %v13249_v61  ;;  %10959 = vmatprep.mubr.msk.bf16.mxu1 %vm224_vm0, %v12184_v20  ;;  %11020 = vmatpush3.bf16.msra.mxu1 %v13069_v21  ;;  %v2163_v44 = vrot.slane %v13249_v61, 2 }
 0x202   : > { %2232 = vrot.lane.b32.xlu0 %v2148_v24, %s12309_s13  ;;  %2240 = vrot.lane.b32.xlu1 %v2155_v7, %s12309_s13  ;;  %v12185_v7 = vld [vmem:[#allocation2 + $0x58] sm:$0xff] }
 0x203   : > { %v10717_v18 = vpop.f32.mrb[32].mxu0  ;;  %11021 = vmatprep.subr.bf16.mxu1 %v12173_v17 }
 0x204   : > { %v13260_v23 = vadd.f32 %v10717_v18, %v12858_v19  ;;  %v1647_v48 = vpop.f32.mrb[33].mxu0  ;;  %v1892_v19 = vrot.slane %v13249_v61, 1 }
 0x205   : > { %v13263_v33 = vadd.f32 %v1647_v48, %v12860_v25  ;;  %v10718_v13 = vpop.f32.mrb[34].mxu0  ;;  %11022 = vmatpush3.bf16.msra.mxu1 %v12173_v17  ;;  %v17068_v25 = vrot.slane %v13180_v57, 1 }
 0x206   : > { %17065 = vst [vmem:[#allocation32_spill] sm:$0xff] %v13260_v23  ;;  %v13266_v63 = vadd.f32 %v10718_v13, %v12862_v28  ;;  %2236 = vrot.lane.b32.xlu0 %v13172_v9, %s12309_s13  ;;  %1957 = vrot.lane.b32.xlu1 %v1891_v5, %s12308_s6  ;;  %v1650_v24 = vpop.f32.mrb[35].mxu0  ;;  %v1893_v28 = vrot.slane %v13238_v16, 1  ;;  %v12186_v5 = vld [vmem:[#allocation2 + $0x60] sm:$0xff]  ;;  %v17073_v13 = vrot.slane %v13189_v11, 2 }
 0x207   : > { %17066 = vst [vmem:[#allocation33_spill] sm:$0xff] %v13263_v33  ;;  %v13272_v21 = vadd.f32 %v1650_v24, %v12864_v29 }
 0x208   : > { %10960 = vmatmul.mubr.msk.bf16.gmra.mrb[104].mxu1 %vm224_vm0, %v12185_v7 }
 0x209   : > { %17067 = vst [vmem:[#allocation34_spill] sm:$0xff] %v13272_v21  ;;  %10963 = vmatprep.mubr.msk.bf16.mxu1 %vm224_vm0, %v12186_v5  ;;  %v1895_v48 = vrot.slane %v13272_v21, 1 }
 0x20a   : > { %1953 = vrot.lane.b32.xlu0 %v17068_v25, %s12308_s6  ;;  %2246 = vrot.lane.b32.xlu1 %v2160_v32, %s12309_s13  ;;  %v1894_v32 = vsel %vm1870_vm4, %v1892_v19, %v1893_v28  ;;  %v2168_v25 = vrot.slane %v13272_v21, 2  ;;  %v12175_v21 = vld [vmem:[%s16877_s1 + $0x88] sm:$0xff]  }
 0x20b   : > { %v10721_v9 = vpop.f32.mrb[36].mxu0 }
 0x20c   : > { %v13283_v29 = vadd.f32 %v10721_v9, %v12874_v22  ;;  %v1663_v15 = vpop.f32.mrb[37].mxu0  ;;  %v17071_v22 = vrot.slane %v13189_v11, 1 }
 0x20d   : > { %v13287_v54 = vadd.f32 %v1663_v15, %v12876_v26  ;;  %v10722_v17 = vpop.f32.mrb[38].mxu0  ;;  %v2164_v26 = vrot.slane %v13238_v16, 2  ;;  %v12198_v16 = vld [vmem:[#allocation2 + $0x108] sm:$0xff] }
 0x20e   : > { %17069 = vst [vmem:[#allocation35_spill] sm:$0xff] %v13283_v29  ;;  %v13295_v1 = vadd.f32 %v10722_v17, %v12878_v30  ;;  %1949 = vrot.lane.b32.xlu0 %v17071_v22, %s12308_s6  ;;  %1963 = vrot.lane.b32.xlu1 %v1894_v32, %s12308_s6  ;;  %v1666_v18 = vpop.f32.mrb[39].mxu0 }
 0x20f   : > { %17070 = vst [vmem:[#allocation36_spill] sm:$0xff] %v13287_v54  ;;  %v13303_v20 = vadd.f32 %v1666_v18, %v12880_v34  ;;  %v2165_v30 = vsel %vm2127_vm3, %v2163_v44, %v2164_v26  ;;  %v1896_v34 = vrot.slane %v13260_v23, 1 }
 0x210   : > { %10964 = vmatmul.mubr.msk.bf16.gmra.mrb[108].mxu1 %vm224_vm0, %v12560_v42 }
 0x211   : > { %17072 = vst [vmem:[#allocation37_spill] sm:$0xff] %v13303_v20  ;;  %10967 = vmatprep.mubr.msk.bf16.mxu1 %vm224_vm0, %v12569_v46  ;;  %v1897_v15 = vsel %vm1870_vm4, %v1895_v48, %v1896_v34  ;;  %v1898_v32 = vrot.slane %v13303_v20, 1 }
 0x212   : > { %2238 = vrot.lane.b32.xlu0 %v17073_v13, %s12309_s13  ;;  %2252 = vrot.lane.b32.xlu1 %v2165_v30, %s12309_s13  ;;  %v2173_v30 = vrot.slane %v13303_v20, 2 }
 0x213   : > { %v10725_v24 = vpop.f32.mrb[40].mxu0 }
 0x214   : > { %v13321_v42 = vadd.f32 %v10725_v24, %v12890_v31  ;;  %v1679_v7 = vpop.f32.mrb[41].mxu0  ;;  %v2169_v31 = vrot.slane %v13260_v23, 2 }
 0x215   : > { %v13325_v9 = vadd.f32 %v1679_v7, %v12892_v36  ;;  %v10726_v5 = vpop.f32.mrb[42].mxu0 }
 0x216   : > { %17074 = vst [vmem:[#allocation38_spill] sm:$0xff] %v13321_v42  ;;  %v13333_v17 = vadd.f32 %v10726_v5, %v12894_v37  ;;  %2242 = vrot.lane.b32.xlu0 %v13195_v14, %s12309_s13  ;;  %1969 = vrot.lane.b32.xlu1 %v1897_v15, %s12308_s6  ;;  %v1682_v46 = vpop.f32.mrb[43].mxu0  ;;  %v2170_v37 = vsel %vm2127_vm3, %v2168_v25, %v2169_v31  ;;  %v17077_v14 = vrot.slane %v13209_v3, 1 }
 0x217   : > { %17075 = vst [vmem:[#allocation39_spill] sm:$0xff] %v13325_v9  ;;  %v13340_v36 = vadd.f32 %v1682_v46, %v12896_v38  ;;  %v1899_v38 = vrot.slane %v13283_v29, 1 }
 0x218   : > { %10968 = vmatmul.mubr.msk.bf16.gmra.mrb[112].mxu1 %vm224_vm0, %v12593_v53 }
 0x219   : > { %17076 = vst [vmem:[#allocation40_spill] sm:$0xff] %v13340_v36  ;;  %10971 = vmatprep.mubr.msk.bf16.mxu1 %vm224_vm0, %v12601_v56  ;;  %v1900_v7 = vsel %vm1870_vm4, %v1898_v32, %v1899_v38  ;;  %v17080_v56 = vrot.slane %v13217_v35, 1 }
 0x21a   : > { %1959 = vrot.lane.b32.xlu0 %v17077_v14, %s12308_s6  ;;  %2258 = vrot.lane.b32.xlu1 %v2170_v37, %s12309_s13  ;;  %v1902_v37 = vrot.slane %v13321_v42, 1 }
 0x21b   : > { %v10729_v22 = vpop.f32.mrb[44].mxu0 }
 0x21c   : > { %v13358_v53 = vadd.f32 %v10729_v22, %v12906_v39  ;;  %v1695_v18 = vpop.f32.mrb[45].mxu0 }
 0x21d   : > { %v13362_v13 = vadd.f32 %v1695_v18, %v12908_v40  ;;  %v10730_v24 = vpop.f32.mrb[46].mxu0  ;;  %v2174_v40 = vrot.slane %v13283_v29, 2 }
 0x21e   : > { %17078 = vst [vmem:[#allocation41_spill] sm:$0xff] %v13358_v53  ;;  %v13370_v5 = vadd.f32 %v10730_v24, %v12910_v41  ;;  %1955 = vrot.lane.b32.xlu0 %v17080_v56, %s12308_s6  ;;  %1975 = vrot.lane.b32.xlu1 %v1900_v7, %s12308_s6  ;;  %v1698_v39 = vpop.f32.mrb[47].mxu0  ;;  %v2166_v56 = vrot.slane %v13244_v51, 2 }
 0x21f   : > { %17079 = vst [vmem:[#allocation42_spill] sm:$0xff] %v13362_v13  ;;  %v13378_v15 = vadd.f32 %v1698_v39, %v12912_v43  ;;  %v2175_v41 = vsel %vm2127_vm3, %v2173_v30, %v2174_v40 }
 0x220   : > { %10972 = vmatmul.mubr.msk.bf16.gmra.mrb[116].mxu1 %vm224_vm0, %v12613_v58 }
 0x221   : > { %17081 = vst [vmem:[#allocation43_spill] sm:$0xff] %v13378_v15  ;;  %10975 = vmatprep.mubr.msk.bf16.mxu1 %vm224_vm0, %v12617_v60 }
 0x222   : > { %2244 = vrot.lane.b32.xlu0 %v2158_v27, %s12309_s13  ;;  %2264 = vrot.lane.b32.xlu1 %v2175_v41, %s12309_s13  ;;  %v16902_v27 = vrot.slane %v13340_v36, 1 }
 0x223   : > { %v10733_v46 = vpop.f32.mrb[48].mxu0 }
 0x224   : > { %v13394_v43 = vadd.f32 %v10733_v46, %v12922_v45  ;;  %v1711_v58 = vpop.f32.mrb[49].mxu0 }
 0x225   : > { %v13398_v14 = vadd.f32 %v1711_v58, %v12924_v47  ;;  %v10734_v22 = vpop.f32.mrb[50].mxu0  ;;  %v17091_v58 = vld [vmem:[#allocation6_spill] sm:$0xff] }
 0x226   : > { %17082 = vst [vmem:[#allocation44_spill] sm:$0xff] %v13394_v43  ;;  %v13401_v18 = vadd.f32 %v10734_v22, %v12926_v49  ;;  %2248 = vrot.lane.b32.xlu0 %v13223_v59, %s12309_s13  ;;  %1983 = vrot.lane.b32.xlu1 %v1902_v37, %s12308_s6  ;;  %v1714_v60 = vpop.f32.mrb[51].mxu0  ;;  %v16899_v59 = vrot.slane %v13340_v36, 2 }
 0x227   : > { %17083 = vst [vmem:[#allocation45_spill] sm:$0xff] %v13398_v14  ;;  %v13409_v45 = vadd.f32 %v1714_v60, %v12928_v50 }
 0x228   : > { %10976 = vmatmul.mubr.msk.bf16.gmra.mrb[120].mxu1 %vm224_vm0, %v12629_v62  ;;  %v2181_v62 = vrot.slane %v13333_v17, 2 }
 0x229   : > { %17084 = vst [vmem:[#allocation46_spill] sm:$0xff] %v13409_v45  ;;  %10979 = vmatprep.mubr.msk.bf16.mxu1 %vm224_vm0, %v12633_v0 }
 0x22a   : > { %1965 = vrot.lane.b32.xlu0 %v1893_v28, %s12308_s6  ;;  %1979 = vrot.lane.b32.xlu1 %v16902_v27, %s12308_s6  ;;  %v12191_v27 = vld [vmem:[#allocation2 + $0xd0] sm:$0xff] }
 0x22b   : > { %v10737_v47 = vpop.f32.mrb[52].mxu0 }
 0x22c   : > { %v13423_v49 = vadd.f32 %v10737_v47, %v12941_v52  ;;  %v1727_v50 = vpop.f32.mrb[53].mxu0  ;;  %v16901_v52 = vrot.slane %v13321_v42, 2  ;;  %v17093_v47 = vld [vmem:[#allocation7_spill] sm:$0xff] }
 0x22d   : > { %v13428_v24 = vadd.f32 %v1727_v50, %v12943_v55  ;;  %v10738_v28 = vpop.f32.mrb[54].mxu0  ;;  %v13443_v55 = vpop.permute.xlu0 %4668 }
 0x22e   : > { %17085 = vst [vmem:[#allocation47_spill] sm:$0xff] %v13423_v49  ;;  %v13431_v7 = vadd.f32 %v10738_v28, %v12945_v4  ;;  %1961 = vrot.lane.b32.xlu0 %v1892_v19, %s12308_s6  ;;  %2268 = vrot.lane.b32.xlu1 %v16899_v59, %s12309_s13  ;;  %v1730_v0 = vpop.f32.mrb[55].mxu0  ;;  %17088 = vst [vmem:[#allocation50_spill] sm:$0xff] %v13443_v55  ;;  %v2182_v4 = vsel %vm2127_vm3, %v16901_v52, %v2181_v62  ;;  %v16897_v62 = vrot.slane %v13378_v15, 1  ;;  %v12188_v28 = vld [vmem:[#allocation2 + $0xb8] sm:$0xff] }
 0x22f   : > { %17086 = vst [vmem:[#allocation48_spill] sm:$0xff] %v13428_v24  ;;  %v13441_v17 = vadd.f32 %v1730_v0, %v12947_v6  ;;  %v12187_v6 = vld [vmem:[#allocation2 + $0xb0] sm:$0xff]  ;;  %v12189_v0 = vld [vmem:[#allocation2 + $0xc0] sm:$0xff]  ;;  %10227 = vmatprep.mubr.msk.f32.mxu0 %vm4672_vm6, %v13443_v55  ;;  %v17141_v55 = vrot.slane %v13394_v43, 2 }
 0x230   : > { %10980 = vmatmul.mubr.msk.bf16.gmra.mrb[124].mxu1 %vm224_vm0, %v12645_v2  ;;  %v16898_v2 = vrot.slane %v13358_v53, 1 }
 0x231   : > { %17087 = vst [vmem:[#allocation49_spill] sm:$0xff] %v13441_v17  ;;  %10983 = vmatprep.mubr.msk.bf16.mxu1 %vm224_vm0, %v12187_v6  ;;  %v13473_v60 = vpop.permute.xlu0 %4670  ;;  %v17146_v13 = vrot.slane %v13441_v17, 1 }
 0x232   : > { %2250 = vrot.lane.b32.xlu0 %v2163_v44, %s12309_s13  ;;  %2272 = vrot.lane.b32.xlu1 %v2182_v4, %s12309_s13  ;;  %v2167_v44 = vsel %vm2127_vm3, %v2164_v26, %v2166_v56  ;;  %17092 = vst [vmem:[#allocation6_spill] sm:$0xff] %v13473_v60  ;;  %v17095_v56 = vld [vmem:[#allocation8_spill] sm:$0xff] }
 0x233   : > { %v10741_v19 = vpop.f32.mrb[56].mxu0 }
 0x234   : > { %v13457_v39 = vadd.f32 %v10741_v19, %v12961_v10  ;;  %v1743_v51 = vpop.f32.mrb[57].mxu0 }
 0x235   : > { %v13461_v41 = vadd.f32 %v1743_v51, %v12963_v12  ;;  %v10742_v46 = vpop.f32.mrb[58].mxu0  ;;  %v16900_v51 = vrot.slane %v13378_v15, 2 }
 0x236   : > { %17089 = vst [vmem:[#allocation51_spill] sm:$0xff] %v13457_v39  ;;  %v13467_v22 = vadd.f32 %v10742_v46, %v17091_v58  ;;  %2254 = vrot.lane.b32.xlu0 %v2167_v44, %s12309_s13  ;;  %1989 = vrot.lane.b32.xlu1 %v16898_v2, %s12308_s6  ;;  %v1746_v10 = vpop.f32.mrb[59].mxu0  ;;  %v2186_v46 = vrot.slane %v13370_v5, 2  ;;  %v17097_v58 = vld [vmem:[#allocation9_spill] sm:$0xff]  ;;  %v17101_v5 = vld [vmem:[#allocation10_spill] sm:$0xff] }
 0x237   : > { %17090 = vst [vmem:[#allocation52_spill] sm:$0xff] %v13461_v41  ;;  %v13476_v12 = vadd.f32 %v1746_v10, %v17093_v47  ;;  %v16908_v47 = vrot.slane %v13358_v53, 2  ;;  %v12199_v41 = vld [vmem:[#allocation2 + $0x110] sm:$0xff] }
 0x238   : > { %v1924_v50 = vpop.permute.xlu1 %1923  ;;  %10984 = vmatmul.mubr.msk.bf16.gmra.mrb[128].mxu1 %vm224_vm0, %v12188_v28  ;;  %v17099_v28 = vld [vmem:[#allocation13_spill] sm:$0xff] }
 0x239   : > { %17094 = vst [vmem:[#allocation7_spill] sm:$0xff] %v13476_v12  ;;  %10987 = vmatprep.mubr.msk.bf16.mxu1 %vm224_vm0, %v12189_v0  ;;  %v17100_v0 = vld [vmem:[#allocation14_spill] sm:$0xff] }
 0x23a   : > { %1971 = vrot.lane.b32.xlu0 %v1896_v34, %s12308_s6  ;;  %1985 = vrot.lane.b32.xlu1 %v16897_v62, %s12308_s6 }
 0x23b   : > { %v10745_v26 = vpop.f32.mrb[60].mxu0 }
 0x23c   : > { %v13488_v4 = vadd.f32 %v10745_v26, %v17095_v56  ;;  %v1920_v19 = vpop.permute.xlu1 %1919  ;;  %v1922_v6 = vpop.permute.xlu0 %1921 }
 0x23d   : > { %v1759_v44 = vpop.f32.mrb[61].mxu0  ;;  %v2063_v26 = vadd.f32 %v1920_v19, %v17099_v28  ;;  %v2064_v56 = vadd.f32 %v1922_v6, %v17100_v0  ;;  %v13518_v19 = vld [vmem:[%s16877_s1 + $0x80] sm:$0xff]   ;;  %v2171_v6 = vrot.slane %v13266_v63, 2 }
 0x23e   : > { %17096 = vst [vmem:[#allocation8_spill] sm:$0xff] %v13488_v4  ;;  %v13493_v34 = vadd.f32 %v1759_v44, %v17097_v58  ;;  %v10746_v10 = vpop.f32.mrb[62].mxu0  ;;  %1967 = vrot.lane.b32.xlu0 %v1895_v48, %s12308_s6  ;;  %2274 = vrot.lane.b32.xlu1 %v16900_v51, %s12309_s13  ;;  %v17102_v58 = vld [vmem:[#allocation11_spill] sm:$0xff]  ;;  %v13513_v48 = vld [vmem:[%s16878_s2] ss:$0 sm:$0xff] }
 0x23f   : > { %v13505_v62 = vadd.f32 %v10746_v10, %v17101_v5  ;;  %v1762_v44 = vpop.f32.mrb[63].mxu0  ;;  %v12190_v10 = vld [vmem:[#allocation2 + $0xc8] sm:$0xff]  ;;  %v2187_v5 = vsel %vm2127_vm3, %v16908_v47, %v2186_v46  ;;  %11087 = vmatprep.subr.bf16.mxu1 %v13518_v19  ;;  %v16907_v46 = vrot.slane %v13394_v43, 1  ;;  %v12196_v47 = vld [vmem:[#allocation2 + $0xf8] sm:$0xff] }
 0x240   : > { %17098 = vst [vmem:[#allocation9_spill] sm:$0xff] %v13493_v34  ;;  %v13508_v2 = vadd.f32 %v1762_v44, %v17102_v58  ;;  %v2209_v59 = vpop.permute.xlu1 %2208  ;;  %v2211_v51 = vpop.permute.xlu0 %2210  ;;  %10988 = vmatmul.mubr.msk.bf16.gmra.mrb[132].mxu1 %vm224_vm0, %v12190_v10  ;;  %v17104_v44 = vld [vmem:[#allocation12_spill] sm:$0xff]  ;;  %v17120_v34 = vrot.slane %v13378_v15, 1 }
 0x241   : > { %v2352_v28 = vadd.f32 %v2209_v59, %v2063_v26  ;;  %v2353_v0 = vadd.f32 %v2211_v51, %v2064_v56  ;;  %v2065_v58 = vadd.f32 %v17104_v44, %v1924_v50  ;;  %10991 = vmatprep.mubr.msk.bf16.mxu1 %vm224_vm0, %v12191_v27  ;;  %v2172_v50 = vsel %vm2127_vm3, %v2169_v31, %v2171_v6  ;;  %v12192_v6 = vld [vmem:[#allocation2 + $0xd8] sm:$0xff] }
 0x242   : > { %17103 = vst [vmem:[#allocation13_spill] sm:$0xff] %v13508_v2  ;;  %2256 = vrot.lane.b32.xlu0 %v2168_v25, %s12309_s13  ;;  %2278 = vrot.lane.b32.xlu1 %v2187_v5, %s12309_s13 }
 0x243   : > { %v2407_v52 = vadd.f32 %v13513_v48, %v2352_v28  ;;  %v2408_v63 = vadd.f32 %v13513_v48, %v2353_v0  ;;  %v17105_v0 = vld [vmem:[#allocation17_spill] sm:$0xff] }
 0x244   : > { %v2213_v59 = vpop.permute.xlu1 %2212  ;;  %v1928_v51 = vpop.permute.xlu0 %1927 }
 0x245   : > { %v2455_v26 = vmax.f32 %v2407_v52, 0.0  ;;  %v2456_v56 = vmax.f32 %v2408_v63, 0.0  ;;  %v2354_v25 = vadd.f32 %v2213_v59, %v2065_v58  ;;  %v2067_v5 = vadd.f32 %v1928_v51, %v17105_v0 }
 0x246   : > { %2260 = vrot.lane.b32.xlu0 %v2172_v50, %s12309_s13  ;;  %1995 = vrot.lane.b32.xlu1 %v16907_v46, %s12308_s6  ;;  %v16905_v58 = vrot.slane %v13409_v45, 1  ;;  %v16903_v50 = vrot.slane %v13409_v45, 2 }
 0x247   : > { %v2552_v27 = vrot.slane %v2455_v26, 7  ;;  %v2553_v10 = vrot.slane %v2456_v56, 7  ;;  %v2409_v28 = vadd.f32 %v13513_v48, %v2354_v25  ;;  %v12193_v26 = vld [vmem:[#allocation2 + $0xe0] sm:$0xff] }
 0x248   : > { %v1930_v52 = vpop.permute.xlu1 %1929  ;;  %v2217_v44 = vpop.permute.xlu0 %2216  ;;  %10992 = vmatmul.mubr.msk.bf16.gmra.mrb[136].mxu1 %vm224_vm0, %v12192_v6  ;;  %v2176_v6 = vrot.slane %v13295_v1, 2  ;;  %v12195_v1 = vld [vmem:[#allocation2 + $0xf0] sm:$0xff] }
 0x249   : > { %v13546_v63 = vsel %vm2551_vm5, %v2552_v27, %v2553_v10  ;;  %v2457_v31 = vmax.f32 %v2409_v28, 0.0  ;;  %v2356_v59 = vadd.f32 %v2217_v44, %v2067_v5  ;;  %10995 = vmatprep.mubr.msk.bf16.mxu1 %vm224_vm0, %v12193_v26  ;;  %v2191_v27 = vrot.slane %v13401_v18, 2  ;;  %v17108_v18 = vld [vmem:[#allocation16_spill] sm:$0xff] }
 0x24a   : > { %17106 = vst [vmem:[#allocation14_spill] sm:$0xff] %v13546_v63  ;;  %1977 = vrot.lane.b32.xlu0 %v1899_v38, %s12308_s6  ;;  %1991 = vrot.lane.b32.xlu1 %v16905_v58, %s12308_s6  ;;  %v16904_v5 = vrot.slane %v13394_v43, 2 }
 0x24b   : > { %v2555_v51 = vrot.slane %v2457_v31, 7  ;;  %v2411_v0 = vadd.f32 %v13513_v48, %v2356_v59  ;;  %v12194_v59 = vld [vmem:[#allocation2 + $0xe8] sm:$0xff] }
 0x24c   : > { %v1926_v56 = vpop.permute.xlu1 %1925  ;;  %v1936_v25 = vpop.permute.xlu0 %1935 }
 0x24d   : > { %v13559_v28 = vsel %vm2551_vm5, %v2553_v10, %v2555_v51  ;;  %v2066_v44 = vadd.f32 %v1926_v56, %v17108_v18  ;;  %v2192_v51 = vsel %vm2127_vm3, %v16904_v5, %v2191_v27  ;;  %v2459_v26 = vmax.f32 %v2411_v0, 0.0  ;;  %v17109_v56 = vld [vmem:[#allocation15_spill] sm:$0xff] }
 0x24e   : > { %17107 = vst [vmem:[#allocation10_spill] sm:$0xff] %v13559_v28  ;;  %1973 = vrot.lane.b32.xlu0 %v1898_v32, %s12308_s6  ;;  %2280 = vrot.lane.b32.xlu1 %v16903_v50, %s12309_s13  ;;  %v2068_v18 = vadd.f32 %v17109_v56, %v1930_v52  ;;  %v16906_v27 = vrot.slane %v13423_v49, 1  ;;  %v2177_v52 = vsel %vm2127_vm3, %v2174_v40, %v2176_v6 }
 0x250   : > { %v2215_v10 = vpop.permute.xlu1 %2214  ;;  %v1932_v31 = vpop.permute.xlu0 %1931  ;;  %10996 = vmatmul.mubr.msk.bf16.gmra.mrb[140].mxu1 %vm224_vm0, %v12194_v59  ;;  %v17110_v59 = vld [vmem:[#allocation19_spill] sm:$0xff] }
 0x251   : > { %v2355_v32 = vadd.f32 %v2215_v10, %v2066_v44  ;;  %10999 = vmatprep.mubr.msk.bf16.mxu1 %vm224_vm0, %v12195_v1  ;;  %v2069_v44 = vadd.f32 %v1932_v31, %v17110_v59  ;;  %v16909_v31 = vrot.slane %v13441_v17, 1  ;;  %v17112_v1 = vld [vmem:[#allocation18_spill] sm:$0xff] }
 0x252   : > { %2262 = vrot.lane.b32.xlu0 %v2173_v30, %s12309_s13  ;;  %2284 = vrot.lane.b32.xlu1 %v2192_v51, %s12309_s13  ;;  %v2071_v59 = vadd.f32 %v17112_v1, %v1936_v25 }
 0x253   : > { %v2410_v38 = vadd.f32 %v13513_v48, %v2355_v32  ;;  %v13587_v10 = vpop.f32.mrb[36].mxu1  ;;  %v2558_v32 = vrot.slane %v2459_v26, 7 }
 0x254   : > { %v2219_v50 = vpop.permute.xlu1 %2218  ;;  %v13590_v5 = vpop.f32.mrb[37].mxu1  ;;  %v4162_v40 = vrot.slane %v13587_v10, 4 }
 0x255   : > { %v2458_v0 = vmax.f32 %v2410_v38, 0.0  ;;  %v2357_v30 = vadd.f32 %v2219_v50, %v2068_v18  ;;  %v2221_v58 = vpop.permute.xlu0 %2220  ;;  %v10890_v56 = vpop.f32.mrb[38].mxu1  ;;  %v17111_v38 = vrot.slane %v13340_v36, 1 }
 0x256   : > { %v2358_v51 = vadd.f32 %v2221_v58, %v2069_v44  ;;  %2266 = vrot.lane.b32.xlu0 %v2177_v52, %s12309_s13  ;;  %2001 = vrot.lane.b32.xlu1 %v16906_v27, %s12308_s6  ;;  %v4164_v6 = vrot.slane %v10890_v56, 4  ;;  %v13607_v26 = vpop.f32.mrb[39].mxu1  ;;  %v16911_v44 = vrot.slane %v13587_v10, 2 }
 0x257   : > { %v1903_v50 = vsel %vm1870_vm4, %v17111_v38, %v1902_v37  ;;  %v2557_v18 = vrot.slane %v2458_v0, 7  ;;  %v2412_v58 = vadd.f32 %v13513_v48, %v2357_v30  ;;  %v16910_v52 = vrot.slane %v13607_v26, 2 }
 0x258   : > { %v16912_v27 = vrot.slane %v13607_v26, 4  ;;  %v1934_v46 = vpop.permute.xlu1 %1933  ;;  %v2413_v38 = vadd.f32 %v13513_v48, %v2358_v51  ;;  %11000 = vmatmul.mubr.msk.bf16.gmra.mrb[144].mxu1 %vm224_vm0, %v12196_v47  ;;  %v13619_v56 = vsel %vm4160_vm7, %v4162_v40, %v4164_v6 }
 0x259   : > { %v13614_v37 = vsel %vm2551_vm5, %v2557_v18, %v2558_v32  ;;  %v2460_v0 = vmax.f32 %v2412_v58, 0.0  ;;  %v2225_v30 = vpop.permute.xlu0 %2224  ;;  %v13630_v51 = vsel %vm2127_vm3, %v16910_v52, %v16911_v44  ;;  %v17114_v58 = vld [vmem:[#allocation20_spill] sm:$0xff]  ;;  %v2196_v52 = vrot.slane %v13431_v7, 2 }
 0x25a   : > { %17113 = vst [vmem:[#allocation11_spill] sm:$0xff] %v13614_v37  ;;  %v2360_v25 = vadd.f32 %v2225_v30, %v2071_v59  ;;  %1981 = vrot.lane.b32.xlu0 %v1903_v50, %s12308_s6  ;;  %1997 = vrot.lane.b32.xlu1 %v16909_v31, %s12308_s6  ;;  %v13635_v47 = vsel %vm4160_vm7, %v16912_v27, %v4162_v40  ;;  %v12197_v50 = vld [vmem:[#allocation2 + $0x100] sm:$0xff]  ;;  %v2461_v8 = vmax.f32 %v2413_v38, 0.0  ;;  %v17126_v37 = vld [vmem:[#allocation23_spill] sm:$0xff] }
 0x25b   : > { %v2560_v18 = vrot.slane %v2460_v0, 7  ;;  %v2070_v6 = vadd.f32 %v1934_v46, %v17114_v58  ;;  %11003 = vmatprep.mubr.msk.bf16.mxu1 %vm224_vm0, %v12197_v50  ;;  %v13640_v59 = vpop.f32.mrb[40].mxu1  ;;  %v17116_v46 = vrot.slane %v13321_v42, 2  ;;  %v17117_v58 = vrot.slane %v13340_v36, 2 }
 0x25c   : > { %v2415_v1 = vadd.f32 %v13513_v48, %v2360_v25  ;;  %v2223_v30 = vpop.permute.xlu1 %2222  ;;  %v13647_v40 = vpop.f32.mrb[41].mxu1 }
 0x25d   : > { %v13645_v44 = vsel %vm2551_vm5, %v2558_v32, %v2560_v18  ;;  %v2359_v0 = vadd.f32 %v2223_v30, %v2070_v6  ;;  %v1942_v27 = vpop.permute.xlu0 %1941  ;;  %v2180_v25 = vsel %vm2127_vm3, %v17117_v58, %v17116_v46  ;;  %v10894_v7 = vpop.f32.mrb[42].mxu1  ;;  %v17118_v32 = vrot.slane %v13441_v17, 2 }
 0x25e   : > { %17115 = vst [vmem:[#allocation12_spill] sm:$0xff] %v13645_v44  ;;  %2270 = vrot.lane.b32.xlu0 %v2180_v25, %s12309_s13  ;;  %v2463_v18 = vmax.f32 %v2415_v1, 0.0  ;;  %v4167_v6 = vrot.slane %v13640_v59, 4  ;;  %v4169_v61 = vrot.slane %v10894_v7, 4  ;;  %v13663_v46 = vpop.f32.mrb[43].mxu1  ;;  %v17119_v1 = vrot.slane %v13358_v53, 1 }
 0x25f   : > { %2286 = vrot.lane.b32.xlu1 %v17118_v32, %s12309_s13  ;;  %v2414_v30 = vadd.f32 %v13513_v48, %v2359_v0  ;;  %v17121_v7 = vrot.slane %v13423_v49, 2 }
 0x260   : > { %v1940_v50 = vpop.permute.xlu1 %1939  ;;  %11004 = vmatmul.mubr.msk.bf16.gmra.mrb[148].mxu1 %vm224_vm0, %v12198_v16  ;;  %v1906_v0 = vsel %vm1870_vm4, %v17120_v34, %v17119_v1  ;;  %v13678_v31 = vsel %vm4160_vm7, %v4167_v6, %v4169_v61  ;;  %v17122_v16 = vrot.slane %v13640_v59, 2  ;;  %v17124_v34 = vrot.slane %v13663_v46, 4 }
 0x261   : > { %v2462_v25 = vmax.f32 %v2414_v30, 0.0  ;;  %v1938_v32 = vpop.permute.xlu0 %1937  ;;  %v2197_v58 = vsel %vm2127_vm3, %v17121_v7, %v2196_v52  ;;  %v17123_v30 = vrot.slane %v13663_v46, 2  ;;  %v2562_v52 = vrot.slane %v2461_v8, 7  ;;  %11007 = vmatprep.mubr.msk.bf16.mxu1 %vm224_vm0, %v12199_v41 }
 0x262   : > { %1987 = vrot.lane.b32.xlu0 %v1906_v0, %s12308_s6  ;;  %v13692_v1 = vsel %vm4160_vm7, %v17124_v34, %v4167_v6  ;;  %v2565_v7 = vrot.slane %v2463_v18, 7  ;;  %v17125_v0 = vld [vmem:[#allocation22_spill] sm:$0xff]  ;;  %v2073_v44 = vadd.f32 %v1940_v50, %v17126_v37  ;;  %v17130_v41 = vrot.slane %v13358_v53, 2  ;;  %v12200_v50 = vld [vmem:[#allocation2 + $0x118] sm:$0xff]  ;;  %v12202_v53 = vld [vmem:[#allocation2 + $0x128] sm:$0xff] }
 0x263   : > { %2290 = vrot.lane.b32.xlu1 %v2197_v58, %s12309_s13  ;;  %v13687_v38 = vsel %vm2127_vm3, %v17123_v30, %v17122_v16  ;;  %v2563_v61 = vrot.slane %v2462_v25, 7  ;;  %v2072_v58 = vadd.f32 %v1938_v32, %v17125_v0  ;;  %v13697_v24 = vpop.f32.mrb[44].mxu1  ;;  %v16919_v16 = vrot.slane %v13457_v39, 1 }
 0x264   : > { %17127 = vst [vmem:[#allocation17_spill] sm:$0xff] %v13697_v24  ;;  %v2229_v14 = vpop.permute.xlu1 %2228  ;;  %v13706_v8 = vpop.f32.mrb[45].mxu1  ;;  %v17131_v25 = vrot.slane %v13378_v15, 2 }
 0x265   : > { %v13701_v30 = vsel %vm2551_vm5, %v2562_v52, %v2563_v61  ;;  %v13704_v6 = vsel %vm2551_vm5, %v2563_v61, %v2565_v7  ;;  %v2227_v18 = vpop.permute.xlu0 %2226  ;;  %v2362_v34 = vadd.f32 %v2229_v14, %v2073_v44  ;;  %v10898_v0 = vpop.f32.mrb[46].mxu1  ;;  %v17132_v7 = vld [vmem:[#allocation21_spill] sm:$0xff] }
 0x266   : > { %17128 = vst [vmem:[#allocation16_spill] sm:$0xff] %v13701_v30  ;;  %17129 = vst [vmem:[#allocation15_spill] sm:$0xff] %v13704_v6  ;;  %v2185_v37 = vsel %vm2127_vm3, %v17131_v25, %v17130_v41  ;;  %v2361_v32 = vadd.f32 %v2227_v18, %v2072_v58  ;;  %v2074_v61 = vadd.f32 %v17132_v7, %v1942_v27  ;;  %v4172_v41 = vrot.slane %v13697_v24, 4  ;;  %v13723_v28 = vpop.f32.mrb[47].mxu1 }
 0x267   : > { %2276 = vrot.lane.b32.xlu0 %v2185_v37, %s12309_s13  ;;  %2007 = vrot.lane.b32.xlu1 %v16919_v16, %s12308_s6  ;;  %v4174_v25 = vrot.slane %v10898_v0, 4  ;;  %v2417_v44 = vadd.f32 %v13513_v48, %v2362_v34  ;;  %v16921_v58 = vrot.slane %v13723_v28, 2  ;;  %v17133_v7 = vrot.slane %v13394_v43, 1 }
 0x268   : > { %v2416_v14 = vadd.f32 %v13513_v48, %v2361_v32  ;;  %v1946_v37 = vpop.permute.xlu1 %1945  ;;  %11008 = vmatmul.mubr.msk.bf16.gmra.mrb[152].mxu1 %vm224_vm0, %v12200_v50  ;;  %v17134_v16 = vrot.slane %v13409_v45, 1  ;;  %v17135_v18 = vrot.slane %v13476_v12, 1  ;;  %v17136_v50 = vrot.slane %v13697_v24, 2 }
 0x269   : > { %v2231_v27 = vpop.permute.xlu0 %2230  ;;  %v13736_v63 = vsel %vm4160_vm7, %v4172_v41, %v4174_v25  ;;  %v2465_v34 = vmax.f32 %v2417_v44, 0.0  ;;  %v17137_v25 = vrot.slane %v13723_v28, 4 }
 0x26a   : > { %v1909_v0 = vsel %vm1870_vm4, %v17134_v16, %v17133_v7  ;;  %v2464_v32 = vmax.f32 %v2416_v14, 0.0  ;;  %v2363_v52 = vadd.f32 %v2231_v27, %v2074_v61  ;;  %v13747_v30 = vsel %vm2127_vm3, %v16921_v58, %v17136_v50  ;;  %v12201_v16 = vld [vmem:[#allocation2 + $0x120] sm:$0xff] }
 0x26b   : > { %1993 = vrot.lane.b32.xlu0 %v1909_v0, %s12308_s6  ;;  %2003 = vrot.lane.b32.xlu1 %v17135_v18, %s12308_s6  ;;  %v13753_v61 = vsel %vm4160_vm7, %v17137_v25, %v4172_v41  ;;  %v2568_v44 = vrot.slane %v2465_v34, 7  ;;  %v13756_v18 = vpop.f32.mrb[48].mxu1  ;;  %v16928_v0 = vrot.slane %v13476_v12, 2  ;;  %v2201_v50 = vrot.slane %v13467_v22, 2  ;;  %v17139_v58 = vld [vmem:[#allocation26_spill] sm:$0xff] }
 0x26c   : > { %11011 = vmatprep.mubr.msk.bf16.mxu1 %vm224_vm0, %v12201_v16  ;;  %v2567_v14 = vrot.slane %v2464_v32, 7  ;;  %v2418_v27 = vadd.f32 %v13513_v48, %v2363_v52  ;;  %17138 = vst [vmem:[#allocation19_spill] sm:$0xff] %v13756_v18  ;;  %v2235_v7 = vpop.permute.xlu1 %2234  ;;  %v2076_v6 = vadd.f32 %v1946_v37, %v17139_v58  ;;  %v13761_v60 = vpop.f32.mrb[49].mxu1  ;;  %v17142_v41 = vrot.slane %v13409_v45, 2 }
 0x26d   : > { %17140 = vst [vmem:[#allocation18_spill] sm:$0xff] %v13761_v60  ;;  %v1948_v16 = vpop.permute.xlu0 %1947  ;;  %v10902_v25 = vpop.f32.mrb[50].mxu1  ;;  %v4177_v58 = vrot.slane %v13756_v18, 4  ;;  %v17145_v22 = vrot.slane %v13423_v49, 1 }
 0x26e   : > { %v2190_v32 = vsel %vm2127_vm3, %v17142_v41, %v17141_v55  ;;  %v13769_v52 = vsel %vm2551_vm5, %v2567_v14, %v2568_v44  ;;  %v2466_v34 = vmax.f32 %v2418_v27, 0.0  ;;  %v2365_v37 = vadd.f32 %v2235_v7, %v2076_v6  ;;  %v13777_v45 = vpop.f32.mrb[51].mxu1 }
 0x26f   : > { %17143 = vst [vmem:[#allocation20_spill] sm:$0xff] %v13769_v52  ;;  %2282 = vrot.lane.b32.xlu0 %v2190_v32, %s12309_s13  ;;  %2292 = vrot.lane.b32.xlu1 %v16928_v0, %s12309_s13  ;;  %v4179_v43 = vrot.slane %v10902_v25, 4  ;;  %17144 = vst [vmem:[#allocation22_spill] sm:$0xff] %v13777_v45  ;;  %v16930_v14 = vrot.slane %v13756_v18, 2  ;;  %v16929_v27 = vrot.slane %v13777_v45, 2  ;;  %v1912_v6 = vsel %vm1870_vm4, %v17146_v13, %v17145_v22 }
 0x270   : > { %v2570_v55 = vrot.slane %v2466_v34, 7  ;;  %v1952_v32 = vpop.permute.xlu1 %1951  ;;  %11012 = vmatmul.mubr.msk.bf16.gmra.mrb[156].mxu1 %vm224_vm0, %v12202_v53  ;;  %v17147_v7 = vrot.slane %v13457_v39, 2  ;;  %v17154_v52 = vrot.slane %v13441_v17, 2  ;;  %v12204_v17 = vld [vmem:[#allocation2 + $0x138] sm:$0xff] }
 0x271   : > { %v1944_v0 = vpop.permute.xlu0 %1943  ;;  %v13792_v25 = vsel %vm4160_vm7, %v4177_v58, %v4179_v43  ;;  %v13804_v53 = vsel %vm2127_vm3, %v16929_v27, %v16930_v14  ;;  %v2420_v43 = vadd.f32 %v13513_v48, %v2365_v37  ;;  %v16936_v27 = vrot.slane %v13488_v4, 1 }
 0x272   : > { %v2202_v34 = vsel %vm2127_vm3, %v17147_v7, %v2201_v50  ;;  %v13795_v41 = vsel %vm2551_vm5, %v2568_v44, %v2570_v55  ;;  %v12203_v50 = vld [vmem:[#allocation2 + $0x130] sm:$0xff]  ;;  %v17149_v44 = vrot.slane %v13777_v45, 4  ;;  %v17150_v55 = vld [vmem:[#allocation25_spill] sm:$0xff]  ;;  %v17153_v37 = vrot.slane %v13423_v49, 2 }
 0x273   : > { %17148 = vst [vmem:[#allocation23_spill] sm:$0xff] %v13795_v41  ;;  %1999 = vrot.lane.b32.xlu0 %v1912_v6, %s12308_s6  ;;  %2296 = vrot.lane.b32.xlu1 %v2202_v34, %s12309_s13  ;;  %v2075_v6 = vadd.f32 %v1944_v0, %v17150_v55  ;;  %v13816_v7 = vpop.f32.mrb[52].mxu1  ;;  %v1916_v0 = vrot.slane %v13508_v2, 1  ;;  %v2468_v55 = vmax.f32 %v2420_v43, 0.0  ;;  %v17156_v43 = vrot.slane %v13457_v39, 1 }
 0x274   : > { %11015 = vmatprep.mubr.msk.bf16.mxu1 %vm224_vm0, %v12203_v50  ;;  %v13813_v22 = vsel %vm4160_vm7, %v17149_v44, %v4177_v58  ;;  %17151 = vst [vmem:[#allocation21_spill] sm:$0xff] %v13816_v7  ;;  %v2241_v34 = vpop.permute.xlu1 %2240  ;;  %v13819_v14 = vpop.f32.mrb[53].mxu1  ;;  %v2195_v50 = vsel %vm2127_vm3, %v17154_v52, %v17153_v37  ;;  %v17155_v58 = vld [vmem:[#allocation24_spill] sm:$0xff]  ;;  %v4182_v9 = vrot.slane %v13816_v7, 4  ;;  %v17158_v37 = vrot.slane %v13816_v7, 2 }
 0x275   : > { %17152 = vst [vmem:[#allocation26_spill] sm:$0xff] %v13819_v14  ;;  %v2233_v13 = vpop.permute.xlu0 %2232  ;;  %v10906_v15 = vpop.f32.mrb[54].mxu1  ;;  %v2077_v44 = vadd.f32 %v17155_v58, %v1948_v16 }
 0x276   : > { %v2364_v41 = vadd.f32 %v2233_v13, %v2075_v6  ;;  %v4184_v49 = vrot.slane %v10906_v15, 4  ;;  %v13833_v42 = vpop.f32.mrb[55].mxu1  ;;  %v17157_v15 = vrot.slane %v13476_v12, 1 }
 0x277   : > { %2288 = vrot.lane.b32.xlu0 %v2195_v50, %s12309_s13  ;;  %2013 = vrot.lane.b32.xlu1 %v16936_v27, %s12308_s6  ;;  %v4964_v27 = vld [vmem:[#allocation2 + $0x10] sm:$0xff]  ;;  %v17160_v54 = vrot.slane %v13833_v42, 4 }
 0x278   : > { %v2419_v13 = vadd.f32 %v13513_v48, %v2364_v41  ;;  %v13839_v50 = vpop.permute.xlu1 %1957  ;;  %11016 = vmatmul.mubr.msk.bf16.gmra.mrb[160].mxu1 %vm224_vm0, %v12204_v17  ;;  %v1915_v58 = vsel %vm1870_vm4, %v17157_v15, %v17156_v43  ;;  %v13848_v52 = vsel %vm4160_vm7, %v4182_v9, %v4184_v49  ;;  %v17159_v17 = vrot.slane %v13833_v42, 2 }
 0x279   : > { %v2237_v16 = vpop.permute.xlu0 %2236  ;;  %v13862_v43 = vsel %vm4160_vm7, %v17160_v54, %v4182_v9  ;;  %11023 = vmatprep.mubr.msk.bf16.mxu1 %vm224_vm0, %v4964_v27  ;;  %v2573_v49 = vrot.slane %v2468_v55, 7  ;;  %v17162_v9 = vrot.slane %v13457_v39, 2  ;;  %v17163_v27 = vrot.slane %v13476_v12, 2 }
 0x27a   : > { %v2467_v41 = vmax.f32 %v2419_v13, 0.0  ;;  %v2366_v6 = vadd.f32 %v2237_v16, %v2077_v44  ;;  %v13857_v36 = vsel %vm2127_vm3, %v17159_v17, %v17158_v37  ;;  %v2206_v37 = vrot.slane %v13505_v62, 2  ;;  %v4965_v62 = vld [vmem:[#allocation2 + $0x18] sm:$0xff] }
 0x27b   : > { %2005 = vrot.lane.b32.xlu0 %v1915_v58, %s12308_s6  ;;  %2009 = vrot.lane.b32.xlu1 %v1916_v0, %s12308_s6  ;;  %v13866_v16 = vpop.f32.mrb[56].mxu1  ;;  %v2203_v58 = vrot.slane %v13508_v2, 2  ;;  %v2079_v17 = vadd.f32 %v1952_v32, %v13189_v11  ;;  %v2200_v55 = vsel %vm2127_vm3, %v17163_v27, %v17162_v9  ;;  %v2204_v11 = vrot.slane %v13488_v4, 2 }
 0x27c   : > { %v2572_v44 = vrot.slane %v2467_v41, 7  ;;  %v2421_v13 = vadd.f32 %v13513_v48, %v2366_v6  ;;  %v13868_v15 = vpop.permute.xlu1 %2246  ;;  %v13873_v20 = vpop.f32.mrb[57].mxu1  ;;  %v4187_v2 = vrot.slane %v13866_v16, 4  ;;  %v16945_v9 = vrot.slane %v13866_v16, 2 }
 0x27d   : > { %17161 = vst [vmem:[#allocation25_spill] sm:$0xff] %v13873_v20  ;;  %v1954_v54 = vpop.permute.xlu0 %1953  ;;  %v10910_v29 = vpop.f32.mrb[58].mxu1  ;;  %v2368_v32 = vadd.f32 %v2241_v34, %v2079_v17  ;;  %v17166_v17 = vrot.slane %v13488_v4, 1 }
 0x27e   : > { %v13881_v6 = vsel %vm2551_vm5, %v2572_v44, %v2573_v49  ;;  %v2469_v41 = vmax.f32 %v2421_v13, 0.0  ;;  %v4189_v39 = vrot.slane %v10910_v29, 4  ;;  %v13887_v33 = vpop.f32.mrb[59].mxu1  ;;  %v2207_v29 = vsel %vm2127_vm3, %v2204_v11, %v2206_v37 }
 0x27f   : > { %17164 = vst [vmem:[#allocation24_spill] sm:$0xff] %v13881_v6  ;;  %2294 = vrot.lane.b32.xlu0 %v2200_v55, %s12309_s13  ;;  %2298 = vrot.lane.b32.xlu1 %v2203_v58, %s12309_s13  ;;  %v4966_v55 = vld [vmem:[#allocation2 + $0x20] sm:$0xff] }
 0x280   : > { %v2575_v12 = vrot.slane %v2469_v41, 7  ;;  %v13892_v27 = vpop.permute.xlu1 %1963  ;;  %11024 = vmatmul.mubr.msk.bf16.vlgmr.msra.gmra.mrb[100].mxu1 %vm224_vm0, %v4965_v62  ;;  %v1918_v41 = vsel %vm1870_vm4, %v1916_v0, %v17166_v17  ;;  %v13903_v44 = vsel %vm4160_vm7, %v4187_v2, %v4189_v39  ;;  %v17168_v62 = vrot.slane %v13887_v33, 2 }
 0x281   : > { %17165 = vst [vmem:[#allocation53_spill] sm:$0xff] %v13892_v27  ;;  %v1950_v34 = vpop.permute.xlu0 %1949  ;;  %v2423_v27 = vadd.f32 %v13513_v48, %v2368_v32  ;;  %11027 = vmatprep.mubr.msk.bf16.mxu1 %vm224_vm0, %v4966_v55  ;;  %11088 = vmatpush3.bf16.msra.mxu1 %v13518_v19  ;;  %v2205_v39 = vsel %vm2127_vm3, %v2203_v58, %v2204_v11  ;;  %v4967_v19 = vld [vmem:[#allocation2 + $0x28] sm:$0xff] }
 0x282   : > { %v13906_v13 = vsel %vm2551_vm5, %v2573_v49, %v2575_v12  ;;  %v13915_v37 = vsel %vm2127_vm3, %v17168_v62, %v16945_v9  ;;  %v17169_v12 = vrot.slane %v13887_v33, 4  ;;  %v17170_v49 = vld [vmem:[#allocation27_spill] sm:$0xff]  ;;  %11089 = vmatprep.subr.bf16.mxu1 %v12175_v21 }
 0x283   : > { %17167 = vst [vmem:[#allocation54_spill] sm:$0xff] %v13906_v13  ;;  %2302 = vrot.lane.b32.xlu1 %v2207_v29, %s12309_s13  ;;  %2011 = vrot.lane.b32.xlu0 %v1918_v41, %s12308_s6  ;;  %v2078_v29 = vadd.f32 %v1950_v34, %v17170_v49  ;;  %v13928_v17 = vpop.f32.mrb[60].mxu1  ;;  %v2471_v34 = vmax.f32 %v2423_v27, 0.0 }
 0x284   : > { %v13924_v0 = vsel %vm4160_vm7, %v17169_v12, %v4187_v2  ;;  %v13930_v41 = vpop.permute.xlu1 %2252  ;;  %v13932_v32 = vpop.f32.mrb[61].mxu1  ;;  %v17173_v2 = vrot.slane %v13587_v10, 2  ;;  %v2080_v12 = vadd.f32 %v13180_v57, %v1954_v54  ;;  %v4192_v49 = vrot.slane %v13928_v17, 4 }
 0x285   : > { %17171 = vst [vmem:[#allocation27_spill] sm:$0xff] %v13930_v41  ;;  %17172 = vst [vmem:[#allocation55_spill] sm:$0xff] %v13932_v32  ;;  %v2239_v62 = vpop.permute.xlu0 %2238  ;;  %v10914_v9 = vpop.f32.mrb[62].mxu1  ;;  %11090 = vmatpush3.bf16.msra.mxu1 %v12175_v21  ;;  %v16948_v58 = vrot.slane %v13928_v17, 2  ;;  %v17175_v21 = vrot.slane %v13607_v26, 2 }
 0x286   : > { %v2367_v55 = vadd.f32 %v2239_v62, %v2078_v29  ;;  %v4194_v41 = vrot.slane %v10914_v9, 4  ;;  %v13941_v6 = vpop.f32.mrb[63].mxu1 }
 0x287   : > { %3956 = vrot.lane.b32.xlu1 %v17173_v2, %s12308_s6  ;;  %2300 = vrot.lane.b32.xlu0 %v2205_v39, %s12309_s13  ;;  %v16947_v29 = vrot.slane %v13941_v6, 2  ;;  %v16950_v62 = vrot.slane %v13941_v6, 4  ;;  %v4968_v39 = vld [vmem:[#allocation2 + $0x30] sm:$0xff] }
 0x288   : > { %v2422_v11 = vadd.f32 %v13513_v48, %v2367_v55  ;;  %v13947_v2 = vpop.permute.xlu1 %1969  ;;  %11028 = vmatmul.mubr.msk.bf16.gmra.mrb[104].mxu1 %vm224_vm0, %v4967_v19  ;;  %v13951_v54 = vsel %vm4160_vm7, %v4192_v49, %v4194_v41  ;;  %v2578_v19 = vrot.slane %v2471_v34, 7  ;;  %v17180_v34 = vrot.slane %v13607_v26, 4 }
 0x289   : > { %17174 = vst [vmem:[#allocation56_spill] sm:$0xff] %v13947_v2  ;;  %v2243_v57 = vpop.permute.xlu0 %2242  ;;  %v13963_v55 = vsel %vm2127_vm3, %v16947_v29, %v16948_v58  ;;  %v13968_v41 = vsel %vm4160_vm7, %v16950_v62, %v4192_v49  ;;  %11031 = vmatprep.mubr.msk.bf16.mxu1 %vm224_vm0, %v4968_v39  ;;  %v4969_v39 = vld [vmem:[#allocation2 + $0x38] sm:$0xff] }
 0x28a   : > { %v2470_v9 = vmax.f32 %v2422_v11, 0.0  ;;  %v2369_v27 = vadd.f32 %v2243_v57, %v2080_v12 }
 0x28b   : > { %3952 = vrot.lane.b32.xlu1 %v17175_v21, %s12308_s6  ;;  %3954 = vrot.lane.b32.xlu0 %v13630_v51, %s12308_s6  ;;  %v13972_v57 = vpop.f32.mrb[64].mxu1  ;;  %v2082_v21 = vadd.f32 %v13839_v50, %v13217_v35 }
 0x28c   : > { %v2577_v12 = vrot.slane %v2470_v9, 7  ;;  %v2424_v11 = vadd.f32 %v13513_v48, %v2369_v27  ;;  %17176 = vst [vmem:[#allocation57_spill] sm:$0xff] %v13972_v57  ;;  %v13974_v51 = vpop.permute.xlu1 %2258  ;;  %v13978_v29 = vpop.f32.mrb[65].mxu1  ;;  %v4197_v35 = vrot.slane %v13972_v57, 4 }
 0x28d   : > { %17177 = vst [vmem:[#allocation58_spill] sm:$0xff] %v13974_v51  ;;  %17178 = vst [vmem:[#allocation59_spill] sm:$0xff] %v13978_v29  ;;  %v1960_v58 = vpop.permute.xlu0 %1959  ;;  %v10918_v62 = vpop.f32.mrb[66].mxu1  ;;  %v2371_v9 = vadd.f32 %v13868_v15, %v2082_v21  ;;  %v14192_v29 = vld [vmem:[#allocation2 + $0x80] sm:$0xff] }
 0x28e   : > { %v13981_v13 = vsel %vm2551_vm5, %v2577_v12, %v2578_v19  ;;  %v2472_v49 = vmax.f32 %v2424_v11, 0.0  ;;  %v4199_v50 = vrot.slane %v10918_v62, 4  ;;  %v13990_v27 = vpop.f32.mrb[67].mxu1  ;;  %v16953_v12 = vrot.slane %v13972_v57, 2 }
 0x28f   : > { %17179 = vst [vmem:[#allocation60_spill] sm:$0xff] %v13981_v13  ;;  %4241 = vrot.lane.b32.xlu1 %v17180_v34, %s12309_s13  ;;  %4243 = vrot.lane.b32.xlu0 %v13635_v47, %s12309_s13  ;;  %v16952_v11 = vrot.slane %v13990_v27, 2  ;;  %v16954_v51 = vrot.slane %v13990_v27, 4  ;;  %v4970_v34 = vld [vmem:[#allocation2 + $0x40] sm:$0xff] }
 0x290   : > { %v2580_v4 = vrot.slane %v2472_v49, 7  ;;  %v13995_v2 = vpop.permute.xlu1 %1975  ;;  %11032 = vmatmul.mubr.msk.bf16.gmra.mrb[108].mxu1 %vm224_vm0, %v4969_v39  ;;  %v13999_v15 = vsel %vm4160_vm7, %v4197_v35, %v4199_v50  ;;  %v2426_v49 = vadd.f32 %v13513_v48, %v2371_v9  ;;  %v17186_v39 = vrot.slane %v13640_v59, 2 }
 0x291   : > { %17181 = vst [vmem:[#allocation61_spill] sm:$0xff] %v13995_v2  ;;  %v1956_v47 = vpop.permute.xlu0 %1955  ;;  %v14013_v21 = vsel %vm2127_vm3, %v16952_v11, %v16953_v12  ;;  %11035 = vmatprep.mubr.msk.bf16.mxu1 %vm224_vm0, %v4970_v34 }
 0x292   : > { %v14002_v62 = vsel %vm2551_vm5, %v2578_v19, %v2580_v4  ;;  %v14022_v4 = vsel %vm4160_vm7, %v16954_v51, %v4197_v35  ;;  %v4971_v35 = vld [vmem:[#allocation2 + $0x48] sm:$0xff]  ;;  %v2474_v34 = vmax.f32 %v2426_v49, 0.0 }
 0x293   : > { %17182 = vst [vmem:[#allocation62_spill] sm:$0xff] %v14002_v62  ;;  %4245 = vrot.lane.b32.xlu1 %v13619_v56, %s12309_s13  ;;  %3960 = vrot.lane.b32.xlu0 %v13687_v38, %s12308_s6  ;;  %v17183_v56 = vld [vmem:[#allocation28_spill] sm:$0xff]  ;;  %v14025_v19 = vpop.f32.mrb[68].mxu1  ;;  %v17189_v62 = vrot.slane %v13663_v46, 2 }
 0x294   : > { %v2081_v38 = vadd.f32 %v1956_v47, %v17183_v56  ;;  %v14027_v50 = vpop.permute.xlu1 %2264  ;;  %v14029_v11 = vpop.f32.mrb[69].mxu1  ;;  %v2083_v47 = vadd.f32 %v13209_v3, %v1960_v58  ;;  %v4202_v56 = vrot.slane %v14025_v19, 4 }
 0x295   : > { %17184 = vst [vmem:[#allocation28_spill] sm:$0xff] %v14027_v50  ;;  %17185 = vst [vmem:[#allocation63_spill] sm:$0xff] %v14029_v11  ;;  %v2245_v12 = vpop.permute.xlu0 %2244  ;;  %v10922_v2 = vpop.f32.mrb[70].mxu1 }
 0x296   : > { %v2370_v9 = vadd.f32 %v2245_v12, %v2081_v38  ;;  %v4204_v51 = vrot.slane %v10922_v2, 4  ;;  %v14038_v13 = vpop.f32.mrb[71].mxu1 }
 0x297   : > { %3962 = vrot.lane.b32.xlu1 %v17186_v39, %s12308_s6  ;;  %4249 = vrot.lane.b32.xlu0 %v13692_v1, %s12309_s13  ;;  %17187 = vst [vmem:[#allocation64_spill] sm:$0xff] %v14038_v13  ;;  %v16958_v38 = vrot.slane %v14038_v13, 2  ;;  %v4972_v1 = vld [vmem:[#allocation2 + $0x50] sm:$0xff] }
 0x298   : > { %v2425_v12 = vadd.f32 %v13513_v48, %v2370_v9  ;;  %v14044_v50 = vpop.permute.xlu1 %1983  ;;  %11036 = vmatmul.mubr.msk.bf16.gmra.mrb[112].mxu1 %vm224_vm0, %v4971_v35  ;;  %v14048_v3 = vsel %vm4160_vm7, %v4202_v56, %v4204_v51  ;;  %v17190_v9 = vrot.slane %v14025_v19, 2  ;;  %v17191_v35 = vrot.slane %v14038_v13, 4 }
 0x299   : > { %17188 = vst [vmem:[#allocation65_spill] sm:$0xff] %v14044_v50  ;;  %v2249_v49 = vpop.permute.xlu0 %2248  ;;  %11039 = vmatprep.mubr.msk.bf16.mxu1 %vm224_vm0, %v4972_v1  ;;  %v17197_v1 = vrot.slane %v13663_v46, 4 }
 0x29a   : > { %v2473_v58 = vmax.f32 %v2425_v12, 0.0  ;;  %v2372_v2 = vadd.f32 %v2249_v49, %v2083_v47  ;;  %v14060_v39 = vsel %vm2127_vm3, %v16958_v38, %v17190_v9  ;;  %v14065_v51 = vsel %vm4160_vm7, %v17191_v35, %v4202_v56 }
 0x29b   : > { %3958 = vrot.lane.b32.xlu1 %v17189_v62, %s12308_s6  ;;  %3966 = vrot.lane.b32.xlu0 %v13747_v30, %s12308_s6  ;;  %v2583_v47 = vrot.slane %v2474_v34, 7  ;;  %v14069_v49 = vpop.f32.mrb[72].mxu1 }
 0x29c   : > { %v2582_v12 = vrot.slane %v2473_v58, 7  ;;  %v2427_v62 = vadd.f32 %v13513_v48, %v2372_v2  ;;  %17192 = vst [vmem:[#allocation66_spill] sm:$0xff] %v14069_v49  ;;  %v14071_v30 = vpop.permute.xlu1 %1979  ;;  %v14073_v50 = vpop.f32.mrb[73].mxu1  ;;  %v4973_v48 = vld [vmem:[#allocation2 + $0x58] sm:$0xff]  ;;  %v4207_v34 = vrot.slane %v14069_v49, 4 }
 0x29d   : > { %17193 = vst [vmem:[#allocation67_spill] sm:$0xff] %v14071_v30  ;;  %17194 = vst [vmem:[#allocation68_spill] sm:$0xff] %v14073_v50  ;;  %v14075_v23 = vpop.permute.xlu0 %1965  ;;  %v10926_v56 = vpop.f32.mrb[74].mxu1  ;;  %v4974_v50 = vld [vmem:[#allocation2 + $0x60] sm:$0xff] }
 0x29e   : > { %17195 = vst [vmem:[#allocation69_spill] sm:$0xff] %v14075_v23  ;;  %v14078_v9 = vsel %vm2551_vm5, %v2582_v12, %v2583_v47  ;;  %v2475_v38 = vmax.f32 %v2427_v62, 0.0  ;;  %v4209_v58 = vrot.slane %v10926_v56, 4  ;;  %v14086_v2 = vpop.f32.mrb[75].mxu1  ;;  %v16960_v23 = vrot.slane %v14069_v49, 2 }
 0x29f   : > { %17196 = vst [vmem:[#allocation70_spill] sm:$0xff] %v14078_v9  ;;  %4247 = vrot.lane.b32.xlu1 %v17197_v1, %s12309_s13  ;;  %4255 = vrot.lane.b32.xlu0 %v13753_v61, %s12309_s13  ;;  %17198 = vst [vmem:[#allocation71_spill] sm:$0xff] %v14086_v2  ;;  %v16959_v12 = vrot.slane %v14086_v2, 2  ;;  %v16961_v62 = vrot.slane %v14086_v2, 4 }
 0x2a0   : > { %v2585_v35 = vrot.slane %v2475_v38, 7  ;;  %v14091_v30 = vpop.permute.xlu1 %2268  ;;  %11040 = vmatmul.mubr.msk.bf16.gmra.mrb[116].mxu1 %vm224_vm0, %v4973_v48  ;;  %v14097_v61 = vsel %vm4160_vm7, %v4207_v34, %v4209_v58 }
 0x2a1   : > { %17199 = vst [vmem:[#allocation72_spill] sm:$0xff] %v14091_v30  ;;  %v14094_v1 = vpop.permute.xlu0 %1961  ;;  %v14111_v38 = vsel %vm2127_vm3, %v16959_v12, %v16960_v23  ;;  %11043 = vmatprep.mubr.msk.bf16.mxu1 %vm224_vm0, %v4974_v50  ;;  %v17206_v23 = vrot.slane %v13697_v24, 2  ;;  %v4975_v50 = vld [vmem:[#allocation2 + $0x68] sm:$0xff] }
 0x2a2   : > { %17200 = vst [vmem:[#allocation73_spill] sm:$0xff] %v14094_v1  ;;  %v14100_v56 = vsel %vm2551_vm5, %v2583_v47, %v2585_v35  ;;  %v14119_v47 = vsel %vm4160_vm7, %v16961_v62, %v4207_v34 }
 0x2a3   : > { %17201 = vst [vmem:[#allocation74_spill] sm:$0xff] %v14100_v56  ;;  %4251 = vrot.lane.b32.xlu1 %v13678_v31, %s12309_s13  ;;  %3972 = vrot.lane.b32.xlu0 %v13804_v53, %s12308_s6  ;;  %v14121_v31 = vpop.f32.mrb[76].mxu1 }
 0x2a4   : > { %17202 = vst [vmem:[#allocation75_spill] sm:$0xff] %v14121_v31  ;;  %v14123_v53 = vpop.permute.xlu1 %2272  ;;  %v14125_v58 = vpop.f32.mrb[77].mxu1  ;;  %v4212_v34 = vrot.slane %v14121_v31, 4  ;;  %v16965_v9 = vrot.slane %v14121_v31, 2 }
 0x2a5   : > { %17203 = vst [vmem:[#allocation76_spill] sm:$0xff] %v14123_v53  ;;  %17204 = vst [vmem:[#allocation77_spill] sm:$0xff] %v14125_v58  ;;  %v14127_v35 = vpop.permute.xlu0 %2250  ;;  %v10930_v12 = vpop.f32.mrb[78].mxu1  ;;  %v14142_v53 = vld [vmem:[#allocation2 + $0x70] sm:$0xff] }
 0x2a6   : > { %17205 = vst [vmem:[#allocation78_spill] sm:$0xff] %v14127_v35  ;;  %v4214_v48 = vrot.slane %v10930_v12, 4  ;;  %v14135_v62 = vpop.f32.mrb[79].mxu1  ;;  %v17210_v12 = vrot.slane %v13723_v28, 2 }
 0x2a7   : > { %3968 = vrot.lane.b32.xlu1 %v17206_v23, %s12308_s6  ;;  %4261 = vrot.lane.b32.xlu0 %v13813_v22, %s12309_s13  ;;  %17207 = vst [vmem:[#allocation79_spill] sm:$0xff] %v14135_v62  ;;  %v16964_v56 = vrot.slane %v14135_v62, 2 }
 0x2a8   : > { %v14140_v1 = vpop.permute.xlu1 %1989  ;;  %11044 = vmatmul.mubr.msk.bf16.gmra.mrb[120].mxu1 %vm224_vm0, %v4975_v50  ;;  %v14148_v22 = vsel %vm4160_vm7, %v4212_v34, %v4214_v48  ;;  %v17211_v50 = vrot.slane %v14135_v62, 4 }
 0x2a9   : > { %17208 = vst [vmem:[#allocation80_spill] sm:$0xff] %v14140_v1  ;;  %v14145_v23 = vpop.permute.xlu0 %2254  ;;  %v14160_v35 = vsel %vm2127_vm3, %v16964_v56, %v16965_v9  ;;  %11047 = vmatprep.mubr.msk.bf16.mxu1 %vm224_vm0, %v14142_v53  ;;  %v17216_v56 = vrot.slane %v13723_v28, 4 }
 0x2aa   : > { %17209 = vst [vmem:[#allocation81_spill] sm:$0xff] %v14145_v23  ;;  %v14165_v23 = vsel %vm4160_vm7, %v17211_v50, %v4212_v34  ;;  %v14182_v34 = vld [vmem:[#allocation2 + $0x78] sm:$0xff] }
 0x2ab   : > { %3964 = vrot.lane.b32.xlu1 %v17210_v12, %s12308_s6  ;;  %3978 = vrot.lane.b32.xlu0 %v13857_v36, %s12308_s6  ;;  %v14169_v48 = vpop.f32.mrb[80].mxu1 }
 0x2ac   : > { %17212 = vst [vmem:[#allocation82_spill] sm:$0xff] %v14169_v48  ;;  %v14171_v12 = vpop.permute.xlu1 %1985  ;;  %v14173_v36 = vpop.f32.mrb[81].mxu1  ;;  %v4217_v50 = vrot.slane %v14169_v48, 4 }
 0x2ad   : > { %17213 = vst [vmem:[#allocation83_spill] sm:$0xff] %v14171_v12  ;;  %17214 = vst [vmem:[#allocation84_spill] sm:$0xff] %v14173_v36  ;;  %v14175_v1 = vpop.permute.xlu0 %1971  ;;  %v10934_v30 = vpop.f32.mrb[82].mxu1  ;;  %v16967_v12 = vrot.slane %v14169_v48, 2 }
 0x2ae   : > { %17215 = vst [vmem:[#allocation85_spill] sm:$0xff] %v14175_v1  ;;  %v4219_v9 = vrot.slane %v10934_v30, 4  ;;  %v14185_v58 = vpop.f32.mrb[83].mxu1 }
 0x2af   : > { %4253 = vrot.lane.b32.xlu1 %v17216_v56, %s12309_s13  ;;  %4267 = vrot.lane.b32.xlu0 %v13862_v43, %s12309_s13  ;;  %v16966_v36 = vrot.slane %v14185_v58, 2  ;;  %v16968_v1 = vrot.slane %v14185_v58, 4 }
 0x2b0   : > { %v14190_v11 = vpop.permute.xlu1 %2274  ;;  %11048 = vmatmul.mubr.msk.bf16.gmra.mrb[124].mxu1 %vm224_vm0, %v14182_v34  ;;  %v14199_v56 = vsel %vm4160_vm7, %v4217_v50, %v4219_v9 }
 0x2b1   : > { %17217 = vst [vmem:[#allocation86_spill] sm:$0xff] %v14190_v11  ;;  %v14196_v43 = vpop.permute.xlu0 %1967  ;;  %v14210_v30 = vsel %vm2127_vm3, %v16966_v36, %v16967_v12  ;;  %11051 = vmatprep.mubr.msk.bf16.mxu1 %vm224_vm0, %v14192_v29  ;;  %v14217_v9 = vsel %vm4160_vm7, %v16968_v1, %v4217_v50  ;;  %v17223_v36 = vrot.slane %v13756_v18, 2  ;;  %v14232_v12 = vld [vmem:[#allocation2 + $0x88] sm:$0xff]  ;;  %v14242_v18 = vld [vmem:[#allocation2 + $0x90] sm:$0xff] }
 0x2b2   : > { %17218 = vst [vmem:[#allocation87_spill] sm:$0xff] %v14196_v43  ;;  %17219 = vst [vmem:[#allocation88_spill] sm:$0xff] %v14217_v9 }
 0x2b3   : > { %4257 = vrot.lane.b32.xlu1 %v13736_v63, %s12309_s13  ;;  %3984 = vrot.lane.b32.xlu0 %v13915_v37, %s12308_s6  ;;  %v14219_v11 = vpop.f32.mrb[84].mxu1 }
 0x2b4   : > { %v14221_v63 = vpop.permute.xlu1 %2278  ;;  %v14223_v37 = vpop.f32.mrb[85].mxu1  ;;  %v4222_v50 = vrot.slane %v14219_v11, 4 }
 0x2b5   : > { %17220 = vst [vmem:[#allocation89_spill] sm:$0xff] %v14221_v63  ;;  %17221 = vst [vmem:[#allocation90_spill] sm:$0xff] %v14223_v37  ;;  %v14225_v43 = vpop.permute.xlu0 %2256  ;;  %v10938_v32 = vpop.f32.mrb[86].mxu1  ;;  %v16972_v63 = vrot.slane %v14219_v11, 2 }
 0x2b6   : > { %17222 = vst [vmem:[#allocation91_spill] sm:$0xff] %v14225_v43  ;;  %v4224_v1 = vrot.slane %v10938_v32, 4  ;;  %v14235_v20 = vpop.f32.mrb[87].mxu1  ;;  %v17226_v32 = vrot.slane %v13777_v45, 2 }
 0x2b7   : > { %3974 = vrot.lane.b32.xlu1 %v17223_v36, %s12308_s6  ;;  %4273 = vrot.lane.b32.xlu0 %v13924_v0, %s12309_s13  ;;  %v16971_v37 = vrot.slane %v14235_v20, 2 }
 0x2b8   : > { %v14240_v14 = vpop.permute.xlu1 %1995  ;;  %11052 = vmatmul.mubr.msk.bf16.gmra.mrb[128].mxu1 %vm224_vm0, %v14232_v12  ;;  %v14249_v36 = vsel %vm4160_vm7, %v4222_v50, %v4224_v1 }
 0x2b9   : > { %17224 = vst [vmem:[#allocation92_spill] sm:$0xff] %v14240_v14  ;;  %v14246_v0 = vpop.permute.xlu0 %2260  ;;  %v14261_v43 = vsel %vm2127_vm3, %v16971_v37, %v16972_v63  ;;  %v17228_v14 = vrot.slane %v14235_v20, 4  ;;  %11055 = vmatprep.mubr.msk.bf16.mxu1 %vm224_vm0, %v14242_v18  ;;  %v17233_v37 = vrot.slane %v13777_v45, 4  ;;  %v14293_v45 = vld [vmem:[#allocation2 + $0xa0] sm:$0xff] }
 0x2ba   : > { %17225 = vst [vmem:[#allocation93_spill] sm:$0xff] %v14246_v0  ;;  %17227 = vst [vmem:[#allocation94_spill] sm:$0xff] %v14261_v43 }
 0x2bb   : > { %3970 = vrot.lane.b32.xlu1 %v17226_v32, %s12308_s6  ;;  %3990 = vrot.lane.b32.xlu0 %v13963_v55, %s12308_s6  ;;  %v14266_v0 = vsel %vm4160_vm7, %v17228_v14, %v4222_v50  ;;  %v14270_v1 = vpop.f32.mrb[88].mxu1  ;;  %v14283_v14 = vld [vmem:[#allocation2 + $0x98] sm:$0xff] }
 0x2bc   : > { %17229 = vst [vmem:[#allocation95_spill] sm:$0xff] %v14266_v0  ;;  %v14272_v32 = vpop.permute.xlu1 %1991  ;;  %v14274_v55 = vpop.f32.mrb[89].mxu1  ;;  %v4227_v50 = vrot.slane %v14270_v1, 4 }
 0x2bd   : > { %17230 = vst [vmem:[#allocation96_spill] sm:$0xff] %v14272_v32  ;;  %17231 = vst [vmem:[#allocation97_spill] sm:$0xff] %v14274_v55  ;;  %v14276_v60 = vpop.permute.xlu0 %1977  ;;  %v10942_v24 = vpop.f32.mrb[90].mxu1  ;;  %v16976_v32 = vrot.slane %v14270_v1, 2 }
 0x2be   : > { %17232 = vst [vmem:[#allocation98_spill] sm:$0xff] %v14276_v60  ;;  %v4229_v63 = vrot.slane %v10942_v24, 4  ;;  %v14286_v0 = vpop.f32.mrb[91].mxu1 }
 0x2bf   : > { %4259 = vrot.lane.b32.xlu1 %v17233_v37, %s12309_s13  ;;  %4279 = vrot.lane.b32.xlu0 %v13968_v41, %s12309_s13  ;;  %v16974_v55 = vrot.slane %v14286_v0, 2  ;;  %v16975_v60 = vrot.slane %v14286_v0, 4 }
 0x2c0   : > { %v14291_v43 = vpop.permute.xlu1 %2280  ;;  %11056 = vmatmul.mubr.msk.bf16.gmra.mrb[132].mxu1 %vm224_vm0, %v14283_v14  ;;  %v14300_v37 = vsel %vm4160_vm7, %v4227_v50, %v4229_v63 }
 0x2c1   : > { %17234 = vst [vmem:[#allocation99_spill] sm:$0xff] %v14291_v43  ;;  %v14297_v41 = vpop.permute.xlu0 %1973  ;;  %17236 = vst [vmem:[#allocation101_spill] sm:$0xff] %v14300_v37  ;;  %v14311_v24 = vsel %vm2127_vm3, %v16974_v55, %v16976_v32  ;;  %v14316_v43 = vsel %vm4160_vm7, %v16975_v60, %v4227_v50  ;;  %11059 = vmatprep.mubr.msk.bf16.mxu1 %vm224_vm0, %v14293_v45  ;;  %v17243_v55 = vrot.slane %v13816_v7, 2  ;;  %v14333_v50 = vld [vmem:[#allocation2 + $0xa8] sm:$0xff]  ;;  %v14343_v7 = vld [vmem:[#allocation2 + $0xb0] sm:$0xff] }
 0x2c2   : > { %17235 = vst [vmem:[#allocation100_spill] sm:$0xff] %v14297_v41  ;;  %17237 = vst [vmem:[#allocation102_spill] sm:$0xff] %v14311_v24 }
 0x2c3   : > { %4263 = vrot.lane.b32.xlu1 %v13792_v25, %s12309_s13  ;;  %3996 = vrot.lane.b32.xlu0 %v14013_v21, %s12308_s6  ;;  %17238 = vst [vmem:[#allocation103_spill] sm:$0xff] %v14316_v43  ;;  %v14320_v63 = vpop.f32.mrb[92].mxu1 }
 0x2c4   : > { %17239 = vst [vmem:[#allocation104_spill] sm:$0xff] %v14320_v63  ;;  %v14322_v25 = vpop.permute.xlu1 %2284  ;;  %v14324_v21 = vpop.f32.mrb[93].mxu1  ;;  %v4232_v60 = vrot.slane %v14320_v63, 4 }
 0x2c5   : > { %17240 = vst [vmem:[#allocation105_spill] sm:$0xff] %v14322_v25  ;;  %17241 = vst [vmem:[#allocation106_spill] sm:$0xff] %v14324_v21  ;;  %v14326_v41 = vpop.permute.xlu0 %2262  ;;  %v10946_v37 = vpop.f32.mrb[94].mxu1  ;;  %v16980_v25 = vrot.slane %v14320_v63, 2  ;;  %v17249_v21 = vrot.slane %v14038_v13, 2 }
 0x2c6   : > { %17242 = vst [vmem:[#allocation107_spill] sm:$0xff] %v14326_v41  ;;  %v4234_v32 = vrot.slane %v10946_v37, 4  ;;  %v14336_v43 = vpop.f32.mrb[95].mxu1  ;;  %v17248_v37 = vrot.slane %v13833_v42, 2 }
 0x2c7   : > { %3980 = vrot.lane.b32.xlu1 %v17243_v55, %s12308_s6  ;;  %4285 = vrot.lane.b32.xlu0 %v14022_v4, %s12309_s13  ;;  %17244 = vst [vmem:[#allocation108_spill] sm:$0xff] %v14336_v43  ;;  %v17250_v41 = vrot.slane %v14336_v43, 2 }
 0x2c8   : > { %v14341_v24 = vpop.permute.xlu1 %2001  ;;  %11060 = vmatmul.mubr.msk.bf16.gmra.mrb[136].mxu1 %vm224_vm0, %v14333_v50  ;;  %v14350_v55 = vsel %vm4160_vm7, %v4232_v60, %v4234_v32 }
 0x2c9   : > { %17245 = vst [vmem:[#allocation109_spill] sm:$0xff] %v14341_v24  ;;  %v14347_v4 = vpop.permute.xlu0 %2266  ;;  %17247 = vst [vmem:[#allocation111_spill] sm:$0xff] %v14350_v55  ;;  %v14363_v24 = vsel %vm2127_vm3, %v17250_v41, %v16980_v25  ;;  %11063 = vmatprep.mubr.msk.bf16.mxu1 %vm224_vm0, %v14343_v7  ;;  %v17257_v41 = vrot.slane %v13833_v42, 4 }
 0x2ca   : > { %17246 = vst [vmem:[#allocation110_spill] sm:$0xff] %v14347_v4  ;;  %17251 = vst [vmem:[#allocation112_spill] sm:$0xff] %v14363_v24  ;;  %v17252_v4 = vrot.slane %v14336_v43, 4 }
 0x2cb   : > { %3976 = vrot.lane.b32.xlu1 %v17248_v37, %s12308_s6  ;;  %4000 = vrot.lane.b32.xlu0 %v17249_v21, %s12308_s6  ;;  %v14372_v37 = vpop.f32.mrb[96].mxu1 }
 0x2cc   : > { %v14368_v32 = vsel %vm4160_vm7, %v17252_v4, %v4232_v60  ;;  %v14374_v55 = vpop.permute.xlu1 %1997  ;;  %v14376_v21 = vpop.f32.mrb[97].mxu1  ;;  %v17258_v60 = vrot.slane %v14038_v13, 4  ;;  %v14386_v4 = vld [vmem:[#allocation2 + $0xb8] sm:$0xff]  ;;  %v4237_v25 = vrot.slane %v14372_v37, 4 }
 0x2cd   : > { %17253 = vst [vmem:[#allocation113_spill] sm:$0xff] %v14368_v32  ;;  %17254 = vst [vmem:[#allocation114_spill] sm:$0xff] %v14374_v55  ;;  %v14378_v63 = vpop.permute.xlu0 %1981  ;;  %v10950_v9 = vpop.f32.mrb[98].mxu1  ;;  %v16985_v55 = vrot.slane %v14372_v37, 2 }
 0x2ce   : > { %17255 = vst [vmem:[#allocation115_spill] sm:$0xff] %v14376_v21  ;;  %17256 = vst [vmem:[#allocation116_spill] sm:$0xff] %v14378_v63  ;;  %v4239_v32 = vrot.slane %v10950_v9, 4  ;;  %v14389_v24 = vpop.f32.mrb[99].mxu1 }
 0x2cf   : > { %4265 = vrot.lane.b32.xlu1 %v17257_v41, %s12309_s13  ;;  %4289 = vrot.lane.b32.xlu0 %v17258_v60, %s12309_s13  ;;  %v16984_v63 = vrot.slane %v14389_v24, 2  ;;  %v16986_v21 = vrot.slane %v14389_v24, 4  ;;  %v14396_v41 = vld [vmem:[#allocation2 + $0xc0] sm:$0xff] }
 0x2d0   : > { %11064 = vmatmul.mubr.msk.bf16.gmra.mrb[140].mxu1 %vm224_vm0, %v14386_v4  ;;  %v14403_v13 = vsel %vm4160_vm7, %v4237_v25, %v4239_v32 }
 0x2d1   : > { %v14394_v43 = vpop.permute.xlu1 %2286  ;;  %v14400_v60 = vpop.permute.xlu0 %2270  ;;  %v14414_v9 = vsel %vm2127_vm3, %v16984_v63, %v16985_v55  ;;  %11067 = vmatprep.mubr.msk.bf16.mxu1 %vm224_vm0, %v14396_v41  ;;  %v14432_v63 = vld [vmem:[#allocation2 + $0xc8] sm:$0xff] }
 0x2d2   : > { %17259 = vst [vmem:[#allocation117_spill] sm:$0xff] %v14394_v43  ;;  %17260 = vst [vmem:[#allocation118_spill] sm:$0xff] %v14400_v60  ;;  %v14419_v43 = vsel %vm4160_vm7, %v16986_v21, %v4237_v25  ;;  %v14436_v25 = vld [vmem:[#allocation2 + $0xd0] sm:$0xff] }
 0x2d3   : > { %4269 = vrot.lane.b32.xlu1 %v13848_v52, %s12309_s13  ;;  %4293 = vrot.lane.b32.xlu0 %v14048_v3, %s12309_s13  ;;  %v17263_v3 = vrot.slane %v13866_v16, 2 }
 0x2d5   : > { %v14423_v32 = vpop.permute.xlu1 %2290  ;;  %v14425_v52 = vpop.permute.xlu0 %1987 }
 0x2d6   : > { %17261 = vst [vmem:[#allocation119_spill] sm:$0xff] %v14423_v32  ;;  %17262 = vst [vmem:[#allocation120_spill] sm:$0xff] %v14425_v52  ;;  %v17266_v32 = vrot.slane %v13887_v33, 2  ;;  %v17270_v52 = vrot.slane %v13887_v33, 4 }
 0x2d7   : > { %3986 = vrot.lane.b32.xlu1 %v17263_v3, %s12308_s6  ;;  %4002 = vrot.lane.b32.xlu0 %v14060_v39, %s12308_s6  ;;  %v17267_v3 = vrot.slane %v14069_v49, 2 }
 0x2d8   : > { %11068 = vmatmul.mubr.msk.bf16.gmra.mrb[144].mxu1 %vm224_vm0, %v14432_v63 }
 0x2d9   : > { %v14434_v55 = vpop.permute.xlu1 %2007  ;;  %v14440_v21 = vpop.permute.xlu0 %2276  ;;  %11071 = vmatprep.mubr.msk.bf16.mxu1 %vm224_vm0, %v14436_v25 }
 0x2da   : > { %17264 = vst [vmem:[#allocation121_spill] sm:$0xff] %v14434_v55  ;;  %17265 = vst [vmem:[#allocation122_spill] sm:$0xff] %v14440_v21  ;;  %v17271_v21 = vrot.slane %v14086_v2, 2 }
 0x2db   : > { %3982 = vrot.lane.b32.xlu1 %v17266_v32, %s12308_s6  ;;  %4010 = vrot.lane.b32.xlu0 %v17267_v3, %s12308_s6  ;;  %v14460_v32 = vld [vmem:[#allocation2 + $0xd8] sm:$0xff]  ;;  %v14464_v3 = vld [vmem:[#allocation2 + $0xe0] sm:$0xff] }
 0x2dd   : > { %v14450_v39 = vpop.permute.xlu1 %2003  ;;  %v14452_v55 = vpop.permute.xlu0 %1993 }
 0x2de   : > { %17268 = vst [vmem:[#allocation123_spill] sm:$0xff] %v14450_v39  ;;  %17269 = vst [vmem:[#allocation124_spill] sm:$0xff] %v14452_v55  ;;  %v17277_v55 = vrot.slane %v13928_v17, 2 }
 0x2df   : > { %4271 = vrot.lane.b32.xlu1 %v17270_v52, %s12309_s13  ;;  %4006 = vrot.lane.b32.xlu0 %v17271_v21, %s12308_s6  ;;  %v17274_v52 = vrot.slane %v14086_v2, 4  ;;  %v14490_v2 = vld [vmem:[#allocation2 + $0xf0] sm:$0xff] }
 0x2e0   : > { %11072 = vmatmul.mubr.msk.bf16.gmra.mrb[148].mxu1 %vm224_vm0, %v14460_v32 }
 0x2e1   : > { %v14462_v60 = vpop.permute.xlu1 %2292  ;;  %v14468_v39 = vpop.permute.xlu0 %2282  ;;  %11075 = vmatprep.mubr.msk.bf16.mxu1 %vm224_vm0, %v14464_v3 }
 0x2e2   : > { %17272 = vst [vmem:[#allocation125_spill] sm:$0xff] %v14462_v60  ;;  %17273 = vst [vmem:[#allocation126_spill] sm:$0xff] %v14468_v39  ;;  %v14486_v39 = vld [vmem:[#allocation2 + $0xe8] sm:$0xff] }
 0x2e3   : > { %4275 = vrot.lane.b32.xlu1 %v13903_v44, %s12309_s13  ;;  %4295 = vrot.lane.b32.xlu0 %v17274_v52, %s12309_s13 }
 0x2e5   : > { %v14477_v21 = vpop.permute.xlu1 %2296  ;;  %v14479_v60 = vpop.permute.xlu0 %1999 }
 0x2e6   : > { %17275 = vst [vmem:[#allocation127_spill] sm:$0xff] %v14477_v21  ;;  %17276 = vst [vmem:[#allocation128_spill] sm:$0xff] %v14479_v60  ;;  %v17280_v21 = vrot.slane %v13941_v6, 2  ;;  %v17284_v60 = vrot.slane %v13941_v6, 4 }
 0x2e7   : > { %3992 = vrot.lane.b32.xlu1 %v17277_v55, %s12308_s6  ;;  %4299 = vrot.lane.b32.xlu0 %v14097_v61, %s12309_s13  ;;  %v17281_v55 = vrot.slane %v14121_v31, 2 }
 0x2e8   : > { %11076 = vmatmul.mubr.msk.bf16.gmra.mrb[152].mxu1 %vm224_vm0, %v14486_v39 }
 0x2e9   : > { %v14488_v44 = vpop.permute.xlu1 %2013  ;;  %v14494_v52 = vpop.permute.xlu0 %2288  ;;  %11079 = vmatprep.mubr.msk.bf16.mxu1 %vm224_vm0, %v14490_v2 }
 0x2ea   : > { %17278 = vst [vmem:[#allocation129_spill] sm:$0xff] %v14488_v44  ;;  %17279 = vst [vmem:[#allocation130_spill] sm:$0xff] %v14494_v52  ;;  %v17285_v52 = vrot.slane %v14135_v62, 2 }
 0x2eb   : > { %3988 = vrot.lane.b32.xlu1 %v17280_v21, %s12308_s6  ;;  %4016 = vrot.lane.b32.xlu0 %v17281_v55, %s12308_s6  ;;  %v14514_v21 = vld [vmem:[#allocation2 + $0xf8] sm:$0xff]  ;;  %v14518_v55 = vld [vmem:[#allocation2 + $0x100] sm:$0xff] }
 0x2ed   : > { %v14504_v61 = vpop.permute.xlu1 %2009  ;;  %v14506_v44 = vpop.permute.xlu0 %2005 }
 0x2ee   : > { %17282 = vst [vmem:[#allocation131_spill] sm:$0xff] %v14504_v61  ;;  %17283 = vst [vmem:[#allocation132_spill] sm:$0xff] %v14506_v44  ;;  %v17291_v44 = vrot.slane %v13972_v57, 2 }
 0x2ef   : > { %4277 = vrot.lane.b32.xlu1 %v17284_v60, %s12309_s13  ;;  %4012 = vrot.lane.b32.xlu0 %v17285_v52, %s12308_s6  ;;  %v17288_v60 = vrot.slane %v14135_v62, 4  ;;  %v17295_v62 = vrot.slane %v13990_v27, 4 }
 0x2f0   : > { %11080 = vmatmul.mubr.msk.bf16.gmra.mrb[156].mxu1 %vm224_vm0, %v14514_v21 }
 0x2f1   : > { %v14516_v49 = vpop.permute.xlu1 %2298  ;;  %v14522_v61 = vpop.permute.xlu0 %2294  ;;  %11083 = vmatprep.mubr.msk.bf16.mxu1 %vm224_vm0, %v14518_v55 }
 0x2f2   : > { %17286 = vst [vmem:[#allocation133_spill] sm:$0xff] %v14516_v49  ;;  %17287 = vst [vmem:[#allocation134_spill] sm:$0xff] %v14522_v61  ;;  %v14540_v61 = vld [vmem:[#allocation2 + $0x108] sm:$0xff] }
 0x2f3   : > { %4281 = vrot.lane.b32.xlu1 %v13951_v54, %s12309_s13  ;;  %4301 = vrot.lane.b32.xlu0 %v17288_v60, %s12309_s13 }
 0x2f5   : > { %v14531_v52 = vpop.permute.xlu1 %2302  ;;  %v14533_v49 = vpop.permute.xlu0 %2011 }
 0x2f6   : > { %17289 = vst [vmem:[#allocation135_spill] sm:$0xff] %v14531_v52  ;;  %17290 = vst [vmem:[#allocation136_spill] sm:$0xff] %v14533_v49  ;;  %v17293_v52 = vrot.slane %v13990_v27, 2  ;;  %v17294_v49 = vrot.slane %v14169_v48, 2 }
 0x2f7   : > { %3998 = vrot.lane.b32.xlu1 %v17291_v44, %s12308_s6  ;;  %4305 = vrot.lane.b32.xlu0 %v14148_v22, %s12309_s13 }
 0x2f8   : > { %11084 = vmatmul.mubr.msk.bf16.gmra.mrb[160].mxu1 %vm224_vm0, %v14540_v61 }
 0x2f9   : > { %v3957_v54 = vpop.permute.xlu1 %3956  ;;  %v14544_v60 = vpop.permute.xlu0 %2300  ;;  %11091 = vmatprep.mubr.msk.bf16.mxu1 %vm224_vm0, %v14142_v53 }
 0x2fa   : > { %17292 = vst [vmem:[#allocation137_spill] sm:$0xff] %v14544_v60  ;;  %v17296_v60 = vrot.slane %v14185_v58, 2 }
 0x2fb   : > { %3994 = vrot.lane.b32.xlu1 %v17293_v52, %s12308_s6  ;;  %4022 = vrot.lane.b32.xlu0 %v17294_v49, %s12308_s6  ;;  %v14565_v49 = vld [vmem:[%s16878_s2 + $0x1] ss:$0 sm:$0xff] }
 0x2fd   : > { %v3953_v22 = vpop.permute.xlu1 %3952  ;;  %v3955_v44 = vpop.permute.xlu0 %3954 }
 0x2fe   : > { %v4096_v31 = vadd.f32 %v3953_v22, %v13590_v5  ;;  %v4097_v52 = vadd.f32 %v3955_v44, %v13607_v26  ;;  %v17297_v5 = vrot.slane %v14185_v58, 4  ;;  %v4098_v26 = vadd.f32 %v13587_v10, %v3957_v54 }
 0x2ff   : > { %4283 = vrot.lane.b32.xlu1 %v17295_v62, %s12309_s13  ;;  %4018 = vrot.lane.b32.xlu0 %v17296_v60, %s12308_s6 }
 0x300   : > { %11092 = vmatmul.mubr.msk.bf16.vlgmr.msra.gmra.mrb[100].mxu1 %vm224_vm0, %v14182_v34 }
 0x301   : > { %v4242_v53 = vpop.permute.xlu1 %4241  ;;  %v4244_v57 = vpop.permute.xlu0 %4243  ;;  %11095 = vmatprep.mubr.msk.bf16.mxu1 %vm224_vm0, %v14192_v29 }
 0x302   : > { %v4385_v48 = vadd.f32 %v4242_v53, %v4096_v31  ;;  %v4386_v62 = vadd.f32 %v4244_v57, %v4097_v52 }
 0x303   : > { %4287 = vrot.lane.b32.xlu1 %v13999_v15, %s12309_s13  ;;  %4307 = vrot.lane.b32.xlu0 %v17297_v5, %s12309_s13  ;;  %v17298_v15 = vrot.slane %v14025_v19, 2 }
 0x304   : > { %v4441_v60 = vadd.f32 %v14565_v49, %v4385_v48  ;;  %v4442_v22 = vadd.f32 %v14565_v49, %v4386_v62 }
 0x305   : > { %v4246_v34 = vpop.permute.xlu1 %4245  ;;  %v3961_v57 = vpop.permute.xlu0 %3960 }
 0x306   : > { %v4489_v31 = vmax.f32 %v4441_v60, 0.0  ;;  %v4387_v44 = vadd.f32 %v4246_v34, %v4098_v26  ;;  %v4490_v52 = vmax.f32 %v4442_v22, 0.0  ;;  %v4100_v62 = vadd.f32 %v3961_v57, %v13663_v46 }
 0x307   : > { %4004 = vrot.lane.b32.xlu1 %v17298_v15, %s12308_s6  ;;  %4311 = vrot.lane.b32.xlu0 %v14199_v56, %s12309_s13  ;;  %v17299_v56 = vrot.slane %v14219_v11, 2 }
 0x308   : > { %v4586_v10 = vrot.slane %v4489_v31, 6  ;;  %v4443_v48 = vadd.f32 %v14565_v49, %v4387_v44  ;;  %v4587_v54 = vrot.slane %v4490_v52, 6  ;;  %11096 = vmatmul.mubr.msk.bf16.gmra.mrb[104].mxu1 %vm224_vm0, %v14232_v12 }
 0x309   : > { %v3963_v29 = vpop.permute.xlu1 %3962  ;;  %v4250_v5 = vpop.permute.xlu0 %4249  ;;  %11099 = vmatprep.mubr.msk.bf16.mxu1 %vm224_vm0, %v14242_v18 }
 0x30a   : > { %v4491_v53 = vmax.f32 %v4443_v48, 0.0  ;;  %v14589_v26 = vsel %vm4585_vm8, %v4586_v10, %v4587_v54  ;;  %v4389_v22 = vadd.f32 %v4250_v5, %v4100_v62  ;;  %v4101_v10 = vadd.f32 %v13640_v59, %v3963_v29 }
 0x30b   : > { %4291 = vrot.lane.b32.xlu1 %v14065_v51, %s12309_s13  ;;  %4028 = vrot.lane.b32.xlu0 %v17299_v56, %s12308_s6  ;;  %v17300_v51 = vrot.slane %v14235_v20, 2 }
 0x30c   : > { %v4589_v60 = vrot.slane %v4491_v53, 6  ;;  %v4445_v44 = vadd.f32 %v14565_v49, %v4389_v22 }
 0x30d   : > { %v3959_v46 = vpop.permute.xlu1 %3958  ;;  %v3967_v12 = vpop.permute.xlu0 %3966 }
 0x30e   : > { %v14599_v34 = vsel %vm4585_vm8, %v4587_v54, %v4589_v60  ;;  %v4099_v57 = vadd.f32 %v3959_v46, %v13647_v40  ;;  %v4493_v48 = vmax.f32 %v4445_v44, 0.0  ;;  %v4103_v56 = vadd.f32 %v3967_v12, %v13723_v28 }
 0x30f   : > { %v11362_v31 = vpack.c.bf16 %v14599_v34, %v14589_v26  ;;  %4008 = vrot.lane.b32.xlu1 %v14111_v38, %s12308_s6  ;;  %4024 = vrot.lane.b32.xlu0 %v17300_v51, %s12308_s6  ;;  %v17301_v38 = vrot.slane %v14235_v20, 4 }
 0x310   : > { %11100 = vmatmul.mubr.msk.bf16.gmra.mrb[108].mxu1 %vm224_vm0, %v14283_v14 }
 0x311   : > { %v4248_v18 = vpop.permute.xlu1 %4247  ;;  %v4256_v15 = vpop.permute.xlu0 %4255  ;;  %11103 = vmatprep.mubr.msk.bf16.mxu1 %vm224_vm0, %v14293_v45 }
 0x312   : > { %v4388_v52 = vadd.f32 %v4248_v18, %v4099_v57 }
 0x313   : > { %4297 = vrot.lane.b32.xlu1 %v14119_v47, %s12309_s13  ;;  %4313 = vrot.lane.b32.xlu0 %v17301_v38, %s12309_s13  ;;  %v4592_v47 = vrot.slane %v4493_v48, 6 }
 0x314   : > { %v4444_v54 = vadd.f32 %v14565_v49, %v4388_v52 }
 0x315   : > { %v4252_v40 = vpop.permute.xlu1 %4251  ;;  %v3973_v62 = vpop.permute.xlu0 %3972 }
 0x316   : > { %v4492_v53 = vmax.f32 %v4444_v54, 0.0  ;;  %v4390_v14 = vadd.f32 %v4252_v40, %v4101_v10  ;;  %v17306_v10 = vld [vmem:[#allocation17_spill] sm:$0xff] }
 0x317   : > { %4014 = vrot.lane.b32.xlu1 %v14160_v35, %s12308_s6  ;;  %4317 = vrot.lane.b32.xlu0 %v14249_v36, %s12309_s13  ;;  %v17302_v35 = vrot.slane %v14270_v1, 2  ;;  %v4392_v36 = vadd.f32 %v4256_v15, %v4103_v56  ;;  %v17304_v15 = vld [vmem:[#allocation88_spill] sm:$0xff] }
 0x318   : > { %v4591_v5 = vrot.slane %v4492_v53, 6  ;;  %v4446_v59 = vadd.f32 %v14565_v49, %v4390_v14  ;;  %11104 = vmatmul.mubr.msk.bf16.gmra.mrb[112].mxu1 %vm224_vm0, %v14333_v50  ;;  %v17307_v14 = vld [vmem:[#allocation94_spill] sm:$0xff] }
 0x319   : > { %v3969_v29 = vpop.permute.xlu1 %3968  ;;  %v4262_v22 = vpop.permute.xlu0 %4261  ;;  %11107 = vmatprep.mubr.msk.bf16.mxu1 %vm224_vm0, %v14343_v7  ;;  %v4448_v44 = vadd.f32 %v14565_v49, %v4392_v36 }
 0x31a   : > { %v14628_v60 = vsel %vm4585_vm8, %v4591_v5, %v4592_v47  ;;  %v4494_v45 = vmax.f32 %v4446_v59, 0.0  ;;  %v4104_v48 = vadd.f32 %v17306_v10, %v3969_v29 }
 0x31b   : > { %4303 = vrot.lane.b32.xlu1 %v14165_v23, %s12309_s13  ;;  %4034 = vrot.lane.b32.xlu0 %v17302_v35, %s12308_s6  ;;  %v17303_v23 = vrot.slane %v14286_v0, 2  ;;  %v4496_v38 = vmax.f32 %v4448_v44, 0.0 }
 0x31c   : > { %v4594_v46 = vrot.slane %v4494_v45, 6  ;;  %v17309_v45 = vld [vmem:[#allocation22_spill] sm:$0xff] }
 0x31d   : > { %v3965_v28 = vpop.permute.xlu1 %3964  ;;  %v14642_v51 = vpop.permute.xlu0 %3978  ;;  %v4597_v5 = vrot.slane %v4496_v38, 6  ;;  %v4106_v35 = vadd.f32 %v3973_v62, %v17309_v45  ;;  %v17314_v38 = vld [vmem:[#allocation108_spill] sm:$0xff] }
 0x31e   : > { %v14640_v12 = vsel %vm4585_vm8, %v4592_v47, %v4594_v46  ;;  %v4102_v7 = vadd.f32 %v3965_v28, %v13706_v8  ;;  %v17308_v47 = vld [vmem:[#allocation101_spill] sm:$0xff]  ;;  %v17310_v28 = vld [vmem:[#allocation95_spill] sm:$0xff]  ;;  %v17315_v10 = vrot.slane %v17314_v38, 2 }
 0x31f   : > { %v11368_v50 = vpack.c.bf16 %v14640_v12, %v14628_v60  ;;  %4020 = vrot.lane.b32.xlu1 %v14210_v30, %s12308_s6  ;;  %4030 = vrot.lane.b32.xlu0 %v17303_v23, %s12308_s6  ;;  %v17305_v30 = vrot.slane %v14286_v0, 4  ;;  %v17311_v23 = vld [vmem:[#allocation104_spill] sm:$0xff] }
 0x320   : > { %11108 = vmatmul.mubr.msk.bf16.gmra.mrb[116].mxu1 %vm224_vm0, %v14386_v4  ;;  %v17312_v44 = vrot.slane %v17311_v23, 2 }
 0x321   : > { %v4254_v57 = vpop.permute.xlu1 %4253  ;;  %v4268_v52 = vpop.permute.xlu0 %4267  ;;  %11111 = vmatprep.mubr.msk.bf16.mxu1 %vm224_vm0, %v14396_v41 }
 0x322   : > { %v4391_v18 = vadd.f32 %v4254_v57, %v4102_v7  ;;  %v4395_v7 = vadd.f32 %v4262_v22, %v4106_v35 }
 0x323   : > { %4309 = vrot.lane.b32.xlu1 %v17304_v15, %s12309_s13  ;;  %4319 = vrot.lane.b32.xlu0 %v17305_v30, %s12309_s13  ;;  %v17313_v30 = vld [vmem:[#allocation102_spill] sm:$0xff] }
 0x324   : > { %v4447_v54 = vadd.f32 %v14565_v49, %v4391_v18  ;;  %v4451_v22 = vadd.f32 %v14565_v49, %v4395_v7 }
 0x325   : > { %v4258_v8 = vpop.permute.xlu1 %4257  ;;  %v14664_v53 = vpop.permute.xlu0 %3984 }
 0x326   : > { %v4495_v40 = vmax.f32 %v4447_v54, 0.0  ;;  %v4393_v4 = vadd.f32 %v4258_v8, %v4104_v48  ;;  %v17316_v48 = vld [vmem:[#allocation18_spill] sm:$0xff] }
 0x327   : > { %4026 = vrot.lane.b32.xlu1 %v17307_v14, %s12308_s6  ;;  %4323 = vrot.lane.b32.xlu0 %v17308_v47, %s12309_s13  ;;  %v17318_v14 = vrot.slane %v17314_v38, 4  ;;  %v4499_v47 = vmax.f32 %v4451_v22, 0.0 }
 0x328   : > { %v4596_v59 = vrot.slane %v4495_v40, 6  ;;  %v4449_v29 = vadd.f32 %v14565_v49, %v4393_v4  ;;  %11112 = vmatmul.mubr.msk.bf16.gmra.mrb[120].mxu1 %vm224_vm0, %v14432_v63  ;;  %v17317_v4 = vld [vmem:[#allocation103_spill] sm:$0xff] }
 0x329   : > { %v3975_v56 = vpop.permute.xlu1 %3974  ;;  %v14677_v46 = vpop.permute.xlu0 %4273  ;;  %11115 = vmatprep.mubr.msk.bf16.mxu1 %vm224_vm0, %v14436_v25  ;;  %v4602_v7 = vrot.slane %v4499_v47, 6  ;;  %v17325_v47 = vld [vmem:[#allocation26_spill] sm:$0xff] }
 0x32a   : > { %v14673_v41 = vsel %vm4585_vm8, %v4596_v59, %v4597_v5  ;;  %v4497_v36 = vmax.f32 %v4449_v29, 0.0 }
 0x32b   : > { %4315 = vrot.lane.b32.xlu1 %v17310_v28, %s12309_s13  ;;  %4040 = vrot.lane.b32.xlu0 %v17312_v44, %s12308_s6  ;;  %v17320_v28 = vld [vmem:[#allocation112_spill] sm:$0xff]  ;;  %v17321_v44 = vld [vmem:[#allocation111_spill] sm:$0xff] }
 0x32c   : > { %v4599_v57 = vrot.slane %v4497_v36, 6 }
 0x32d   : > { %v3971_v62 = vpop.permute.xlu1 %3970  ;;  %v14689_v15 = vpop.permute.xlu0 %3990 }
 0x32e   : > { %v14687_v18 = vsel %vm4585_vm8, %v4597_v5, %v4599_v57  ;;  %v4105_v25 = vadd.f32 %v3971_v62, %v17316_v48  ;;  %v17319_v5 = vld [vmem:[#allocation19_spill] sm:$0xff]  ;;  %v17322_v48 = vld [vmem:[#allocation113_spill] sm:$0xff] }
 0x32f   : > { %v11374_v63 = vpack.c.bf16 %v14687_v18, %v14673_v41  ;;  %4032 = vrot.lane.b32.xlu1 %v17313_v30, %s12308_s6  ;;  %4036 = vrot.lane.b32.xlu0 %v17315_v10, %s12308_s6  ;;  %v4107_v59 = vadd.f32 %v17319_v5, %v3975_v56  ;;  %v4109_v30 = vadd.f32 %v14642_v51, %v13833_v42 }
 0x330   : > { %11116 = vmatmul.mubr.msk.bf16.gmra.mrb[124].mxu1 %vm224_vm0, %v14460_v32 }
 0x331   : > { %v4260_v54 = vpop.permute.xlu1 %4259  ;;  %v14702_v40 = vpop.permute.xlu0 %4279  ;;  %11119 = vmatprep.mubr.msk.bf16.mxu1 %vm224_vm0, %v14464_v3 }
 0x332   : > { %v4394_v8 = vadd.f32 %v4260_v54, %v4105_v25  ;;  %v17323_v25 = vrot.slane %v14372_v37, 2  ;;  %v4398_v54 = vadd.f32 %v4268_v52, %v4109_v30 }
 0x333   : > { %4321 = vrot.lane.b32.xlu1 %v17317_v4, %s12309_s13  ;;  %4325 = vrot.lane.b32.xlu0 %v17318_v14, %s12309_s13  ;;  %v17324_v14 = vrot.slane %v14389_v24, 2 }
 0x334   : > { %v4450_v29 = vadd.f32 %v14565_v49, %v4394_v8  ;;  %v4454_v52 = vadd.f32 %v14565_v49, %v4398_v54 }
 0x335   : > { %v4264_v45 = vpop.permute.xlu1 %4263  ;;  %v14713_v36 = vpop.permute.xlu0 %3996 }
 0x336   : > { %v4498_v32 = vmax.f32 %v4450_v29, 0.0  ;;  %v4396_v35 = vadd.f32 %v4264_v45, %v4107_v59  ;;  %v4502_v45 = vmax.f32 %v4454_v52, 0.0 }
 0x337   : > { %4038 = vrot.lane.b32.xlu1 %v17320_v28, %s12308_s6  ;;  %4329 = vrot.lane.b32.xlu0 %v17321_v44, %s12309_s13 }
 0x338   : > { %v4601_v57 = vrot.slane %v4498_v32, 6  ;;  %v4452_v56 = vadd.f32 %v14565_v49, %v4396_v35  ;;  %11120 = vmatmul.mubr.msk.bf16.gmra.mrb[128].mxu1 %vm224_vm0, %v14486_v39  ;;  %v17327_v32 = vld [vmem:[#allocation21_spill] sm:$0xff] }
 0x339   : > { %v3981_v62 = vpop.permute.xlu1 %3980  ;;  %v14727_v22 = vpop.permute.xlu0 %4285  ;;  %11123 = vmatprep.mubr.msk.bf16.mxu1 %vm224_vm0, %v14490_v2 }
 0x33a   : > { %v14723_v3 = vsel %vm4585_vm8, %v4601_v57, %v4602_v7  ;;  %v4500_v10 = vmax.f32 %v4452_v56, 0.0  ;;  %v4110_v35 = vadd.f32 %v17327_v32, %v3981_v62  ;;  %v4112_v62 = vadd.f32 %v14664_v53, %v13887_v33  ;;  %v5726_v53 = vld [vmem:[#allocation2 + $0x118] sm:$0xff] }
 0x33b   : > { %4327 = vrot.lane.b32.xlu1 %v17322_v48, %s12309_s13  ;;  %4046 = vrot.lane.b32.xlu0 %v17323_v25, %s12308_s6 }
 0x33c   : > { %v4604_v8 = vrot.slane %v4500_v10, 6  ;;  %v5725_v10 = vld [vmem:[#allocation2 + $0x110] sm:$0xff] }
 0x33d   : > { %v3977_v42 = vpop.permute.xlu1 %3976  ;;  %v14739_v4 = vpop.permute.xlu0 %4000 }
 0x33e   : > { %v14737_v51 = vsel %vm4585_vm8, %v4602_v7, %v4604_v8  ;;  %v4108_v2 = vadd.f32 %v3977_v42, %v17325_v47 }
 0x33f   : > { %v11380_v39 = vpack.c.bf16 %v14737_v51, %v14723_v3  ;;  %4044 = vrot.lane.b32.xlu1 %v14414_v9, %s12308_s6  ;;  %4042 = vrot.lane.b32.xlu0 %v17324_v14, %s12308_s6  ;;  %v17326_v9 = vrot.slane %v14389_v24, 4 }
 0x340   : > { %11124 = vmatmul.mubr.msk.bf16.gmra.mrb[132].mxu1 %vm224_vm0, %v14514_v21 }
 0x341   : > { %v4266_v5 = vpop.permute.xlu1 %4265  ;;  %v14752_v29 = vpop.permute.xlu0 %4289  ;;  %11127 = vmatprep.mubr.msk.bf16.mxu1 %vm224_vm0, %v14518_v55 }
 0x342   : > { %v4397_v59 = vadd.f32 %v4266_v5, %v4108_v2  ;;  %v5727_v5 = vld [vmem:[#allocation2 + $0x120] sm:$0xff] }
 0x343   : > { %4333 = vrot.lane.b32.xlu1 %v14419_v43, %s12309_s13  ;;  %4331 = vrot.lane.b32.xlu0 %v17326_v9, %s12309_s13  ;;  %v4607_v43 = vrot.slane %v4502_v45, 6 }
 0x344   : > { %v4453_v28 = vadd.f32 %v14565_v49, %v4397_v59 }
 0x345   : > { %v4270_v44 = vpop.permute.xlu1 %4269  ;;  %v14763_v57 = vpop.permute.xlu0 %4293 }
 0x346   : > { %v4501_v21 = vmax.f32 %v4453_v28, 0.0  ;;  %v4399_v7 = vadd.f32 %v4270_v44, %v4110_v35 }
 0x347   : > { %4335 = vrot.lane.b32.xlu0 %v14403_v13, %s12309_s13  ;;  %v4401_v13 = vadd.f32 %v14677_v46, %v4112_v62  ;;  %v5729_v62 = vld [vmem:[#allocation2 + $0x130] sm:$0xff] }
 0x348   : > { %v4606_v56 = vrot.slane %v4501_v21, 6  ;;  %v4455_v30 = vadd.f32 %v14565_v49, %v4399_v7  ;;  %11128 = vmatmul.mubr.msk.bf16.gmra.mrb[136].mxu1 %vm224_vm0, %v14540_v61  ;;  %v17328_v61 = vld [vmem:[#allocation25_spill] sm:$0xff] }
 0x349   : > { %v3987_v48 = vpop.permute.xlu1 %3986  ;;  %v14775_v54 = vpop.permute.xlu0 %4002  ;;  %11131 = vmatprep.mubr.msk.bf16.mxu1 %vm224_vm0, %v5725_v10  ;;  %v4457_v47 = vadd.f32 %v14565_v49, %v4401_v13  ;;  %v4115_v13 = vadd.f32 %v14689_v15, %v13941_v6  ;;  %v5730_v15 = vld [vmem:[#allocation2 + $0x138] sm:$0xff] }
 0x34a   : > { %v14771_v25 = vsel %vm4585_vm8, %v4606_v56, %v4607_v43  ;;  %v4503_v55 = vmax.f32 %v4455_v30, 0.0  ;;  %v4113_v32 = vadd.f32 %v13866_v16, %v3987_v48 }
 0x34b   : > { %v4505_v45 = vmax.f32 %v4457_v47, 0.0 }
 0x34c   : > { %v4609_v8 = vrot.slane %v4503_v55, 6 }
 0x34d   : > { %v3983_v42 = vpop.permute.xlu1 %3982  ;;  %v14782_v52 = vpop.permute.xlu0 %4010  ;;  %v4612_v56 = vrot.slane %v4505_v45, 6  ;;  %v5731_v45 = vld [vmem:[#allocation2 + $0x140] sm:$0xff] }
 0x34e   : > { %v14780_v14 = vsel %vm4585_vm8, %v4607_v43, %v4609_v8  ;;  %v4111_v2 = vadd.f32 %v3983_v42, %v17328_v61  ;;  %v5728_v43 = vld [vmem:[#allocation2 + $0x128] sm:$0xff]  ;;  %v4404_v42 = vadd.f32 %v14702_v40, %v4115_v13 }
 0x34f   : > { %v11386_v33 = vpack.c.bf16 %v14780_v14, %v14771_v25 }
 0x350   : > { %11132 = vmatmul.mubr.msk.bf16.gmra.mrb[140].mxu1 %vm224_vm0, %v5726_v53 }
 0x351   : > { %v4272_v59 = vpop.permute.xlu1 %4271  ;;  %v14789_v9 = vpop.permute.xlu0 %4006  ;;  %11135 = vmatprep.mubr.msk.bf16.mxu1 %vm224_vm0, %v5727_v5  ;;  %v4460_v5 = vadd.f32 %v14565_v49, %v4404_v42 }
 0x352   : > { %v4400_v46 = vadd.f32 %v4272_v59, %v4111_v2  ;;  %v17329_v59 = vld [vmem:[#allocation55_spill] sm:$0xff] }
 0x354   : > { %v4456_v35 = vadd.f32 %v14565_v49, %v4400_v46 }
 0x355   : > { %v4276_v28 = vpop.permute.xlu1 %4275  ;;  %v14794_v7 = vpop.permute.xlu0 %4295 }
 0x356   : > { %v4504_v44 = vmax.f32 %v4456_v35, 0.0  ;;  %v4402_v21 = vadd.f32 %v4276_v28, %v4113_v32  ;;  %v4508_v28 = vmax.f32 %v4460_v5, 0.0 }
 0x358   : > { %v4611_v30 = vrot.slane %v4504_v44, 6  ;;  %v4458_v10 = vadd.f32 %v14565_v49, %v4402_v21  ;;  %11136 = vmatmul.mubr.msk.bf16.gmra.mrb[144].mxu1 %vm224_vm0, %v5728_v43  ;;  %v4617_v13 = vrot.slane %v4508_v28, 6 }
 0x359   : > { %v3993_v55 = vpop.permute.xlu1 %3992  ;;  %v14803_v48 = vpop.permute.xlu0 %4299  ;;  %11139 = vmatprep.mubr.msk.bf16.mxu1 %vm224_vm0, %v5729_v62  ;;  %v5732_v62 = vld [vmem:[#allocation2 + $0x148] sm:$0xff] }
 0x35a   : > { %v14800_v8 = vsel %vm4585_vm8, %v4611_v30, %v4612_v56  ;;  %v4506_v16 = vmax.f32 %v4458_v10, 0.0  ;;  %v4116_v44 = vadd.f32 %v13928_v17, %v3993_v55 }
 0x35c   : > { %v4614_v53 = vrot.slane %v4506_v16, 6 }
 0x35d   : > { %v3989_v47 = vpop.permute.xlu1 %3988  ;;  %v14810_v2 = vpop.permute.xlu0 %4016 }
 0x35e   : > { %v14808_v61 = vsel %vm4585_vm8, %v4612_v56, %v4614_v53  ;;  %v4114_v46 = vadd.f32 %v3989_v47, %v17329_v59  ;;  %v5733_v53 = vld [vmem:[#allocation2 + $0x150] sm:$0xff] }
 0x35f   : > { %v11392_v6 = vpack.c.bf16 %v14808_v61, %v14800_v8  ;;  %v14999_v8 = vld [vmem:[%s16878_s2] ss:$0 sm:$0xff] }
 0x360   : > { %11140 = vmatmul.mubr.msk.bf16.gmra.mrb[148].mxu1 %vm224_vm0, %v5730_v15  ;;  %v4118_v15 = vadd.f32 %v14713_v36, %v13990_v27  ;;  %v5734_v36 = vld [vmem:[#allocation2 + $0x158] sm:$0xff] }
 0x361   : > { %v4278_v32 = vpop.permute.xlu1 %4277  ;;  %v14817_v35 = vpop.permute.xlu0 %4012  ;;  %11143 = vmatprep.mubr.msk.bf16.mxu1 %vm224_vm0, %v5731_v45 }
 0x362   : > { %v4403_v40 = vadd.f32 %v4278_v32, %v4114_v46  ;;  %v4407_v59 = vadd.f32 %v14727_v22, %v4118_v15 }
 0x364   : > { %v4459_v21 = vadd.f32 %v14565_v49, %v4403_v40  ;;  %v4463_v28 = vadd.f32 %v14565_v49, %v4407_v59 }
 0x365   : > { %v4282_v43 = vpop.permute.xlu1 %4281  ;;  %v14822_v10 = vpop.permute.xlu0 %4301 }
 0x366   : > { %v4507_v56 = vmax.f32 %v4459_v21, 0.0  ;;  %v4405_v30 = vadd.f32 %v4282_v43, %v4116_v44  ;;  %v17330_v44 = vld [vmem:[#allocation59_spill] sm:$0xff]  ;;  %v5735_v43 = vld [vmem:[#allocation2 + $0x160] sm:$0xff] }
 0x368   : > { %v4616_v16 = vrot.slane %v4507_v56, 6  ;;  %v4461_v42 = vadd.f32 %v14565_v49, %v4405_v30  ;;  %11144 = vmatmul.mubr.msk.bf16.gmra.mrb[152].mxu1 %vm224_vm0, %v5732_v62  ;;  %v4511_v62 = vmax.f32 %v4463_v28, 0.0 }
 0x369   : > { %v3999_v47 = vpop.permute.xlu1 %3998  ;;  %v14831_v55 = vpop.permute.xlu0 %4305  ;;  %11147 = vmatprep.mubr.msk.bf16.mxu1 %vm224_vm0, %v5733_v53  ;;  %v17332_v53 = vld [vmem:[#allocation63_spill] sm:$0xff] }
 0x36a   : > { %v14828_v5 = vsel %vm4585_vm8, %v4616_v16, %v4617_v13  ;;  %v4509_v17 = vmax.f32 %v4461_v42, 0.0  ;;  %v4120_v15 = vadd.f32 %v14739_v4, %v17332_v53 }
 0x36c   : > { %v4619_v46 = vrot.slane %v4509_v17, 6 }
 0x36d   : > { %v3995_v45 = vpop.permute.xlu1 %3994  ;;  %v14838_v40 = vpop.permute.xlu0 %4022 }
 0x36e   : > { %v14836_v32 = vsel %vm4585_vm8, %v4617_v13, %v4619_v46  ;;  %v4117_v21 = vadd.f32 %v3995_v45, %v17330_v44  ;;  %v17331_v13 = vld [vmem:[#allocation57_spill] sm:$0xff]  ;;  %v5736_v44 = vld [vmem:[#allocation2 + $0x168] sm:$0xff] }
 0x36f   : > { %v11398_v27 = vpack.c.bf16 %v14836_v32, %v14828_v5  ;;  %v4119_v16 = vadd.f32 %v17331_v13, %v3999_v47 }
 0x370   : > { %11148 = vmatmul.mubr.msk.bf16.gmra.mrb[156].mxu1 %vm224_vm0, %v5734_v36  ;;  %v4409_v36 = vadd.f32 %v14752_v29, %v4120_v15  ;;  %v17334_v15 = vld [vmem:[#allocation68_spill] sm:$0xff] }
 0x371   : > { %v4284_v56 = vpop.permute.xlu1 %4283  ;;  %v14845_v30 = vpop.permute.xlu0 %4018  ;;  %11151 = vmatprep.mubr.msk.bf16.mxu1 %vm224_vm0, %v5735_v43 }
 0x372   : > { %v4406_v22 = vadd.f32 %v4284_v56, %v4117_v21  ;;  %v4622_v21 = vrot.slane %v4511_v62, 6 }
 0x374   : > { %v4462_v42 = vadd.f32 %v14565_v49, %v4406_v22 }
 0x375   : > { %v4288_v17 = vpop.permute.xlu1 %4287  ;;  %v14852_v45 = vpop.permute.xlu0 %4307 }
 0x376   : > { %v4510_v59 = vmax.f32 %v4462_v42, 0.0  ;;  %v4408_v46 = vadd.f32 %v4288_v17, %v4119_v16  ;;  %v4465_v16 = vadd.f32 %v14565_v49, %v4409_v36  ;;  %v17333_v42 = vld [vmem:[#allocation64_spill] sm:$0xff]  ;;  %v4123_v17 = vadd.f32 %v14789_v9, %v17334_v15 }
 0x377   : > { %v4121_v29 = vadd.f32 %v14775_v54, %v17333_v42 }
 0x378   : > { %v4621_v56 = vrot.slane %v4510_v59, 6  ;;  %v4464_v43 = vadd.f32 %v14565_v49, %v4408_v46  ;;  %11152 = vmatmul.mubr.msk.bf16.gmra.mrb[160].mxu1 %vm224_vm0, %v5736_v44  ;;  %v17335_v46 = vld [vmem:[#allocation66_spill] sm:$0xff]  ;;  %v4412_v54 = vadd.f32 %v14794_v7, %v4123_v17  ;;  %v17337_v17 = vld [vmem:[#allocation77_spill] sm:$0xff] }
 0x379   : > { %v4005_v28 = vpop.permute.xlu1 %4004  ;;  %v14861_v13 = vpop.permute.xlu0 %4311 }
 0x37a   : > { %v14857_v47 = vsel %vm4585_vm8, %v4621_v56, %v4622_v21  ;;  %v4512_v22 = vmax.f32 %v4464_v43, 0.0  ;;  %v4122_v4 = vadd.f32 %v14025_v19, %v4005_v28  ;;  %v4125_v56 = vadd.f32 %v17335_v46, %v14782_v52 }
 0x37b   : > { %v4513_v28 = vmax.f32 %v4465_v16, 0.0  ;;  %v4126_v46 = vadd.f32 %v14817_v35, %v17337_v17 }
 0x37c   : > { %v4624_v62 = vrot.slane %v4512_v22, 6  ;;  %v4411_v53 = vadd.f32 %v14763_v57, %v4122_v4  ;;  %v4414_v9 = vadd.f32 %v14803_v48, %v4125_v56  ;;  %v17338_v48 = vmov 0  ;;  %v17341_v56 = vld [vmem:[#allocation75_spill] sm:$0xff] }
 0x37d   : > { %v4292_v59 = vpop.permute.xlu1 %4291  ;;  %v14875_v36 = vpop.permute.xlu0 %4028  ;;  %v17339_v48 = vsel %vm14889_vm9, 4294967295, %v17338_v48 }
 0x37e   : > { %v14872_v44 = vsel %vm4585_vm8, %v4622_v21, %v4624_v62  ;;  %v4467_v19 = vadd.f32 %v14565_v49, %v4411_v53  ;;  %v4410_v43 = vadd.f32 %v4292_v59, %v4121_v29  ;;  %v4626_v62 = vrot.slane %v4513_v28, 6  ;;  %v17336_v59 = vld [vmem:[#allocation71_spill] sm:$0xff]  ;;  %17340 = vst [vmem:[#allocation88_spill] sm:$0xff] %v17339_v48 }
 0x37f   : > { %v4468_v53 = vadd.f32 %v14565_v49, %v4412_v54  ;;  %v4470_v29 = vadd.f32 %v14565_v49, %v4414_v9 }
 0x380   : > { %v4515_v22 = vmax.f32 %v4467_v19, 0.0  ;;  %v4466_v4 = vadd.f32 %v14565_v49, %v4410_v43  ;;  %v4128_v19 = vadd.f32 %v17341_v56, %v14810_v2 }
 0x381   : > { %v4009_v52 = vpop.permute.xlu1 %4008  ;;  %v4025_v21 = vpop.permute.xlu0 %4024 }
 0x382   : > { %v4514_v42 = vmax.f32 %v4466_v4, 0.0  ;;  %v4629_v15 = vrot.slane %v4515_v22, 6  ;;  %v4124_v7 = vadd.f32 %v4009_v52, %v17336_v59  ;;  %v4516_v22 = vmax.f32 %v4468_v53, 0.0 }
 0x383   : > { %v4415_v4 = vadd.f32 %v14822_v10, %v4126_v46  ;;  %v4518_v52 = vmax.f32 %v4470_v29, 0.0 }
 0x384   : > { %v4627_v16 = vrot.slane %v4514_v42, 6  ;;  %v4417_v42 = vadd.f32 %v14831_v55, %v4128_v19  ;;  %v17344_v19 = vld [vmem:[#allocation82_spill] sm:$0xff] }
 0x385   : > { %v4298_v57 = vpop.permute.xlu1 %4297  ;;  %v4314_v28 = vpop.permute.xlu0 %4313  ;;  %v4471_v10 = vadd.f32 %v14565_v49, %v4415_v4  ;;  %v4634_v53 = vrot.slane %v4518_v52, 6 }
 0x386   : > { %v4413_v43 = vadd.f32 %v4298_v57, %v4124_v7  ;;  %v4628_v54 = vsel %vm4585_vm8, %v4626_v62, %v4627_v16  ;;  %v4630_v9 = vsel %vm4585_vm8, %v4627_v16, %v4629_v15  ;;  %v4631_v62 = vrot.slane %v4516_v22, 6  ;;  %v17342_v15 = vld [vmem:[#allocation79_spill] sm:$0xff]  ;;  %v17343_v7 = vld [vmem:[#allocation84_spill] sm:$0xff] }
 0x387   : > { %v11359_v35 = vpack.c.bf16 %v4630_v9, %v4628_v54  ;;  %v4473_v55 = vadd.f32 %v14565_v49, %v4417_v42  ;;  %v4129_v46 = vadd.f32 %v14845_v30, %v17343_v7  ;;  %v4519_v9 = vmax.f32 %v4471_v10, 0.0 }
 0x388   : > { %v4469_v59 = vadd.f32 %v14565_v49, %v4413_v43  ;;  %v4131_v43 = vadd.f32 %v17344_v19, %v14838_v40 }
 0x389   : > { %v4015_v17 = vpop.permute.xlu1 %4014  ;;  %11361 = vmatprep.subr.msk.bf16.mxu0 %vm14889_vm9, %v11359_v35  ;;  %v4318_v57 = vpop.permute.xlu0 %4317  ;;  %v4418_v22 = vadd.f32 %v14852_v45, %v4129_v46  ;;  %v4521_v35 = vmax.f32 %v4473_v55, 0.0 }
 0x38a   : > { %v4517_v2 = vmax.f32 %v4469_v59, 0.0  ;;  %11364 = vmatpush3.bf16.xpose.msk.msra.mxu0 %vm14889_vm9, %v11362_v31  ;;  %v4127_v16 = vadd.f32 %v4015_v17, %v17342_v15  ;;  %v4420_v52 = vadd.f32 %v14861_v13, %v4131_v43  ;;  %v4636_v17 = vrot.slane %v4519_v9, 6 }
 0x38b   : > { %v4474_v45 = vadd.f32 %v14565_v49, %v4418_v22  ;;  %v4134_v15 = vadd.f32 %v14219_v11, %v14875_v36  ;;  %v17346_v22 = vld [vmem:[#allocation97_spill] sm:$0xff] }
 0x38c   : > { %v4632_v29 = vrot.slane %v4517_v2, 6  ;;  %v4639_v2 = vrot.slane %v4521_v35, 6  ;;  %v4476_v13 = vadd.f32 %v14565_v49, %v4420_v52 }
 0x38d   : > { %v4304_v56 = vpop.permute.xlu1 %4303  ;;  %v4035_v34 = vpop.permute.xlu0 %4034  ;;  %v4522_v7 = vmax.f32 %v4474_v45, 0.0  ;;  %v4423_v43 = vadd.f32 %v4318_v57, %v4134_v15 }
 0x38e   : > { %v4416_v26 = vadd.f32 %v4304_v56, %v4127_v16  ;;  %v4633_v31 = vsel %vm4585_vm8, %v4631_v62, %v4632_v29  ;;  %v4635_v54 = vsel %vm4585_vm8, %v4632_v29, %v4634_v53  ;;  %v17345_v53 = vld [vmem:[#allocation90_spill] sm:$0xff]  ;;  %v4524_v19 = vmax.f32 %v4476_v13, 0.0 }
 0x38f   : > { %v11365_v4 = vpack.c.bf16 %v4635_v54, %v4633_v31  ;;  %v4132_v55 = vadd.f32 %v4025_v21, %v17345_v53  ;;  %v4641_v11 = vrot.slane %v4522_v7, 6  ;;  %v4479_v57 = vadd.f32 %v14565_v49, %v4423_v43 }
 0x390   : > { %v4472_v42 = vadd.f32 %v14565_v49, %v4416_v26  ;;  %v4137_v52 = vadd.f32 %v14270_v1, %v4035_v34 }
 0x391   : > { %v4021_v30 = vpop.permute.xlu1 %4020  ;;  %11367 = vmatprep.subr.msk.bf16.mxu0 %vm14889_vm9, %v11365_v4  ;;  %v4031_v59 = vpop.permute.xlu0 %4030  ;;  %v4421_v46 = vadd.f32 %v4314_v28, %v4132_v55  ;;  %v4644_v28 = vrot.slane %v4524_v19, 6  ;;  %v4527_v45 = vmax.f32 %v4479_v57, 0.0 }
 0x392   : > { %v4520_v40 = vmax.f32 %v4472_v42, 0.0  ;;  %11370 = vmatpush3.bf16.xpose.msk.msra.mxu0 %vm14889_vm9, %v11368_v50  ;;  %v4130_v10 = vadd.f32 %v4021_v30, %v14185_v58  ;;  %v4135_v4 = vadd.f32 %v4031_v59, %v17346_v22 }
 0x393   : > { %v4477_v36 = vadd.f32 %v14565_v49, %v4421_v46 }
 0x394   : > { %v4637_v62 = vrot.slane %v4520_v40, 6 }
 0x395   : > { %v4310_v29 = vpop.permute.xlu1 %4309  ;;  %v4320_v60 = vpop.permute.xlu0 %4319 }
 0x396   : > { %v4419_v16 = vadd.f32 %v4310_v29, %v4130_v10  ;;  %v4638_v12 = vsel %vm4585_vm8, %v4636_v17, %v4637_v62  ;;  %v4640_v50 = vsel %vm4585_vm8, %v4637_v62, %v4639_v2  ;;  %v4424_v40 = vadd.f32 %v4320_v60, %v4135_v4 }
 0x397   : > { %v11371_v56 = vpack.c.bf16 %v4640_v50, %v4638_v12  ;;  %v4649_v10 = vrot.slane %v4527_v45, 6 }
 0x398   : > { %v4475_v26 = vadd.f32 %v14565_v49, %v4419_v16  ;;  %v4480_v34 = vadd.f32 %v14565_v49, %v4424_v40  ;;  %v17347_v16 = vld [vmem:[#allocation106_spill] sm:$0xff] }
 0x399   : > { %v4027_v58 = vpop.permute.xlu1 %4026  ;;  %11373 = vmatprep.subr.msk.bf16.mxu0 %vm14889_vm9, %v11371_v56  ;;  %v4324_v31 = vpop.permute.xlu0 %4323 }
 0x39a   : > { %v4523_v21 = vmax.f32 %v4475_v26, 0.0  ;;  %11376 = vmatpush3.bf16.xpose.msk.msra.mxu0 %vm14889_vm9, %v11374_v63  ;;  %v4133_v9 = vadd.f32 %v4027_v58, %v14235_v20  ;;  %v4525_v63 = vmax.f32 %v4477_v36, 0.0  ;;  %v4426_v2 = vadd.f32 %v4324_v31, %v4137_v52 }
 0x39b   : > { %v4528_v51 = vmax.f32 %v4480_v34, 0.0 }
 0x39c   : > { %v4642_v54 = vrot.slane %v4523_v21, 6  ;;  %v4646_v1 = vrot.slane %v4525_v63, 6  ;;  %v4482_v53 = vadd.f32 %v14565_v49, %v4426_v2  ;;  %v17351_v63 = vld [vmem:[#allocation34_spill] sm:$0xff] }
 0x39d   : > { %v4316_v35 = vpop.permute.xlu1 %4315  ;;  %v4041_v30 = vpop.permute.xlu0 %4040  ;;  %v4651_v21 = vrot.slane %v4528_v51, 6 }
 0x39e   : > { %v4422_v42 = vadd.f32 %v4316_v35, %v4133_v9  ;;  %v4643_v41 = vsel %vm4585_vm8, %v4641_v11, %v4642_v54  ;;  %v4645_v18 = vsel %vm4585_vm8, %v4642_v54, %v4644_v28  ;;  %v4530_v46 = vmax.f32 %v4482_v53, 0.0  ;;  %v17348_v35 = vld [vmem:[#allocation85_spill] sm:$0xff] }
 0x39f   : > { %v11377_v17 = vpack.c.bf16 %v4645_v18, %v4643_v41  ;;  %v4140_v43 = vadd.f32 %v17311_v23, %v4041_v30  ;;  %v17350_v18 = vld [vmem:[#allocation56_spill] sm:$0xff] }
 0x3a0   : > { %v4478_v13 = vadd.f32 %v14565_v49, %v4422_v42  ;;  %v4654_v11 = vrot.slane %v4530_v46, 6 }
 0x3a1   : > { %v4033_v62 = vpop.permute.xlu1 %4032  ;;  %11379 = vmatprep.subr.msk.bf16.mxu0 %vm14889_vm9, %v11377_v17  ;;  %v4037_v59 = vpop.permute.xlu0 %4036  ;;  %v17352_v17 = vld [vmem:[#allocation93_spill] sm:$0xff] }
 0x3a2   : > { %v4526_v20 = vmax.f32 %v4478_v13, 0.0  ;;  %11382 = vmatpush3.bf16.xpose.msk.msra.mxu0 %vm14889_vm9, %v11380_v39  ;;  %v4136_v29 = vadd.f32 %v4033_v62, %v14286_v0  ;;  %v4138_v60 = vadd.f32 %v4037_v59, %v17347_v16  ;;  %v17353_v62 = vld [vmem:[#allocation58_spill] sm:$0xff]  ;;  %v17354_v59 = vld [vmem:[#allocation87_spill] sm:$0xff] }
 0x3a4   : > { %v4647_v55 = vrot.slane %v4526_v20, 6 }
 0x3a5   : > { %v4322_v15 = vpop.permute.xlu1 %4321  ;;  %v4326_v50 = vpop.permute.xlu0 %4325 }
 0x3a6   : > { %v4425_v12 = vadd.f32 %v4322_v15, %v4136_v29  ;;  %v4648_v7 = vsel %vm4585_vm8, %v4646_v1, %v4647_v55  ;;  %v4650_v3 = vsel %vm4585_vm8, %v4647_v55, %v4649_v10  ;;  %v4427_v19 = vadd.f32 %v4326_v50, %v4138_v60  ;;  %v17355_v1 = vld [vmem:[#allocation33_spill] sm:$0xff]  ;;  %v17356_v15 = vld [vmem:[#allocation91_spill] sm:$0xff] }
 0x3a7   : > { %v11383_v39 = vpack.c.bf16 %v4650_v3, %v4648_v7  ;;  %v2087_v34 = vadd.f32 %v17355_v1, %v17354_v59  ;;  %v17357_v60 = vld [vmem:[#allocation115_spill] sm:$0xff] }
 0x3a8   : > { %v4481_v56 = vadd.f32 %v14565_v49, %v4425_v12  ;;  %v4483_v28 = vadd.f32 %v14565_v49, %v4427_v19 }
 0x3a9   : > { %v4039_v26 = vpop.permute.xlu1 %4038  ;;  %11385 = vmatprep.subr.msk.bf16.mxu0 %vm14889_vm9, %v11383_v39  ;;  %v4330_v58 = vpop.permute.xlu0 %4329  ;;  %v2376_v16 = vadd.f32 %v17356_v15, %v2087_v34  ;;  %v17369_v34 = vld [vmem:[#allocation65_spill] sm:$0xff] }
 0x3aa   : > { %v4529_v0 = vmax.f32 %v4481_v56, 0.0  ;;  %11388 = vmatpush3.bf16.xpose.msk.msra.mxu0 %vm14889_vm9, %v11386_v33  ;;  %v4429_v31 = vadd.f32 %v4330_v58, %v4140_v43  ;;  %v4139_v23 = vadd.f32 %v4039_v26, %v17314_v38  ;;  %v17349_v33 = vld [vmem:[#allocation32_spill] sm:$0xff]  ;;  %v4531_v42 = vmax.f32 %v4483_v28, 0.0  ;;  %v17358_v43 = vld [vmem:[#allocation98_spill] sm:$0xff]  ;;  %v17359_v26 = vld [vmem:[#allocation35_spill] sm:$0xff] }
 0x3ab   : > { %v2089_v52 = vadd.f32 %v17349_v33, %v17348_v35  ;;  %v2088_v38 = vadd.f32 %v17351_v63, %v17350_v18  ;;  %v2431_v19 = vadd.f32 %v14999_v8, %v2376_v16  ;;  %v17365_v33 = vld [vmem:[#allocation28_spill] sm:$0xff]  ;;  %v17373_v16 = vld [vmem:[#allocation118_spill] sm:$0xff] }
 0x3ac   : > { %v4652_v36 = vrot.slane %v4529_v0, 6  ;;  %v4485_v57 = vadd.f32 %v14565_v49, %v4429_v31  ;;  %v4656_v10 = vrot.slane %v4531_v42, 6  ;;  %v2092_v0 = vadd.f32 %v17359_v26, %v17358_v43  ;;  %v17360_v31 = vld [vmem:[#allocation61_spill] sm:$0xff] }
 0x3ad   : > { %v4328_v54 = vpop.permute.xlu1 %4327  ;;  %v4047_v22 = vpop.permute.xlu0 %4046  ;;  %v2378_v45 = vadd.f32 %v17352_v17, %v2089_v52  ;;  %v2377_v20 = vadd.f32 %v17353_v62, %v2088_v38  ;;  %v17367_v62 = vld [vmem:[#allocation116_spill] sm:$0xff]  ;;  %v17376_v26 = vpack.c.bf16 %v14872_v44, %v14857_v47  ;;  %v17381_v47 = vld [vmem:[#allocation122_spill] sm:$0xff] }
 0x3ae   : > { %v4428_v9 = vadd.f32 %v4328_v54, %v4139_v23  ;;  %v4653_v4 = vsel %vm4585_vm8, %v4651_v21, %v4652_v36  ;;  %v4655_v25 = vsel %vm4585_vm8, %v4652_v36, %v4654_v11  ;;  %v4533_v30 = vmax.f32 %v4485_v57, 0.0  ;;  %v17361_v11 = vld [vmem:[#allocation37_spill] sm:$0xff]  ;;  %v17362_v54 = vld [vmem:[#allocation100_spill] sm:$0xff] }
 0x3af   : > { %v11389_v14 = vpack.c.bf16 %v4655_v25, %v4653_v4  ;;  %v2433_v61 = vadd.f32 %v14999_v8, %v2378_v45  ;;  %v2432_v46 = vadd.f32 %v14999_v8, %v2377_v20  ;;  %v4143_v58 = vadd.f32 %v14372_v37, %v4047_v22  ;;  %v17364_v22 = vld [vmem:[#allocation110_spill] sm:$0xff]  ;;  %v17368_v20 = vld [vmem:[#allocation40_spill] sm:$0xff] }
 0x3b0   : > { %v4484_v41 = vadd.f32 %v14565_v49, %v4428_v9  ;;  %v4659_v53 = vrot.slane %v4533_v30, 6  ;;  %v2091_v36 = vadd.f32 %v17361_v11, %v17360_v31  ;;  %v17363_v9 = vld [vmem:[#allocation36_spill] sm:$0xff]  ;;  %v2381_v4 = vadd.f32 %v17364_v22, %v2092_v0 }
 0x3b1   : > { %v4045_v40 = vpop.permute.xlu1 %4044  ;;  %11391 = vmatprep.subr.msk.bf16.mxu0 %vm14889_vm9, %v11389_v14  ;;  %v4043_v13 = vpop.permute.xlu0 %4042  ;;  %v2481_v28 = vmax.f32 %v2433_v61, 0.0  ;;  %v2090_v37 = vadd.f32 %v17363_v9, %v17362_v54  ;;  %v2480_v35 = vmax.f32 %v2432_v46, 0.0  ;;  %v2479_v30 = vmax.f32 %v2431_v19, 0.0  ;;  %v17377_v11 = vld [vmem:[#allocation120_spill] sm:$0xff] }
 0x3b2   : > { %v4532_v2 = vmax.f32 %v4484_v41, 0.0  ;;  %11394 = vmatpush3.bf16.xpose.msk.msra.mxu0 %vm14889_vm9, %v11392_v6  ;;  %v4142_v29 = vadd.f32 %v4045_v40, %v14389_v24  ;;  %v4141_v12 = vadd.f32 %v4043_v13, %v17357_v60  ;;  %v2380_v52 = vadd.f32 %v17365_v33, %v2091_v36  ;;  %v17366_v41 = vld [vmem:[#allocation107_spill] sm:$0xff]  ;;  %v17382_v22 = vld [vmem:[#allocation80_spill] sm:$0xff]  ;;  %v17384_v33 = vld [vmem:[#allocation86_spill] sm:$0xff] }
 0x3b3   : > { %v2379_v18 = vadd.f32 %v17366_v41, %v2090_v37  ;;  %v2595_v32 = vrot.slane %v2481_v28, 7  ;;  %v2593_v17 = vrot.slane %v2480_v35, 7  ;;  %v2094_v59 = vadd.f32 %v17368_v20, %v17367_v62  ;;  %v17378_v36 = vld [vmem:[#allocation43_spill] sm:$0xff]  ;;  %v17391_v62 = vld [vmem:[#allocation96_spill] sm:$0xff]  ;;  %v17392_v20 = vld [vmem:[#allocation45_spill] sm:$0xff] }
 0x3b4   : > { %v4657_v55 = vrot.slane %v4532_v2, 6  ;;  %v2435_v45 = vadd.f32 %v14999_v8, %v2380_v52  ;;  %v2592_v2 = vrot.slane %v2479_v30, 7  ;;  %v2097_v28 = vadd.f32 %v17378_v36, %v17377_v11  ;;  %v17385_v30 = vld [vmem:[#allocation89_spill] sm:$0xff]  ;;  %v17402_v11 = vld [vmem:[#allocation12_spill] sm:$0xff]  ;;  %v17403_v36 = vld [vmem:[#allocation11_spill] sm:$0xff] }
 0x3b5   : > { %v4334_v50 = vpop.permute.xlu1 %4333  ;;  %v4332_v7 = vpop.permute.xlu0 %4331  ;;  %v2434_v13 = vadd.f32 %v14999_v8, %v2379_v18  ;;  %v2383_v60 = vadd.f32 %v17373_v16, %v2094_v59  ;;  %v17386_v18 = vld [vmem:[#allocation50_spill] sm:$0xff]  ;;  %v2099_v59 = vadd.f32 %v17392_v20, %v17391_v62 }
 0x3b6   : > { %v4431_v6 = vadd.f32 %v4334_v50, %v4142_v29  ;;  %v4658_v3 = vsel %vm4585_vm8, %v4656_v10, %v4657_v55  ;;  %v4660_v51 = vsel %vm4585_vm8, %v4657_v55, %v4659_v53  ;;  %v4430_v39 = vadd.f32 %v4332_v7, %v4141_v12  ;;  %v17370_v10 = vld [vmem:[#allocation38_spill] sm:$0xff]  ;;  %v17372_v55 = vld [vmem:[#allocation39_spill] sm:$0xff]  ;;  %v17374_v7 = vld [vmem:[#allocation72_spill] sm:$0xff] }
 0x3b7   : > { %v11395_v24 = vpack.c.bf16 %v4660_v51, %v4658_v3  ;;  %v2095_v53 = vadd.f32 %v17370_v10, %v17369_v34  ;;  %v2596_v50 = vsel %vm2551_vm5, %v2593_v17, %v2595_v32  ;;  %v2483_v61 = vmax.f32 %v2435_v45, 0.0  ;;  %v17375_v51 = vld [vmem:[#allocation76_spill] sm:$0xff] }
 0x3b8   : > { %v4487_v56 = vadd.f32 %v14565_v49, %v4431_v6  ;;  %v4486_v21 = vadd.f32 %v14565_v49, %v4430_v39  ;;  %v2594_v46 = vsel %vm2551_vm5, %v2592_v2, %v2593_v17  ;;  %v2438_v43 = vadd.f32 %v14999_v8, %v2383_v60  ;;  %v17393_v34 = vld [vmem:[#allocation92_spill] sm:$0xff] }
 0x3b9   : > { %11397 = vmatprep.subr.msk.bf16.mxu0 %vm14889_vm9, %v11395_v24  ;;  %v4336_v57 = vpop.permute.xlu0 %4335  ;;  %v2384_v39 = vadd.f32 %v17375_v51, %v2095_v53  ;;  %v2482_v24 = vmax.f32 %v2434_v13, 0.0  ;;  %v2598_v0 = vrot.slane %v2483_v61, 7  ;;  %v2386_v44 = vadd.f32 %v17381_v47, %v2097_v28  ;;  %v17394_v10 = vld [vmem:[#allocation44_spill] sm:$0xff]  ;;  %v15093_v61 = vld [vmem:[%s16879_s3] sm:$0xff]  ;;  %v17399_v51 = vld [vmem:[#allocation105_spill] sm:$0xff] }
 0x3ba   : > { %v4535_v23 = vmax.f32 %v4487_v56, 0.0  ;;  %11400 = vmatpush3.bf16.xpose.msk.msra.mxu0 %vm14889_vm9, %v11398_v27  ;;  %v4534_v25 = vmax.f32 %v4486_v21, 0.0  ;;  %v4432_v14 = vadd.f32 %v4336_v57, %v4143_v58  ;;  %v2436_v27 = vadd.f32 %v14999_v8, %v2381_v4  ;;  %v17380_v57 = vld [vmem:[#allocation42_spill] sm:$0xff]  ;;  %v17383_v4 = vld [vmem:[#allocation41_spill] sm:$0xff] }
 0x3bb   : > { %v11407_v56 = vpack.c.bf16 %v2596_v50, %v2594_v46  ;;  %v2439_v21 = vadd.f32 %v14999_v8, %v2384_v39  ;;  %v2597_v31 = vrot.slane %v2482_v24, 7  ;;  %v2486_v9 = vmax.f32 %v2438_v43, 0.0 }
 0x3bc   : > { %v4662_v42 = vrot.slane %v4535_v23, 6  ;;  %v4661_v63 = vrot.slane %v4534_v25, 6  ;;  %v4488_v5 = vadd.f32 %v14565_v49, %v4432_v14  ;;  %v17371_v49 = vld [vmem:[#allocation67_spill] sm:$0xff]  ;;  %v2484_v15 = vmax.f32 %v2436_v27, 0.0  ;;  %v17387_v27 = vld [vmem:[#allocation6_spill] sm:$0xff] }
 0x3bd   : > { %v2093_v29 = vadd.f32 %v17372_v55, %v17371_v49  ;;  %v17379_v23 = vld [vmem:[#allocation83_spill] sm:$0xff]  ;;  %v2098_v25 = vadd.f32 %v17383_v4, %v17382_v22  ;;  %v2487_v35 = vmax.f32 %v2439_v21, 0.0  ;;  %v2441_v32 = vadd.f32 %v14999_v8, %v2386_v44  ;;  %v17395_v49 = vld [vmem:[#allocation124_spill] sm:$0xff]  ;;  %v17396_v55 = vld [vmem:[#allocation46_spill] sm:$0xff] }
 0x3be   : > { %v4536_v38 = vmax.f32 %v4488_v5, 0.0  ;;  %v4663_v40 = vsel %vm4585_vm8, %v4661_v63, %v4662_v42  ;;  %v2600_v19 = vrot.slane %v2484_v15, 7  ;;  %v2096_v54 = vadd.f32 %v17380_v57, %v17379_v23  ;;  %v17397_v15 = vld [vmem:[#allocation99_spill] sm:$0xff] }
 0x3bf   : > { %v2382_v3 = vadd.f32 %v17374_v7, %v2093_v29  ;;  %v2387_v41 = vadd.f32 %v17385_v30, %v2098_v25  ;;  %v2603_v5 = vrot.slane %v2486_v9, 7  ;;  %v2605_v2 = vrot.slane %v2487_v35, 7 }
 0x3c0   : > { %v4664_v1 = vrot.slane %v4536_v38, 6  ;;  %v2601_v37 = vsel %vm2551_vm5, %v2598_v0, %v2600_v19  ;;  %v2385_v52 = vadd.f32 %v17384_v33, %v2096_v54  ;;  %v17388_v38 = vld [vmem:[#allocation10_spill] sm:$0xff]  ;;  %v2101_v53 = vadd.f32 %v17394_v10, %v17393_v34  ;;  %v17406_v33 = vld [vmem:[#allocation128_spill] sm:$0xff] }
 0x3c1   : > { %v2437_v58 = vadd.f32 %v14999_v8, %v2382_v3  ;;  %v2100_v29 = vadd.f32 %v17396_v55, %v17395_v49  ;;  %v2388_v16 = vadd.f32 %v17397_v15, %v2099_v59  ;;  %v2489_v60 = vmax.f32 %v2441_v32, 0.0  ;;  %v17411_v59 = vld [vmem:[#allocation119_spill] sm:$0xff]  ;;  %v17413_v49 = vld [vmem:[#allocation16_spill] sm:$0xff] }
 0x3c2   : > { %v4665_v12 = vsel %vm4585_vm8, %v4662_v42, %v4664_v1  ;;  %v2599_v42 = vsel %vm2551_vm5, %v2597_v31, %v2598_v0  ;;  %v2440_v13 = vadd.f32 %v14999_v8, %v2385_v52  ;;  %v2442_v1 = vadd.f32 %v14999_v8, %v2387_v41  ;;  %v17400_v0 = vld [vmem:[#allocation114_spill] sm:$0xff]  ;;  %v17407_v52 = vld [vmem:[#allocation49_spill] sm:$0xff] }
 0x3c3   : > { %v11401_v6 = vpack.c.bf16 %v4665_v12, %v4663_v40  ;;  %v2485_v14 = vmax.f32 %v2437_v58, 0.0  ;;  %v11413_v63 = vpack.c.bf16 %v2601_v37, %v2599_v42  ;;  %v17389_v40 = vld [vmem:[#allocation14_spill] sm:$0xff]  ;;  %v2606_v50 = vsel %vm2551_vm5, %v2603_v5, %v2605_v2  ;;  %v17401_v58 = vld [vmem:[#allocation48_spill] sm:$0xff] }
 0x3c4   : > { %v17390_v17 = vpack.c.bf16 %v17388_v38, %v17389_v40  ;;  %v2488_v3 = vmax.f32 %v2440_v13, 0.0  ;;  %v2390_v39 = vadd.f32 %v17399_v51, %v2101_v53  ;;  %v2490_v46 = vmax.f32 %v2442_v1, 0.0  ;;  %v17410_v40 = vld [vmem:[#allocation130_spill] sm:$0xff]  ;;  %v17412_v53 = vld [vmem:[#allocation15_spill] sm:$0xff] }
 0x3c5   : > { %11403 = vmatprep.subr.msk.bf16.mxu0 %vm14889_vm9, %v11401_v6  ;;  %v2602_v45 = vrot.slane %v2485_v14, 7  ;;  %v17398_v6 = vld [vmem:[#allocation126_spill] sm:$0xff]  ;;  %v2102_v21 = vadd.f32 %v17401_v58, %v17400_v0  ;;  %v2608_v31 = vrot.slane %v2489_v60, 7  ;;  %v17404_v28 = vpack.c.bf16 %v17402_v11, %v17403_v36  ;;  %v17405_v14 = vld [vmem:[#allocation117_spill] sm:$0xff]  ;;  %v17419_v36 = vld [vmem:[#allocation123_spill] sm:$0xff] }
 0x3c6   : > { %11406 = vmatpush3.bf16.xpose.msk.msra.mxu0 %vm14889_vm9, %v17376_v26  ;;  %v2389_v7 = vadd.f32 %v17398_v6, %v2100_v29  ;;  %v2443_v26 = vadd.f32 %v14999_v8, %v2388_v16  ;;  %v2607_v44 = vrot.slane %v2488_v3, 7  ;;  %v2445_v37 = vadd.f32 %v14999_v8, %v2390_v39 }
 0x3c7   : > { %11409 = vmatprep.subr.msk.bf16.mxu0 %vm14889_vm9, %v11407_v56  ;;  %v2604_v12 = vsel %vm2551_vm5, %v2602_v45, %v2603_v5  ;;  %v2610_v25 = vrot.slane %v2490_v46, 7  ;;  %v2391_v35 = vadd.f32 %v17405_v14, %v2102_v21  ;;  %v2103_v42 = vadd.f32 %v17407_v52, %v17406_v33  ;;  %v17417_v21 = vld [vmem:[#allocation121_spill] sm:$0xff]  ;;  %v17423_v52 = vld [vmem:[#allocation127_spill] sm:$0xff] }
 0x3c8   : > { %v11419_v43 = vpack.c.bf16 %v2606_v50, %v2604_v12  ;;  %v2444_v57 = vadd.f32 %v14999_v8, %v2389_v7  ;;  %v2491_v41 = vmax.f32 %v2443_v26, 0.0  ;;  %v2609_v45 = vsel %vm2551_vm5, %v2607_v44, %v2608_v31  ;;  %v17416_v26 = vld [vmem:[#allocation7_spill] sm:$0xff]  ;;  %v17421_v44 = vld [vmem:[#allocation134_spill] sm:$0xff] }
 0x3c9   : > { %v2611_v2 = vsel %vm2551_vm5, %v2608_v31, %v2610_v25  ;;  %v2493_v13 = vmax.f32 %v2445_v37, 0.0  ;;  %v2446_v20 = vadd.f32 %v14999_v8, %v2391_v35  ;;  %v17414_v55 = vpack.c.bf16 %v17412_v53, %v17413_v49  ;;  %v17418_v31 = vld [vmem:[#allocation51_spill] sm:$0xff]  ;;  %v17422_v25 = vld [vmem:[#allocation125_spill] sm:$0xff]  ;;  %v17427_v49 = vld [vmem:[#allocation136_spill] sm:$0xff] }
 0x3ca   : > { %v2492_v38 = vmax.f32 %v2444_v57, 0.0  ;;  %v2612_v10 = vrot.slane %v2491_v41, 7  ;;  %v11425_v15 = vpack.c.bf16 %v2611_v2, %v2609_v45  ;;  %v2107_v11 = vadd.f32 %v17418_v31, %v17417_v21  ;;  %v17434_v31 = vld [vmem:[#allocation69_spill] sm:$0xff] }
 0x3cb   : > { %v2615_v7 = vrot.slane %v2493_v13, 7  ;;  %v2494_v46 = vmax.f32 %v2446_v20, 0.0 }
 0x3cc   : > { %v2613_v16 = vrot.slane %v2492_v38, 7 }
 0x3cd   : > { %10228 = vmatmul.mubr.msk.f32.vlgmr.msra.gmra.mrb[64].mxu0 %vm4672_vm6, %v17386_v18  ;;  %v17408_v18 = vld [vmem:[#allocation109_spill] sm:$0xff] }
 0x3ce   : > { %10229 = vmatprep.mubr.msk.f32.mxu0 %vm4672_vm6, %v17387_v27  ;;  %11412 = vmatpush3.bf16.xpose.msk.msra.mxu0 %vm14889_vm9, %v17390_v17  ;;  %v2392_v17 = vadd.f32 %v17410_v40, %v2103_v42  ;;  %v2396_v42 = vadd.f32 %v17423_v52, %v2107_v11  ;;  %v17435_v11 = vld [vmem:[#allocation29_spill] sm:$0xff] }
 0x3cf   : > { %11415 = vmatprep.subr.msk.bf16.mxu0 %vm14889_vm9, %v11413_v63  ;;  %v17409_v63 = vld [vmem:[#allocation47_spill] sm:$0xff] }
 0x3d0   : > { %v2104_v5 = vadd.f32 %v17409_v63, %v17408_v18  ;;  %v2447_v60 = vadd.f32 %v14999_v8, %v2392_v17  ;;  %v2617_v18 = vrot.slane %v2494_v46, 7  ;;  %v17424_v63 = vld [vmem:[#allocation23_spill] sm:$0xff]  ;;  %v2451_v53 = vadd.f32 %v14999_v8, %v2396_v42  ;;  %v17442_v42 = vld [vmem:[#allocation81_spill] sm:$0xff] }
 0x3d1   : > { %10230 = vmatmul.mubr.msk.f32.gmra.mrb[66].mxu0 %vm4672_vm6, %v17387_v27 }
 0x3d2   : > { %10263 = vmatprep.mubr.msk.f32.mxu0 %vm4672_vm6, %v15093_v61  ;;  %v2393_v1 = vadd.f32 %v17411_v59, %v2104_v5  ;;  %v17425_v5 = vld [vmem:[#allocation20_spill] sm:$0xff] }
 0x3d3   : > { %v15099_v24 = vpop.f32.mrb[100].mxu1 }
 0x3d4   : > { %v6237_v56 = vrot.slane %v15099_v24, 3  ;;  %v15102_v19 = vpop.f32.mrb[101].mxu1  ;;  %v6493_v54 = vrot.slane %v15099_v24, 6 }
 0x3d5   : > { %v11094_v23 = vpop.f32.mrb[102].mxu1 }
 0x3d6   : > { %11418 = vmatpush3.bf16.xpose.msk.msra.mxu0 %vm14889_vm9, %v17404_v28  ;;  %v6495_v9 = vrot.slane %v11094_v23, 6  ;;  %v15114_v47 = vpop.f32.mrb[103].mxu1  ;;  %6288 = vrot.lane.b32.xlu0 %v6237_v56, %s12308_s6  ;;  %v17420_v28 = vld [vmem:[#allocation52_spill] sm:$0xff] }
 0x3d7   : > { %11421 = vmatprep.subr.msk.bf16.mxu0 %vm14889_vm9, %v11419_v43  ;;  %v6236_v22 = vrot.slane %v15114_v47, 3  ;;  %v6492_v4 = vrot.slane %v15114_v47, 6  ;;  %v17415_v43 = vld [vmem:[#allocation132_spill] sm:$0xff]  ;;  %v2105_v23 = vadd.f32 %v17420_v28, %v17419_v36  ;;  %v2086_v36 = vadd.f32 %v17435_v11, %v17434_v31 }
 0x3d8   : > { %v6496_v30 = vsel %vm4585_vm8, %v6493_v54, %v6495_v9  ;;  %v2106_v0 = vadd.f32 %v17416_v26, %v17415_v43  ;;  %v2495_v9 = vmax.f32 %v2447_v60, 0.0  ;;  %v17430_v60 = vld [vmem:[#allocation8_spill] sm:$0xff]  ;;  %v17433_v43 = vld [vmem:[#allocation137_spill] sm:$0xff] }
 0x3d9   : > { %v6238_v32 = vsel %vm6235_vm10, %v6236_v22, %v6237_v56  ;;  %v6494_v27 = vsel %vm4585_vm8, %v6492_v4, %v6493_v54  ;;  %v2448_v56 = vadd.f32 %v14999_v8, %v2393_v1  ;;  %v2394_v14 = vadd.f32 %v17422_v25, %v2105_v23  ;;  %v17439_v25 = vld [vmem:[#allocation31_spill] sm:$0xff] }
 0x3da   : > { %6286 = vrot.lane.b32.xlu1 %v6238_v32, %s12308_s6  ;;  %6284 = vrot.lane.b32.xlu0 %v6236_v22, %s12308_s6  ;;  %v2395_v37 = vadd.f32 %v17421_v44, %v2106_v0  ;;  %v2614_v22 = vsel %vm2551_vm5, %v2612_v10, %v2613_v16  ;;  %v17426_v32 = vpack.c.bf16 %v17424_v63, %v17425_v5  ;;  %v2618_v38 = vrot.slane %v2495_v9, 7  ;;  %v17436_v9 = vld [vmem:[#allocation133_spill] sm:$0xff]  ;;  %v17443_v63 = vld [vmem:[#allocation54_spill] sm:$0xff]  ;;  %v17444_v5 = vld [vmem:[#allocation24_spill] sm:$0xff] }
 0x3db   : > { %v15135_v62 = vpop.f32.mrb[104].mxu1  ;;  %v2496_v33 = vmax.f32 %v2448_v56, 0.0  ;;  %v2449_v13 = vadd.f32 %v14999_v8, %v2394_v14  ;;  %v17440_v14 = vld [vmem:[#allocation73_spill] sm:$0xff] }
 0x3dc   : > { %v15139_v34 = vpop.f32.mrb[105].mxu1  ;;  %v6498_v12 = vrot.slane %v15135_v62, 6  ;;  %v6240_v3 = vrot.slane %v15135_v62, 3  ;;  %v2450_v40 = vadd.f32 %v14999_v8, %v2395_v37  ;;  %v2619_v0 = vsel %vm2551_vm5, %v2617_v18, %v2618_v38  ;;  %v17437_v37 = vld [vmem:[#allocation135_spill] sm:$0xff] }
 0x3dd   : > { %v11098_v29 = vpop.f32.mrb[106].mxu1  ;;  %v2620_v10 = vrot.slane %v2496_v33, 7  ;;  %v2497_v28 = vmax.f32 %v2449_v13, 0.0  ;;  %v17441_v33 = vld [vmem:[#allocation30_spill] sm:$0xff]  ;;  %v2375_v18 = vadd.f32 %v17442_v42, %v2086_v36 }
 0x3de   : > { %11424 = vmatpush3.bf16.xpose.msk.msra.mxu0 %vm14889_vm9, %v17414_v55  ;;  %v6500_v50 = vrot.slane %v11098_v29, 6  ;;  %v15148_v6 = vpop.f32.mrb[107].mxu1  ;;  %6574 = vrot.lane.b32.xlu1 %v6494_v27, %s12309_s13  ;;  %v17428_v55 = vld [vmem:[#allocation13_spill] sm:$0xff]  ;;  %v2498_v56 = vmax.f32 %v2450_v40, 0.0  ;;  %v2084_v52 = vadd.f32 %v17441_v33, %v17440_v14 }
 0x3df   : > { %6572 = vrot.lane.b32.xlu0 %v6492_v4, %s12309_s13  ;;  %v6239_v51 = vrot.slane %v15148_v6, 3  ;;  %v6497_v39 = vrot.slane %v15148_v6, 6  ;;  %11427 = vmatprep.subr.msk.bf16.mxu0 %vm14889_vm9, %v11425_v15  ;;  %v2616_v4 = vsel %vm2551_vm5, %v2613_v16, %v2615_v7  ;;  %v2109_v29 = vadd.f32 %v17428_v55, %v17427_v49  ;;  %v17429_v16 = vld [vmem:[#allocation129_spill] sm:$0xff] }
 0x3e0   : > { %v15161_v58 = vsel %vm4585_vm8, %v6498_v12, %v6500_v50  ;;  %v11431_v27 = vpack.c.bf16 %v2616_v4, %v2614_v22  ;;  %v17431_v50 = vld [vmem:[#allocation131_spill] sm:$0xff]  ;;  %v17432_v7 = vld [vmem:[#allocation9_spill] sm:$0xff]  ;;  %v2621_v21 = vsel %vm2551_vm5, %v2618_v38, %v2620_v10  ;;  %v2623_v38 = vrot.slane %v2498_v56, 7 }
 0x3e1   : > { %v6241_v57 = vsel %vm6235_vm10, %v6239_v51, %v6240_v3  ;;  %v6499_v54 = vsel %vm4585_vm8, %v6497_v39, %v6498_v12  ;;  %v2110_v12 = vadd.f32 %v17430_v60, %v17429_v16  ;;  %v2398_v26 = vadd.f32 %v17433_v43, %v2109_v29 }
 0x3e2   : > { %6294 = vrot.lane.b32.xlu1 %v6240_v3, %s12308_s6  ;;  %v2108_v3 = vadd.f32 %v17432_v7, %v17431_v50  ;;  %v2622_v10 = vrot.slane %v2497_v28, 7  ;;  %v2430_v31 = vadd.f32 %v14999_v8, %v2375_v18 }
 0x3e3   : > { %6576 = vrot.lane.b32.xlu0 %v6496_v30, %s12309_s13  ;;  %v15175_v35 = vpop.f32.mrb[108].mxu1  ;;  %v2399_v22 = vadd.f32 %v17437_v37, %v2110_v12  ;;  %v2453_v40 = vadd.f32 %v14999_v8, %v2398_v26 }
 0x3e4   : > { %v15178_v41 = vpop.f32.mrb[109].mxu1  ;;  %v6503_v17 = vrot.slane %v15175_v35, 6  ;;  %v6243_v20 = vrot.slane %v15175_v35, 3  ;;  %v2397_v44 = vadd.f32 %v17436_v9, %v2108_v3  ;;  %v2624_v26 = vsel %vm2551_vm5, %v2622_v10, %v2623_v38  ;;  %v17448_v9 = vld [vmem:[#allocation62_spill] sm:$0xff] }
 0x3e5   : > { %v11102_v30 = vpop.f32.mrb[110].mxu1  ;;  %v2454_v60 = vadd.f32 %v14999_v8, %v2399_v22  ;;  %v2501_v43 = vmax.f32 %v2453_v40, 0.0 }
 0x3e6   : > { %11430 = vmatpush3.bf16.xpose.msk.msra.mxu0 %vm14889_vm9, %v17426_v32  ;;  %v6505_v45 = vrot.slane %v11102_v30, 6  ;;  %v15187_v2 = vpop.f32.mrb[111].mxu1  ;;  %6290 = vrot.lane.b32.xlu1 %v6239_v51, %s12308_s6  ;;  %v17445_v32 = vpack.c.bf16 %v17443_v63, %v17444_v5  ;;  %v2452_v16 = vadd.f32 %v14999_v8, %v2397_v44  ;;  %v17449_v44 = vld [vmem:[#allocation60_spill] sm:$0xff] }
 0x3e7   : > { %6292 = vrot.lane.b32.xlu0 %v6241_v57, %s12308_s6  ;;  %v6242_v59 = vrot.slane %v15187_v2, 3  ;;  %v6502_v1 = vrot.slane %v15187_v2, 6  ;;  %11433 = vmatprep.subr.msk.bf16.mxu0 %vm14889_vm9, %v11431_v27  ;;  %v2499_v57 = vmax.f32 %v2451_v53, 0.0  ;;  %v11437_v27 = vpack.c.bf16 %v2621_v21, %v2619_v0 }
 0x3e8   : > { %v15201_v15 = vsel %vm4585_vm8, %v6503_v17, %v6505_v45  ;;  %v2500_v11 = vmax.f32 %v2452_v16, 0.0  ;;  %v2502_v36 = vmax.f32 %v2454_v60, 0.0  ;;  %v17450_v37 = vpack.c.bf16 %v17448_v9, %v17449_v44  ;;  %v17452_v16 = vld [vmem:[#allocation70_spill] sm:$0xff] }
 0x3e9   : > { %v6244_v51 = vsel %vm6235_vm10, %v6242_v59, %v6243_v20  ;;  %v6504_v46 = vsel %vm4585_vm8, %v6502_v1, %v6503_v17  ;;  %v2625_v29 = vrot.slane %v2499_v57, 7 }
 0x3ea   : > { %6578 = vrot.lane.b32.xlu1 %v6497_v39, %s12309_s13  ;;  %v17438_v39 = vld [vmem:[#allocation53_spill] sm:$0xff]  ;;  %v2627_v18 = vrot.slane %v2500_v11, 7  ;;  %v2630_v63 = vrot.slane %v2502_v36, 7 }
 0x3eb   : > { %6580 = vrot.lane.b32.xlu0 %v6499_v54, %s12309_s13  ;;  %v15220_v23 = vpop.f32.mrb[112].mxu1  ;;  %v2085_v54 = vadd.f32 %v17439_v25, %v17438_v39  ;;  %v2626_v0 = vsel %vm2551_vm5, %v2623_v38, %v2625_v29  ;;  %v2628_v39 = vrot.slane %v2501_v43, 7  ;;  %v17451_v29 = vld [vmem:[#allocation74_spill] sm:$0xff] }
 0x3ec   : > { %v15224_v4 = vpop.f32.mrb[113].mxu1  ;;  %v6508_v17 = vrot.slane %v15220_v23, 6  ;;  %v6246_v53 = vrot.slane %v15220_v23, 3  ;;  %v17453_v60 = vpack.c.bf16 %v17451_v29, %v17452_v16 }
 0x3ed   : > { %v11106_v30 = vpop.f32.mrb[114].mxu1  ;;  %v2629_v38 = vsel %vm2551_vm5, %v2627_v18, %v2628_v39  ;;  %v2631_v40 = vsel %vm2551_vm5, %v2628_v39, %v2630_v63 }
 0x3ee   : > { %11436 = vmatpush3.bf16.xpose.msk.msra.mxu0 %vm14889_vm9, %v17445_v32  ;;  %v6510_v45 = vrot.slane %v11106_v30, 6  ;;  %v15238_v13 = vpop.f32.mrb[115].mxu1  ;;  %6582 = vrot.lane.b32.xlu1 %v15161_v58, %s12309_s13  ;;  %v17446_v58 = vld [vmem:[#allocation27_spill] sm:$0xff] }
 0x3ef   : > { %6298 = vrot.lane.b32.xlu0 %v6244_v51, %s12308_s6  ;;  %v6245_v49 = vrot.slane %v15238_v13, 3  ;;  %v6507_v55 = vrot.slane %v15238_v13, 6  ;;  %11439 = vmatprep.subr.msk.bf16.mxu0 %vm14889_vm9, %v11437_v27  ;;  %v2374_v50 = vadd.f32 %v17446_v58, %v2085_v54  ;;  %v17447_v51 = vld [vmem:[#allocation78_spill] sm:$0xff] }
 0x3f0   : > { %v15251_v12 = vsel %vm4585_vm8, %v6508_v17, %v6510_v45  ;;  %v2373_v56 = vadd.f32 %v17447_v51, %v2084_v52 }
 0x3f1   : > { %v6247_v7 = vsel %vm6235_vm10, %v6245_v49, %v6246_v53  ;;  %v6509_v3 = vsel %vm4585_vm8, %v6507_v55, %v6508_v17  ;;  %v2429_v57 = vadd.f32 %v14999_v8, %v2374_v50  ;;  %v11449_v50 = vpack.c.bf16 %v2631_v40, %v2629_v38 }
 0x3f2   : > { %6300 = vrot.lane.b32.xlu1 %v6243_v20, %s12308_s6  ;;  %v2428_v22 = vadd.f32 %v14999_v8, %v2373_v56  ;;  %v2478_v8 = vmax.f32 %v2430_v31, 0.0 }
 0x3f3   : > { %6586 = vrot.lane.b32.xlu0 %v6504_v46, %s12309_s13  ;;  %v15267_v21 = vpop.f32.mrb[116].mxu1  ;;  %v11443_v46 = vpack.c.bf16 %v2626_v0, %v2624_v26  ;;  %v2477_v30 = vmax.f32 %v2429_v57, 0.0 }
 0x3f4   : > { %v15270_v28 = vpop.f32.mrb[117].mxu1  ;;  %v6513_v25 = vrot.slane %v15267_v21, 6  ;;  %v6249_v33 = vrot.slane %v15267_v21, 3  ;;  %v2476_v27 = vmax.f32 %v2428_v22, 0.0  ;;  %v2590_v45 = vrot.slane %v2478_v8, 7 }
 0x3f5   : > { %v11110_v20 = vpop.f32.mrb[118].mxu1 }
 0x3f6   : > { %11442 = vmatpush3.bf16.xpose.msk.msra.mxu0 %vm14889_vm9, %v17450_v37  ;;  %v6515_v54 = vrot.slane %v11110_v20, 6  ;;  %v15280_v14 = vpop.f32.mrb[119].mxu1  ;;  %6296 = vrot.lane.b32.xlu1 %v6242_v59, %s12308_s6 }
 0x3f7   : > { %6304 = vrot.lane.b32.xlu0 %v6247_v7, %s12308_s6  ;;  %v6248_v52 = vrot.slane %v15280_v14, 3  ;;  %v6512_v42 = vrot.slane %v15280_v14, 6  ;;  %11445 = vmatprep.subr.msk.bf16.mxu0 %vm14889_vm9, %v11443_v46  ;;  %v2587_v7 = vrot.slane %v2476_v27, 7 }
 0x3f8   : > { %v15292_v5 = vsel %vm4585_vm8, %v6513_v25, %v6515_v54 }
 0x3f9   : > { %v6250_v59 = vsel %vm6235_vm10, %v6248_v52, %v6249_v33  ;;  %v6514_v32 = vsel %vm4585_vm8, %v6512_v42, %v6513_v25 }
 0x3fa   : > { %6584 = vrot.lane.b32.xlu1 %v6502_v1, %s12309_s13  ;;  %v2588_v1 = vrot.slane %v2477_v30, 7  ;;  %v15385_v30 = vld [vmem:[%s16879_s3 + $0x8] sm:$0xff] }
 0x3fb   : > { %6592 = vrot.lane.b32.xlu0 %v6509_v3, %s12309_s13  ;;  %v15308_v17 = vpop.f32.mrb[120].mxu1 }
 0x3fc   : > { %v15310_v10 = vpop.f32.mrb[121].mxu1  ;;  %v6518_v3 = vrot.slane %v15308_v17, 6  ;;  %v6252_v43 = vrot.slane %v15308_v17, 3  ;;  %v2591_v31 = vsel %vm2551_vm5, %v2588_v1, %v2590_v45  ;;  %v2589_v57 = vsel %vm2551_vm5, %v2587_v7, %v2588_v1 }
 0x3fd   : > { %v11114_v58 = vpop.f32.mrb[122].mxu1  ;;  %v11452_v9 = vpack.c.bf16 %v2591_v31, %v2589_v57 }
 0x3fe   : > { %11448 = vmatpush3.bf16.xpose.msk.msra.mxu0 %vm14889_vm9, %v17453_v60  ;;  %v6520_v51 = vrot.slane %v11114_v58, 6  ;;  %v15318_v56 = vpop.f32.mrb[123].mxu1  ;;  %6588 = vrot.lane.b32.xlu1 %v15201_v15, %s12309_s13 }
 0x3ff   : > { %6310 = vrot.lane.b32.xlu0 %v6250_v59, %s12308_s6  ;;  %v6251_v26 = vrot.slane %v15318_v56, 3  ;;  %v6517_v0 = vrot.slane %v15318_v56, 6  ;;  %11451 = vmatprep.subr.msk.bf16.mxu0 %vm14889_vm9, %v11449_v50 }
 0x400   : > { %v15330_v11 = vsel %vm4585_vm8, %v6518_v3, %v6520_v51 }
 0x401   : > { %v6253_v15 = vsel %vm6235_vm10, %v6251_v26, %v6252_v43  ;;  %v6519_v36 = vsel %vm4585_vm8, %v6517_v0, %v6518_v3 }
 0x402   : > { %6306 = vrot.lane.b32.xlu1 %v6246_v53, %s12308_s6 }
 0x403   : > { %6598 = vrot.lane.b32.xlu0 %v6514_v32, %s12309_s13  ;;  %v15345_v44 = vpop.f32.mrb[124].mxu1 }
 0x404   : > { %17454 = vst [vmem:[#allocation17_spill] sm:$0xff] %v15345_v44  ;;  %v15347_v37 = vpop.f32.mrb[125].mxu1  ;;  %v6523_v46 = vrot.slane %v15345_v44, 6  ;;  %v6255_v53 = vrot.slane %v15345_v44, 3 }
 0x405   : > { %17455 = vst [vmem:[#allocation94_spill] sm:$0xff] %v15347_v37  ;;  %v11118_v20 = vpop.f32.mrb[126].mxu1 }
 0x406   : > { %11454 = vmatpush3.bf16.xpose.msk.msra.mxu0 %vm14889_vm9, %v11452_v9  ;;  %v6525_v22 = vrot.slane %v11118_v20, 6  ;;  %v15352_v39 = vpop.f32.mrb[127].mxu1  ;;  %6302 = vrot.lane.b32.xlu1 %v6245_v49, %s12308_s6 }
 0x407   : > { %6316 = vrot.lane.b32.xlu0 %v6253_v15, %s12308_s6  ;;  %v6254_v25 = vrot.slane %v15352_v39, 3  ;;  %v17001_v54 = vrot.slane %v15352_v39, 6 }
 0x408   : > { %v15362_v8 = vsel %vm4585_vm8, %v6523_v46, %v6525_v22 }
 0x409   : > { %v6256_v18 = vsel %vm6235_vm10, %v6254_v25, %v6255_v53  ;;  %v6524_v49 = vsel %vm4585_vm8, %v17001_v54, %v6523_v46 }
 0x40a   : > { %6590 = vrot.lane.b32.xlu1 %v6507_v55, %s12309_s13 }
 0x40b   : > { %6604 = vrot.lane.b32.xlu0 %v6519_v36, %s12309_s13  ;;  %v15376_v63 = vpop.f32.mrb[128].mxu1 }
 0x40c   : > { %17456 = vst [vmem:[#allocation101_spill] sm:$0xff] %v15376_v63  ;;  %v15378_v59 = vpop.f32.mrb[129].mxu1  ;;  %v6528_v55 = vrot.slane %v15376_v63, 6 }
 0x40d   : > { %17457 = vst [vmem:[#allocation22_spill] sm:$0xff] %v15378_v59  ;;  %10264 = vmatmul.mubr.msk.f32.vlgmr.msra.gmra.mrb[64].mxu0 %vm4672_vm6, %v15093_v61  ;;  %v11122_v32 = vpop.f32.mrb[130].mxu1  ;;  %v17000_v61 = vrot.slane %v15376_v63, 3 }
 0x40e   : > { %10265 = vmatprep.mubr.msk.f32.mxu0 %vm4672_vm6, %v15385_v30  ;;  %v6530_v27 = vrot.slane %v11122_v32, 6  ;;  %v15390_v38 = vpop.f32.mrb[131].mxu1  ;;  %6594 = vrot.lane.b32.xlu1 %v15251_v12, %s12309_s13 }
 0x40f   : > { %17458 = vst [vmem:[#allocation95_spill] sm:$0xff] %v15390_v38  ;;  %6322 = vrot.lane.b32.xlu0 %v6256_v18, %s12308_s6  ;;  %v16999_v40 = vrot.slane %v15390_v38, 3  ;;  %v16998_v45 = vrot.slane %v15390_v38, 6 }
 0x410   : > { %v15399_v29 = vsel %vm4585_vm8, %v6528_v55, %v6530_v27 }
 0x411   : > { %10266 = vmatmul.mubr.msk.f32.gmra.mrb[66].mxu0 %vm4672_vm6, %v15385_v30  ;;  %v6259_v12 = vsel %vm6235_vm10, %v16999_v40, %v17000_v61  ;;  %v15411_v16 = vsel %vm4585_vm8, %v16998_v45, %v6528_v55 }
 0x412   : > { %6312 = vrot.lane.b32.xlu1 %v6249_v33, %s12308_s6 }
 0x413   : > { %6610 = vrot.lane.b32.xlu0 %v6524_v49, %s12309_s13  ;;  %v15417_v60 = vpop.f32.mrb[132].mxu1 }
 0x414   : > { %17459 = vst [vmem:[#allocation104_spill] sm:$0xff] %v15417_v60  ;;  %v15419_v58 = vpop.f32.mrb[133].mxu1  ;;  %v6533_v1 = vrot.slane %v15417_v60, 6  ;;  %v16997_v33 = vrot.slane %v15417_v60, 3 }
 0x415   : > { %17460 = vst [vmem:[#allocation102_spill] sm:$0xff] %v15419_v58  ;;  %v11126_v50 = vpop.f32.mrb[134].mxu1 }
 0x416   : > { %v6535_v7 = vrot.slane %v11126_v50, 6  ;;  %v15422_v3 = vpop.f32.mrb[135].mxu1  ;;  %6308 = vrot.lane.b32.xlu1 %v6248_v52, %s12308_s6 }
 0x417   : > { %6328 = vrot.lane.b32.xlu0 %v6259_v12, %s12308_s6  ;;  %v16996_v51 = vrot.slane %v15422_v3, 3  ;;  %v16995_v31 = vrot.slane %v15422_v3, 6 }
 0x418   : > { %v15432_v15 = vsel %vm4585_vm8, %v6533_v1, %v6535_v7 }
 0x419   : > { %v6262_v36 = vsel %vm6235_vm10, %v16996_v51, %v16997_v33  ;;  %v6534_v52 = vsel %vm4585_vm8, %v16995_v31, %v6533_v1 }
 0x41a   : > { %6596 = vrot.lane.b32.xlu1 %v6512_v42, %s12309_s13 }
 0x41b   : > { %6334 = vrot.lane.b32.xlu0 %v6262_v36, %s12308_s6  ;;  %v15446_v57 = vpop.f32.mrb[136].mxu1 }
 0x41c   : > { %v15448_v9 = vpop.f32.mrb[137].mxu1  ;;  %v6538_v46 = vrot.slane %v15446_v57, 6  ;;  %v16994_v49 = vrot.slane %v15446_v57, 3 }
 0x41d   : > { %17461 = vst [vmem:[#allocation108_spill] sm:$0xff] %v15448_v9  ;;  %v11130_v20 = vpop.f32.mrb[138].mxu1 }
 0x41e   : > { %v6540_v22 = vrot.slane %v11130_v20, 6  ;;  %v15451_v18 = vpop.f32.mrb[139].mxu1  ;;  %6600 = vrot.lane.b32.xlu1 %v15292_v5, %s12309_s13 }
 0x41f   : > { %6622 = vrot.lane.b32.xlu0 %v6534_v52, %s12309_s13  ;;  %v16993_v42 = vrot.slane %v15451_v18, 3  ;;  %v6537_v32 = vrot.slane %v15451_v18, 6 }
 0x420   : > { %v6541_v55 = vsel %vm4585_vm8, %v6538_v46, %v6540_v22 }
 0x421   : > { %v6265_v27 = vsel %vm6235_vm10, %v16993_v42, %v16994_v49  ;;  %v15466_v12 = vsel %vm4585_vm8, %v6537_v32, %v6538_v46 }
 0x422   : > { %6318 = vrot.lane.b32.xlu1 %v6252_v43, %s12308_s6 }
 0x423   : > { %6626 = vrot.lane.b32.xlu0 %v6537_v32, %s12309_s13  ;;  %v15472_v5 = vpop.f32.mrb[140].mxu1 }
 0x424   : > { %17462 = vst [vmem:[#allocation18_spill] sm:$0xff] %v15472_v5  ;;  %v15474_v50 = vpop.f32.mrb[141].mxu1  ;;  %v6543_v7 = vrot.slane %v15472_v5, 6  ;;  %v6267_v43 = vrot.slane %v15472_v5, 3 }
 0x425   : > { %17463 = vst [vmem:[#allocation103_spill] sm:$0xff] %v15474_v50  ;;  %v11134_v1 = vpop.f32.mrb[142].mxu1 }
 0x426   : > { %v6545_v36 = vrot.slane %v11134_v1, 6  ;;  %v15477_v52 = vpop.f32.mrb[143].mxu1  ;;  %6314 = vrot.lane.b32.xlu1 %v6251_v26, %s12308_s6 }
 0x427   : > { %17464 = vst [vmem:[#allocation19_spill] sm:$0xff] %v15477_v52  ;;  %6630 = vrot.lane.b32.xlu0 %v6541_v55, %s12309_s13  ;;  %v6266_v20 = vrot.slane %v15477_v52, 3  ;;  %v6542_v46 = vrot.slane %v15477_v52, 6 }
 0x428   : > { %v6546_v22 = vsel %vm4585_vm8, %v6543_v7, %v6545_v36 }
 0x429   : > { %v15488_v32 = vsel %vm6235_vm10, %v6266_v20, %v6267_v43  ;;  %v15491_v1 = vsel %vm4585_vm8, %v6542_v46, %v6543_v7 }
 0x42a   : > { %6602 = vrot.lane.b32.xlu1 %v6517_v0, %s12309_s13 }
 0x42b   : > { %6340 = vrot.lane.b32.xlu0 %v6265_v27, %s12308_s6  ;;  %v15497_v26 = vpop.f32.mrb[144].mxu1 }
 0x42c   : > { %17465 = vst [vmem:[#allocation112_spill] sm:$0xff] %v15497_v26  ;;  %v15499_v55 = vpop.f32.mrb[145].mxu1  ;;  %v6548_v49 = vrot.slane %v15497_v26, 6  ;;  %v6270_v7 = vrot.slane %v15497_v26, 3 }
 0x42d   : > { %17466 = vst [vmem:[#allocation111_spill] sm:$0xff] %v15499_v55  ;;  %v11138_v42 = vpop.f32.mrb[146].mxu1 }
 0x42e   : > { %v6550_v36 = vrot.slane %v11138_v42, 6  ;;  %v15502_v31 = vpop.f32.mrb[147].mxu1  ;;  %6606 = vrot.lane.b32.xlu1 %v15330_v11, %s12309_s13 }
 0x42f   : > { %17467 = vst [vmem:[#allocation113_spill] sm:$0xff] %v15502_v31  ;;  %6348 = vrot.lane.b32.xlu0 %v6267_v43, %s12308_s6  ;;  %v6269_v0 = vrot.slane %v15502_v31, 3  ;;  %v6547_v27 = vrot.slane %v15502_v31, 6 }
 0x430   : > { %v6551_v51 = vsel %vm4585_vm8, %v6548_v49, %v6550_v36 }
 0x431   : > { %v15512_v33 = vsel %vm6235_vm10, %v6269_v0, %v6270_v7  ;;  %v15515_v42 = vsel %vm4585_vm8, %v6547_v27, %v6548_v49 }
 0x432   : > { %6324 = vrot.lane.b32.xlu1 %v6255_v53, %s12308_s6 }
 0x433   : > { %6344 = vrot.lane.b32.xlu0 %v6266_v20, %s12308_s6  ;;  %v15521_v11 = vpop.f32.mrb[148].mxu1 }
 0x434   : > { %17468 = vst [vmem:[#allocation26_spill] sm:$0xff] %v15521_v11  ;;  %v15523_v43 = vpop.f32.mrb[149].mxu1  ;;  %v6553_v40 = vrot.slane %v15521_v11, 6  ;;  %v6273_v53 = vrot.slane %v15521_v11, 3 }
 0x435   : > { %17469 = vst [vmem:[#allocation21_spill] sm:$0xff] %v15523_v43  ;;  %v11142_v45 = vpop.f32.mrb[150].mxu1 }
 0x436   : > { %v6555_v36 = vrot.slane %v11142_v45, 6  ;;  %v15526_v61 = vpop.f32.mrb[151].mxu1  ;;  %6320 = vrot.lane.b32.xlu1 %v6254_v25, %s12308_s6 }
 0x437   : > { %6632 = vrot.lane.b32.xlu0 %v6542_v46, %s12309_s13  ;;  %v17004_v49 = vrot.slane %v15526_v61, 3  ;;  %v17005_v20 = vrot.slane %v15526_v61, 6  ;;  %v17470_v46 = vrot.slane %v15352_v39, 6 }
 0x438   : > { %v15536_v54 = vsel %vm4585_vm8, %v6553_v40, %v6555_v36 }
 0x439   : > { %v15541_v45 = vsel %vm6235_vm10, %v17004_v49, %v6273_v53  ;;  %v15546_v25 = vsel %vm4585_vm8, %v17005_v20, %v6553_v40 }
 0x43a   : > { %6608 = vrot.lane.b32.xlu1 %v17470_v46, %s12309_s13 }
 0x43b   : > { %6636 = vrot.lane.b32.xlu0 %v6546_v22, %s12309_s13  ;;  %v15552_v43 = vpop.f32.mrb[152].mxu1 }
 0x43c   : > { %v15554_v36 = vpop.f32.mrb[153].mxu1  ;;  %v6558_v31 = vrot.slane %v15552_v43, 6  ;;  %v17009_v40 = vrot.slane %v15552_v43, 3 }
 0x43d   : > { %17471 = vst [vmem:[#allocation25_spill] sm:$0xff] %v15554_v36  ;;  %v11146_v11 = vpop.f32.mrb[154].mxu1 }
 0x43e   : > { %v6560_v49 = vrot.slane %v11146_v11, 6  ;;  %v15557_v55 = vpop.f32.mrb[155].mxu1  ;;  %6612 = vrot.lane.b32.xlu1 %v15362_v8, %s12309_s13 }
 0x43f   : > { %6354 = vrot.lane.b32.xlu0 %v6270_v7, %s12308_s6  ;;  %v17008_v46 = vrot.slane %v15557_v55, 3  ;;  %v17010_v22 = vrot.slane %v15557_v55, 6  ;;  %v17472_v7 = vrot.slane %v15376_v63, 3 }
 0x440   : > { %v15566_v20 = vsel %vm4585_vm8, %v6558_v31, %v6560_v49 }
 0x441   : > { %v15573_v11 = vsel %vm6235_vm10, %v17008_v46, %v17009_v40  ;;  %v15578_v8 = vsel %vm4585_vm8, %v17010_v22, %v6558_v31  ;;  %v17474_v31 = vrot.slane %v15390_v38, 3 }
 0x442   : > { %6330 = vrot.lane.b32.xlu1 %v17472_v7, %s12308_s6 }
 0x443   : > { %6350 = vrot.lane.b32.xlu0 %v6269_v0, %s12308_s6  ;;  %v15584_v49 = vpop.f32.mrb[156].mxu1 }
 0x444   : > { %v15586_v36 = vpop.f32.mrb[157].mxu1  ;;  %v6563_v52 = vrot.slane %v15584_v49, 6  ;;  %v17016_v7 = vrot.slane %v15584_v49, 3 }
 0x445   : > { %17473 = vst [vmem:[#allocation55_spill] sm:$0xff] %v15586_v36  ;;  %v11150_v26 = vpop.f32.mrb[158].mxu1 }
 0x446   : > { %v6565_v46 = vrot.slane %v11150_v26, 6  ;;  %v15589_v40 = vpop.f32.mrb[159].mxu1  ;;  %6326 = vrot.lane.b32.xlu1 %v17474_v31, %s12308_s6  ;;  %v17475_v31 = vrot.slane %v15390_v38, 6 }
 0x447   : > { %6638 = vrot.lane.b32.xlu0 %v6547_v27, %s12309_s13  ;;  %v17015_v0 = vrot.slane %v15589_v40, 3  ;;  %v17017_v22 = vrot.slane %v15589_v40, 6 }
 0x448   : > { %v6289_v63 = vpop.permute.xlu0 %6288  ;;  %v15599_v36 = vsel %vm4585_vm8, %v6563_v52, %v6565_v46 }
 0x449   : > { %v15606_v26 = vsel %vm6235_vm10, %v17015_v0, %v17016_v7  ;;  %v15611_v27 = vsel %vm4585_vm8, %v17017_v22, %v6563_v52  ;;  %v17477_v52 = vrot.slane %v15417_v60, 3 }
 0x44a   : > { %6614 = vrot.lane.b32.xlu1 %v17475_v31, %s12309_s13 }
 0x44b   : > { %6642 = vrot.lane.b32.xlu0 %v6551_v51, %s12309_s13  ;;  %v15617_v46 = vpop.f32.mrb[160].mxu1 }
 0x44c   : > { %v15619_v48 = vpop.f32.mrb[161].mxu1  ;;  %v6287_v50 = vpop.permute.xlu1 %6286  ;;  %v6568_v0 = vrot.slane %v15617_v46, 6  ;;  %v17021_v51 = vrot.slane %v15617_v46, 3 }
 0x44d   : > { %17476 = vst [vmem:[#allocation59_spill] sm:$0xff] %v15619_v48  ;;  %v6285_v5 = vpop.permute.xlu0 %6284  ;;  %v11154_v9 = vpop.f32.mrb[162].mxu1  ;;  %v6429_v31 = vadd.f32 %v6287_v50, %v15114_v47  ;;  %v17478_v50 = vrot.slane %v15422_v3, 3 }
 0x44e   : > { %v6570_v7 = vrot.slane %v11154_v9, 6  ;;  %v15622_v58 = vpop.f32.mrb[163].mxu1  ;;  %6336 = vrot.lane.b32.xlu1 %v17477_v52, %s12308_s6  ;;  %v6428_v38 = vadd.f32 %v6285_v5, %v15102_v19  ;;  %v15636_v9 = vld [vmem:[%s16878_s2 + $0x2] ss:$0 sm:$0xff] }
 0x44f   : > { %6360 = vrot.lane.b32.xlu0 %v6273_v53, %s12308_s6  ;;  %v17020_v22 = vrot.slane %v15622_v58, 3  ;;  %v17023_v48 = vrot.slane %v15622_v58, 6 }
 0x450   : > { %v6575_v59 = vpop.permute.xlu1 %6574  ;;  %v15639_v52 = vsel %vm4585_vm8, %v6568_v0, %v6570_v7 }
 0x451   : > { %v6717_v53 = vadd.f32 %v6575_v59, %v6429_v31  ;;  %v6573_v60 = vpop.permute.xlu0 %6572  ;;  %v15646_v47 = vsel %vm6235_vm10, %v17020_v22, %v17021_v51  ;;  %v15651_v19 = vsel %vm4585_vm8, %v17023_v48, %v6568_v0  ;;  %v17479_v59 = vrot.slane %v15526_v61, 3 }
 0x452   : > { %v6716_v5 = vadd.f32 %v6573_v60, %v6428_v38  ;;  %6332 = vrot.lane.b32.xlu1 %v17478_v50, %s12308_s6  ;;  %v6430_v31 = vadd.f32 %v15099_v24, %v6289_v63  ;;  %v17480_v38 = vrot.slane %v15422_v3, 6  ;;  %v17481_v60 = vrot.slane %v15526_v61, 6 }
 0x453   : > { %6356 = vrot.lane.b32.xlu0 %v17479_v59, %s12308_s6  ;;  %v6773_v7 = vadd.f32 %v15636_v9, %v6717_v53 }
 0x454   : > { %v6772_v22 = vadd.f32 %v15636_v9, %v6716_v5  ;;  %v6295_v51 = vpop.permute.xlu1 %6294 }
 0x455   : > { %v6821_v44 = vmax.f32 %v6773_v7, 0.0  ;;  %v6577_v37 = vpop.permute.xlu0 %6576 }
 0x456   : > { %v6820_v0 = vmax.f32 %v6772_v22, 0.0  ;;  %v6718_v48 = vadd.f32 %v6577_v37, %v6430_v31  ;;  %6620 = vrot.lane.b32.xlu1 %v17480_v38, %s12309_s13 }
 0x457   : > { %6644 = vrot.lane.b32.xlu0 %v17481_v60, %s12309_s13  ;;  %v6918_v50 = vrot.slane %v6821_v44, 5 }
 0x458   : > { %v6917_v53 = vrot.slane %v6820_v0, 5  ;;  %v6774_v24 = vadd.f32 %v15636_v9, %v6718_v48  ;;  %v6291_v63 = vpop.permute.xlu1 %6290 }
 0x459   : > { %v6293_v5 = vpop.permute.xlu0 %6292  ;;  %v6431_v37 = vadd.f32 %v6291_v63, %v15139_v34  ;;  %v6433_v34 = vadd.f32 %v15135_v62, %v6295_v51 }
 0x45a   : > { %v15670_v59 = vsel %vm6916_vm11, %v6917_v53, %v6918_v50  ;;  %v6822_v22 = vmax.f32 %v6774_v24, 0.0  ;;  %6624 = vrot.lane.b32.xlu1 %v15432_v15, %s12309_s13  ;;  %v6432_v44 = vadd.f32 %v6293_v5, %v15148_v6  ;;  %v17482_v53 = vrot.slane %v15446_v57, 3 }
 0x45b   : > { %6648 = vrot.lane.b32.xlu0 %v15536_v54, %s12309_s13  ;;  %v17483_v15 = vrot.slane %v15552_v43, 3 }
 0x45c   : > { %v6920_v7 = vrot.slane %v6822_v22, 5  ;;  %v6579_v31 = vpop.permute.xlu1 %6578 }
 0x45d   : > { %v6719_v0 = vadd.f32 %v6579_v31, %v6431_v37  ;;  %v6581_v48 = vpop.permute.xlu0 %6580 }
 0x45e   : > { %v15679_v38 = vsel %vm6916_vm11, %v6918_v50, %v6920_v7  ;;  %v6720_v60 = vadd.f32 %v6581_v48, %v6432_v44  ;;  %6342 = vrot.lane.b32.xlu1 %v17482_v53, %s12308_s6  ;;  %v17484_v7 = vrot.slane %v15451_v18, 3  ;;  %v17485_v44 = vrot.slane %v15557_v55, 3 }
 0x45f   : > { %6366 = vrot.lane.b32.xlu0 %v17483_v15, %s12308_s6  ;;  %v11458_v6 = vpack.c.bf16 %v15679_v38, %v15670_v59  ;;  %v6775_v54 = vadd.f32 %v15636_v9, %v6719_v0 }
 0x460   : > { %v6776_v24 = vadd.f32 %v15636_v9, %v6720_v60  ;;  %v6583_v50 = vpop.permute.xlu1 %6582 }
 0x461   : > { %v6823_v63 = vmax.f32 %v6775_v54, 0.0  ;;  %v6721_v5 = vadd.f32 %v6583_v50, %v6433_v34  ;;  %v6299_v22 = vpop.permute.xlu0 %6298  ;;  %v17486_v34 = vrot.slane %v15557_v55, 6 }
 0x462   : > { %v6824_v37 = vmax.f32 %v6776_v24, 0.0  ;;  %6338 = vrot.lane.b32.xlu1 %v17484_v7, %s12308_s6  ;;  %v6435_v60 = vadd.f32 %v6299_v22, %v15187_v2 }
 0x463   : > { %6362 = vrot.lane.b32.xlu0 %v17485_v44, %s12308_s6  ;;  %v6922_v62 = vrot.slane %v6823_v63, 5  ;;  %v6777_v51 = vadd.f32 %v15636_v9, %v6721_v5 }
 0x464   : > { %v6923_v31 = vrot.slane %v6824_v37, 5  ;;  %v6301_v0 = vpop.permute.xlu1 %6300 }
 0x465   : > { %v6825_v48 = vmax.f32 %v6777_v51, 0.0  ;;  %v6587_v53 = vpop.permute.xlu0 %6586  ;;  %v6436_v51 = vadd.f32 %v15175_v35, %v6301_v0 }
 0x466   : > { %v15701_v15 = vsel %vm6916_vm11, %v6922_v62, %v6923_v31  ;;  %6628 = vrot.lane.b32.xlu1 %v15466_v12, %s12309_s13  ;;  %v6723_v24 = vadd.f32 %v6587_v53, %v6435_v60  ;;  %v17487_v62 = vrot.slane %v15584_v49, 3 }
 0x467   : > { %6650 = vrot.lane.b32.xlu0 %v17486_v34, %s12309_s13  ;;  %v6925_v54 = vrot.slane %v6825_v48, 5 }
 0x468   : > { %v6297_v50 = vpop.permute.xlu1 %6296  ;;  %v6779_v12 = vadd.f32 %v15636_v9, %v6723_v24 }
 0x469   : > { %v15709_v63 = vsel %vm6916_vm11, %v6923_v31, %v6925_v54  ;;  %v6305_v5 = vpop.permute.xlu0 %6304  ;;  %v6434_v22 = vadd.f32 %v6297_v50, %v15178_v41  ;;  %v17488_v41 = vrot.slane %v15589_v40, 3 }
 0x46a   : > { %v11464_v2 = vpack.c.bf16 %v15709_v63, %v15701_v15  ;;  %6346 = vrot.lane.b32.xlu1 %v15488_v32, %s12308_s6  ;;  %v6827_v32 = vmax.f32 %v6779_v12, 0.0  ;;  %v6438_v35 = vadd.f32 %v6305_v5, %v15238_v13 }
 0x46b   : > { %6654 = vrot.lane.b32.xlu0 %v15566_v20, %s12309_s13 }
 0x46c   : > { %v6585_v37 = vpop.permute.xlu1 %6584 }
 0x46d   : > { %v6722_v7 = vadd.f32 %v6585_v37, %v6434_v22  ;;  %v6593_v44 = vpop.permute.xlu0 %6592 }
 0x46e   : > { %6634 = vrot.lane.b32.xlu1 %v15491_v1, %s12309_s13  ;;  %v6928_v1 = vrot.slane %v6827_v32, 5  ;;  %v6726_v22 = vadd.f32 %v6593_v44, %v6438_v35 }
 0x46f   : > { %6372 = vrot.lane.b32.xlu0 %v17487_v62, %s12308_s6  ;;  %v6778_v31 = vadd.f32 %v15636_v9, %v6722_v7 }
 0x470   : > { %v6589_v20 = vpop.permute.xlu1 %6588 }
 0x471   : > { %v6826_v48 = vmax.f32 %v6778_v31, 0.0  ;;  %v6724_v60 = vadd.f32 %v6589_v20, %v6436_v51  ;;  %v6311_v53 = vpop.permute.xlu0 %6310  ;;  %v17490_v20 = vrot.slane %v15617_v46, 3 }
 0x472   : > { %6352 = vrot.lane.b32.xlu1 %v15512_v33, %s12308_s6  ;;  %v17489_v33 = vrot.slane %v15589_v40, 6 }
 0x473   : > { %6368 = vrot.lane.b32.xlu0 %v17488_v41, %s12308_s6  ;;  %v6927_v34 = vrot.slane %v6826_v48, 5  ;;  %v6780_v54 = vadd.f32 %v15636_v9, %v6724_v60 }
 0x474   : > { %v6307_v24 = vpop.permute.xlu1 %6306 }
 0x475   : > { %v15734_v0 = vsel %vm6916_vm11, %v6927_v34, %v6928_v1  ;;  %v6828_v50 = vmax.f32 %v6780_v54, 0.0  ;;  %v6599_v12 = vpop.permute.xlu0 %6598 }
 0x476   : > { %6640 = vrot.lane.b32.xlu1 %v15515_v42, %s12309_s13  ;;  %v6782_v42 = vadd.f32 %v15636_v9, %v6726_v22 }
 0x477   : > { %6656 = vrot.lane.b32.xlu0 %v17489_v33, %s12309_s13  ;;  %v6930_v37 = vrot.slane %v6828_v50, 5 }
 0x478   : > { %v6303_v7 = vpop.permute.xlu1 %6302  ;;  %v6830_v48 = vmax.f32 %v6782_v42, 0.0 }
 0x479   : > { %v15742_v62 = vsel %vm6916_vm11, %v6928_v1, %v6930_v37  ;;  %v6317_v51 = vpop.permute.xlu0 %6316  ;;  %v6437_v5 = vadd.f32 %v6303_v7, %v15224_v4  ;;  %v17491_v4 = vrot.slane %v15622_v58, 3 }
 0x47a   : > { %v11470_v13 = vpack.c.bf16 %v15742_v62, %v15734_v0  ;;  %6358 = vrot.lane.b32.xlu1 %v15541_v45, %s12308_s6  ;;  %v6439_v45 = vadd.f32 %v15220_v23, %v6307_v24  ;;  %v6441_v23 = vadd.f32 %v6311_v53, %v15280_v14 }
 0x47b   : > { %6660 = vrot.lane.b32.xlu0 %v15599_v36, %s12309_s13 }
 0x47c   : > { %v6591_v44 = vpop.permute.xlu1 %6590  ;;  %v6729_v37 = vadd.f32 %v6599_v12, %v6441_v23 }
 0x47d   : > { %v6725_v32 = vadd.f32 %v6591_v44, %v6437_v5  ;;  %v6605_v31 = vpop.permute.xlu0 %6604 }
 0x47e   : > { %6646 = vrot.lane.b32.xlu1 %v15546_v25, %s12309_s13  ;;  %v6933_v25 = vrot.slane %v6830_v48, 5 }
 0x47f   : > { %6378 = vrot.lane.b32.xlu0 %v17490_v20, %s12308_s6  ;;  %v6781_v60 = vadd.f32 %v15636_v9, %v6725_v32 }
 0x480   : > { %v6595_v36 = vpop.permute.xlu1 %6594 }
 0x481   : > { %v6829_v41 = vmax.f32 %v6781_v60, 0.0  ;;  %v6727_v1 = vadd.f32 %v6595_v36, %v6439_v45  ;;  %v15759_v34 = vpop.permute.xlu0 %6322 }
 0x482   : > { %6364 = vrot.lane.b32.xlu1 %v15573_v11, %s12308_s6  ;;  %v17492_v11 = vrot.slane %v15622_v58, 6 }
 0x483   : > { %6374 = vrot.lane.b32.xlu0 %v17491_v4, %s12308_s6  ;;  %v6932_v54 = vrot.slane %v6829_v41, 5  ;;  %v6783_v35 = vadd.f32 %v15636_v9, %v6727_v1  ;;  %v6444_v4 = vadd.f32 %v6317_v51, %v15318_v56 }
 0x484   : > { %v6313_v50 = vpop.permute.xlu1 %6312 }
 0x485   : > { %v15769_v24 = vsel %vm6916_vm11, %v6932_v54, %v6933_v25  ;;  %v6831_v33 = vmax.f32 %v6783_v35, 0.0  ;;  %v15771_v22 = vpop.permute.xlu0 %6610 }
 0x486   : > { %6652 = vrot.lane.b32.xlu1 %v15578_v8, %s12309_s13  ;;  %v6785_v8 = vadd.f32 %v15636_v9, %v6729_v37 }
 0x487   : > { %6662 = vrot.lane.b32.xlu0 %v17492_v11, %s12309_s13  ;;  %v6935_v7 = vrot.slane %v6831_v33, 5 }
 0x488   : > { %v6309_v42 = vpop.permute.xlu1 %6308  ;;  %v6833_v48 = vmax.f32 %v6785_v8, 0.0 }
 0x489   : > { %v15779_v5 = vsel %vm6916_vm11, %v6933_v25, %v6935_v7  ;;  %v15781_v14 = vpop.permute.xlu0 %6328  ;;  %v6440_v12 = vadd.f32 %v6309_v42, %v15270_v28  ;;  %v12208_v28 = vld [vmem:[%s16879_s3] sm:$0xff] }
 0x48a   : > { %v11476_v53 = vpack.c.bf16 %v15779_v5, %v15769_v24  ;;  %6370 = vrot.lane.b32.xlu1 %v15606_v26, %s12308_s6  ;;  %v6442_v26 = vadd.f32 %v15267_v21, %v6313_v50 }
 0x48b   : > { %6666 = vrot.lane.b32.xlu0 %v15639_v52, %s12309_s13 }
 0x48c   : > { %v6597_v44 = vpop.permute.xlu1 %6596 }
 0x48d   : > { %v6728_v32 = vadd.f32 %v6597_v44, %v6440_v12  ;;  %v15791_v20 = vpop.permute.xlu0 %6334 }
 0x48e   : > { %6658 = vrot.lane.b32.xlu1 %v15611_v27, %s12309_s13 }
 0x48f   : > { %6616 = vrot.lane.b32.xlu0 %v15411_v16, %s12309_s13  ;;  %v6784_v45 = vadd.f32 %v15636_v9, %v6728_v32  ;;  %v6938_v16 = vrot.slane %v6833_v48, 5 }
 0x490   : > { %v6601_v52 = vpop.permute.xlu1 %6600 }
 0x491   : > { %v6832_v60 = vmax.f32 %v6784_v45, 0.0  ;;  %v6730_v36 = vadd.f32 %v6601_v52, %v6442_v26  ;;  %v15799_v41 = vpop.permute.xlu0 %6622 }
 0x492   : > { %6376 = vrot.lane.b32.xlu1 %v15646_v47, %s12308_s6  ;;  %v6732_v47 = vadd.f32 %v6605_v31, %v6444_v4 }
 0x493   : > { %6997 = vrot.lane.b32.xlu0 %v12208_v28, %s12309_s13  ;;  %v6937_v27 = vrot.slane %v6832_v60, 5  ;;  %v6786_v21 = vadd.f32 %v15636_v9, %v6730_v36  ;;  %v6447_v60 = vadd.f32 %v15759_v34, %v15352_v39  ;;  %v17493_v34 = vld [vmem:[#allocation94_spill] sm:$0xff] }
 0x494   : > { %v6319_v1 = vpop.permute.xlu1 %6318  ;;  %v6788_v51 = vadd.f32 %v15636_v9, %v6732_v47 }
 0x495   : > { %v15810_v25 = vsel %vm6916_vm11, %v6937_v27, %v6938_v16  ;;  %v6834_v54 = vmax.f32 %v6786_v21, 0.0  ;;  %v15812_v35 = vpop.permute.xlu0 %6626  ;;  %v6445_v8 = vadd.f32 %v15308_v17, %v6319_v1  ;;  %v6735_v28 = vadd.f32 %v15771_v22, %v6447_v60  ;;  %v17494_v22 = vld [vmem:[#allocation17_spill] sm:$0xff] }
 0x496   : > { %6664 = vrot.lane.b32.xlu1 %v15651_v19, %s12309_s13  ;;  %v6836_v42 = vmax.f32 %v6788_v51, 0.0 }
 0x497   : > { %v6940_v50 = vrot.slane %v6834_v54, 5  ;;  %v6791_v39 = vadd.f32 %v15636_v9, %v6735_v28 }
 0x498   : > { %v6315_v23 = vpop.permute.xlu1 %6314  ;;  %v6943_v26 = vrot.slane %v6836_v42, 5 }
 0x499   : > { %v15817_v33 = vsel %vm6916_vm11, %v6938_v16, %v6940_v50  ;;  %v15819_v11 = vpop.permute.xlu0 %6630  ;;  %v6443_v37 = vadd.f32 %v6315_v23, %v15310_v10  ;;  %v6839_v51 = vmax.f32 %v6791_v39, 0.0  ;;  %v17495_v39 = vld [vmem:[#allocation22_spill] sm:$0xff] }
 0x49a   : > { %6618 = vrot.lane.b32.xlu1 %v15399_v29, %s12309_s13 }
 0x49c   : > { %v6603_v7 = vpop.permute.xlu1 %6602 }
 0x49d   : > { %v6731_v19 = vadd.f32 %v6603_v7, %v6443_v37  ;;  %v15827_v31 = vpop.permute.xlu0 %6340 }
 0x49e   : > { %6999 = vrot.lane.b32.xlu1 %v15385_v30, %s12309_s13 }
 0x49f   : > { %v6787_v12 = vadd.f32 %v15636_v9, %v6731_v19 }
 0x4a0   : > { %v6607_v44 = vpop.permute.xlu1 %6606 }
 0x4a1   : > { %v6835_v32 = vmax.f32 %v6787_v12, 0.0  ;;  %v6733_v48 = vadd.f32 %v6607_v44, %v6445_v8  ;;  %v15833_v29 = vpop.permute.xlu0 %6348  ;;  %v6948_v44 = vrot.slane %v6839_v51, 5 }
 0x4a3   : > { %v6942_v45 = vrot.slane %v6835_v32, 5  ;;  %v6789_v10 = vadd.f32 %v15636_v9, %v6733_v48 }
 0x4a4   : > { %v6325_v52 = vpop.permute.xlu1 %6324 }
 0x4a5   : > { %v15839_v30 = vsel %vm6916_vm11, %v6942_v45, %v6943_v26  ;;  %v6837_v36 = vmax.f32 %v6789_v10, 0.0  ;;  %v15841_v17 = vpop.permute.xlu0 %6344  ;;  %v6448_v37 = vadd.f32 %v17494_v22, %v6325_v52 }
 0x4a7   : > { %v6945_v16 = vrot.slane %v6837_v36, 5 }
 0x4a8   : > { %v6321_v27 = vpop.permute.xlu1 %6320 }
 0x4a9   : > { %v15845_v21 = vsel %vm6916_vm11, %v6943_v26, %v6945_v16  ;;  %v15847_v1 = vpop.permute.xlu0 %6632  ;;  %v6446_v54 = vadd.f32 %v6321_v27, %v17493_v34 }
 0x4ac   : > { %v6609_v47 = vpop.permute.xlu1 %6608 }
 0x4ad   : > { %v6734_v50 = vadd.f32 %v6609_v47, %v6446_v54  ;;  %v15853_v23 = vpop.permute.xlu0 %6636 }
 0x4af   : > { %v6790_v7 = vadd.f32 %v15636_v9, %v6734_v50 }
 0x4b0   : > { %v6613_v19 = vpop.permute.xlu1 %6612 }
 0x4b1   : > { %v6838_v42 = vmax.f32 %v6790_v7, 0.0  ;;  %v6736_v8 = vadd.f32 %v6613_v19, %v6448_v37  ;;  %v15857_v12 = vpop.permute.xlu0 %6354  ;;  %v6453_v37 = vadd.f32 %v15791_v20, %v15422_v3 }
 0x4b3   : > { %v6947_v32 = vrot.slane %v6838_v42, 5  ;;  %v6792_v48 = vadd.f32 %v15636_v9, %v6736_v8  ;;  %v6741_v19 = vadd.f32 %v15799_v41, %v6453_v37 }
 0x4b4   : > { %v15860_v26 = vpop.permute.xlu1 %6330 }
 0x4b5   : > { %v15863_v45 = vsel %vm6916_vm11, %v6947_v32, %v6948_v44  ;;  %v6840_v10 = vmax.f32 %v6792_v48, 0.0  ;;  %v15865_v60 = vpop.permute.xlu0 %6350  ;;  %v17496_v32 = vld [vmem:[#allocation102_spill] sm:$0xff] }
 0x4b7   : > { %v6950_v52 = vrot.slane %v6840_v10, 5 }
 0x4b8   : > { %v6327_v36 = vpop.permute.xlu1 %6326 }
 0x4b9   : > { %v15868_v28 = vsel %vm6916_vm11, %v6948_v44, %v6950_v52  ;;  %v15870_v16 = vpop.permute.xlu0 %6638  ;;  %v6449_v34 = vadd.f32 %v6327_v36, %v17495_v39  ;;  %v6797_v44 = vadd.f32 %v15636_v9, %v6741_v19 }
 0x4bb   : > { %v6845_v39 = vmax.f32 %v6797_v44, 0.0 }
 0x4bc   : > { %v6615_v54 = vpop.permute.xlu1 %6614 }
 0x4bd   : > { %v6737_v47 = vadd.f32 %v6615_v54, %v6449_v34  ;;  %v15875_v50 = vpop.permute.xlu0 %6642  ;;  %v17497_v34 = vld [vmem:[#allocation104_spill] sm:$0xff]  ;;  %v6958_v37 = vrot.slane %v6845_v39, 5 }
 0x4bf   : > { %v15878_v51 = vadd.f32 %v15636_v9, %v6737_v47 }
 0x4c0   : > { %v6337_v22 = vpop.permute.xlu1 %6336 }
 0x4c1   : > { %v15882_v7 = vpop.permute.xlu0 %6360  ;;  %v6454_v54 = vadd.f32 %v17497_v34, %v6337_v22  ;;  %v17498_v34 = vld [vmem:[#allocation108_spill] sm:$0xff] }
 0x4c4   : > { %v6333_v42 = vpop.permute.xlu1 %6332 }
 0x4c5   : > { %v15885_v8 = vpop.permute.xlu0 %6356  ;;  %v6452_v48 = vadd.f32 %v6333_v42, %v17496_v32 }
 0x4c8   : > { %v6621_v10 = vpop.permute.xlu1 %6620 }
 0x4c9   : > { %v6740_v52 = vadd.f32 %v6621_v10, %v6452_v48  ;;  %v15889_v36 = vpop.permute.xlu0 %6644 }
 0x4cb   : > { %v6796_v3 = vadd.f32 %v15636_v9, %v6740_v52 }
 0x4cc   : > { %v6625_v20 = vpop.permute.xlu1 %6624 }
 0x4cd   : > { %v6844_v47 = vmax.f32 %v6796_v3, 0.0  ;;  %v6742_v27 = vadd.f32 %v6625_v20, %v6454_v54  ;;  %v15893_v41 = vpop.permute.xlu0 %6648 }
 0x4cf   : > { %v6957_v4 = vrot.slane %v6844_v47, 5  ;;  %v6798_v19 = vadd.f32 %v15636_v9, %v6742_v27  ;;  %v6456_v27 = vadd.f32 %v15827_v31, %v15451_v18 }
 0x4d0   : > { %v6343_v56 = vpop.permute.xlu1 %6342 }
 0x4d1   : > { %v6846_v42 = vmax.f32 %v6798_v19, 0.0  ;;  %v6457_v32 = vadd.f32 %v15446_v57, %v6343_v56  ;;  %v15897_v48 = vpop.permute.xlu0 %6366  ;;  %v6959_v44 = vsel %vm6916_vm11, %v6957_v4, %v6958_v37  ;;  %v17499_v4 = vld [vmem:[#allocation18_spill] sm:$0xff]  ;;  %v17500_v19 = vld [vmem:[#allocation103_spill] sm:$0xff] }
 0x4d2   : > { %v6460_v47 = vadd.f32 %v17499_v4, %v15833_v29 }
 0x4d3   : > { %v6960_v22 = vrot.slane %v6846_v42, 5  ;;  %v6745_v10 = vadd.f32 %v15819_v11, %v6457_v32  ;;  %v6458_v11 = vadd.f32 %v15841_v17, %v17500_v19 }
 0x4d4   : > { %v6339_v52 = vpop.permute.xlu1 %6338 }
 0x4d5   : > { %v6455_v54 = vadd.f32 %v6339_v52, %v17498_v34  ;;  %v15902_v3 = vpop.permute.xlu0 %6362  ;;  %v6961_v39 = vsel %vm6916_vm11, %v6958_v37, %v6960_v22  ;;  %v6801_v57 = vadd.f32 %v15636_v9, %v6745_v10  ;;  %v6746_v18 = vadd.f32 %v15847_v1, %v6458_v11  ;;  %v17503_v1 = vld [vmem:[#allocation112_spill] sm:$0xff] }
 0x4d6   : > { %v11455_v20 = vpack.c.bf16 %v6961_v39, %v6959_v44 }
 0x4d7   : > { %v6743_v56 = vadd.f32 %v15812_v35, %v6455_v54  ;;  %v6748_v35 = vadd.f32 %v15853_v23, %v6460_v47  ;;  %v6849_v31 = vmax.f32 %v6801_v57, 0.0  ;;  %v6802_v54 = vadd.f32 %v15636_v9, %v6746_v18 }
 0x4d8   : > { %v6629_v42 = vpop.permute.xlu1 %6628  ;;  %11457 = vmatprep.subr.msk.bf16.mxu0 %vm14889_vm9, %v11455_v20  ;;  %v6463_v23 = vadd.f32 %v17503_v1, %v15857_v12 }
 0x4d9   : > { %v6799_v37 = vadd.f32 %v15636_v9, %v6743_v56  ;;  %v6744_v44 = vadd.f32 %v6629_v42, %v6456_v27  ;;  %v15916_v22 = vpop.permute.xlu0 %6650  ;;  %11460 = vmatpush3.bf16.xpose.msk.msra.mxu0 %vm14889_vm9, %v11458_v6  ;;  %v6804_v39 = vadd.f32 %v15636_v9, %v6748_v35  ;;  %v6965_v59 = vrot.slane %v6849_v31, 5  ;;  %v17502_v6 = vld [vmem:[#allocation19_spill] sm:$0xff] }
 0x4da   : > { %v17504_v56 = vld [vmem:[#allocation111_spill] sm:$0xff]  ;;  %v6751_v31 = vadd.f32 %v15875_v50, %v6463_v23 }
 0x4db   : > { %v6847_v29 = vmax.f32 %v6799_v37, 0.0  ;;  %v6800_v17 = vadd.f32 %v15636_v9, %v6744_v44  ;;  %v6461_v4 = vadd.f32 %v15865_v60, %v17504_v56  ;;  %v6850_v37 = vmax.f32 %v6802_v54, 0.0 }
 0x4dc   : > { %v6347_v10 = vpop.permute.xlu1 %6346  ;;  %v6852_v44 = vmax.f32 %v6804_v39, 0.0  ;;  %v6807_v50 = vadd.f32 %v15636_v9, %v6751_v31  ;;  %v17505_v39 = vld [vmem:[#allocation113_spill] sm:$0xff] }
 0x4dd   : > { %v6848_v52 = vmax.f32 %v6800_v17, 0.0  ;;  %v15926_v34 = vpop.permute.xlu0 %6654  ;;  %v6962_v38 = vrot.slane %v6847_v29, 5  ;;  %v6459_v27 = vadd.f32 %v6347_v10, %v17502_v6  ;;  %v6749_v35 = vadd.f32 %v15870_v16, %v6461_v4  ;;  %v17507_v6 = vld [vmem:[#allocation21_spill] sm:$0xff] }
 0x4de   : > { %v6967_v10 = vrot.slane %v6850_v37, 5 }
 0x4df   : > { %v6963_v20 = vrot.slane %v6848_v52, 5  ;;  %v6970_v52 = vrot.slane %v6852_v44, 5  ;;  %v6805_v16 = vadd.f32 %v15636_v9, %v6749_v35 }
 0x4e0   : > { %v6635_v57 = vpop.permute.xlu1 %6634 }
 0x4e1   : > { %v6747_v47 = vadd.f32 %v6635_v57, %v6459_v27  ;;  %v15935_v19 = vpop.permute.xlu0 %6372  ;;  %v6964_v11 = vsel %vm6916_vm11, %v6962_v38, %v6963_v20  ;;  %v6966_v42 = vsel %vm6916_vm11, %v6963_v20, %v6965_v59  ;;  %v17506_v38 = vld [vmem:[#allocation26_spill] sm:$0xff]  ;;  %v6464_v27 = vadd.f32 %v15885_v8, %v17507_v6 }
 0x4e2   : > { %v11461_v18 = vpack.c.bf16 %v6966_v42, %v6964_v11  ;;  %v6466_v20 = vadd.f32 %v17506_v38, %v15882_v7  ;;  %v6855_v11 = vmax.f32 %v6807_v50, 0.0 }
 0x4e3   : > { %v6803_v12 = vadd.f32 %v15636_v9, %v6747_v47  ;;  %v6752_v57 = vadd.f32 %v15889_v36, %v6464_v27  ;;  %v6853_v47 = vmax.f32 %v6805_v16, 0.0 }
 0x4e4   : > { %v6353_v29 = vpop.permute.xlu1 %6352  ;;  %11463 = vmatprep.subr.msk.bf16.mxu0 %vm14889_vm9, %v11461_v18  ;;  %v6754_v56 = vadd.f32 %v15893_v41, %v6466_v20  ;;  %v6975_v18 = vrot.slane %v6855_v11, 5 }
 0x4e5   : > { %v6851_v60 = vmax.f32 %v6803_v12, 0.0  ;;  %v6369_v17 = vpop.permute.xlu0 %6368  ;;  %11466 = vmatpush3.bf16.xpose.msk.msra.mxu0 %vm14889_vm9, %v11464_v2  ;;  %v6462_v59 = vadd.f32 %v6353_v29, %v17505_v39  ;;  %v6808_v36 = vadd.f32 %v15636_v9, %v6752_v57  ;;  %v6972_v44 = vrot.slane %v6853_v47, 5 }
 0x4e6   : > { %v6810_v41 = vadd.f32 %v15636_v9, %v6754_v56  ;;  %v6469_v12 = vadd.f32 %v15552_v43, %v15897_v48 }
 0x4e7   : > { %v6968_v54 = vrot.slane %v6851_v60, 5  ;;  %v17508_v60 = vld [vmem:[#allocation25_spill] sm:$0xff]  ;;  %v6856_v16 = vmax.f32 %v6808_v36, 0.0 }
 0x4e8   : > { %v6641_v1 = vpop.permute.xlu1 %6640  ;;  %v6858_v50 = vmax.f32 %v6810_v41, 0.0 }
 0x4e9   : > { %v6750_v15 = vadd.f32 %v6641_v1, %v6462_v59  ;;  %v6657_v63 = vpop.permute.xlu0 %6656  ;;  %v6969_v2 = vsel %vm6916_vm11, %v6967_v10, %v6968_v54  ;;  %v6971_v23 = vsel %vm6916_vm11, %v6968_v54, %v6970_v52  ;;  %v6467_v10 = vadd.f32 %v15902_v3, %v17508_v60 }
 0x4ea   : > { %v11467_v4 = vpack.c.bf16 %v6971_v23, %v6969_v2  ;;  %v6977_v38 = vrot.slane %v6856_v16, 5  ;;  %v6980_v20 = vrot.slane %v6858_v50, 5  ;;  %v6472_v1 = vadd.f32 %v15584_v49, %v15935_v19 }
 0x4eb   : > { %v6806_v42 = vadd.f32 %v15636_v9, %v6750_v15  ;;  %v6755_v39 = vadd.f32 %v15916_v22, %v6467_v10  ;;  %v17509_v15 = vld [vmem:[#allocation55_spill] sm:$0xff] }
 0x4ec   : > { %v6359_v7 = vpop.permute.xlu1 %6358  ;;  %11469 = vmatprep.subr.msk.bf16.mxu0 %vm14889_vm9, %v11467_v4  ;;  %v6470_v2 = vadd.f32 %v6369_v17, %v17509_v15  ;;  %v17510_v17 = vpack.c.bf16 %v15817_v33, %v15810_v25 }
 0x4ed   : > { %v6854_v8 = vmax.f32 %v6806_v42, 0.0  ;;  %v6661_v37 = vpop.permute.xlu0 %6660  ;;  %11472 = vmatpush3.bf16.xpose.msk.msra.mxu0 %vm14889_vm9, %v11470_v13  ;;  %v6465_v31 = vadd.f32 %v6359_v7, %v15526_v61  ;;  %v6757_v61 = vadd.f32 %v15926_v34, %v6469_v12  ;;  %v6811_v22 = vadd.f32 %v15636_v9, %v6755_v39 }
 0x4ee   : > { %v6758_v56 = vadd.f32 %v6657_v63, %v6470_v2  ;;  %v6760_v4 = vadd.f32 %v6661_v37, %v6472_v1 }
 0x4ef   : > { %v6973_v35 = vrot.slane %v6854_v8, 5  ;;  %v6813_v34 = vadd.f32 %v15636_v9, %v6757_v61  ;;  %v6859_v11 = vmax.f32 %v6811_v22, 0.0 }
 0x4f0   : > { %v6647_v29 = vpop.permute.xlu1 %6646  ;;  %v6814_v63 = vadd.f32 %v15636_v9, %v6758_v56  ;;  %v6816_v8 = vadd.f32 %v15636_v9, %v6760_v4 }
 0x4f1   : > { %v6753_v0 = vadd.f32 %v6647_v29, %v6465_v31  ;;  %v6379_v62 = vpop.permute.xlu0 %6378  ;;  %v6974_v13 = vsel %vm6916_vm11, %v6972_v44, %v6973_v35  ;;  %v6976_v52 = vsel %vm6916_vm11, %v6973_v35, %v6975_v18  ;;  %v6861_v42 = vmax.f32 %v6813_v34, 0.0  ;;  %v17511_v18 = vld [vmem:[#allocation95_spill] sm:$0xff] }
 0x4f2   : > { %v11473_v54 = vpack.c.bf16 %v6976_v52, %v6974_v13  ;;  %v6982_v37 = vrot.slane %v6859_v11, 5  ;;  %v6450_v35 = vadd.f32 %v15781_v14, %v17511_v18  ;;  %v6475_v31 = vadd.f32 %v15617_v46, %v6379_v62  ;;  %v17512_v29 = vld [vmem:[#allocation59_spill] sm:$0xff]  ;;  %v12179_v18 = vld [vmem:[%s16877_s1 + $0x98] sm:$0xff]  }
 0x4f3   : > { %v6809_v59 = vadd.f32 %v15636_v9, %v6753_v0  ;;  %v6985_v36 = vrot.slane %v6861_v42, 5  ;;  %v6862_v13 = vmax.f32 %v6814_v63, 0.0  ;;  %v6864_v52 = vmax.f32 %v6816_v8, 0.0 }
 0x4f4   : > { %v6365_v43 = vpop.permute.xlu1 %6364  ;;  %11475 = vmatprep.subr.msk.bf16.mxu0 %vm14889_vm9, %v11473_v54  ;;  %v6841_v14 = vmax.f32 %v15878_v51, 0.0  ;;  %v17515_v11 = vpack.c.bf16 %v15868_v28, %v15863_v45  ;;  %v12176_v28 = vld [vmem:[%s16877_s1 + $0xa0] sm:$0xff]  }
 0x4f5   : > { %v6857_v48 = vmax.f32 %v6809_v59, 0.0  ;;  %v6375_v3 = vpop.permute.xlu0 %6374  ;;  %11478 = vmatpush3.bf16.xpose.msk.msra.mxu0 %vm14889_vm9, %v11476_v53  ;;  %v6468_v27 = vadd.f32 %v6365_v43, %v15557_v55  ;;  %v17513_v59 = vpack.c.bf16 %v15845_v21, %v15839_v30 }
 0x4f6   : > { %v6473_v25 = vadd.f32 %v6375_v3, %v17512_v29  ;;  %v6990_v3 = vrot.slane %v6864_v52, 5  ;;  %v12213_v29 = vld [vmem:[#allocation2 + $0x60] sm:$0xff]  ;;  %v12220_v52 = vld [vmem:[#allocation2 + $0x98] sm:$0xff] }
 0x4f7   : > { %v6978_v6 = vrot.slane %v6857_v48, 5  ;;  %v6987_v48 = vrot.slane %v6862_v13, 5  ;;  %v12219_v13 = vld [vmem:[#allocation2 + $0x90] sm:$0xff] }
 0x4f8   : > { %v6653_v23 = vpop.permute.xlu1 %6652 }
 0x4f9   : > { %v6756_v57 = vadd.f32 %v6653_v23, %v6468_v27  ;;  %v6663_v24 = vpop.permute.xlu0 %6662  ;;  %v6979_v5 = vsel %vm6916_vm11, %v6977_v38, %v6978_v6  ;;  %v6981_v53 = vsel %vm6916_vm11, %v6978_v6, %v6980_v20  ;;  %v6952_v6 = vrot.slane %v6841_v14, 5  ;;  %v12225_v14 = vld [vmem:[#allocation2 + $0xc0] sm:$0xff] }
 0x4fa   : > { %v11479_v47 = vpack.c.bf16 %v6981_v53, %v6979_v5  ;;  %v6761_v54 = vadd.f32 %v6663_v24, %v6473_v25  ;;  %v12214_v25 = vld [vmem:[#allocation2 + $0x68] sm:$0xff] }
 0x4fb   : > { %v6812_v7 = vadd.f32 %v15636_v9, %v6756_v57  ;;  %v17514_v57 = vld [vmem:[#allocation101_spill] sm:$0xff] }
 0x4fc   : > { %v6371_v55 = vpop.permute.xlu1 %6370  ;;  %11481 = vmatprep.subr.msk.bf16.mxu0 %vm14889_vm9, %v11479_v47  ;;  %v6817_v51 = vadd.f32 %v15636_v9, %v6761_v54  ;;  %v6451_v24 = vadd.f32 %v17514_v57, %v15860_v26  ;;  %v12223_v54 = vld [vmem:[#allocation2 + $0xb0] sm:$0xff]  ;;  %v7154_v57 = vld [vmem:[#allocation2 + $0x20] sm:$0xff] }
 0x4fd   : > { %v6860_v49 = vmax.f32 %v6812_v7, 0.0  ;;  %v6667_v19 = vpop.permute.xlu0 %6666  ;;  %11484 = vmatpush3.bf16.xpose.msk.msra.mxu0 %vm14889_vm9, %v17510_v17  ;;  %v6471_v44 = vadd.f32 %v6371_v55, %v15589_v40 }
 0x4fe   : > { %v6763_v40 = vadd.f32 %v6667_v19, %v6475_v31  ;;  %v6865_v5 = vmax.f32 %v6817_v51, 0.0  ;;  %v12211_v31 = vld [vmem:[#allocation2 + $0x50] sm:$0xff]  ;;  %v12234_v51 = vld [vmem:[#allocation2 + $0x108] sm:$0xff] }
 0x4ff   : > { %v6983_v41 = vrot.slane %v6860_v49, 5 }
 0x500   : > { %v6659_v12 = vpop.permute.xlu1 %6658  ;;  %v6819_v20 = vadd.f32 %v15636_v9, %v6763_v40  ;;  %v6992_v42 = vrot.slane %v6865_v5, 5  ;;  %v12224_v40 = vld [vmem:[#allocation2 + $0xb8] sm:$0xff]  ;;  %v7156_v5 = vld [vmem:[#allocation2 + $0x30] sm:$0xff] }
 0x501   : > { %v6759_v33 = vadd.f32 %v6659_v12, %v6471_v44  ;;  %v6617_v60 = vpop.permute.xlu0 %6616  ;;  %v6984_v10 = vsel %vm6916_vm11, %v6982_v37, %v6983_v41  ;;  %v6986_v0 = vsel %vm6916_vm11, %v6983_v41, %v6985_v36  ;;  %v12177_v36 = vld [vmem:[%s16877_s1 + $0xa8] sm:$0xff]   ;;  %v12178_v41 = vld [vmem:[%s16877_s1 + $0x90] sm:$0xff]   ;;  %v12209_v44 = vld [vmem:[#allocation2 + $0x40] sm:$0xff] }
 0x502   : > { %v6738_v16 = vadd.f32 %v6617_v60, %v6450_v35  ;;  %v11485_v50 = vpack.c.bf16 %v6986_v0, %v6984_v10  ;;  %v6867_v53 = vmax.f32 %v6819_v20, 0.0  ;;  %v12210_v35 = vld [vmem:[#allocation2 + $0x48] sm:$0xff]  ;;  %v12212_v12 = vld [vmem:[#allocation2 + $0x58] sm:$0xff]  ;;  %v12217_v10 = vld [vmem:[#allocation2 + $0x80] sm:$0xff] }
 0x503   : > { %v6815_v39 = vadd.f32 %v15636_v9, %v6759_v33  ;;  %v12215_v33 = vld [vmem:[#allocation2 + $0x70] sm:$0xff]  ;;  %v12216_v60 = vld [vmem:[#allocation2 + $0x78] sm:$0xff]  ;;  %v12218_v0 = vld [vmem:[#allocation2 + $0x88] sm:$0xff] }
 0x504   : > { %v6794_v46 = vadd.f32 %v15636_v9, %v6738_v16  ;;  %v6377_v62 = vpop.permute.xlu1 %6376  ;;  %11487 = vmatprep.subr.msk.bf16.mxu0 %vm14889_vm9, %v11485_v50  ;;  %v6995_v7 = vrot.slane %v6867_v53, 5  ;;  %v12221_v16 = vld [vmem:[#allocation2 + $0xa0] sm:$0xff]  ;;  %v12222_v50 = vld [vmem:[#allocation2 + $0xa8] sm:$0xff]  ;;  %v12235_v20 = vld [vmem:[#allocation2 + $0x110] sm:$0xff] }
 0x505   : > { %v6863_v61 = vmax.f32 %v6815_v39, 0.0  ;;  %11490 = vmatpush3.bf16.xpose.msk.msra.mxu0 %vm14889_vm9, %v17513_v59  ;;  %v6998_v43 = vpop.permute.xlu0 %6997  ;;  %v6474_v34 = vadd.f32 %v6377_v62, %v15622_v58  ;;  %v12180_v39 = vld [vmem:[%s16877_s1 + $0xb0] sm:$0xff]   ;;  %v12229_v59 = vld [vmem:[#allocation2 + $0xe0] sm:$0xff]  ;;  %v7157_v53 = vld [vmem:[#allocation2 + $0x38] sm:$0xff] }
 0x506   : > { %v6842_v38 = vmax.f32 %v6794_v46, 0.0  ;;  %10401 = vmatprep.mubr.msk.f32.mxu0 %vm4672_vm6, %v6998_v43  ;;  %v12226_v46 = vld [vmem:[#allocation2 + $0xc8] sm:$0xff]  ;;  %v12227_v62 = vld [vmem:[#allocation2 + $0xd0] sm:$0xff] }
 0x507   : > { %v6988_v22 = vrot.slane %v6863_v61, 5  ;;  %v12228_v61 = vld [vmem:[#allocation2 + $0xd8] sm:$0xff] }
 0x508   : > { %v6953_v27 = vrot.slane %v6842_v38, 5  ;;  %v6665_v1 = vpop.permute.xlu1 %6664  ;;  %v12233_v38 = vld [vmem:[#allocation2 + $0x100] sm:$0xff] }
 0x509   : > { %v6762_v30 = vadd.f32 %v6665_v1, %v6474_v34  ;;  %v6989_v21 = vsel %vm6916_vm11, %v6987_v48, %v6988_v22  ;;  %v6991_v15 = vsel %vm6916_vm11, %v6988_v22, %v6990_v3  ;;  %v12231_v48 = vld [vmem:[#allocation2 + $0xf0] sm:$0xff]  ;;  %v12232_v3 = vld [vmem:[#allocation2 + $0xf8] sm:$0xff]  ;;  %v12237_v34 = vld [vmem:[#allocation2 + $0x120] sm:$0xff] }
 0x50a   : > { %v6954_v2 = vsel %vm6916_vm11, %v6952_v6, %v6953_v27  ;;  %v11491_v23 = vpack.c.bf16 %v6991_v15, %v6989_v21  ;;  %v12236_v22 = vld [vmem:[#allocation2 + $0x118] sm:$0xff]  ;;  %v12238_v6 = vld [vmem:[#allocation2 + $0x128] sm:$0xff]  ;;  %v7150_v1 = vld [vmem:[#allocation2] sm:$0xff] }
 0x50b   : > { %v6818_v56 = vadd.f32 %v15636_v9, %v6762_v30  ;;  %v12240_v30 = vld [vmem:[#allocation2 + $0x138] sm:$0xff]  ;;  %v7151_v21 = vld [vmem:[#allocation2 + $0x8] sm:$0xff]  ;;  %v7152_v15 = vld [vmem:[#allocation2 + $0x10] sm:$0xff] }
 0x50c   : > { %v6619_v4 = vpop.permute.xlu1 %6618  ;;  %11493 = vmatprep.subr.msk.bf16.mxu0 %vm14889_vm9, %v11491_v23  ;;  %v7153_v23 = vld [vmem:[#allocation2 + $0x18] sm:$0xff] }
 0x50d   : > { %v6866_v58 = vmax.f32 %v6818_v56, 0.0  ;;  %v6739_v47 = vadd.f32 %v6619_v4, %v6451_v24  ;;  %11496 = vmatpush3.bf16.xpose.msk.msra.mxu0 %vm14889_vm9, %v17515_v11  ;;  %v7155_v24 = vld [vmem:[#allocation2 + $0x28] sm:$0xff]  ;;  %v7158_v56 = vld [vmem:[#allocation2 + $0x40] sm:$0xff] }
 0x50e   : > { %v7159_v4 = vld [vmem:[#allocation2 + $0x48] sm:$0xff]  ;;  %v7162_v11 = vld [vmem:[#allocation2 + $0x60] sm:$0xff] }
 0x50f   : > { %v6993_v55 = vrot.slane %v6866_v58, 5  ;;  %v6795_v26 = vadd.f32 %v15636_v9, %v6739_v47  ;;  %v7160_v58 = vld [vmem:[#allocation2 + $0x50] sm:$0xff]  ;;  %v7161_v47 = vld [vmem:[#allocation2 + $0x58] sm:$0xff] }
 0x510   : > { %v7000_v9 = vpop.permute.xlu1 %6999 }
 0x511   : > { %v6843_v49 = vmax.f32 %v6795_v26, 0.0  ;;  %v6994_v19 = vsel %vm6916_vm11, %v6992_v42, %v6993_v55  ;;  %v6996_v17 = vsel %vm6916_vm11, %v6993_v55, %v6995_v7  ;;  %v7163_v42 = vld [vmem:[#allocation2 + $0x68] sm:$0xff]  ;;  %v7164_v7 = vld [vmem:[#allocation2 + $0x70] sm:$0xff]  ;;  %v7165_v55 = vld [vmem:[#allocation2 + $0x78] sm:$0xff] }
 0x512   : > { %v11497_v63 = vpack.c.bf16 %v6996_v17, %v6994_v19  ;;  %v7166_v26 = vld [vmem:[#allocation2 + $0x80] sm:$0xff]  ;;  %v7168_v19 = vld [vmem:[#allocation2 + $0x90] sm:$0xff]  ;;  %v7169_v17 = vld [vmem:[#allocation2 + $0x98] sm:$0xff] }
 0x513   : > { %v6955_v8 = vrot.slane %v6843_v49, 5  ;;  %v7167_v49 = vld [vmem:[#allocation2 + $0x88] sm:$0xff] }
 0x514   : > { %11499 = vmatprep.subr.msk.bf16.mxu0 %vm14889_vm9, %v11497_v63  ;;  %v7170_v63 = vld [vmem:[#allocation2 + $0xa0] sm:$0xff] }
 0x515   : > { %v6956_v45 = vsel %vm6916_vm11, %v6953_v27, %v6955_v8  ;;  %v12239_v27 = vld [vmem:[#allocation2 + $0x130] sm:$0xff]  ;;  %v7171_v8 = vld [vmem:[#allocation2 + $0xa8] sm:$0xff] }
 0x516   : > { %v11500_v37 = vpack.c.bf16 %v6956_v45, %v6954_v2  ;;  %v12181_v2 = vld [vmem:[%s16877_s1 + $0xb8] sm:$0xff]   ;;  %v7172_v45 = vld [vmem:[#allocation2 + $0xb0] sm:$0xff] }
 0x518   : > { %11502 = vmatpush3.bf16.xpose.msk.msra.mxu0 %vm14889_vm9, %v11500_v37  ;;  %v7174_v37 = vld [vmem:[#allocation2 + $0xc0] sm:$0xff] }
 0x519   : > { %11155 = vmatprep.subr.bf16.mxu0 %v12176_v28 }
 0x51f   : > { %10402 = vmatmul.mubr.msk.f32.vlgmr.msra.gmra.mrb[64].mxu0 %vm4672_vm6, %v6998_v43  ;;  %v12230_v43 = vld [vmem:[#allocation2 + $0xe8] sm:$0xff] }
 0x520   : > { %11156 = vmatpush3.bf16.msra.mxu0 %v12176_v28  ;;  %10403 = vmatprep.mubr.msk.f32.mxu0 %vm4672_vm6, %v7000_v9  ;;  %v7173_v28 = vld [vmem:[#allocation2 + $0xb8] sm:$0xff] }
 0x521   : > { %11157 = vmatprep.subr.bf16.mxu0 %v12177_v36 }
 0x523   : > { %10404 = vmatmul.mubr.msk.f32.gmra.mrb[66].mxu0 %vm4672_vm6, %v7000_v9  ;;  %v7175_v9 = vld [vmem:[#allocation2 + $0xc8] sm:$0xff] }
 0x524   : > { %11158 = vmatpush3.bf16.msra.mxu0 %v12177_v36  ;;  %11159 = vmatprep.mubr.msk.bf16.mxu0 %vm224_vm0, %v12209_v44  ;;  %v7176_v36 = vld [vmem:[#allocation2 + $0xd0] sm:$0xff]  ;;  %v7178_v44 = vld [vmem:[#allocation2 + $0xe0] sm:$0xff] }
 0x525   : > { %11223 = vmatprep.subr.bf16.mxu0 %v12178_v41 }
 0x527   : > { %11160 = vmatmul.mubr.msk.bf16.vlgmr.msra.gmra.mrb[68].mxu0 %vm224_vm0, %v12210_v35  ;;  %v7180_v35 = vld [vmem:[#allocation2 + $0xf0] sm:$0xff] }
 0x528   : > { %11163 = vmatprep.mubr.msk.bf16.mxu0 %vm224_vm0, %v12211_v31  ;;  %11224 = vmatpush3.bf16.msra.mxu0 %v12178_v41  ;;  %v7177_v41 = vld [vmem:[#allocation2 + $0xd8] sm:$0xff] }
 0x529   : > { %11225 = vmatprep.subr.bf16.mxu0 %v12179_v18  ;;  %v7181_v31 = vld [vmem:[#allocation2 + $0xf8] sm:$0xff] }
 0x52c   : > { %11226 = vmatpush3.bf16.msra.mxu0 %v12179_v18  ;;  %v7179_v18 = vld [vmem:[#allocation2 + $0xe8] sm:$0xff] }
 0x52d   : > { %11291 = vmatprep.subr.bf16.mxu0 %v12180_v39 }
 0x52f   : > { %11164 = vmatmul.mubr.msk.bf16.gmra.mrb[72].mxu0 %vm224_vm0, %v12212_v12  ;;  %v7907_v12 = vld [vmem:[#allocation2 + $0x100] sm:$0xff] }
 0x530   : > { %11167 = vmatprep.mubr.msk.bf16.mxu0 %vm224_vm0, %v12213_v29  ;;  %v7908_v29 = vld [vmem:[#allocation2 + $0x108] sm:$0xff] }
 0x537   : > { %11168 = vmatmul.mubr.msk.bf16.gmra.mrb[76].mxu0 %vm224_vm0, %v12214_v25  ;;  %v7909_v25 = vld [vmem:[#allocation2 + $0x110] sm:$0xff] }
 0x538   : > { %11171 = vmatprep.mubr.msk.bf16.mxu0 %vm224_vm0, %v12215_v33  ;;  %v7910_v33 = vld [vmem:[#allocation2 + $0x118] sm:$0xff] }
 0x53f   : > { %11172 = vmatmul.mubr.msk.bf16.gmra.mrb[80].mxu0 %vm224_vm0, %v12216_v60  ;;  %v7911_v60 = vld [vmem:[#allocation2 + $0x120] sm:$0xff] }
 0x540   : > { %11175 = vmatprep.mubr.msk.bf16.mxu0 %vm224_vm0, %v12217_v10  ;;  %v7912_v10 = vld [vmem:[#allocation2 + $0x128] sm:$0xff] }
 0x547   : > { %11176 = vmatmul.mubr.msk.bf16.gmra.mrb[84].mxu0 %vm224_vm0, %v12218_v0  ;;  %v7913_v0 = vld [vmem:[#allocation2 + $0x130] sm:$0xff] }
 0x548   : > { %11179 = vmatprep.mubr.msk.bf16.mxu0 %vm224_vm0, %v12219_v13  ;;  %v7914_v13 = vld [vmem:[#allocation2 + $0x138] sm:$0xff] }
 0x54f   : > { %11180 = vmatmul.mubr.msk.bf16.gmra.mrb[88].mxu0 %vm224_vm0, %v12220_v52  ;;  %v7915_v52 = vld [vmem:[#allocation2 + $0x140] sm:$0xff] }
 0x550   : > { %11183 = vmatprep.mubr.msk.bf16.mxu0 %vm224_vm0, %v12221_v16  ;;  %v7916_v16 = vld [vmem:[#allocation2 + $0x148] sm:$0xff] }
 0x557   : > { %11184 = vmatmul.mubr.msk.bf16.gmra.mrb[92].mxu0 %vm224_vm0, %v12222_v50  ;;  %v7917_v50 = vld [vmem:[#allocation2 + $0x150] sm:$0xff] }
 0x558   : > { %11187 = vmatprep.mubr.msk.bf16.mxu0 %vm224_vm0, %v12223_v54  ;;  %v7918_v54 = vld [vmem:[#allocation2 + $0x158] sm:$0xff] }
 0x55f   : > { %11188 = vmatmul.mubr.msk.bf16.gmra.mrb[96].mxu0 %vm224_vm0, %v12224_v40  ;;  %v7919_v40 = vld [vmem:[#allocation2 + $0x160] sm:$0xff] }
 0x560   : > { %11191 = vmatprep.mubr.msk.bf16.mxu0 %vm224_vm0, %v12225_v14  ;;  %v7921_v14 = vld [vmem:[#allocation2 + $0x170] sm:$0xff] }
 0x567   : > { %11192 = vmatmul.mubr.msk.bf16.gmra.mrb[100].mxu0 %vm224_vm0, %v12226_v46  ;;  %v7922_v46 = vld [vmem:[#allocation2 + $0x178] sm:$0xff] }
 0x568   : > { %11195 = vmatprep.mubr.msk.bf16.mxu0 %vm224_vm0, %v12227_v62 }
 0x56f   : > { %11196 = vmatmul.mubr.msk.bf16.gmra.mrb[104].mxu0 %vm224_vm0, %v12228_v61 }
 0x570   : > { %11199 = vmatprep.mubr.msk.bf16.mxu0 %vm224_vm0, %v12229_v59 }
 0x577   : > { %11200 = vmatmul.mubr.msk.bf16.gmra.mrb[108].mxu0 %vm224_vm0, %v12230_v43 }
 0x578   : > { %11203 = vmatprep.mubr.msk.bf16.mxu0 %vm224_vm0, %v12231_v48 }
 0x57f   : > { %11204 = vmatmul.mubr.msk.bf16.gmra.mrb[112].mxu0 %vm224_vm0, %v12232_v3 }
 0x580   : > { %11207 = vmatprep.mubr.msk.bf16.mxu0 %vm224_vm0, %v12233_v38 }
 0x587   : > { %11208 = vmatmul.mubr.msk.bf16.gmra.mrb[116].mxu0 %vm224_vm0, %v12234_v51 }
 0x588   : > { %11211 = vmatprep.mubr.msk.bf16.mxu0 %vm224_vm0, %v12235_v20 }
 0x58f   : > { %11212 = vmatmul.mubr.msk.bf16.gmra.mrb[120].mxu0 %vm224_vm0, %v12236_v22 }
 0x590   : > { %11215 = vmatprep.mubr.msk.bf16.mxu0 %vm224_vm0, %v12237_v34 }
 0x597   : > { %11216 = vmatmul.mubr.msk.bf16.gmra.mrb[124].mxu0 %vm224_vm0, %v12238_v6 }
 0x598   : > { %11219 = vmatprep.mubr.msk.bf16.mxu0 %vm224_vm0, %v12239_v27 }
 0x59f   : > { %11220 = vmatmul.mubr.msk.bf16.gmra.mrb[128].mxu0 %vm224_vm0, %v12240_v30 }
 0x5a0   : > { %11227 = vmatprep.mubr.msk.bf16.mxu0 %vm224_vm0, %v7150_v1 }
 0x5a7   : > { %11228 = vmatmul.mubr.msk.bf16.vlgmr.msra.gmra.mrb[68].mxu0 %vm224_vm0, %v7151_v21 }
 0x5a8   : > { %11231 = vmatprep.mubr.msk.bf16.mxu0 %vm224_vm0, %v7152_v15  ;;  %11292 = vmatpush3.bf16.msra.mxu0 %v12180_v39  ;;  %v7920_v39 = vld [vmem:[#allocation2 + $0x168] sm:$0xff] }
 0x5a9   : > { %11293 = vmatprep.subr.bf16.mxu0 %v12181_v2 }
 0x5ac   : > { %11294 = vmatpush3.bf16.msra.mxu0 %v12181_v2 }
 0x5af   : > { %11232 = vmatmul.mubr.msk.bf16.gmra.mrb[72].mxu0 %vm224_vm0, %v7153_v23 }
 0x5b0   : > { %11235 = vmatprep.mubr.msk.bf16.mxu0 %vm224_vm0, %v7154_v57 }
 0x5b7   : > { %11236 = vmatmul.mubr.msk.bf16.gmra.mrb[76].mxu0 %vm224_vm0, %v7155_v24 }
 0x5b8   : > { %11239 = vmatprep.mubr.msk.bf16.mxu0 %vm224_vm0, %v7156_v5 }
 0x5bf   : > { %11240 = vmatmul.mubr.msk.bf16.gmra.mrb[80].mxu0 %vm224_vm0, %v7157_v53 }
 0x5c0   : > { %11243 = vmatprep.mubr.msk.bf16.mxu0 %vm224_vm0, %v7158_v56 }
 0x5c7   : > { %11244 = vmatmul.mubr.msk.bf16.gmra.mrb[84].mxu0 %vm224_vm0, %v7159_v4 }
 0x5c8   : > { %11247 = vmatprep.mubr.msk.bf16.mxu0 %vm224_vm0, %v7160_v58 }
 0x5cf   : > { %11248 = vmatmul.mubr.msk.bf16.gmra.mrb[88].mxu0 %vm224_vm0, %v7161_v47 }
 0x5d0   : > { %11251 = vmatprep.mubr.msk.bf16.mxu0 %vm224_vm0, %v7162_v11 }
 0x5d7   : > { %11252 = vmatmul.mubr.msk.bf16.gmra.mrb[92].mxu0 %vm224_vm0, %v7163_v42 }
 0x5d8   : > { %11255 = vmatprep.mubr.msk.bf16.mxu0 %vm224_vm0, %v7164_v7 }
 0x5df   : > { %11256 = vmatmul.mubr.msk.bf16.gmra.mrb[96].mxu0 %vm224_vm0, %v7165_v55 }
 0x5e0   : > { %11259 = vmatprep.mubr.msk.bf16.mxu0 %vm224_vm0, %v7166_v26 }
 0x5e7   : > { %11260 = vmatmul.mubr.msk.bf16.gmra.mrb[100].mxu0 %vm224_vm0, %v7167_v49 }
 0x5e8   : > { %11263 = vmatprep.mubr.msk.bf16.mxu0 %vm224_vm0, %v7168_v19 }
 0x5ef   : > { %11264 = vmatmul.mubr.msk.bf16.gmra.mrb[104].mxu0 %vm224_vm0, %v7169_v17 }
 0x5f0   : > { %11267 = vmatprep.mubr.msk.bf16.mxu0 %vm224_vm0, %v7170_v63 }
 0x5f7   : > { %11268 = vmatmul.mubr.msk.bf16.gmra.mrb[108].mxu0 %vm224_vm0, %v7171_v8 }
 0x5f8   : > { %11271 = vmatprep.mubr.msk.bf16.mxu0 %vm224_vm0, %v7172_v45 }
 0x5ff   : > { %11272 = vmatmul.mubr.msk.bf16.gmra.mrb[112].mxu0 %vm224_vm0, %v7173_v28 }
 0x600   : > { %11275 = vmatprep.mubr.msk.bf16.mxu0 %vm224_vm0, %v7174_v37 }
 0x607   : > { %11276 = vmatmul.mubr.msk.bf16.gmra.mrb[116].mxu0 %vm224_vm0, %v7175_v9 }
 0x608   : > { %11279 = vmatprep.mubr.msk.bf16.mxu0 %vm224_vm0, %v7176_v36 }
 0x60f   : > { %11280 = vmatmul.mubr.msk.bf16.gmra.mrb[120].mxu0 %vm224_vm0, %v7177_v41 }
 0x610   : > { %11283 = vmatprep.mubr.msk.bf16.mxu0 %vm224_vm0, %v7178_v44 }
 0x617   : > { %11284 = vmatmul.mubr.msk.bf16.gmra.mrb[124].mxu0 %vm224_vm0, %v7179_v18 }
 0x618   : > { %11287 = vmatprep.mubr.msk.bf16.mxu0 %vm224_vm0, %v7180_v35 }
 0x61f   : > { %11288 = vmatmul.mubr.msk.bf16.gmra.mrb[128].mxu0 %vm224_vm0, %v7181_v31 }
 0x620   : > { %11295 = vmatprep.mubr.msk.bf16.mxu0 %vm224_vm0, %v7166_v26 }
 0x627   : > { %11296 = vmatmul.mubr.msk.bf16.vlgmr.msra.gmra.mrb[68].mxu0 %vm224_vm0, %v7167_v49 }
 0x628   : > { %11299 = vmatprep.mubr.msk.bf16.mxu0 %vm224_vm0, %v7168_v19 }
 0x62f   : > { %11300 = vmatmul.mubr.msk.bf16.gmra.mrb[72].mxu0 %vm224_vm0, %v7169_v17 }
 0x630   : > { %11303 = vmatprep.mubr.msk.bf16.mxu0 %vm224_vm0, %v7170_v63 }
 0x637   : > { %11304 = vmatmul.mubr.msk.bf16.gmra.mrb[76].mxu0 %vm224_vm0, %v7171_v8 }
 0x638   : > { %11307 = vmatprep.mubr.msk.bf16.mxu0 %vm224_vm0, %v7172_v45 }
 0x63f   : > { %11308 = vmatmul.mubr.msk.bf16.gmra.mrb[80].mxu0 %vm224_vm0, %v7173_v28 }
 0x640   : > { %11311 = vmatprep.mubr.msk.bf16.mxu0 %vm224_vm0, %v7174_v37 }
 0x647   : > { %11312 = vmatmul.mubr.msk.bf16.gmra.mrb[84].mxu0 %vm224_vm0, %v7175_v9 }
 0x648   : > { %11315 = vmatprep.mubr.msk.bf16.mxu0 %vm224_vm0, %v7176_v36 }
 0x64f   : > { %11316 = vmatmul.mubr.msk.bf16.gmra.mrb[88].mxu0 %vm224_vm0, %v7177_v41 }
 0x650   : > { %11319 = vmatprep.mubr.msk.bf16.mxu0 %vm224_vm0, %v7178_v44 }
 0x657   : > { %11320 = vmatmul.mubr.msk.bf16.gmra.mrb[92].mxu0 %vm224_vm0, %v7179_v18 }
 0x658   : > { %11323 = vmatprep.mubr.msk.bf16.mxu0 %vm224_vm0, %v7180_v35 }
 0x65f   : > { %11324 = vmatmul.mubr.msk.bf16.gmra.mrb[96].mxu0 %vm224_vm0, %v7181_v31 }
 0x660   : > { %11327 = vmatprep.mubr.msk.bf16.mxu0 %vm224_vm0, %v7907_v12 }
 0x667   : > { %11328 = vmatmul.mubr.msk.bf16.gmra.mrb[100].mxu0 %vm224_vm0, %v7908_v29 }
 0x668   : > { %11331 = vmatprep.mubr.msk.bf16.mxu0 %vm224_vm0, %v7909_v25 }
 0x66f   : > { %11332 = vmatmul.mubr.msk.bf16.gmra.mrb[104].mxu0 %vm224_vm0, %v7910_v33 }
 0x670   : > { %11335 = vmatprep.mubr.msk.bf16.mxu0 %vm224_vm0, %v7911_v60 }
 0x677   : > { %11336 = vmatmul.mubr.msk.bf16.gmra.mrb[108].mxu0 %vm224_vm0, %v7912_v10 }
 0x678   : > { %11339 = vmatprep.mubr.msk.bf16.mxu0 %vm224_vm0, %v7913_v0 }
 0x67f   : > { %11340 = vmatmul.mubr.msk.bf16.gmra.mrb[112].mxu0 %vm224_vm0, %v7914_v13 }
 0x680   : > { %11343 = vmatprep.mubr.msk.bf16.mxu0 %vm224_vm0, %v7915_v52 }
 0x687   : > { %11344 = vmatmul.mubr.msk.bf16.gmra.mrb[116].mxu0 %vm224_vm0, %v7916_v16 }
 0x688   : > { %11347 = vmatprep.mubr.msk.bf16.mxu0 %vm224_vm0, %v7917_v50 }
 0x68f   : > { %11348 = vmatmul.mubr.msk.bf16.gmra.mrb[120].mxu0 %vm224_vm0, %v7918_v54 }
 0x690   : > { %11351 = vmatprep.mubr.msk.bf16.mxu0 %vm224_vm0, %v7919_v40 }
 0x697   : > { %11352 = vmatmul.mubr.msk.bf16.gmra.mrb[124].mxu0 %vm224_vm0, %v7920_v39 }
 0x698   : > { %11355 = vmatprep.mubr.msk.bf16.mxu0 %vm224_vm0, %v7921_v14 }
 0x69f   : > { %11356 = vmatmul.mubr.msk.bf16.gmra.mrb[128].mxu0 %vm224_vm0, %v7922_v46 }
 0x6fa   : > { %v16164_v62 = vpop.f32.mrb[68].mxu0 }
 0x6fb   : > { %v8422_v61 = vrot.slane %v16164_v62, 4  ;;  %8679 = vrot.lane.b32.xlu0 %v16164_v62, %s12309_s13  ;;  %v16169_v59 = vpop.f32.mrb[69].mxu0 }
 0x6fc   : > { %v11298_v43 = vpop.f32.mrb[70].mxu0 }
 0x6fd   : > { %8473 = vrot.lane.b32.xlu1 %v8422_v61, %s12308_s6  ;;  %v16172_v48 = vpop.f32.mrb[71].mxu0 }
 0x6fe   : > { %v8421_v3 = vrot.slane %v16172_v48, 4 }
 0x700   : > { %v8423_v38 = vsel %vm4160_vm7, %v8421_v3, %v8422_v61 }
 0x701   : > { %8681 = vrot.lane.b32.xlu1 %v11298_v43, %s12309_s13  ;;  %8471 = vrot.lane.b32.xlu0 %v8423_v38, %s12308_s6 }
 0x702   : > { %v16178_v51 = vpop.f32.mrb[72].mxu0 }
 0x703   : > { %v16180_v20 = vpop.f32.mrb[73].mxu0  ;;  %v8425_v6 = vrot.slane %v16178_v51, 4 }
 0x704   : > { %v11302_v22 = vpop.f32.mrb[74].mxu0 }
 0x705   : > { %8677 = vrot.lane.b32.xlu1 %v16172_v48, %s12309_s13  ;;  %8685 = vrot.lane.b32.xlu0 %v16178_v51, %s12309_s13  ;;  %v16186_v34 = vpop.f32.mrb[75].mxu0 }
 0x706   : > { %v8424_v27 = vrot.slane %v16186_v34, 4 }
 0x708   : > { %v8426_v1 = vsel %vm4160_vm7, %v8424_v27, %v8425_v6 }
 0x709   : > { %8469 = vrot.lane.b32.xlu1 %v8421_v3, %s12308_s6  ;;  %8477 = vrot.lane.b32.xlu0 %v8426_v1, %s12308_s6 }
 0x70a   : > { %v16193_v30 = vpop.f32.mrb[76].mxu0 }
 0x70b   : > { %v16195_v21 = vpop.f32.mrb[77].mxu0  ;;  %v8428_v23 = vrot.slane %v16193_v30, 4 }
 0x70c   : > { %v11306_v15 = vpop.f32.mrb[78].mxu0 }
 0x70d   : > { %8479 = vrot.lane.b32.xlu1 %v8425_v6, %s12308_s6  ;;  %8691 = vrot.lane.b32.xlu0 %v16193_v30, %s12309_s13  ;;  %v16200_v2 = vpop.f32.mrb[79].mxu0 }
 0x70e   : > { %v8427_v57 = vrot.slane %v16200_v2, 4 }
 0x710   : > { %v8429_v24 = vsel %vm4160_vm7, %v8427_v57, %v8428_v23 }
 0x711   : > { %8687 = vrot.lane.b32.xlu1 %v11302_v22, %s12309_s13  ;;  %8483 = vrot.lane.b32.xlu0 %v8429_v24, %s12308_s6 }
 0x712   : > { %v16207_v5 = vpop.f32.mrb[80].mxu0 }
 0x713   : > { %v16209_v53 = vpop.f32.mrb[81].mxu0  ;;  %v8431_v58 = vrot.slane %v16207_v5, 4 }
 0x714   : > { %v11310_v56 = vpop.f32.mrb[82].mxu0 }
 0x715   : > { %8683 = vrot.lane.b32.xlu1 %v16186_v34, %s12309_s13  ;;  %8697 = vrot.lane.b32.xlu0 %v16207_v5, %s12309_s13  ;;  %v16215_v4 = vpop.f32.mrb[83].mxu0 }
 0x716   : > { %v8430_v47 = vrot.slane %v16215_v4, 4 }
 0x718   : > { %v8432_v11 = vsel %vm4160_vm7, %v8430_v47, %v8431_v58 }
 0x719   : > { %8475 = vrot.lane.b32.xlu1 %v8424_v27, %s12308_s6  ;;  %8489 = vrot.lane.b32.xlu0 %v8432_v11, %s12308_s6 }
 0x71a   : > { %v16222_v42 = vpop.f32.mrb[84].mxu0 }
 0x71b   : > { %v16224_v7 = vpop.f32.mrb[85].mxu0  ;;  %v8434_v49 = vrot.slane %v16222_v42, 4 }
 0x71c   : > { %v11314_v55 = vpop.f32.mrb[86].mxu0 }
 0x71d   : > { %8485 = vrot.lane.b32.xlu1 %v8428_v23, %s12308_s6  ;;  %8703 = vrot.lane.b32.xlu0 %v16222_v42, %s12309_s13  ;;  %v16229_v26 = vpop.f32.mrb[87].mxu0 }
 0x71e   : > { %v8433_v19 = vrot.slane %v16229_v26, 4 }
 0x720   : > { %v8435_v17 = vsel %vm4160_vm7, %v8433_v19, %v8434_v49 }
 0x721   : > { %8693 = vrot.lane.b32.xlu1 %v11306_v15, %s12309_s13  ;;  %8495 = vrot.lane.b32.xlu0 %v8435_v17, %s12308_s6 }
 0x722   : > { %v16236_v63 = vpop.f32.mrb[88].mxu0 }
 0x723   : > { %v16238_v8 = vpop.f32.mrb[89].mxu0  ;;  %v8437_v37 = vrot.slane %v16236_v63, 4 }
 0x724   : > { %v11318_v45 = vpop.f32.mrb[90].mxu0 }
 0x725   : > { %8689 = vrot.lane.b32.xlu1 %v16200_v2, %s12309_s13  ;;  %8709 = vrot.lane.b32.xlu0 %v16236_v63, %s12309_s13  ;;  %v16244_v28 = vpop.f32.mrb[91].mxu0 }
 0x726   : > { %v8436_v9 = vrot.slane %v16244_v28, 4 }
 0x728   : > { %v8438_v36 = vsel %vm4160_vm7, %v8436_v9, %v8437_v37 }
 0x729   : > { %8481 = vrot.lane.b32.xlu1 %v8427_v57, %s12308_s6  ;;  %8501 = vrot.lane.b32.xlu0 %v8438_v36, %s12308_s6 }
 0x72a   : > { %v16253_v41 = vpop.f32.mrb[92].mxu0 }
 0x72b   : > { %v16255_v44 = vpop.f32.mrb[93].mxu0  ;;  %v8440_v31 = vrot.slane %v16253_v41, 4 }
 0x72c   : > { %v16257_v18 = vpop.f32.mrb[94].mxu0 }
 0x72d   : > { %8491 = vrot.lane.b32.xlu1 %v8431_v58, %s12308_s6  ;;  %8715 = vrot.lane.b32.xlu0 %v16253_v41, %s12309_s13  ;;  %v16262_v35 = vpop.f32.mrb[95].mxu0 }
 0x72e   : > { %v8439_v12 = vrot.slane %v16262_v35, 4 }
 0x730   : > { %v8441_v29 = vsel %vm4160_vm7, %v8439_v12, %v8440_v31 }
 0x731   : > { %8699 = vrot.lane.b32.xlu1 %v11310_v56, %s12309_s13  ;;  %8507 = vrot.lane.b32.xlu0 %v8441_v29, %s12308_s6 }
 0x732   : > { %v16271_v25 = vpop.f32.mrb[96].mxu0 }
 0x733   : > { %v16273_v33 = vpop.f32.mrb[97].mxu0  ;;  %v8443_v0 = vrot.slane %v16271_v25, 4 }
 0x734   : > { %17516 = vst [vmem:[#allocation57_spill] sm:$0xff] %v16273_v33  ;;  %v16275_v60 = vpop.f32.mrb[98].mxu0 }
 0x735   : > { %8695 = vrot.lane.b32.xlu1 %v16215_v4, %s12309_s13  ;;  %v16279_v10 = vpop.f32.mrb[99].mxu0 }
 0x736   : > { %v17025_v13 = vrot.slane %v16279_v10, 4 }
 0x738   : > { %v8444_v52 = vsel %vm4160_vm7, %v17025_v13, %v8443_v0 }
 0x739   : > { %8487 = vrot.lane.b32.xlu1 %v8430_v47, %s12308_s6  ;;  %8513 = vrot.lane.b32.xlu0 %v8444_v52, %s12308_s6 }
 0x73a   : > { %v16290_v16 = vpop.f32.mrb[100].mxu0 }
 0x73b   : > { %v8446_v50 = vrot.slane %v16290_v16, 4  ;;  %v16293_v54 = vpop.f32.mrb[101].mxu0 }
 0x73c   : > { %17517 = vst [vmem:[#allocation63_spill] sm:$0xff] %v16293_v54  ;;  %v11330_v40 = vpop.f32.mrb[102].mxu0 }
 0x73d   : > { %8497 = vrot.lane.b32.xlu1 %v8434_v49, %s12308_s6  ;;  %8521 = vrot.lane.b32.xlu0 %v8446_v50, %s12308_s6  ;;  %v16297_v39 = vpop.f32.mrb[103].mxu0 }
 0x73e   : > { %17518 = vst [vmem:[#allocation64_spill] sm:$0xff] %v16297_v39  ;;  %v8445_v14 = vrot.slane %v16297_v39, 4 }
 0x740   : > { %v16301_v46 = vsel %vm4160_vm7, %v8445_v14, %v8446_v50 }
 0x741   : > { %8705 = vrot.lane.b32.xlu1 %v11314_v55, %s12309_s13  ;;  %8729 = vrot.lane.b32.xlu0 %v11330_v40, %s12309_s13 }
 0x742   : > { %v16305_v61 = vpop.f32.mrb[104].mxu0 }
 0x743   : > { %v16307_v43 = vpop.f32.mrb[105].mxu0  ;;  %v8449_v22 = vrot.slane %v16305_v61, 4 }
 0x744   : > { %17519 = vst [vmem:[#allocation68_spill] sm:$0xff] %v16307_v43  ;;  %v11334_v3 = vpop.f32.mrb[106].mxu0 }
 0x745   : > { %8701 = vrot.lane.b32.xlu1 %v16229_v26, %s12309_s13  ;;  %8725 = vrot.lane.b32.xlu0 %v16297_v39, %s12309_s13  ;;  %v16313_v38 = vpop.f32.mrb[107].mxu0 }
 0x746   : > { %17520 = vst [vmem:[#allocation66_spill] sm:$0xff] %v16313_v38  ;;  %v8448_v6 = vrot.slane %v16313_v38, 4 }
 0x748   : > { %v16318_v27 = vsel %vm4160_vm7, %v8448_v6, %v8449_v22 }
 0x749   : > { %8493 = vrot.lane.b32.xlu1 %v8433_v19, %s12308_s6  ;;  %8517 = vrot.lane.b32.xlu0 %v8445_v14, %s12308_s6 }
 0x74a   : > { %v16322_v1 = vpop.f32.mrb[108].mxu0 }
 0x74b   : > { %v16324_v15 = vpop.f32.mrb[109].mxu0  ;;  %v8452_v24 = vrot.slane %v16322_v1, 4 }
 0x74c   : > { %17521 = vst [vmem:[#allocation71_spill] sm:$0xff] %v16324_v15  ;;  %v11338_v23 = vpop.f32.mrb[110].mxu0 }
 0x74d   : > { %8503 = vrot.lane.b32.xlu1 %v8437_v37, %s12308_s6  ;;  %8527 = vrot.lane.b32.xlu0 %v8449_v22, %s12308_s6  ;;  %v16328_v57 = vpop.f32.mrb[111].mxu0 }
 0x74e   : > { %17522 = vst [vmem:[#allocation77_spill] sm:$0xff] %v16328_v57  ;;  %v8451_v56 = vrot.slane %v16328_v57, 4 }
 0x750   : > { %v16333_v58 = vsel %vm4160_vm7, %v8451_v56, %v8452_v24 }
 0x751   : > { %8711 = vrot.lane.b32.xlu1 %v11318_v45, %s12309_s13  ;;  %8735 = vrot.lane.b32.xlu0 %v11334_v3, %s12309_s13 }
 0x752   : > { %v16337_v47 = vpop.f32.mrb[112].mxu0 }
 0x753   : > { %v16339_v11 = vpop.f32.mrb[113].mxu0  ;;  %v8455_v19 = vrot.slane %v16337_v47, 4 }
 0x754   : > { %17523 = vst [vmem:[#allocation75_spill] sm:$0xff] %v16339_v11  ;;  %v11342_v55 = vpop.f32.mrb[114].mxu0 }
 0x755   : > { %8707 = vrot.lane.b32.xlu1 %v16244_v28, %s12309_s13  ;;  %8731 = vrot.lane.b32.xlu0 %v16313_v38, %s12309_s13  ;;  %v16345_v49 = vpop.f32.mrb[115].mxu0 }
 0x756   : > { %17524 = vst [vmem:[#allocation79_spill] sm:$0xff] %v16345_v49  ;;  %v8454_v17 = vrot.slane %v16345_v49, 4 }
 0x758   : > { %v16350_v45 = vsel %vm4160_vm7, %v8454_v17, %v8455_v19 }
 0x759   : > { %8499 = vrot.lane.b32.xlu1 %v8436_v9, %s12308_s6  ;;  %8523 = vrot.lane.b32.xlu0 %v8448_v6, %s12308_s6 }
 0x75a   : > { %v16356_v37 = vpop.f32.mrb[116].mxu0 }
 0x75b   : > { %v16358_v36 = vpop.f32.mrb[117].mxu0  ;;  %v8458_v50 = vrot.slane %v16356_v37, 4 }
 0x75c   : > { %17525 = vst [vmem:[#allocation84_spill] sm:$0xff] %v16358_v36  ;;  %v16360_v29 = vpop.f32.mrb[118].mxu0  ;;  %v16431_v36 = vld [vmem:[%s16878_s2 + $0x3] ss:$0 sm:$0xff] }
 0x75d   : > { %8509 = vrot.lane.b32.xlu1 %v8440_v31, %s12308_s6  ;;  %8533 = vrot.lane.b32.xlu0 %v8452_v24, %s12308_s6  ;;  %v16364_v52 = vpop.f32.mrb[119].mxu0 }
 0x75e   : > { %v17024_v40 = vrot.slane %v16364_v52, 4 }
 0x760   : > { %v16371_v9 = vsel %vm4160_vm7, %v17024_v40, %v8458_v50 }
 0x761   : > { %8717 = vrot.lane.b32.xlu1 %v16257_v18, %s12309_s13  ;;  %8741 = vrot.lane.b32.xlu0 %v11338_v23, %s12309_s13 }
 0x762   : > { %v16376_v14 = vpop.f32.mrb[120].mxu0 }
 0x763   : > { %v16378_v31 = vpop.f32.mrb[121].mxu0  ;;  %v17027_v6 = vrot.slane %v16376_v14, 4 }
 0x764   : > { %17526 = vst [vmem:[#allocation82_spill] sm:$0xff] %v16378_v31  ;;  %v16380_v3 = vpop.f32.mrb[122].mxu0 }
 0x765   : > { %8713 = vrot.lane.b32.xlu1 %v16262_v35, %s12309_s13  ;;  %8737 = vrot.lane.b32.xlu0 %v16328_v57, %s12309_s13  ;;  %v16386_v22 = vpop.f32.mrb[123].mxu0 }
 0x766   : > { %v17026_v18 = vrot.slane %v16386_v22, 4 }
 0x768   : > { %v16395_v23 = vsel %vm4160_vm7, %v17026_v18, %v17027_v6 }
 0x769   : > { %8505 = vrot.lane.b32.xlu1 %v8439_v12, %s12308_s6  ;;  %8529 = vrot.lane.b32.xlu0 %v8451_v56, %s12308_s6 }
 0x76a   : > { %v16401_v24 = vpop.f32.mrb[124].mxu0 }
 0x76b   : > { %v16403_v40 = vpop.f32.mrb[125].mxu0  ;;  %v17031_v6 = vrot.slane %v16401_v24, 4 }
 0x76c   : > { %17527 = vst [vmem:[#allocation90_spill] sm:$0xff] %v16403_v40  ;;  %v16405_v13 = vpop.f32.mrb[126].mxu0 }
 0x76d   : > { %8515 = vrot.lane.b32.xlu1 %v8443_v0, %s12308_s6  ;;  %8539 = vrot.lane.b32.xlu0 %v8455_v19, %s12308_s6  ;;  %v16411_v18 = vpop.f32.mrb[127].mxu0  ;;  %v8680_v31 = vpop.permute.xlu0 %8679 }
 0x76e   : > { %v17030_v12 = vrot.slane %v16411_v18, 4 }
 0x76f   : > { %v8474_v56 = vpop.permute.xlu1 %8473 }
 0x770   : > { %v16420_v40 = vsel %vm4160_vm7, %v17030_v12, %v17031_v6  ;;  %v8615_v0 = vadd.f32 %v16164_v62, %v8474_v56 }
 0x771   : > { %8719 = vrot.lane.b32.xlu1 %v16279_v10, %s12309_s13  ;;  %8747 = vrot.lane.b32.xlu0 %v11342_v55, %s12309_s13  ;;  %v17529_v55 = vrot.slane %v16279_v10, 4 }
 0x772   : > { %v16426_v19 = vpop.f32.mrb[128].mxu0 }
 0x773   : > { %v8682_v57 = vpop.permute.xlu1 %8681  ;;  %v8472_v11 = vpop.permute.xlu0 %8471 }
 0x774   : > { %v8823_v32 = vadd.f32 %v8682_v57, %v8615_v0  ;;  %v8614_v12 = vadd.f32 %v8472_v11, %v16172_v48  ;;  %v16434_v6 = vpop.f32.mrb[129].mxu0  ;;  %v17036_v57 = vrot.slane %v16426_v19, 4 }
 0x775   : > { %17528 = vst [vmem:[#allocation97_spill] sm:$0xff] %v16434_v6  ;;  %v16436_v38 = vpop.f32.mrb[130].mxu0  ;;  %8511 = vrot.lane.b32.xlu1 %v17529_v55, %s12308_s6  ;;  %8743 = vrot.lane.b32.xlu0 %v16345_v49, %s12309_s13 }
 0x776   : > { %v8879_v62 = vadd.f32 %v16431_v36, %v8823_v32  ;;  %v8822_v56 = vadd.f32 %v8680_v31, %v8614_v12  ;;  %v16444_v15 = vpop.f32.mrb[131].mxu0 }
 0x777   : > { %v17035_v48 = vrot.slane %v16444_v15, 4  ;;  %v8678_v11 = vpop.permute.xlu1 %8677  ;;  %v8686_v0 = vpop.permute.xlu0 %8685 }
 0x778   : > { %v8927_v6 = vmax.f32 %v8879_v62, 0.0  ;;  %v8878_v39 = vadd.f32 %v16431_v36, %v8822_v56 }
 0x779   : > { %8727 = vrot.lane.b32.xlu1 %v16290_v16, %s12309_s13  ;;  %8535 = vrot.lane.b32.xlu0 %v8454_v17, %s12308_s6  ;;  %v16457_v32 = vsel %vm4160_vm7, %v17035_v48, %v17036_v57 }
 0x77a   : > { %v8926_v31 = vmax.f32 %v8878_v39, 0.0  ;;  %v9024_v49 = vrot.slane %v8927_v6, 4 }
 0x77b   : > { %v8470_v12 = vpop.permute.xlu1 %8469  ;;  %v8478_v55 = vpop.permute.xlu0 %8477 }
 0x77c   : > { %v9022_v43 = vrot.slane %v8926_v31, 4  ;;  %v8613_v62 = vadd.f32 %v8470_v12, %v16169_v59  ;;  %v8617_v56 = vadd.f32 %v8478_v55, %v16186_v34 }
 0x77d   : > { %8519 = vrot.lane.b32.xlu1 %v16301_v46, %s12308_s6  ;;  %8545 = vrot.lane.b32.xlu0 %v8458_v50, %s12308_s6 }
 0x77e   : > { %v16465_v17 = vsel %vm4160_vm7, %v9022_v43, %v9024_v49  ;;  %v8821_v33 = vadd.f32 %v8678_v11, %v8613_v62  ;;  %v8825_v48 = vadd.f32 %v8686_v0, %v8617_v56 }
 0x77f   : > { %v8480_v57 = vpop.permute.xlu1 %8479  ;;  %v8692_v39 = vpop.permute.xlu0 %8691 }
 0x780   : > { %v8877_v54 = vadd.f32 %v16431_v36, %v8821_v33  ;;  %v8618_v6 = vadd.f32 %v16178_v51, %v8480_v57  ;;  %v8881_v34 = vadd.f32 %v16431_v36, %v8825_v48 }
 0x781   : > { %8733 = vrot.lane.b32.xlu1 %v16305_v61, %s12309_s13  ;;  %8753 = vrot.lane.b32.xlu0 %v16360_v29, %s12309_s13 }
 0x782   : > { %v8925_v59 = vmax.f32 %v8877_v54, 0.0  ;;  %v8929_v33 = vmax.f32 %v8881_v34, 0.0 }
 0x783   : > { %v8688_v46 = vpop.permute.xlu1 %8687  ;;  %v8484_v49 = vpop.permute.xlu0 %8483 }
 0x784   : > { %v9021_v50 = vrot.slane %v8925_v59, 4  ;;  %v8826_v11 = vadd.f32 %v8688_v46, %v8618_v6  ;;  %v8620_v0 = vadd.f32 %v8484_v49, %v16200_v2  ;;  %v17530_v2 = vrot.slane %v16364_v52, 4 }
 0x785   : > { %8525 = vrot.lane.b32.xlu1 %v16318_v27, %s12308_s6  ;;  %8749 = vrot.lane.b32.xlu0 %v16364_v52, %s12309_s13  ;;  %v9027_v27 = vrot.slane %v8929_v33, 4  ;;  %v17531_v59 = vrot.slane %v16376_v14, 4 }
 0x786   : > { %v16480_v51 = vsel %vm4160_vm7, %v9021_v50, %v9022_v43  ;;  %v8882_v54 = vadd.f32 %v16431_v36, %v8826_v11  ;;  %v8828_v29 = vadd.f32 %v8692_v39, %v8620_v0 }
 0x787   : > { %v11506_v57 = vpack.c.bf16 %v16465_v17, %v16480_v51  ;;  %v8684_v48 = vpop.permute.xlu1 %8683  ;;  %v8698_v31 = vpop.permute.xlu0 %8697 }
 0x788   : > { %v8930_v12 = vmax.f32 %v8882_v54, 0.0 }
 0x789   : > { %8739 = vrot.lane.b32.xlu1 %v16322_v1, %s12309_s13  ;;  %8541 = vrot.lane.b32.xlu0 %v17530_v2, %s12308_s6 }
 0x78a   : > { %v9029_v43 = vrot.slane %v8930_v12, 4 }
 0x78b   : > { %v8476_v55 = vpop.permute.xlu1 %8475  ;;  %v8490_v62 = vpop.permute.xlu0 %8489 }
 0x78c   : > { %v16491_v56 = vsel %vm4160_vm7, %v9027_v27, %v9029_v43  ;;  %v8616_v39 = vadd.f32 %v8476_v55, %v16180_v20  ;;  %v8623_v6 = vadd.f32 %v8490_v62, %v16215_v4  ;;  %v8884_v20 = vadd.f32 %v16431_v36, %v8828_v29 }
 0x78d   : > { %8531 = vrot.lane.b32.xlu1 %v16333_v58, %s12308_s6  ;;  %8551 = vrot.lane.b32.xlu0 %v17531_v59, %s12308_s6 }
 0x78e   : > { %v8824_v34 = vadd.f32 %v8684_v48, %v8616_v39  ;;  %v8831_v46 = vadd.f32 %v8698_v31, %v8623_v6 }
 0x78f   : > { %v8486_v49 = vpop.permute.xlu1 %8485  ;;  %v8704_v50 = vpop.permute.xlu0 %8703 }
 0x790   : > { %v8880_v11 = vadd.f32 %v16431_v36, %v8824_v34  ;;  %v8621_v0 = vadd.f32 %v16193_v30, %v8486_v49  ;;  %v8932_v30 = vmax.f32 %v8884_v20, 0.0 }
 0x791   : > { %8745 = vrot.lane.b32.xlu1 %v16337_v47, %s12309_s13  ;;  %8759 = vrot.lane.b32.xlu0 %v16380_v3, %s12309_s13 }
 0x792   : > { %v8928_v4 = vmax.f32 %v8880_v11, 0.0 }
 0x793   : > { %v8694_v58 = vpop.permute.xlu1 %8693  ;;  %v8496_v33 = vpop.permute.xlu0 %8495 }
 0x794   : > { %v9026_v54 = vrot.slane %v8928_v4, 4  ;;  %v8829_v48 = vadd.f32 %v8694_v58, %v8621_v0  ;;  %v8626_v31 = vadd.f32 %v8496_v33, %v16229_v26  ;;  %v17532_v26 = vrot.slane %v16386_v22, 4 }
 0x795   : > { %8537 = vrot.lane.b32.xlu1 %v16350_v45, %s12308_s6  ;;  %8755 = vrot.lane.b32.xlu0 %v16386_v22, %s12309_s13  ;;  %v9032_v45 = vrot.slane %v8932_v30, 4 }
 0x796   : > { %v16513_v12 = vsel %vm4160_vm7, %v9026_v54, %v9027_v27  ;;  %v8885_v3 = vadd.f32 %v16431_v36, %v8829_v48  ;;  %v8834_v29 = vadd.f32 %v8704_v50, %v8626_v31  ;;  %v17533_v50 = vrot.slane %v16401_v24, 4 }
 0x797   : > { %v11512_v2 = vpack.c.bf16 %v16491_v56, %v16513_v12  ;;  %v8690_v43 = vpop.permute.xlu1 %8689  ;;  %v8710_v55 = vpop.permute.xlu0 %8709 }
 0x798   : > { %v8933_v62 = vmax.f32 %v8885_v3, 0.0 }
 0x799   : > { %8751 = vrot.lane.b32.xlu1 %v16356_v37, %s12309_s13  ;;  %8547 = vrot.lane.b32.xlu0 %v17532_v26, %s12308_s6 }
 0x79a   : > { %v9034_v39 = vrot.slane %v8933_v62, 4 }
 0x79b   : > { %v8482_v27 = vpop.permute.xlu1 %8481  ;;  %v8502_v6 = vpop.permute.xlu0 %8501 }
 0x79c   : > { %v16524_v59 = vsel %vm4160_vm7, %v9032_v45, %v9034_v39  ;;  %v8619_v34 = vadd.f32 %v8482_v27, %v16195_v21  ;;  %v8629_v49 = vadd.f32 %v8502_v6, %v16244_v28  ;;  %v8887_v21 = vadd.f32 %v16431_v36, %v8831_v46 }
 0x79d   : > { %8543 = vrot.lane.b32.xlu1 %v16371_v9, %s12308_s6  ;;  %8557 = vrot.lane.b32.xlu0 %v17533_v50, %s12308_s6 }
 0x79e   : > { %v8827_v11 = vadd.f32 %v8690_v43, %v8619_v34  ;;  %v16533_v0 = vadd.f32 %v8710_v55, %v8629_v49  ;;  %v17535_v49 = vrot.slane %v16426_v19, 4 }
 0x79f   : > { %v8492_v20 = vpop.permute.xlu1 %8491  ;;  %v8716_v4 = vpop.permute.xlu0 %8715 }
 0x7a0   : > { %v8883_v58 = vadd.f32 %v16431_v36, %v8827_v11  ;;  %v8624_v33 = vadd.f32 %v16207_v5, %v8492_v20  ;;  %v8935_v5 = vmax.f32 %v8887_v21, 0.0 }
 0x7a1   : > { %8757 = vrot.lane.b32.xlu1 %v16376_v14, %s12309_s13  ;;  %8765 = vrot.lane.b32.xlu0 %v16405_v13, %s12309_s13 }
 0x7a2   : > { %v8931_v28 = vmax.f32 %v8883_v58, 0.0 }
 0x7a3   : > { %v8700_v9 = vpop.permute.xlu1 %8699  ;;  %v8508_v54 = vpop.permute.xlu0 %8507 }
 0x7a4   : > { %v9031_v48 = vrot.slane %v8931_v28, 4  ;;  %v8832_v31 = vadd.f32 %v8700_v9, %v8624_v33  ;;  %v8632_v30 = vadd.f32 %v8508_v54, %v16262_v35  ;;  %v17534_v35 = vrot.slane %v16411_v18, 4 }
 0x7a5   : > { %8549 = vrot.lane.b32.xlu1 %v16395_v23, %s12308_s6  ;;  %8761 = vrot.lane.b32.xlu0 %v16411_v18, %s12309_s13  ;;  %v9037_v23 = vrot.slane %v8935_v5, 4 }
 0x7a6   : > { %v16548_v3 = vsel %vm4160_vm7, %v9031_v48, %v9032_v45  ;;  %v8888_v13 = vadd.f32 %v16431_v36, %v8832_v31  ;;  %v16551_v46 = vadd.f32 %v8716_v4, %v8632_v30  ;;  %v17536_v30 = vrot.slane %v16444_v15, 4 }
 0x7a7   : > { %v11518_v43 = vpack.c.bf16 %v16524_v59, %v16548_v3  ;;  %v8696_v55 = vpop.permute.xlu1 %8695 }
 0x7a8   : > { %v8936_v62 = vmax.f32 %v8888_v13, 0.0 }
 0x7a9   : > { %8763 = vrot.lane.b32.xlu1 %v16401_v24, %s12309_s13  ;;  %8553 = vrot.lane.b32.xlu0 %v17534_v35, %s12308_s6 }
 0x7aa   : > { %v9039_v26 = vrot.slane %v8936_v62, 4 }
 0x7ab   : > { %v8488_v45 = vpop.permute.xlu1 %8487  ;;  %v8514_v39 = vpop.permute.xlu0 %8513 }
 0x7ac   : > { %v16561_v27 = vsel %vm4160_vm7, %v9037_v23, %v9039_v26  ;;  %v8622_v6 = vadd.f32 %v8488_v45, %v16209_v53  ;;  %v16565_v34 = vadd.f32 %v8514_v39, %v16279_v10  ;;  %v8890_v53 = vadd.f32 %v16431_v36, %v8834_v29 }
 0x7ad   : > { %8555 = vrot.lane.b32.xlu1 %v16420_v40, %s12308_s6  ;;  %8563 = vrot.lane.b32.xlu0 %v17535_v49, %s12308_s6  ;;  %v8893_v49 = vadd.f32 %v16431_v36, %v16533_v0  ;;  %v9255_v0 = vld [vmem:[%s16880_s4 + $0x8] sm:$0xff] }
 0x7ae   : > { %v8830_v50 = vadd.f32 %v8696_v55, %v8622_v6 }
 0x7af   : > { %v8498_v11 = vpop.permute.xlu1 %8497  ;;  %v8522_v20 = vpop.permute.xlu0 %8521 }
 0x7b0   : > { %v8886_v4 = vadd.f32 %v16431_v36, %v8830_v50  ;;  %v8627_v58 = vadd.f32 %v16222_v42, %v8498_v11  ;;  %v16575_v33 = vadd.f32 %v16290_v16, %v8522_v20  ;;  %v8938_v42 = vmax.f32 %v8890_v53, 0.0 }
 0x7b1   : > { %8769 = vrot.lane.b32.xlu1 %v16426_v19, %s12309_s13  ;;  %8771 = vrot.lane.b32.xlu0 %v16436_v38, %s12309_s13  ;;  %v8941_v53 = vmax.f32 %v8893_v49, 0.0 }
 0x7b2   : > { %v8934_v10 = vmax.f32 %v8886_v4, 0.0 }
 0x7b3   : > { %v8706_v40 = vpop.permute.xlu1 %8705  ;;  %v16582_v21 = vpop.permute.xlu0 %8729 }
 0x7b4   : > { %v9036_v28 = vrot.slane %v8934_v10, 4  ;;  %v8835_v9 = vadd.f32 %v8706_v40, %v8627_v58  ;;  %v9254_v40 = vld [vmem:[%s16880_s4] sm:$0xff] }
 0x7b5   : > { %8767 = vrot.lane.b32.xlu0 %v16444_v15, %s12309_s13  ;;  %8561 = vrot.lane.b32.xlu1 %v16457_v32, %s12308_s6  ;;  %v9042_v32 = vrot.slane %v8938_v42, 4 }
 0x7b6   : > { %v16589_v16 = vsel %vm4160_vm7, %v9036_v28, %v9037_v23  ;;  %v8891_v38 = vadd.f32 %v16431_v36, %v8835_v9  ;;  %v12241_v23 = vld [vmem:[%s16879_s3 + $0x8] sm:$0xff] }
 0x7b7   : > { %v8702_v54 = vpop.permute.xlu1 %8701  ;;  %v16594_v48 = vpop.permute.xlu0 %8725 }
 0x7b8   : > { %v8939_v31 = vmax.f32 %v8891_v38, 0.0 }
 0x7b9   : > { %8559 = vrot.lane.b32.xlu0 %v17536_v30, %s12308_s6  ;;  %8723 = vrot.lane.b32.xlu1 %v16275_v60, %s12309_s13  ;;  %s12310_s6 = smov 104  }
 0x7ba   : > { %v9044_v5 = vrot.slane %v8939_v31, 4 }
 0x7bb   : > { %v8494_v13 = vpop.permute.xlu1 %8493  ;;  %v16601_v55 = vpop.permute.xlu0 %8517 }
 0x7bc   : > { %v16604_v62 = vsel %vm4160_vm7, %v9042_v32, %v9044_v5  ;;  %v8625_v35 = vadd.f32 %v8494_v13, %v16224_v7  ;;  %v12242_v7 = vld [vmem:[%s16879_s3] sm:$0xff] }
 0x7bd   : > { %8721 = vrot.lane.b32.xlu0 %v16271_v25, %s12309_s13  ;;  %9103 = vrot.lane.b32.xlu1 %v12241_v23, %s12310_s6 }
 0x7be   : > { %v8833_v60 = vadd.f32 %v8702_v54, %v8625_v35  ;;  %v9047_v54 = vrot.slane %v8941_v53, 4 }
 0x7bf   : > { %v8504_v26 = vpop.permute.xlu1 %8503  ;;  %v16612_v45 = vpop.permute.xlu0 %8527 }
 0x7c0   : > { %v8889_v39 = vadd.f32 %v16431_v36, %v8833_v60  ;;  %v8630_v6 = vadd.f32 %v16236_v63, %v8504_v26 }
 0x7c1   : > { %9101 = vrot.lane.b32.xlu0 %v12242_v7, %s12310_s6  ;;  %9263 = vperm.xlu1 %12125, %v9255_v0   ;;  %s12311_s6 = smov [#allocation3]  }
 0x7c2   : > { %v8937_v50 = vmax.f32 %v8889_v39, 0.0  ;;  %s12247_s7 = sshll.u32 %s12311_s6, 4  ;;  %s12248_s7 = int_to_ptr.vmem [resolvable:$false] %s12247_s7 }
 0x7c3   : > { %v8712_v11 = vpop.permute.xlu1 %8711  ;;  %v16621_v20 = vpop.permute.xlu0 %8735  ;;  %s12249_s8 = scalar_lea.vmem %s12248_s7, 1024  ;;  %p12250_p0 = scmp.lt.s32.totalorder %s16828_s16, %s12248_s7 }
 0x7c4   : > { %v9041_v4 = vrot.slane %v8937_v50, 4  ;;  %v8838_v58 = vadd.f32 %v8712_v11, %v8630_v6  ;;  %v8896_v6 = vadd.f32 %v16431_v36, %v16551_v46  ;;  %p12251_p1 = scmp.lt.s32.totalorder %s12249_s8, %s12243_s22 }
 0x7c5   : > { %9258 = vperm.xlu0 %12124, %v9254_v40  }
 0x7c6   : > { %v16624_v10 = vsel %vm4160_vm7, %v9041_v4, %v9042_v32  ;;  %v8894_v63 = vadd.f32 %v16431_v36, %v8838_v58  ;;  %v8944_v58 = vmax.f32 %v8896_v6, 0.0  ;;  %p12252_p2 = por %p12251_p1, %p12250_p0 }
 0x7c7   : > { %v8708_v9 = vpop.permute.xlu1 %8707  ;;  %v16635_v42 = vpop.permute.xlu0 %8731 }
 0x7c8   : > { %v8942_v38 = vmax.f32 %v8894_v63, 0.0  ;;  %v9052_v46 = vrot.slane %v8944_v58, 4  ;;  %v17537_v58 = vld [vmem:[#allocation63_spill] sm:$0xff]  ;;  %v17540_v63 = vld [vmem:[#allocation64_spill] sm:$0xff]  ;;  %p12253_p3 = pnand %p12252_p2, %p12246_p13 }
 0x7ca   : > { %v9049_v31 = vrot.slane %v8942_v38, 4 }
 0x7cb   : > { %v8500_v30 = vpop.permute.xlu1 %8499  ;;  %v8524_v32 = vpop.permute.xlu0 %8523 }
 0x7cc   : > { %v16638_v5 = vsel %vm4160_vm7, %v9047_v54, %v9049_v31  ;;  %v8628_v13 = vadd.f32 %v8500_v30, %v16238_v8 }
 0x7ce   : > { %v8836_v35 = vadd.f32 %v8708_v9, %v8628_v13 }
 0x7cf   : > { %v8510_v23 = vpop.permute.xlu1 %8509  ;;  %v16641_v60 = vpop.permute.xlu0 %8533 }
 0x7d0   : > { %v8892_v26 = vadd.f32 %v16431_v36, %v8836_v35  ;;  %v8633_v39 = vadd.f32 %v16253_v41, %v8510_v23 }
 0x7d2   : > { %v8940_v7 = vmax.f32 %v8892_v26, 0.0 }
 0x7d3   : > { %v8718_v49 = vpop.permute.xlu1 %8717  ;;  %v16647_v50 = vpop.permute.xlu0 %8741 }
 0x7d4   : > { %v9046_v11 = vrot.slane %v8940_v7, 4  ;;  %v8841_v4 = vadd.f32 %v8718_v49, %v8633_v39 }
 0x7d6   : > { %v16650_v8 = vsel %vm4160_vm7, %v9046_v11, %v9047_v54  ;;  %v8897_v53 = vadd.f32 %v16431_v36, %v8841_v4 }
 0x7d7   : > { %v8714_v40 = vpop.permute.xlu1 %8713  ;;  %v16655_v41 = vpop.permute.xlu0 %8737 }
 0x7d8   : > { %v8945_v0 = vmax.f32 %v8897_v53, 0.0 }
 0x7da   : > { %v9054_v9 = vrot.slane %v8945_v0, 4 }
 0x7db   : > { %v8506_v38 = vpop.permute.xlu1 %8505  ;;  %v8530_v31 = vpop.permute.xlu0 %8529 }
 0x7dc   : > { %v16658_v30 = vsel %vm4160_vm7, %v9052_v46, %v9054_v9  ;;  %v8631_v13 = vadd.f32 %v8506_v38, %v16255_v44  ;;  %v8637_v44 = vadd.f32 %v16601_v55, %v17537_v58  ;;  %v17538_v9 = vld [vmem:[#allocation57_spill] sm:$0xff]  ;;  %v17539_v58 = vld [vmem:[#allocation68_spill] sm:$0xff] }
 0x7dd   : > { %v8640_v53 = vadd.f32 %v8524_v32, %v17539_v58 }
 0x7de   : > { %v8839_v54 = vadd.f32 %v8714_v40, %v8631_v13  ;;  %v8847_v13 = vadd.f32 %v16582_v21, %v16575_v33 }
 0x7df   : > { %v8516_v35 = vpop.permute.xlu1 %8515  ;;  %v16661_v23 = vpop.permute.xlu0 %8539 }
 0x7e0   : > { %v8895_v26 = vadd.f32 %v16431_v36, %v8839_v54  ;;  %v16665_v39 = vadd.f32 %v16271_v25, %v8516_v35  ;;  %v8845_v54 = vadd.f32 %v16594_v48, %v8637_v44 }
 0x7e2   : > { %v8943_v6 = vmax.f32 %v8895_v26, 0.0  ;;  %v8903_v26 = vadd.f32 %v16431_v36, %v8847_v13  ;;  %v8901_v55 = vadd.f32 %v16431_v36, %v8845_v54  ;;  %v8848_v13 = vadd.f32 %v16635_v42, %v8640_v53 }
 0x7e3   : > { %v8720_v7 = vpop.permute.xlu1 %8719  ;;  %v16667_v49 = vpop.permute.xlu0 %8747  ;;  %v8645_v42 = vadd.f32 %v16322_v1, %v16641_v60 }
 0x7e4   : > { %v9051_v11 = vrot.slane %v8943_v6, 4  ;;  %v8951_v33 = vmax.f32 %v8903_v26, 0.0  ;;  %v8949_v21 = vmax.f32 %v8901_v55, 0.0  ;;  %v17542_v26 = vld [vmem:[#allocation66_spill] sm:$0xff] }
 0x7e6   : > { %v16670_v4 = vsel %vm4160_vm7, %v9051_v11, %v9052_v46  ;;  %v9064_v29 = vrot.slane %v8951_v33, 4  ;;  %v9061_v32 = vrot.slane %v8949_v21, 4  ;;  %v8853_v33 = vadd.f32 %v16647_v50, %v8645_v42  ;;  %v17544_v50 = vld [vmem:[#allocation75_spill] sm:$0xff] }
 0x7e7   : > { %v8512_v40 = vpop.permute.xlu1 %8511  ;;  %v8744_v0 = vpop.permute.xlu0 %8743 }
 0x7e8   : > { %v8634_v38 = vadd.f32 %v8512_v40, %v17538_v9  ;;  %v8909_v60 = vadd.f32 %v16431_v36, %v8853_v33 }
 0x7ea   : > { %v16677_v25 = vadd.f32 %v8720_v7, %v8634_v38  ;;  %v8642_v7 = vadd.f32 %v16305_v61, %v16612_v45  ;;  %v8904_v61 = vadd.f32 %v16431_v36, %v8848_v13  ;;  %v17541_v45 = vld [vmem:[#allocation71_spill] sm:$0xff] }
 0x7eb   : > { %v8728_v35 = vpop.permute.xlu1 %8727  ;;  %v8536_v46 = vpop.permute.xlu0 %8535 }
 0x7ec   : > { %v8850_v48 = vadd.f32 %v16621_v20, %v8642_v7  ;;  %v8952_v13 = vmax.f32 %v8904_v61, 0.0 }
 0x7ef   : > { %v8520_v6 = vpop.permute.xlu1 %8519  ;;  %v16684_v11 = vpop.permute.xlu0 %8545 }
 0x7f0   : > { %v8638_v40 = vadd.f32 %v8520_v6, %v17540_v63  ;;  %v8906_v63 = vadd.f32 %v16431_v36, %v8850_v48 }
 0x7f2   : > { %v8846_v9 = vadd.f32 %v8728_v35, %v8638_v40  ;;  %v8643_v35 = vadd.f32 %v8530_v31, %v17541_v45 }
 0x7f3   : > { %v8734_v44 = vpop.permute.xlu1 %8733  ;;  %v16691_v38 = vpop.permute.xlu0 %8753 }
 0x7f4   : > { %v8902_v54 = vadd.f32 %v16431_v36, %v8846_v9  ;;  %v8954_v9 = vmax.f32 %v8906_v63, 0.0  ;;  %v8851_v31 = vadd.f32 %v16655_v41, %v8643_v35  ;;  %v9066_v41 = vrot.slane %v8952_v13, 4  ;;  %v17545_v35 = vld [vmem:[#allocation77_spill] sm:$0xff] }
 0x7f6   : > { %v8950_v28 = vmax.f32 %v8902_v54, 0.0  ;;  %v8907_v61 = vadd.f32 %v16431_v36, %v8851_v31  ;;  %v17546_v31 = vld [vmem:[#allocation84_spill] sm:$0xff] }
 0x7f7   : > { %v8526_v6 = vpop.permute.xlu1 %8525  ;;  %v16696_v58 = vpop.permute.xlu0 %8749 }
 0x7f8   : > { %v9062_v20 = vrot.slane %v8950_v28, 4  ;;  %v8641_v55 = vadd.f32 %v8526_v6, %v17542_v26  ;;  %v8648_v26 = vadd.f32 %v16337_v47, %v16661_v23 }
 0x7fa   : > { %v8849_v53 = vadd.f32 %v8734_v44, %v8641_v55  ;;  %v9063_v40 = vsel %vm4160_vm7, %v9061_v32, %v9062_v20  ;;  %v9065_v7 = vsel %vm4160_vm7, %v9062_v20, %v9064_v29  ;;  %v9069_v29 = vrot.slane %v8954_v9, 4 }
 0x7fb   : > { %v8740_v21 = vpop.permute.xlu1 %8739  ;;  %v8542_v48 = vpop.permute.xlu0 %8541  ;;  %v11503_v54 = vpack.c.bf16 %v9065_v7, %v9063_v40  ;;  %v8646_v44 = vadd.f32 %v8536_v46, %v17544_v50  ;;  %v8957_v55 = vmax.f32 %v8909_v60, 0.0  ;;  %v8856_v42 = vadd.f32 %v16667_v49, %v8648_v26 }
 0x7fc   : > { %v8905_v28 = vadd.f32 %v16431_v36, %v8849_v53  ;;  %v8955_v9 = vmax.f32 %v8907_v61, 0.0  ;;  %v8651_v50 = vadd.f32 %v16356_v37, %v16684_v11 }
 0x7fd   : > { %11505 = vmatprep.subr.msk.bf16.mxu0 %vm14889_vm9, %v11503_v54  ;;  %v8854_v46 = vadd.f32 %v8744_v0, %v8646_v44  ;;  %v9074_v47 = vrot.slane %v8957_v55, 4  ;;  %v8912_v23 = vadd.f32 %v16431_v36, %v8856_v42  ;;  %v17548_v55 = vld [vmem:[#allocation82_spill] sm:$0xff] }
 0x7fe   : > { %v8953_v1 = vmax.f32 %v8905_v28, 0.0  ;;  %11508 = vmatpush3.bf16.xpose.msk.msra.mxu0 %vm14889_vm9, %v11506_v57  ;;  %v9071_v13 = vrot.slane %v8955_v9, 4  ;;  %v8649_v28 = vadd.f32 %v8542_v48, %v17546_v31 }
 0x7ff   : > { %v8532_v32 = vpop.permute.xlu1 %8531  ;;  %v8552_v63 = vpop.permute.xlu0 %8551  ;;  %v8910_v49 = vadd.f32 %v16431_v36, %v8854_v46  ;;  %v8960_v44 = vmax.f32 %v8912_v23, 0.0 }
 0x800   : > { %v9067_v45 = vrot.slane %v8953_v1, 4  ;;  %v8644_v20 = vadd.f32 %v8532_v32, %v17545_v35  ;;  %v8857_v48 = vadd.f32 %v16696_v58, %v8649_v28 }
 0x801   : > { %v8958_v32 = vmax.f32 %v8910_v49, 0.0  ;;  %v9079_v11 = vrot.slane %v8960_v44, 4 }
 0x802   : > { %v8852_v17 = vadd.f32 %v8740_v21, %v8644_v20  ;;  %v9068_v51 = vsel %vm4160_vm7, %v9066_v41, %v9067_v45  ;;  %v9070_v57 = vsel %vm4160_vm7, %v9067_v45, %v9069_v29  ;;  %v17547_v29 = vld [vmem:[#allocation79_spill] sm:$0xff]  ;;  %v8859_v41 = vadd.f32 %v16691_v38, %v8651_v50 }
 0x803   : > { %v8746_v53 = vpop.permute.xlu1 %8745  ;;  %v8760_v40 = vpop.permute.xlu0 %8759  ;;  %v11509_v7 = vpack.c.bf16 %v9070_v57, %v9068_v51  ;;  %v9076_v26 = vrot.slane %v8958_v32, 4  ;;  %v8913_v58 = vadd.f32 %v16431_v36, %v8857_v48  ;;  %v17551_v48 = vpack.c.bf16 %v16604_v62, %v16624_v10 }
 0x804   : > { %v8908_v33 = vadd.f32 %v16431_v36, %v8852_v17  ;;  %v8915_v38 = vadd.f32 %v16431_v36, %v8859_v41 }
 0x805   : > { %11511 = vmatprep.subr.msk.bf16.mxu0 %vm14889_vm9, %v11509_v7  ;;  %v8961_v23 = vmax.f32 %v8913_v58, 0.0 }
 0x806   : > { %v8956_v54 = vmax.f32 %v8908_v33, 0.0  ;;  %11514 = vmatpush3.bf16.xpose.msk.msra.mxu0 %vm14889_vm9, %v11512_v2 }
 0x807   : > { %v8538_v0 = vpop.permute.xlu1 %8537  ;;  %v8756_v21 = vpop.permute.xlu0 %8755  ;;  %v9081_v28 = vrot.slane %v8961_v23, 4 }
 0x808   : > { %v9072_v1 = vrot.slane %v8956_v54, 4  ;;  %v8647_v60 = vadd.f32 %v8538_v0, %v17547_v29 }
 0x80a   : > { %v8855_v56 = vadd.f32 %v8746_v53, %v8647_v60  ;;  %v9073_v12 = vsel %vm4160_vm7, %v9071_v13, %v9072_v1  ;;  %v9075_v2 = vsel %vm4160_vm7, %v9072_v1, %v9074_v47  ;;  %v8654_v53 = vadd.f32 %v16376_v14, %v8552_v63 }
 0x80b   : > { %v8752_v61 = vpop.permute.xlu1 %8751  ;;  %v8548_v45 = vpop.permute.xlu0 %8547  ;;  %v11515_v35 = vpack.c.bf16 %v9075_v2, %v9073_v12  ;;  %v17549_v14 = vpack.c.bf16 %v16561_v27, %v16589_v16 }
 0x80c   : > { %v8911_v20 = vadd.f32 %v16431_v36, %v8855_v56  ;;  %v8652_v42 = vadd.f32 %v8548_v45, %v17548_v55  ;;  %v8862_v9 = vadd.f32 %v8760_v40, %v8654_v53  ;;  %v17550_v45 = vld [vmem:[#allocation90_spill] sm:$0xff] }
 0x80d   : > { %11517 = vmatprep.subr.msk.bf16.mxu0 %vm14889_vm9, %v11515_v35 }
 0x80e   : > { %v8959_v37 = vmax.f32 %v8911_v20, 0.0  ;;  %11520 = vmatpush3.bf16.xpose.msk.msra.mxu0 %vm14889_vm9, %v11518_v43  ;;  %v8963_v43 = vmax.f32 %v8915_v38, 0.0  ;;  %v8860_v49 = vadd.f32 %v8756_v21, %v8652_v42  ;;  %v8918_v40 = vadd.f32 %v16431_v36, %v8862_v9 }
 0x80f   : > { %v8544_v17 = vpop.permute.xlu1 %8543  ;;  %v8558_v51 = vpop.permute.xlu0 %8557 }
 0x810   : > { %v9077_v57 = vrot.slane %v8959_v37, 4  ;;  %v8650_v46 = vadd.f32 %v8544_v17, %v16364_v52  ;;  %v9084_v63 = vrot.slane %v8963_v43, 4  ;;  %v8916_v21 = vadd.f32 %v16431_v36, %v8860_v49 }
 0x811   : > { %v8657_v60 = vadd.f32 %v16401_v24, %v8558_v51  ;;  %v8966_v16 = vmax.f32 %v8918_v40, 0.0 }
 0x812   : > { %v8858_v7 = vadd.f32 %v8752_v61, %v8650_v46  ;;  %v9078_v59 = vsel %vm4160_vm7, %v9076_v26, %v9077_v57  ;;  %v9080_v3 = vsel %vm4160_vm7, %v9077_v57, %v9079_v11  ;;  %v8964_v41 = vmax.f32 %v8916_v21, 0.0 }
 0x813   : > { %v8758_v33 = vpop.permute.xlu1 %8757  ;;  %v8766_v54 = vpop.permute.xlu0 %8765  ;;  %v11521_v47 = vpack.c.bf16 %v9080_v3, %v9078_v59  ;;  %v9089_v20 = vrot.slane %v8966_v16, 4 }
 0x814   : > { %v8914_v0 = vadd.f32 %v16431_v36, %v8858_v7  ;;  %v8865_v12 = vadd.f32 %v8766_v54, %v8657_v60  ;;  %v9086_v38 = vrot.slane %v8964_v41, 4 }
 0x815   : > { %11523 = vmatprep.subr.msk.bf16.mxu0 %vm14889_vm9, %v11521_v47 }
 0x816   : > { %v8962_v52 = vmax.f32 %v8914_v0, 0.0  ;;  %11526 = vmatpush3.bf16.xpose.msk.msra.mxu0 %vm14889_vm9, %v17549_v14  ;;  %v8921_v37 = vadd.f32 %v16431_v36, %v8865_v12 }
 0x817   : > { %v8550_v13 = vpop.permute.xlu1 %8549  ;;  %v8762_v31 = vpop.permute.xlu0 %8761 }
 0x818   : > { %v9082_v1 = vrot.slane %v8962_v52, 4  ;;  %v8653_v29 = vadd.f32 %v8550_v13, %v16386_v22  ;;  %v8969_v10 = vmax.f32 %v8921_v37, 0.0 }
 0x81a   : > { %v8861_v50 = vadd.f32 %v8758_v33, %v8653_v29  ;;  %v9083_v56 = vsel %vm4160_vm7, %v9081_v28, %v9082_v1  ;;  %v9085_v27 = vsel %vm4160_vm7, %v9082_v1, %v9084_v63  ;;  %v17553_v28 = vld [vmem:[#allocation97_spill] sm:$0xff]  ;;  %v8898_v29 = vadd.f32 %v16431_v36, %v16677_v25 }
 0x81b   : > { %v8764_v2 = vpop.permute.xlu1 %8763  ;;  %v8554_v44 = vpop.permute.xlu0 %8553  ;;  %v11527_v32 = vpack.c.bf16 %v9085_v27, %v9083_v56  ;;  %v17554_v56 = vpack.c.bf16 %v16658_v30, %v16670_v4 }
 0x81c   : > { %v8917_v61 = vadd.f32 %v16431_v36, %v8861_v50  ;;  %v8655_v35 = vadd.f32 %v8554_v44, %v17550_v45 }
 0x81d   : > { %11529 = vmatprep.subr.msk.bf16.mxu0 %vm14889_vm9, %v11527_v32 }
 0x81e   : > { %v8965_v22 = vmax.f32 %v8917_v61, 0.0  ;;  %v8863_v24 = vadd.f32 %v8762_v31, %v8655_v35  ;;  %11532 = vmatpush3.bf16.xpose.msk.msra.mxu0 %vm14889_vm9, %v17551_v48 }
 0x81f   : > { %v8556_v11 = vpop.permute.xlu1 %8555  ;;  %v8564_v26 = vpop.permute.xlu0 %8563 }
 0x820   : > { %v9087_v17 = vrot.slane %v8965_v22, 4  ;;  %v8919_v51 = vadd.f32 %v16431_v36, %v8863_v24  ;;  %v8656_v58 = vadd.f32 %v8556_v11, %v16411_v18  ;;  %v8660_v55 = vadd.f32 %v16426_v19, %v8564_v26 }
 0x821   : > { %v17552_v18 = vpack.c.bf16 %v16638_v5, %v16650_v8  ;;  %v9094_v19 = vrot.slane %v8969_v10, 4 }
 0x822   : > { %v8864_v57 = vadd.f32 %v8764_v2, %v8656_v58  ;;  %v9088_v42 = vsel %vm4160_vm7, %v9086_v38, %v9087_v17  ;;  %v9090_v62 = vsel %vm4160_vm7, %v9087_v17, %v9089_v20  ;;  %v8967_v59 = vmax.f32 %v8919_v51, 0.0 }
 0x823   : > { %v8770_v46 = vpop.permute.xlu1 %8769  ;;  %v8772_v53 = vpop.permute.xlu0 %8771  ;;  %v11533_v7 = vpack.c.bf16 %v9090_v62, %v9088_v42  ;;  %v8946_v2 = vmax.f32 %v8898_v29, 0.0 }
 0x824   : > { %v8920_v3 = vadd.f32 %v16431_v36, %v8864_v57  ;;  %v8868_v43 = vadd.f32 %v8772_v53, %v8660_v55  ;;  %v9091_v47 = vrot.slane %v8967_v59, 4 }
 0x825   : > { %11535 = vmatprep.subr.msk.bf16.mxu0 %vm14889_vm9, %v11533_v7  ;;  %v9056_v4 = vrot.slane %v8946_v2, 4 }
 0x826   : > { %v8968_v9 = vmax.f32 %v8920_v3, 0.0  ;;  %11538 = vmatpush3.bf16.xpose.msk.msra.mxu0 %vm14889_vm9, %v17552_v18  ;;  %v8924_v49 = vadd.f32 %v16431_v36, %v8868_v43 }
 0x827   : > { %v8768_v33 = vpop.permute.xlu0 %8767  ;;  %v8562_v54 = vpop.permute.xlu1 %8561 }
 0x828   : > { %v9092_v23 = vrot.slane %v8968_v9, 4  ;;  %v8659_v0 = vadd.f32 %v8562_v54, %v16444_v15  ;;  %v8972_v8 = vmax.f32 %v8924_v49, 0.0 }
 0x82a   : > { %v8867_v52 = vadd.f32 %v8770_v46, %v8659_v0  ;;  %v9093_v14 = vsel %vm4160_vm7, %v9091_v47, %v9092_v23  ;;  %v9095_v63 = vsel %vm4160_vm7, %v9092_v23, %v9094_v19  ;;  %v9099_v16 = vrot.slane %v8972_v8, 4 }
 0x82b   : > { %v8560_v40 = vpop.permute.xlu0 %8559  ;;  %v8724_v13 = vpop.permute.xlu1 %8723  ;;  %v11539_v5 = vpack.c.bf16 %v9095_v63, %v9093_v14 }
 0x82c   : > { %v8923_v31 = vadd.f32 %v16431_v36, %v8867_v52  ;;  %v8658_v21 = vadd.f32 %v8560_v40, %v17553_v28  ;;  %v8844_v1 = vadd.f32 %v8724_v13, %v16665_v39 }
 0x82d   : > { %11541 = vmatprep.subr.msk.bf16.mxu0 %vm14889_vm9, %v11539_v5 }
 0x82e   : > { %v8971_v15 = vmax.f32 %v8923_v31, 0.0  ;;  %v8866_v60 = vadd.f32 %v8768_v33, %v8658_v21  ;;  %v8900_v50 = vadd.f32 %v16431_v36, %v8844_v1  ;;  %11544 = vmatpush3.bf16.xpose.msk.msra.mxu0 %vm14889_vm9, %v17554_v56 }
 0x82f   : > { %v8722_v27 = vpop.permute.xlu0 %8721 }
 0x830   : > { %v9097_v12 = vrot.slane %v8971_v15, 4  ;;  %v8922_v39 = vadd.f32 %v16431_v36, %v8866_v60  ;;  %v8843_v25 = vadd.f32 %v8722_v27, %v16565_v34  ;;  %v8948_v32 = vmax.f32 %v8900_v50, 0.0 }
 0x832   : > { %v8970_v44 = vmax.f32 %v8922_v39, 0.0  ;;  %v8899_v41 = vadd.f32 %v16431_v36, %v8843_v25  ;;  %v9100_v61 = vsel %vm4160_vm7, %v9097_v12, %v9099_v16  ;;  %v9059_v22 = vrot.slane %v8948_v32, 4  ;;  %v9104_v36 = vpop.permute.xlu1 %9103 }
 0x833   : > { %v9102_v45 = vpop.permute.xlu0 %9101 }
 0x834   : > { %v9096_v35 = vrot.slane %v8970_v44, 4  ;;  %v8947_v30 = vmax.f32 %v8899_v41, 0.0  ;;  %10539 = vmatprep.mubr.msk.f32.mxu0 %vm4672_vm6, %v9102_v45 }
 0x836   : > { %v9057_v24 = vrot.slane %v8947_v30, 4  ;;  %v9098_v48 = vsel %vm4160_vm7, %v9096_v35, %v9097_v12 }
 0x837   : > { %v11545_v20 = vpack.c.bf16 %v9100_v61, %v9098_v48 }
 0x838   : > { %v9058_v34 = vsel %vm4160_vm7, %v9056_v4, %v9057_v24  ;;  %v9060_v37 = vsel %vm4160_vm7, %v9057_v24, %v9059_v22 }
 0x839   : > { %v11548_v11 = vpack.c.bf16 %v9060_v37, %v9058_v34  ;;  %11547 = vmatprep.subr.msk.bf16.mxu0 %vm14889_vm9, %v11545_v20 }
 0x83b   : > { %11550 = vmatpush3.bf16.xpose.msk.msra.mxu0 %vm14889_vm9, %v11548_v11 }
 0x840   : > { %v9264_v6 = vpop.permute.xlu1 %9263 }
 0x842   : > { %10540 = vmatmul.mubr.msk.f32.vlgmr.msra.gmra.mrb[64].mxu0 %vm4672_vm6, %v9102_v45 }
 0x843   : > { %10541 = vmatprep.mubr.msk.f32.mxu0 %vm4672_vm6, %v9104_v36 }
 0x844   : > { %v9259_v26 = vpop.permute.xlu0 %9258 }
 0x846   : > { %10542 = vmatmul.mubr.msk.f32.gmra.mrb[66].mxu0 %vm4672_vm6, %v9104_v36 }
 0x915   : > { %v9239_v38 = vpop.f32.mrb[64].mxu0 }
 0x916   : > { %v9266_v17 = vadd.f32 %v9259_v26, %v9239_v38  ;;  %v9241_v51 = vpop.f32.mrb[65].mxu0 }
 0x917   : > { %v9267_v58 = vadd.f32 %v9259_v26, %v9241_v51 }
 0x918   : > { %9270 = vst [vmem:[%s217_s15] sm:$0xff] %v9266_v17 }
 0x919   : > { %9271 = vst [vmem:[%s217_s15 + $0x8] sm:$0xff] %v9267_v58  ;;  %v9245_v57 = vpop.f32.mrb[66].mxu0 }
 0x91a   : > { %v9268_v55 = vadd.f32 %v9264_v6, %v9245_v57  ;;  %v9247_v42 = vpop.f32.mrb[67].mxu0 }
 0x91b   : > { %v9269_v62 = vadd.f32 %v9264_v6, %v9247_v42 }
 0x91c   : > { %9272 = vst [vmem:[%s217_s15 + $0x10] sm:$0xff] %v9268_v55 }
 0x91d   : > { %9273 = vst [vmem:[%s217_s15 + $0x18] sm:$0xff] %v9269_v62 }
 0x91e   : > { %12256 = shalt.err (!%p12253_p3)
}
 0x91f   : > { %s12257_s13 = scalar_lea.hbm %s16833_s26, 512  ;;  %s12261_s11 = scalar_lea.hbm %s16881_s5, 1024 }
 0x920   : > { %p12258_p4 = scmp.ne.s32.totalorder %s16833_s26, %s12257_s13  ;;  %p12262_p9 = scmp.lt.u32.totalorder %s16833_s26, %s16881_s5 }
 0x921   : > { %p12263_p10 = scmp.lt.u32.totalorder %s12261_s11, %s12257_s13  ;;  %p12265_p12 = scmp.lt.u32.totalorder %s12257_s13, %s16833_s26 }
 0x922   : > { %p12259_p7 = pnand %p12258_p4, %p12382_p5 }
 0x923   : > { %p12264_p11 = por %p12263_p10, %p12262_p9 }
 0x924   : > { %p12260_p8 = pneg %p12259_p7 }
 0x925   : > { %p12266_p13 = por %p12265_p12, %p12264_p11 }
 0x927   : > { %p12267_p0 = pnand %p12266_p13, %p12260_p8 }
 0x929   : > { %12270 = shalt.err (!%p12267_p0)
}
 0x92a   : > { %s12312_s15 = smov 256   ;;  %s12313_s17 = smov 16  }
 0x92b   : > { %12079 = dma.vmem_to_hbm [thread:$0]  (%p12382_p5), %s16828_s16, 512, %s16833_s26, %s16835_s30, %s12312_s15, %s12312_s15, %s12313_s17  }
 0x92c PF: > { %p12085_p1 = scmp.ge.s32.totalorder %s12305_s21, 2  ;;  %s9303_s23 = sand.u32 1, %s12293_s18  }
 0x92d   : > { %s9304_s25 = scalar_lea.sflag [#allocation4], %s9303_s23 }
 0x92e   : > { %p12082_p2 = pnand %p12085_p1, %p12386_p6 }
 0x930   : > { %12288 = dma.done.wait (!%p12082_p2), %s9304_s25, 512  }
 0x931   : > { %12290 = vsyncadd (!%p12082_p2), %s9304_s25, 4294966784  ;;  %p15_p3 = scmp.ge.s32.totalorder %s12369_s24, 4   ;;  %s17555_s18 = smov %s12297_s19 }
 0x932   : > { %s17556_s19 = smov %s12301_s20  ;;  %s17557_s20 = smov %s12380_s27 }
 0x933   : > { %s17558_s21 = smov %s12369_s24  ;;  %17 = sbr.rel (!%p15_p3) target bundleno = 3 (0x3), region = 98 }
 0x93a   :  { %9309 = vsyncpa [#allocation4], 1 }
 0x93b   :  { %9311 = vsyncpa [#allocation4 + $0x1], 1 }

</bundles_post_ra>
